<compile_context>
chip_gen: v6e
topology: v6e:2x2x1
jax: 0.10.0
libtpu: 0.0.40
codegen_flags: <defaults>
</compile_context>

<pallas_src>
import functools

import jax
import jax.numpy as jnp
from jax import lax
from jax.experimental import pallas as pl
from jax.experimental.pallas import tpu as pltpu


def upnet_kernel(x_ref, w0_ref, b0_ref, wmid_ref, bmid_ref, wlast_ref,
                 blast_ref, o_ref, pad0_ref, pad_ref, *, H, W, C, n_mid):
    """Fused UpNet forward for one batch element.

    x_ref    : (1, H, W, 1)        input image tile
    w0_ref   : (9, C)              layer-0 weights (tap-major), BN scale folded in
    b0_ref   : (1, C)              layer-0 fused bias (conv bias + BN shift)
    wmid_ref : (n_mid*9, C, C)     middle weights, [layer*9 + tap] -> (Cin, Cout)
    bmid_ref : (n_mid, C)          middle fused biases
    wlast_ref: (9, C)              last-layer weights (tap-major, Cout = 1)
    blast_ref: (1,)  SMEM          last-layer bias scalar
    o_ref    : (1, H, W)           output tile
    pad0_ref : (H+2, W+2, 1) VMEM  zero-bordered single-channel input (halo)
    pad_ref  : (H+2, W+2, C) VMEM  zero-bordered resident activation (halo)
    """
    f32 = jnp.float32
    HW = H * W

    # ---- layer 0: Conv2d(1->C) (+ folded BatchRenorm) + ReLU ----------------
    # Cin == 1 -> 9 VPU broadcast multiply-adds instead of K=1 MXU matmuls.
    pad0_ref[...] = jnp.zeros_like(pad0_ref)
    pad0_ref[1:H + 1, 1:W + 1, :] = x_ref[0]
    acc0 = jnp.zeros((H, W, C), f32)
    for ky in range(3):
        for kx in range(3):
            t = ky * 3 + kx
            acc0 = acc0 + pad0_ref[ky:ky + H, kx:kx + W, :] * w0_ref[t]
    acc0 = jnp.maximum(acc0 + b0_ref[...], 0.0)

    # Stash into the zero-bordered activation buffer (border = conv halo).
    pad_ref[...] = jnp.zeros_like(pad_ref)
    pad_ref[1:H + 1, 1:W + 1, :] = acc0

    # ---- 15 middle layers: Conv2d(C->C) (+ folded BatchRenorm) + ReLU -------
    def mid_layer(l, carry):
        acc = jnp.zeros((HW, C), f32)
        for ky in range(3):
            for kx in range(3):
                t = ky * 3 + kx
                tap = pad_ref[ky:ky + H, kx:kx + W, :].reshape(HW, C)
                acc = acc + jnp.dot(tap, wmid_ref[l * 9 + t],
                                    preferred_element_type=f32)
        acc = jnp.maximum(acc + bmid_ref[l][None, :], 0.0)
        pad_ref[1:H + 1, 1:W + 1, :] = acc.reshape(H, W, C)
        return carry

    lax.fori_loop(0, n_mid, mid_layer, 0)

    # ---- last layer: Conv2d(C->1), no BN / ReLU ------------------------------
    # Cout == 1 -> VPU multiplies + lane reduction (avoid a 1-lane MXU operand).
    accL = jnp.zeros((H, W, C), f32)
    for ky in range(3):
        for kx in range(3):
            t = ky * 3 + kx
            accL = accL + pad_ref[ky:ky + H, kx:kx + W, :] * wlast_ref[t]
    o_ref[0] = jnp.sum(accL, axis=-1) + blast_ref[0]


def upnet_forward(x_nchw, params):
    """x_nchw: (N, 1, H, W) float32 -> (N, 1, H, W) float32."""
    w0, b0, wmid, bmid, wlast, blast = params
    N, Cin, H, W = x_nchw.shape
    assert Cin == 1
    C = b0.shape[-1]
    n_mid = bmid.shape[0]

    x = jnp.transpose(x_nchw.astype(jnp.float32), (0, 2, 3, 1))  # NHWC (N,H,W,1)

    kernel = functools.partial(upnet_kernel, H=H, W=W, C=C, n_mid=n_mid)
    out = pl.pallas_call(
        kernel,
        out_shape=jax.ShapeDtypeStruct((N, H, W), jnp.float32),
        grid=(N,),
        in_specs=[
            pl.BlockSpec((1, H, W, 1), lambda n: (n, 0, 0, 0)),
            pl.BlockSpec((9, C), lambda n: (0, 0)),
            pl.BlockSpec((1, C), lambda n: (0, 0)),
            pl.BlockSpec((n_mid * 9, C, C), lambda n: (0, 0, 0)),
            pl.BlockSpec((n_mid, C), lambda n: (0, 0)),
            pl.BlockSpec((9, C), lambda n: (0, 0)),
            pl.BlockSpec(memory_space=pltpu.MemorySpace.SMEM),
        ],
        out_specs=pl.BlockSpec((1, H, W), lambda n: (n, 0, 0)),
        scratch_shapes=[
            pltpu.VMEM((H + 2, W + 2, 1), jnp.float32),
            pltpu.VMEM((H + 2, W + 2, C), jnp.float32),
        ],
        compiler_params=pltpu.CompilerParams(
            dimension_semantics=("parallel",),
            vmem_limit_bytes=32 * 1024 * 1024,
        ),
    )(x, w0, b0, wmid, bmid, wlast, blast)

    return out[:, None, :, :]  # back to NCHW (C = 1)


def init_params(key, C=64, n_mid=15):
    """Deterministic synthetic parameters matching UpNet.__init__ shapes.

    Eval-mode BatchRenorm is folded: scale -> conv weights, shift -> bias.
    Returns kernel-ready packed arrays (w0, b0, wmid, bmid, wlast, blast).
    """
    eps = 1e-5

    def conv_init(k, cin, cout):
        kw, kb = jax.random.split(k)
        std = (2.0 / (9.0 * cin)) ** 0.5
        w = std * jax.random.normal(kw, (3, 3, cin, cout), jnp.float32)
        b = 0.01 * jax.random.normal(kb, (cout,), jnp.float32)
        return w, b

    def bn_fold(k, w, b, cout):
        kg, kbeta, km, kv = jax.random.split(k, 4)
        gamma = 1.0 + 0.05 * jax.random.normal(kg, (cout,), jnp.float32)
        beta = 0.05 * jax.random.normal(kbeta, (cout,), jnp.float32)
        mean = 0.05 * jax.random.normal(km, (cout,), jnp.float32)
        var = 1.0 + 0.05 * jax.random.uniform(kv, (cout,), jnp.float32)
        inv = gamma / jnp.sqrt(var + eps)
        return w * inv, beta + (b - mean) * inv  # scale folded into weights

    keys = jax.random.split(key, 2 * (n_mid + 2))

    # layer 0: Conv(1->C) + BatchRenorm + ReLU
    w, b = conv_init(keys[0], 1, C)
    w, b = bn_fold(keys[1], w, b, C)
    w0 = w.reshape(9, C)
    b0 = b.reshape(1, C)

    # middle layers: 15 x [Conv(C->C) + BatchRenorm + ReLU]
    wm, bm = [], []
    for i in range(n_mid):
        w, b = conv_init(keys[2 + 2 * i], C, C)
        w, b = bn_fold(keys[3 + 2 * i], w, b, C)
        wm.append(w.reshape(9, C, C))
        bm.append(b)
    wmid = jnp.concatenate(wm, axis=0)  # (n_mid*9, C, C)
    bmid = jnp.stack(bm, axis=0)        # (n_mid, C)

    # last layer: Conv(C->1), no BN, no ReLU
    w, b = conv_init(keys[-1], C, 1)
    wlast = w.reshape(9, C)
    blast = b  # (1,)

    return w0, b0, wmid, bmid, wlast, blast


def upnet_reference(x_nchw, params):
    """Pure-JAX reference (lax.conv) on the same folded parameters."""
    w0, b0, wmid, bmid, wlast, blast = params
    C = b0.shape[-1]
    n_mid = bmid.shape[0]

    def conv(y, w):
        return lax.conv_general_dilated(
            y, w, window_strides=(1, 1), padding=((1, 1), (1, 1)),
            dimension_numbers=("NHWC", "HWIO", "NHWC"),
            precision=lax.Precision.HIGHEST)

    y = jnp.transpose(x_nchw.astype(jnp.float32), (0, 2, 3, 1))
    y = jnp.maximum(conv(y, w0.reshape(3, 3, 1, C)) + b0[0], 0.0)
    for l in range(n_mid):
        w = wmid[l * 9:(l + 1) * 9].reshape(3, 3, C, C)
        y = jnp.maximum(conv(y, w) + bmid[l], 0.0)
    y = conv(y, wlast.reshape(3, 3, C, 1)) + blast[0]
    return jnp.transpose(y, (0, 3, 1, 2))


if __name__ == "__main__":
    N, H, W = 2, 16, 16
    x = jax.random.normal(jax.random.PRNGKey(0), (N, 1, H, W), jnp.float32)
    params = init_params(jax.random.PRNGKey(1))

    out = jax.block_until_ready(upnet_forward(x, params))

    assert out.shape == (N, 1, H, W), out.shape
    assert bool(jnp.all(jnp.isfinite(out)))

    ref = upnet_reference(x, params)
    assert bool(jnp.allclose(out, ref, atol=3e-2, rtol=3e-2)), (
        float(jnp.max(jnp.abs(out - ref))))

    print("KERNEL_OK")
</pallas_src>

<mosaic_0001>
module attributes {stable_mosaic.version = 11 : i64} {
  func.func @upnet_kernel(%arg0: i32, %arg1: memref<1x16x16x1xf32, #tpu.memory_space<vmem>>, %arg2: memref<9x64xf32, #tpu.memory_space<vmem>>, %arg3: memref<1x64xf32, #tpu.memory_space<vmem>>, %arg4: memref<135x64x64xf32, #tpu.memory_space<vmem>>, %arg5: memref<15x64xf32, #tpu.memory_space<vmem>>, %arg6: memref<9x64xf32, #tpu.memory_space<vmem>>, %arg7: memref<1xf32, #tpu.memory_space<smem>>, %arg8: memref<1x16x16xf32, #tpu.memory_space<vmem>>, %arg9: memref<18x18x1xf32, #tpu.memory_space<vmem>>, %arg10: memref<18x18x64xf32, #tpu.memory_space<vmem>>) attributes {dimension_semantics = [#tpu.dimension_semantics<parallel>], iteration_bounds = array<i64: 2>, scalar_prefetch = 0 : i64, scratch_operands = 2 : i64, tpu.core_type = #tpu.core_type<tc>, window_params = [{transform_indices = @transform_0, window_bounds = array<i64: 1, 16, 16, 1>}, {pipeline_mode = #tpu.pipeline_mode<synchronous>, transform_indices = @transform_1, window_bounds = array<i64: 9, 64>}, {pipeline_mode = #tpu.pipeline_mode<synchronous>, transform_indices = @transform_2, window_bounds = array<i64: 1, 64>}, {pipeline_mode = #tpu.pipeline_mode<synchronous>, transform_indices = @transform_3, window_bounds = array<i64: 135, 64, 64>}, {pipeline_mode = #tpu.pipeline_mode<synchronous>, transform_indices = @transform_4, window_bounds = array<i64: 15, 64>}, {pipeline_mode = #tpu.pipeline_mode<synchronous>, transform_indices = @transform_5, window_bounds = array<i64: 9, 64>}, {transform_indices = @transform_6, window_bounds = array<i64: 1>}, {transform_indices = @transform_7, window_bounds = array<i64: 1, 16, 16>}]} {
    %cst = arith.constant 0.000000e+00 : f32
    %0 = vector.broadcast %cst : f32 to vector<18x18x1xf32>
    %c0 = arith.constant 0 : index
    %c0_0 = arith.constant 0 : index
    %c0_1 = arith.constant 0 : index
    %1 = vector.load %arg9[%c0, %c0_0, %c0_1] : memref<18x18x1xf32, #tpu.memory_space<vmem>>, vector<18x18x1xf32>
    tpu.vector_store %arg9[%c0, %c0_0, %c0_1], %0 {strides = array<i32>} : memref<18x18x1xf32, #tpu.memory_space<vmem>>, vector<18x18x1xf32>,
    %c0_2 = arith.constant 0 : index
    %c0_3 = arith.constant 0 : index
    %c0_4 = arith.constant 0 : index
    %c0_5 = arith.constant 0 : index
    %2 = vector.load %arg1[%c0_2, %c0_3, %c0_4, %c0_5] : memref<1x16x16x1xf32, #tpu.memory_space<vmem>>, vector<1x16x16x1xf32>
    %3 = vector.shape_cast %2 : vector<1x16x16x1xf32> to vector<16x16x1xf32>
    %c1 = arith.constant 1 : index
    %c1_6 = arith.constant 1 : index
    %c0_7 = arith.constant 0 : index
    %4 = vector.load %arg9[%c1, %c1_6, %c0_7] : memref<18x18x1xf32, #tpu.memory_space<vmem>>, vector<16x16x1xf32>
    tpu.vector_store %arg9[%c1, %c1_6, %c0_7], %3 {strides = array<i32>} : memref<18x18x1xf32, #tpu.memory_space<vmem>>, vector<16x16x1xf32>,
    %cst_8 = arith.constant 0.000000e+00 : f32
    %5 = vector.broadcast %cst_8 : f32 to vector<16x16x64xf32>
    %c0_9 = arith.constant 0 : index
    %c0_10 = arith.constant 0 : index
    %c0_11 = arith.constant 0 : index
    %6 = vector.load %arg9[%c0_9, %c0_10, %c0_11] : memref<18x18x1xf32, #tpu.memory_space<vmem>>, vector<16x16x1xf32>
    %c0_12 = arith.constant 0 : index
    %c0_13 = arith.constant 0 : index
    %7 = vector.load %arg2[%c0_12, %c0_13] : memref<9x64xf32, #tpu.memory_space<vmem>>, vector<1x64xf32>
    %8 = vector.shape_cast %7 : vector<1x64xf32> to vector<64xf32>
    %9 = vector.shape_cast %8 : vector<64xf32> to vector<1x1x64xf32>
    %10 = vector.broadcast %6 : vector<16x16x1xf32> to vector<16x16x64xf32>
    %11 = vector.broadcast %9 : vector<1x1x64xf32> to vector<16x16x64xf32>
    %12 = arith.mulf %10, %11 : vector<16x16x64xf32>
    %13 = arith.addf %5, %12 : vector<16x16x64xf32>
    %c0_14 = arith.constant 0 : index
    %c1_15 = arith.constant 1 : index
    %c0_16 = arith.constant 0 : index
    %14 = vector.load %arg9[%c0_14, %c1_15, %c0_16] : memref<18x18x1xf32, #tpu.memory_space<vmem>>, vector<16x16x1xf32>
    %c1_17 = arith.constant 1 : index
    %c0_18 = arith.constant 0 : index
    %15 = vector.load %arg2[%c1_17, %c0_18] : memref<9x64xf32, #tpu.memory_space<vmem>>, vector<1x64xf32>
    %16 = vector.shape_cast %15 : vector<1x64xf32> to vector<64xf32>
    %17 = vector.shape_cast %16 : vector<64xf32> to vector<1x1x64xf32>
    %18 = vector.broadcast %14 : vector<16x16x1xf32> to vector<16x16x64xf32>
    %19 = vector.broadcast %17 : vector<1x1x64xf32> to vector<16x16x64xf32>
    %20 = arith.mulf %18, %19 : vector<16x16x64xf32>
    %21 = arith.addf %13, %20 : vector<16x16x64xf32>
    %c0_19 = arith.constant 0 : index
    %c2 = arith.constant 2 : index
    %c0_20 = arith.constant 0 : index
    %22 = vector.load %arg9[%c0_19, %c2, %c0_20] : memref<18x18x1xf32, #tpu.memory_space<vmem>>, vector<16x16x1xf32>
    %c2_21 = arith.constant 2 : index
    %c0_22 = arith.constant 0 : index
    %23 = vector.load %arg2[%c2_21, %c0_22] : memref<9x64xf32, #tpu.memory_space<vmem>>, vector<1x64xf32>
    %24 = vector.shape_cast %23 : vector<1x64xf32> to vector<64xf32>
    %25 = vector.shape_cast %24 : vector<64xf32> to vector<1x1x64xf32>
    %26 = vector.broadcast %22 : vector<16x16x1xf32> to vector<16x16x64xf32>
    %27 = vector.broadcast %25 : vector<1x1x64xf32> to vector<16x16x64xf32>
    %28 = arith.mulf %26, %27 : vector<16x16x64xf32>
    %29 = arith.addf %21, %28 : vector<16x16x64xf32>
    %c1_23 = arith.constant 1 : index
    %c0_24 = arith.constant 0 : index
    %c0_25 = arith.constant 0 : index
    %30 = vector.load %arg9[%c1_23, %c0_24, %c0_25] : memref<18x18x1xf32, #tpu.memory_space<vmem>>, vector<16x16x1xf32>
    %c3 = arith.constant 3 : index
    %c0_26 = arith.constant 0 : index
    %31 = vector.load %arg2[%c3, %c0_26] : memref<9x64xf32, #tpu.memory_space<vmem>>, vector<1x64xf32>
    %32 = vector.shape_cast %31 : vector<1x64xf32> to vector<64xf32>
    %33 = vector.shape_cast %32 : vector<64xf32> to vector<1x1x64xf32>
    %34 = vector.broadcast %30 : vector<16x16x1xf32> to vector<16x16x64xf32>
    %35 = vector.broadcast %33 : vector<1x1x64xf32> to vector<16x16x64xf32>
    %36 = arith.mulf %34, %35 : vector<16x16x64xf32>
    %37 = arith.addf %29, %36 : vector<16x16x64xf32>
    %c1_27 = arith.constant 1 : index
    %c1_28 = arith.constant 1 : index
    %c0_29 = arith.constant 0 : index
    %38 = vector.load %arg9[%c1_27, %c1_28, %c0_29] : memref<18x18x1xf32, #tpu.memory_space<vmem>>, vector<16x16x1xf32>
    %c4 = arith.constant 4 : index
    %c0_30 = arith.constant 0 : index
    %39 = vector.load %arg2[%c4, %c0_30] : memref<9x64xf32, #tpu.memory_space<vmem>>, vector<1x64xf32>
    %40 = vector.shape_cast %39 : vector<1x64xf32> to vector<64xf32>
    %41 = vector.shape_cast %40 : vector<64xf32> to vector<1x1x64xf32>
    %42 = vector.broadcast %38 : vector<16x16x1xf32> to vector<16x16x64xf32>
    %43 = vector.broadcast %41 : vector<1x1x64xf32> to vector<16x16x64xf32>
    %44 = arith.mulf %42, %43 : vector<16x16x64xf32>
    %45 = arith.addf %37, %44 : vector<16x16x64xf32>
    %c1_31 = arith.constant 1 : index
    %c2_32 = arith.constant 2 : index
    %c0_33 = arith.constant 0 : index
    %46 = vector.load %arg9[%c1_31, %c2_32, %c0_33] : memref<18x18x1xf32, #tpu.memory_space<vmem>>, vector<16x16x1xf32>
    %c5 = arith.constant 5 : index
    %c0_34 = arith.constant 0 : index
    %47 = vector.load %arg2[%c5, %c0_34] : memref<9x64xf32, #tpu.memory_space<vmem>>, vector<1x64xf32>
    %48 = vector.shape_cast %47 : vector<1x64xf32> to vector<64xf32>
    %49 = vector.shape_cast %48 : vector<64xf32> to vector<1x1x64xf32>
    %50 = vector.broadcast %46 : vector<16x16x1xf32> to vector<16x16x64xf32>
    %51 = vector.broadcast %49 : vector<1x1x64xf32> to vector<16x16x64xf32>
    %52 = arith.mulf %50, %51 : vector<16x16x64xf32>
    %53 = arith.addf %45, %52 : vector<16x16x64xf32>
    %c2_35 = arith.constant 2 : index
    %c0_36 = arith.constant 0 : index
    %c0_37 = arith.constant 0 : index
    %54 = vector.load %arg9[%c2_35, %c0_36, %c0_37] : memref<18x18x1xf32, #tpu.memory_space<vmem>>, vector<16x16x1xf32>
    %c6 = arith.constant 6 : index
    %c0_38 = arith.constant 0 : index
    %55 = vector.load %arg2[%c6, %c0_38] : memref<9x64xf32, #tpu.memory_space<vmem>>, vector<1x64xf32>
    %56 = vector.shape_cast %55 : vector<1x64xf32> to vector<64xf32>
    %57 = vector.shape_cast %56 : vector<64xf32> to vector<1x1x64xf32>
    %58 = vector.broadcast %54 : vector<16x16x1xf32> to vector<16x16x64xf32>
    %59 = vector.broadcast %57 : vector<1x1x64xf32> to vector<16x16x64xf32>
    %60 = arith.mulf %58, %59 : vector<16x16x64xf32>
    %61 = arith.addf %53, %60 : vector<16x16x64xf32>
    %c2_39 = arith.constant 2 : index
    %c1_40 = arith.constant 1 : index
    %c0_41 = arith.constant 0 : index
    %62 = vector.load %arg9[%c2_39, %c1_40, %c0_41] : memref<18x18x1xf32, #tpu.memory_space<vmem>>, vector<16x16x1xf32>
    %c7 = arith.constant 7 : index
    %c0_42 = arith.constant 0 : index
    %63 = vector.load %arg2[%c7, %c0_42] : memref<9x64xf32, #tpu.memory_space<vmem>>, vector<1x64xf32>
    %64 = vector.shape_cast %63 : vector<1x64xf32> to vector<64xf32>
    %65 = vector.shape_cast %64 : vector<64xf32> to vector<1x1x64xf32>
    %66 = vector.broadcast %62 : vector<16x16x1xf32> to vector<16x16x64xf32>
    %67 = vector.broadcast %65 : vector<1x1x64xf32> to vector<16x16x64xf32>
    %68 = arith.mulf %66, %67 : vector<16x16x64xf32>
    %69 = arith.addf %61, %68 : vector<16x16x64xf32>
    %c2_43 = arith.constant 2 : index
    %c2_44 = arith.constant 2 : index
    %c0_45 = arith.constant 0 : index
    %70 = vector.load %arg9[%c2_43, %c2_44, %c0_45] : memref<18x18x1xf32, #tpu.memory_space<vmem>>, vector<16x16x1xf32>
    %c8 = arith.constant 8 : index
    %c0_46 = arith.constant 0 : index
    %71 = vector.load %arg2[%c8, %c0_46] : memref<9x64xf32, #tpu.memory_space<vmem>>, vector<1x64xf32>
    %72 = vector.shape_cast %71 : vector<1x64xf32> to vector<64xf32>
    %73 = vector.shape_cast %72 : vector<64xf32> to vector<1x1x64xf32>
    %74 = vector.broadcast %70 : vector<16x16x1xf32> to vector<16x16x64xf32>
    %75 = vector.broadcast %73 : vector<1x1x64xf32> to vector<16x16x64xf32>
    %76 = arith.mulf %74, %75 : vector<16x16x64xf32>
    %77 = arith.addf %69, %76 : vector<16x16x64xf32>
    %c0_47 = arith.constant 0 : index
    %c0_48 = arith.constant 0 : index
    %78 = vector.load %arg3[%c0_47, %c0_48] : memref<1x64xf32, #tpu.memory_space<vmem>>, vector<1x64xf32>
    %79 = vector.shape_cast %78 : vector<1x64xf32> to vector<1x1x64xf32>
    %80 = vector.broadcast %79 : vector<1x1x64xf32> to vector<16x16x64xf32>
    %81 = arith.addf %77, %80 : vector<16x16x64xf32>
    %cst_49 = arith.constant 0.000000e+00 : f32
    %82 = vector.broadcast %cst_49 : f32 to vector<16x16x64xf32>
    %83 = arith.maximumf %81, %82 : vector<16x16x64xf32>
    %cst_50 = arith.constant 0.000000e+00 : f32
    %84 = vector.broadcast %cst_50 : f32 to vector<18x18x64xf32>
    %c0_51 = arith.constant 0 : index
    %c0_52 = arith.constant 0 : index
    %c0_53 = arith.constant 0 : index
    %85 = vector.load %arg10[%c0_51, %c0_52, %c0_53] : memref<18x18x64xf32, #tpu.memory_space<vmem>>, vector<18x18x64xf32>
    tpu.vector_store %arg10[%c0_51, %c0_52, %c0_53], %84 {strides = array<i32>} : memref<18x18x64xf32, #tpu.memory_space<vmem>>, vector<18x18x64xf32>,
    %c1_54 = arith.constant 1 : index
    %c1_55 = arith.constant 1 : index
    %c0_56 = arith.constant 0 : index
    %86 = vector.load %arg10[%c1_54, %c1_55, %c0_56] : memref<18x18x64xf32, #tpu.memory_space<vmem>>, vector<16x16x64xf32>
    tpu.vector_store %arg10[%c1_54, %c1_55, %c0_56], %83 {strides = array<i32>} : memref<18x18x64xf32, #tpu.memory_space<vmem>>, vector<16x16x64xf32>,
    %c0_i32 = arith.constant 0 : i32
    %c15_i32 = arith.constant 15 : i32
    %87 = arith.addi %c0_i32, %c15_i32 : i32
    %c1_i32 = arith.constant 1 : i32
    scf.for %arg11 = %c0_i32 to %87 step %c1_i32  : i32 {
      %cst_109 = arith.constant 0.000000e+00 : f32
      %159 = vector.broadcast %cst_109 : f32 to vector<256x64xf32>
      %c0_110 = arith.constant 0 : index
      %c0_111 = arith.constant 0 : index
      %c0_112 = arith.constant 0 : index
      %160 = vector.load %arg10[%c0_110, %c0_111, %c0_112] : memref<18x18x64xf32, #tpu.memory_space<vmem>>, vector<16x16x64xf32>
      %161 = vector.shape_cast %160 : vector<16x16x64xf32> to vector<256x64xf32>
      %c9_i32 = arith.constant 9 : i32
      %162 = arith.muli %arg11, %c9_i32 : i32
      %c0_i32_113 = arith.constant 0 : i32
      %163 = arith.addi %162, %c0_i32_113 : i32
      %164 = arith.index_cast %163 : i32 to index
      %c0_114 = arith.constant 0 : index
      %c0_115 = arith.constant 0 : index
      %165 = vector.load %arg4[%164, %c0_114, %c0_115] : memref<135x64x64xf32, #tpu.memory_space<vmem>>, vector<1x64x64xf32>
      %166 = vector.shape_cast %165 : vector<1x64x64xf32> to vector<64x64xf32>
      %cst_116 = arith.constant dense<0.000000e+00> : vector<256x64xf32>
      %167 = tpu.matmul %161, %166, %cst_116 {dimension_numbers = #tpu.dot_dimension_numbers<[1], [0], [0], [1], [0, 0, 1, 1], [], []>} : vector<256x64xf32>, vector<64x64xf32>, vector<256x64xf32> -> vector<256x64xf32>
      %168 = arith.addf %159, %167 : vector<256x64xf32>
      %c0_117 = arith.constant 0 : index
      %c1_118 = arith.constant 1 : index
      %c0_119 = arith.constant 0 : index
      %169 = vector.load %arg10[%c0_117, %c1_118, %c0_119] : memref<18x18x64xf32, #tpu.memory_space<vmem>>, vector<16x16x64xf32>
      %170 = vector.shape_cast %169 : vector<16x16x64xf32> to vector<256x64xf32>
      %c9_i32_120 = arith.constant 9 : i32
      %171 = arith.muli %arg11, %c9_i32_120 : i32
      %c1_i32_121 = arith.constant 1 : i32
      %172 = arith.addi %171, %c1_i32_121 : i32
      %173 = arith.index_cast %172 : i32 to index
      %c0_122 = arith.constant 0 : index
      %c0_123 = arith.constant 0 : index
      %174 = vector.load %arg4[%173, %c0_122, %c0_123] : memref<135x64x64xf32, #tpu.memory_space<vmem>>, vector<1x64x64xf32>
      %175 = vector.shape_cast %174 : vector<1x64x64xf32> to vector<64x64xf32>
      %cst_124 = arith.constant dense<0.000000e+00> : vector<256x64xf32>
      %176 = tpu.matmul %170, %175, %cst_124 {dimension_numbers = #tpu.dot_dimension_numbers<[1], [0], [0], [1], [0, 0, 1, 1], [], []>} : vector<256x64xf32>, vector<64x64xf32>, vector<256x64xf32> -> vector<256x64xf32>
      %177 = arith.addf %168, %176 : vector<256x64xf32>
      %c0_125 = arith.constant 0 : index
      %c2_126 = arith.constant 2 : index
      %c0_127 = arith.constant 0 : index
      %178 = vector.load %arg10[%c0_125, %c2_126, %c0_127] : memref<18x18x64xf32, #tpu.memory_space<vmem>>, vector<16x16x64xf32>
      %179 = vector.shape_cast %178 : vector<16x16x64xf32> to vector<256x64xf32>
      %c9_i32_128 = arith.constant 9 : i32
      %180 = arith.muli %arg11, %c9_i32_128 : i32
      %c2_i32 = arith.constant 2 : i32
      %181 = arith.addi %180, %c2_i32 : i32
      %182 = arith.index_cast %181 : i32 to index
      %c0_129 = arith.constant 0 : index
      %c0_130 = arith.constant 0 : index
      %183 = vector.load %arg4[%182, %c0_129, %c0_130] : memref<135x64x64xf32, #tpu.memory_space<vmem>>, vector<1x64x64xf32>
      %184 = vector.shape_cast %183 : vector<1x64x64xf32> to vector<64x64xf32>
      %cst_131 = arith.constant dense<0.000000e+00> : vector<256x64xf32>
      %185 = tpu.matmul %179, %184, %cst_131 {dimension_numbers = #tpu.dot_dimension_numbers<[1], [0], [0], [1], [0, 0, 1, 1], [], []>} : vector<256x64xf32>, vector<64x64xf32>, vector<256x64xf32> -> vector<256x64xf32>
      %186 = arith.addf %177, %185 : vector<256x64xf32>
      %c1_132 = arith.constant 1 : index
      %c0_133 = arith.constant 0 : index
      %c0_134 = arith.constant 0 : index
      %187 = vector.load %arg10[%c1_132, %c0_133, %c0_134] : memref<18x18x64xf32, #tpu.memory_space<vmem>>, vector<16x16x64xf32>
      %188 = vector.shape_cast %187 : vector<16x16x64xf32> to vector<256x64xf32>
      %c9_i32_135 = arith.constant 9 : i32
      %189 = arith.muli %arg11, %c9_i32_135 : i32
      %c3_i32 = arith.constant 3 : i32
      %190 = arith.addi %189, %c3_i32 : i32
      %191 = arith.index_cast %190 : i32 to index
      %c0_136 = arith.constant 0 : index
      %c0_137 = arith.constant 0 : index
      %192 = vector.load %arg4[%191, %c0_136, %c0_137] : memref<135x64x64xf32, #tpu.memory_space<vmem>>, vector<1x64x64xf32>
      %193 = vector.shape_cast %192 : vector<1x64x64xf32> to vector<64x64xf32>
      %cst_138 = arith.constant dense<0.000000e+00> : vector<256x64xf32>
      %194 = tpu.matmul %188, %193, %cst_138 {dimension_numbers = #tpu.dot_dimension_numbers<[1], [0], [0], [1], [0, 0, 1, 1], [], []>} : vector<256x64xf32>, vector<64x64xf32>, vector<256x64xf32> -> vector<256x64xf32>
      %195 = arith.addf %186, %194 : vector<256x64xf32>
      %c1_139 = arith.constant 1 : index
      %c1_140 = arith.constant 1 : index
      %c0_141 = arith.constant 0 : index
      %196 = vector.load %arg10[%c1_139, %c1_140, %c0_141] : memref<18x18x64xf32, #tpu.memory_space<vmem>>, vector<16x16x64xf32>
      %197 = vector.shape_cast %196 : vector<16x16x64xf32> to vector<256x64xf32>
      %c9_i32_142 = arith.constant 9 : i32
      %198 = arith.muli %arg11, %c9_i32_142 : i32
      %c4_i32 = arith.constant 4 : i32
      %199 = arith.addi %198, %c4_i32 : i32
      %200 = arith.index_cast %199 : i32 to index
      %c0_143 = arith.constant 0 : index
      %c0_144 = arith.constant 0 : index
      %201 = vector.load %arg4[%200, %c0_143, %c0_144] : memref<135x64x64xf32, #tpu.memory_space<vmem>>, vector<1x64x64xf32>
      %202 = vector.shape_cast %201 : vector<1x64x64xf32> to vector<64x64xf32>
      %cst_145 = arith.constant dense<0.000000e+00> : vector<256x64xf32>
      %203 = tpu.matmul %197, %202, %cst_145 {dimension_numbers = #tpu.dot_dimension_numbers<[1], [0], [0], [1], [0, 0, 1, 1], [], []>} : vector<256x64xf32>, vector<64x64xf32>, vector<256x64xf32> -> vector<256x64xf32>
      %204 = arith.addf %195, %203 : vector<256x64xf32>
      %c1_146 = arith.constant 1 : index
      %c2_147 = arith.constant 2 : index
      %c0_148 = arith.constant 0 : index
      %205 = vector.load %arg10[%c1_146, %c2_147, %c0_148] : memref<18x18x64xf32, #tpu.memory_space<vmem>>, vector<16x16x64xf32>
      %206 = vector.shape_cast %205 : vector<16x16x64xf32> to vector<256x64xf32>
      %c9_i32_149 = arith.constant 9 : i32
      %207 = arith.muli %arg11, %c9_i32_149 : i32
      %c5_i32 = arith.constant 5 : i32
      %208 = arith.addi %207, %c5_i32 : i32
      %209 = arith.index_cast %208 : i32 to index
      %c0_150 = arith.constant 0 : index
      %c0_151 = arith.constant 0 : index
      %210 = vector.load %arg4[%209, %c0_150, %c0_151] : memref<135x64x64xf32, #tpu.memory_space<vmem>>, vector<1x64x64xf32>
      %211 = vector.shape_cast %210 : vector<1x64x64xf32> to vector<64x64xf32>
      %cst_152 = arith.constant dense<0.000000e+00> : vector<256x64xf32>
      %212 = tpu.matmul %206, %211, %cst_152 {dimension_numbers = #tpu.dot_dimension_numbers<[1], [0], [0], [1], [0, 0, 1, 1], [], []>} : vector<256x64xf32>, vector<64x64xf32>, vector<256x64xf32> -> vector<256x64xf32>
      %213 = arith.addf %204, %212 : vector<256x64xf32>
      %c2_153 = arith.constant 2 : index
      %c0_154 = arith.constant 0 : index
      %c0_155 = arith.constant 0 : index
      %214 = vector.load %arg10[%c2_153, %c0_154, %c0_155] : memref<18x18x64xf32, #tpu.memory_space<vmem>>, vector<16x16x64xf32>
      %215 = vector.shape_cast %214 : vector<16x16x64xf32> to vector<256x64xf32>
      %c9_i32_156 = arith.constant 9 : i32
      %216 = arith.muli %arg11, %c9_i32_156 : i32
      %c6_i32 = arith.constant 6 : i32
      %217 = arith.addi %216, %c6_i32 : i32
      %218 = arith.index_cast %217 : i32 to index
      %c0_157 = arith.constant 0 : index
      %c0_158 = arith.constant 0 : index
      %219 = vector.load %arg4[%218, %c0_157, %c0_158] : memref<135x64x64xf32, #tpu.memory_space<vmem>>, vector<1x64x64xf32>
      %220 = vector.shape_cast %219 : vector<1x64x64xf32> to vector<64x64xf32>
      %cst_159 = arith.constant dense<0.000000e+00> : vector<256x64xf32>
      %221 = tpu.matmul %215, %220, %cst_159 {dimension_numbers = #tpu.dot_dimension_numbers<[1], [0], [0], [1], [0, 0, 1, 1], [], []>} : vector<256x64xf32>, vector<64x64xf32>, vector<256x64xf32> -> vector<256x64xf32>
      %222 = arith.addf %213, %221 : vector<256x64xf32>
      %c2_160 = arith.constant 2 : index
      %c1_161 = arith.constant 1 : index
      %c0_162 = arith.constant 0 : index
      %223 = vector.load %arg10[%c2_160, %c1_161, %c0_162] : memref<18x18x64xf32, #tpu.memory_space<vmem>>, vector<16x16x64xf32>
      %224 = vector.shape_cast %223 : vector<16x16x64xf32> to vector<256x64xf32>
      %c9_i32_163 = arith.constant 9 : i32
      %225 = arith.muli %arg11, %c9_i32_163 : i32
      %c7_i32 = arith.constant 7 : i32
      %226 = arith.addi %225, %c7_i32 : i32
      %227 = arith.index_cast %226 : i32 to index
      %c0_164 = arith.constant 0 : index
      %c0_165 = arith.constant 0 : index
      %228 = vector.load %arg4[%227, %c0_164, %c0_165] : memref<135x64x64xf32, #tpu.memory_space<vmem>>, vector<1x64x64xf32>
      %229 = vector.shape_cast %228 : vector<1x64x64xf32> to vector<64x64xf32>
      %cst_166 = arith.constant dense<0.000000e+00> : vector<256x64xf32>
      %230 = tpu.matmul %224, %229, %cst_166 {dimension_numbers = #tpu.dot_dimension_numbers<[1], [0], [0], [1], [0, 0, 1, 1], [], []>} : vector<256x64xf32>, vector<64x64xf32>, vector<256x64xf32> -> vector<256x64xf32>
      %231 = arith.addf %222, %230 : vector<256x64xf32>
      %c2_167 = arith.constant 2 : index
      %c2_168 = arith.constant 2 : index
      %c0_169 = arith.constant 0 : index
      %232 = vector.load %arg10[%c2_167, %c2_168, %c0_169] : memref<18x18x64xf32, #tpu.memory_space<vmem>>, vector<16x16x64xf32>
      %233 = vector.shape_cast %232 : vector<16x16x64xf32> to vector<256x64xf32>
      %c9_i32_170 = arith.constant 9 : i32
      %234 = arith.muli %arg11, %c9_i32_170 : i32
      %c8_i32 = arith.constant 8 : i32
      %235 = arith.addi %234, %c8_i32 : i32
      %236 = arith.index_cast %235 : i32 to index
      %c0_171 = arith.constant 0 : index
      %c0_172 = arith.constant 0 : index
      %237 = vector.load %arg4[%236, %c0_171, %c0_172] : memref<135x64x64xf32, #tpu.memory_space<vmem>>, vector<1x64x64xf32>
      %238 = vector.shape_cast %237 : vector<1x64x64xf32> to vector<64x64xf32>
      %cst_173 = arith.constant dense<0.000000e+00> : vector<256x64xf32>
      %239 = tpu.matmul %233, %238, %cst_173 {dimension_numbers = #tpu.dot_dimension_numbers<[1], [0], [0], [1], [0, 0, 1, 1], [], []>} : vector<256x64xf32>, vector<64x64xf32>, vector<256x64xf32> -> vector<256x64xf32>
      %240 = arith.addf %231, %239 : vector<256x64xf32>
      %241 = arith.index_cast %arg11 : i32 to index
      %c0_174 = arith.constant 0 : index
      %242 = vector.load %arg5[%241, %c0_174] : memref<15x64xf32, #tpu.memory_space<vmem>>, vector<1x64xf32>
      %243 = vector.shape_cast %242 : vector<1x64xf32> to vector<64xf32>
      %244 = vector.shape_cast %243 : vector<64xf32> to vector<1x64xf32>
      %245 = vector.broadcast %244 : vector<1x64xf32> to vector<256x64xf32>
      %246 = arith.addf %240, %245 : vector<256x64xf32>
      %cst_175 = arith.constant 0.000000e+00 : f32
      %247 = vector.broadcast %cst_175 : f32 to vector<256x64xf32>
      %248 = arith.maximumf %246, %247 : vector<256x64xf32>
      %249 = vector.shape_cast %248 : vector<256x64xf32> to vector<16x16x64xf32>
      %c1_176 = arith.constant 1 : index
      %c1_177 = arith.constant 1 : index
      %c0_178 = arith.constant 0 : index
      %250 = vector.load %arg10[%c1_176, %c1_177, %c0_178] : memref<18x18x64xf32, #tpu.memory_space<vmem>>, vector<16x16x64xf32>
      tpu.vector_store %arg10[%c1_176, %c1_177, %c0_178], %249 {strides = array<i32>} : memref<18x18x64xf32, #tpu.memory_space<vmem>>, vector<16x16x64xf32>,
    }
    %c15_i32_57 = arith.constant 15 : i32
    %cst_58 = arith.constant 0.000000e+00 : f32
    %88 = vector.broadcast %cst_58 : f32 to vector<16x16x64xf32>
    %c0_59 = arith.constant 0 : index
    %c0_60 = arith.constant 0 : index
    %c0_61 = arith.constant 0 : index
    %89 = vector.load %arg10[%c0_59, %c0_60, %c0_61] : memref<18x18x64xf32, #tpu.memory_space<vmem>>, vector<16x16x64xf32>
    %c0_62 = arith.constant 0 : index
    %c0_63 = arith.constant 0 : index
    %90 = vector.load %arg6[%c0_62, %c0_63] : memref<9x64xf32, #tpu.memory_space<vmem>>, vector<1x64xf32>
    %91 = vector.shape_cast %90 : vector<1x64xf32> to vector<64xf32>
    %92 = vector.shape_cast %91 : vector<64xf32> to vector<1x1x64xf32>
    %93 = vector.broadcast %92 : vector<1x1x64xf32> to vector<16x16x64xf32>
    %94 = arith.mulf %89, %93 : vector<16x16x64xf32>
    %95 = arith.addf %88, %94 : vector<16x16x64xf32>
    %c0_64 = arith.constant 0 : index
    %c1_65 = arith.constant 1 : index
    %c0_66 = arith.constant 0 : index
    %96 = vector.load %arg10[%c0_64, %c1_65, %c0_66] : memref<18x18x64xf32, #tpu.memory_space<vmem>>, vector<16x16x64xf32>
    %c1_67 = arith.constant 1 : index
    %c0_68 = arith.constant 0 : index
    %97 = vector.load %arg6[%c1_67, %c0_68] : memref<9x64xf32, #tpu.memory_space<vmem>>, vector<1x64xf32>
    %98 = vector.shape_cast %97 : vector<1x64xf32> to vector<64xf32>
    %99 = vector.shape_cast %98 : vector<64xf32> to vector<1x1x64xf32>
    %100 = vector.broadcast %99 : vector<1x1x64xf32> to vector<16x16x64xf32>
    %101 = arith.mulf %96, %100 : vector<16x16x64xf32>
    %102 = arith.addf %95, %101 : vector<16x16x64xf32>
    %c0_69 = arith.constant 0 : index
    %c2_70 = arith.constant 2 : index
    %c0_71 = arith.constant 0 : index
    %103 = vector.load %arg10[%c0_69, %c2_70, %c0_71] : memref<18x18x64xf32, #tpu.memory_space<vmem>>, vector<16x16x64xf32>
    %c2_72 = arith.constant 2 : index
    %c0_73 = arith.constant 0 : index
    %104 = vector.load %arg6[%c2_72, %c0_73] : memref<9x64xf32, #tpu.memory_space<vmem>>, vector<1x64xf32>
    %105 = vector.shape_cast %104 : vector<1x64xf32> to vector<64xf32>
    %106 = vector.shape_cast %105 : vector<64xf32> to vector<1x1x64xf32>
    %107 = vector.broadcast %106 : vector<1x1x64xf32> to vector<16x16x64xf32>
    %108 = arith.mulf %103, %107 : vector<16x16x64xf32>
    %109 = arith.addf %102, %108 : vector<16x16x64xf32>
    %c1_74 = arith.constant 1 : index
    %c0_75 = arith.constant 0 : index
    %c0_76 = arith.constant 0 : index
    %110 = vector.load %arg10[%c1_74, %c0_75, %c0_76] : memref<18x18x64xf32, #tpu.memory_space<vmem>>, vector<16x16x64xf32>
    %c3_77 = arith.constant 3 : index
    %c0_78 = arith.constant 0 : index
    %111 = vector.load %arg6[%c3_77, %c0_78] : memref<9x64xf32, #tpu.memory_space<vmem>>, vector<1x64xf32>
    %112 = vector.shape_cast %111 : vector<1x64xf32> to vector<64xf32>
    %113 = vector.shape_cast %112 : vector<64xf32> to vector<1x1x64xf32>
    %114 = vector.broadcast %113 : vector<1x1x64xf32> to vector<16x16x64xf32>
    %115 = arith.mulf %110, %114 : vector<16x16x64xf32>
    %116 = arith.addf %109, %115 : vector<16x16x64xf32>
    %c1_79 = arith.constant 1 : index
    %c1_80 = arith.constant 1 : index
    %c0_81 = arith.constant 0 : index
    %117 = vector.load %arg10[%c1_79, %c1_80, %c0_81] : memref<18x18x64xf32, #tpu.memory_space<vmem>>, vector<16x16x64xf32>
    %c4_82 = arith.constant 4 : index
    %c0_83 = arith.constant 0 : index
    %118 = vector.load %arg6[%c4_82, %c0_83] : memref<9x64xf32, #tpu.memory_space<vmem>>, vector<1x64xf32>
    %119 = vector.shape_cast %118 : vector<1x64xf32> to vector<64xf32>
    %120 = vector.shape_cast %119 : vector<64xf32> to vector<1x1x64xf32>
    %121 = vector.broadcast %120 : vector<1x1x64xf32> to vector<16x16x64xf32>
    %122 = arith.mulf %117, %121 : vector<16x16x64xf32>
    %123 = arith.addf %116, %122 : vector<16x16x64xf32>
    %c1_84 = arith.constant 1 : index
    %c2_85 = arith.constant 2 : index
    %c0_86 = arith.constant 0 : index
    %124 = vector.load %arg10[%c1_84, %c2_85, %c0_86] : memref<18x18x64xf32, #tpu.memory_space<vmem>>, vector<16x16x64xf32>
    %c5_87 = arith.constant 5 : index
    %c0_88 = arith.constant 0 : index
    %125 = vector.load %arg6[%c5_87, %c0_88] : memref<9x64xf32, #tpu.memory_space<vmem>>, vector<1x64xf32>
    %126 = vector.shape_cast %125 : vector<1x64xf32> to vector<64xf32>
    %127 = vector.shape_cast %126 : vector<64xf32> to vector<1x1x64xf32>
    %128 = vector.broadcast %127 : vector<1x1x64xf32> to vector<16x16x64xf32>
    %129 = arith.mulf %124, %128 : vector<16x16x64xf32>
    %130 = arith.addf %123, %129 : vector<16x16x64xf32>
    %c2_89 = arith.constant 2 : index
    %c0_90 = arith.constant 0 : index
    %c0_91 = arith.constant 0 : index
    %131 = vector.load %arg10[%c2_89, %c0_90, %c0_91] : memref<18x18x64xf32, #tpu.memory_space<vmem>>, vector<16x16x64xf32>
    %c6_92 = arith.constant 6 : index
    %c0_93 = arith.constant 0 : index
    %132 = vector.load %arg6[%c6_92, %c0_93] : memref<9x64xf32, #tpu.memory_space<vmem>>, vector<1x64xf32>
    %133 = vector.shape_cast %132 : vector<1x64xf32> to vector<64xf32>
    %134 = vector.shape_cast %133 : vector<64xf32> to vector<1x1x64xf32>
    %135 = vector.broadcast %134 : vector<1x1x64xf32> to vector<16x16x64xf32>
    %136 = arith.mulf %131, %135 : vector<16x16x64xf32>
    %137 = arith.addf %130, %136 : vector<16x16x64xf32>
    %c2_94 = arith.constant 2 : index
    %c1_95 = arith.constant 1 : index
    %c0_96 = arith.constant 0 : index
    %138 = vector.load %arg10[%c2_94, %c1_95, %c0_96] : memref<18x18x64xf32, #tpu.memory_space<vmem>>, vector<16x16x64xf32>
    %c7_97 = arith.constant 7 : index
    %c0_98 = arith.constant 0 : index
    %139 = vector.load %arg6[%c7_97, %c0_98] : memref<9x64xf32, #tpu.memory_space<vmem>>, vector<1x64xf32>
    %140 = vector.shape_cast %139 : vector<1x64xf32> to vector<64xf32>
    %141 = vector.shape_cast %140 : vector<64xf32> to vector<1x1x64xf32>
    %142 = vector.broadcast %141 : vector<1x1x64xf32> to vector<16x16x64xf32>
    %143 = arith.mulf %138, %142 : vector<16x16x64xf32>
    %144 = arith.addf %137, %143 : vector<16x16x64xf32>
    %c2_99 = arith.constant 2 : index
    %c2_100 = arith.constant 2 : index
    %c0_101 = arith.constant 0 : index
    %145 = vector.load %arg10[%c2_99, %c2_100, %c0_101] : memref<18x18x64xf32, #tpu.memory_space<vmem>>, vector<16x16x64xf32>
    %c8_102 = arith.constant 8 : index
    %c0_103 = arith.constant 0 : index
    %146 = vector.load %arg6[%c8_102, %c0_103] : memref<9x64xf32, #tpu.memory_space<vmem>>, vector<1x64xf32>
    %147 = vector.shape_cast %146 : vector<1x64xf32> to vector<64xf32>
    %148 = vector.shape_cast %147 : vector<64xf32> to vector<1x1x64xf32>
    %149 = vector.broadcast %148 : vector<1x1x64xf32> to vector<16x16x64xf32>
    %150 = arith.mulf %145, %149 : vector<16x16x64xf32>
    %151 = arith.addf %144, %150 : vector<16x16x64xf32>
    %cst_104 = arith.constant dense<0.000000e+00> : vector<16x16xf32>
    %152 = vector.multi_reduction <add>, %151, %cst_104 [2] : vector<16x16x64xf32> to vector<16x16xf32>
    %c0_105 = arith.constant 0 : index
    %153 = memref.load %arg7[%c0_105] : memref<1xf32, #tpu.memory_space<smem>>
    %154 = vector.broadcast %153 : f32 to vector<16x16xf32>
    %155 = arith.addf %152, %154 : vector<16x16xf32>
    %c0_106 = arith.constant 0 : index
    %c0_107 = arith.constant 0 : index
    %c0_108 = arith.constant 0 : index
    %156 = vector.load %arg8[%c0_106, %c0_107, %c0_108] : memref<1x16x16xf32, #tpu.memory_space<vmem>>, vector<1x16x16xf32>
    %157 = vector.shape_cast %156 : vector<1x16x16xf32> to vector<16x16xf32>
    %158 = vector.shape_cast %155 : vector<16x16xf32> to vector<1x16x16xf32>
    tpu.vector_store %arg8[%c0_106, %c0_107, %c0_108], %158 {strides = array<i32>} : memref<1x16x16xf32, #tpu.memory_space<vmem>>, vector<1x16x16xf32>,
    return
  }
  func.func @transform_0(%arg0: i32) -> (i32, i32, i32, i32) {
    %c0_i32 = arith.constant 0 : i32
    %c0_i32_0 = arith.constant 0 : i32
    %c0_i32_1 = arith.constant 0 : i32
    %c0_i32_2 = arith.constant 0 : i32
    return %arg0, %c0_i32, %c0_i32_0, %c0_i32_1 : i32, i32, i32, i32
  }
  func.func @transform_1(%arg0: i32) -> (i32, i32) {
    %c0_i32 = arith.constant 0 : i32
    %c0_i32_0 = arith.constant 0 : i32
    %c0_i32_1 = arith.constant 0 : i32
    return %c0_i32, %c0_i32_0 : i32, i32
  }
  func.func @transform_2(%arg0: i32) -> (i32, i32) {
    %c0_i32 = arith.constant 0 : i32
    %c0_i32_0 = arith.constant 0 : i32
    %c0_i32_1 = arith.constant 0 : i32
    return %c0_i32, %c0_i32_0 : i32, i32
  }
  func.func @transform_3(%arg0: i32) -> (i32, i32, i32) {
    %c0_i32 = arith.constant 0 : i32
    %c0_i32_0 = arith.constant 0 : i32
    %c0_i32_1 = arith.constant 0 : i32
    %c0_i32_2 = arith.constant 0 : i32
    return %c0_i32, %c0_i32_0, %c0_i32_1 : i32, i32, i32
  }
  func.func @transform_4(%arg0: i32) -> (i32, i32) {
    %c0_i32 = arith.constant 0 : i32
    %c0_i32_0 = arith.constant 0 : i32
    %c0_i32_1 = arith.constant 0 : i32
    return %c0_i32, %c0_i32_0 : i32, i32
  }
  func.func @transform_5(%arg0: i32) -> (i32, i32) {
    %c0_i32 = arith.constant 0 : i32
    %c0_i32_0 = arith.constant 0 : i32
    %c0_i32_1 = arith.constant 0 : i32
    return %c0_i32, %c0_i32_0 : i32, i32
  }
  func.func @transform_6(%arg0: i32) -> i32 {
    %c0_i32 = arith.constant 0 : i32
    %c0_i32_0 = arith.constant 0 : i32
    return %c0_i32 : i32
  }
  func.func @transform_7(%arg0: i32) -> (i32, i32, i32) {
    %c0_i32 = arith.constant 0 : i32
    %c0_i32_0 = arith.constant 0 : i32
    %c0_i32_1 = arith.constant 0 : i32
    return %arg0, %c0_i32, %c0_i32_0 : i32, i32, i32
  }
}

</mosaic_0001>

<bundles_post_ra>
// kernel: tpu_custom_call.1
= control target key start
LH: loop header
LB: loop body
LE: loop exit
PB: predicated region body
PF: predicated region fallthrough
CT: control target
= control target key end

     0   :  { %s14143_s0 = inlined_call_operand.vmem [shape: f32[2,16,16,1], index: 0, kind: input, shape index: {}]   ;;  %s14144_s1 = inlined_call_operand.vmem [shape: f32[9,64], index: 1, kind: input, shape index: {}]   ;;  %s14145_s2 = inlined_call_operand.vmem [shape: f32[1,64], index: 2, kind: input, shape index: {}]   ;;  %s14146_s3 = inlined_call_operand.vmem [shape: f32[135,64,64], index: 3, kind: input, shape index: {}]   ;;  %s14147_s4 = inlined_call_operand.vmem [shape: f32[15,64], index: 4, kind: input, shape index: {}]   ;;  %s14148_s5 = inlined_call_operand.vmem [shape: f32[9,64], index: 5, kind: input, shape index: {}]   ;;  %s14149_s6 = inlined_call_operand.<no memory space> [shape: f32[1], index: 6, kind: input, shape index: {}]   ;;  %s14150_s7 = inlined_call_operand.hbm [shape: f32[2,16,16], index: 7, kind: output, shape index: {}]  }
   0x1   :  { %12 = sst [smem:[#allocation4]] %s14149_s6 }
   0x2   :  { %13 = vsyncpa [#allocation6], 0 }
   0x3   :  { %15 = vsyncpa [#allocation6 + $0x1], 0  ;;  %s9409_s26 = smov 0   ;;  %s9411_s27 = smov 0  }
   0x4   :  { %s9413_s28 = smov 0   ;;  %s9415_s29 = smov 0  }
   0x5 LB: > { %s9430_s6 = sadd.s32 4294967295, %s9355_s29   ;;  %s7880_s30 = sadd.s32 4294967294, %s9355_s29   ;;  %s9355_s29 = sphi %s9415_s29, %s14881_s29   ;;  %s9351_s28 = sphi %s9413_s28, %s14880_s28   ;;  %s9347_s27 = sphi %s9411_s27, %s14879_s27   ;;  %s9343_s26 = sphi %s9409_s26, %s14878_s26  }
   0x6   : > { %s9434_s8 = sadd.s32 1, %s9355_s29   ;;  %s180_s9 = sadd.s32 1, %s9351_s28 }
   0x7   : > { %s177_s10 = ssub.s32 %s9355_s29, %s9434_s8  ;;  %p190_p0 = scmp.ne.s32.totalorder %s9351_s28, %s9347_s27 }
   0x8   : > { %p178_p1 = scmp.eq.s32.totalorder %s177_s10, 0  ;;  %p191_p2 = scmp.eq.s32.totalorder %s9430_s6, 1 }
   0x9   : > { %p196_p3 = scmp.ne.s32.totalorder %s9347_s27, %s9343_s26  ;;  %p197_p4 = scmp.eq.s32.totalorder %s7880_s30, 1 }
   0xa   : > { %s9445_s11 = scalar_select %p178_p1, %s9351_s28, %s180_s9  }
   0xb   : > { %p9447_p5 = por %p191_p2, %p190_p0  ;;  %p9451_p6 = por %p197_p4, %p196_p3 }
   0xc   : > { %p7883_p7 = scmp.ge.s32.totalorder %s9355_s29, 1  ;;  %p241_p8 = scmp.lt.s32.totalorder %s9355_s29, 3 }
   0xe   : > { %p242_p9 = pnand %p7883_p7, %p241_p8 }
  0x10   : > { %245 = sbr.rel (%p242_p9) target bundleno = 1574 (0x626), region = 48 }
  0x15   : > { %vm278_vm0 = vcmask 7168   ;;  %p273_p10 = scmp.lt.s32.totalorder %s9430_s6, 1  ;;  %vm281_vm1 = vcmask 1024   ;;  %v9361_v0 = vmov 0   ;;  %v14151_v1 = vmov 0.0   ;;  %s11809_s16 = smov 0  }
  0x16   : > { %9278 = vset.pattern.permute.xlu0 %v9361_v0  ;;  %279 = vst.msk [vmem:[#allocation2] sm:$0xff] %vm278_vm0, %v14151_v1  ;;  %280 = vst.msk [vmem:[#allocation2 + $0x8] sm:$0xff] %vm278_vm0, %v14151_v1  ;;  %9279 = vset.pattern.permute.xlu1 %v9361_v0  ;;  %vm2820_vm2 = vcmask 523264   ;;  %vm2823_vm3 = vcmask 517120  }
  0x17   : > { %283 = vst.msk [vmem:[#allocation2 + $0x18] sm:$0xff] %vm278_vm0, %v14151_v1  ;;  %284 = vst.msk [vmem:[#allocation2 + $0x20] sm:$0xff] %vm278_vm0, %v14151_v1  ;;  %s274_s14 = scalar_select %p273_p10, %s9430_s6, 1 }
  0x18   : > { %286 = vst.msk [vmem:[#allocation2 + $0x30] sm:$0xff] %vm278_vm0, %v14151_v1  ;;  %287 = vst.msk [vmem:[#allocation2 + $0x38] sm:$0xff] %vm278_vm0, %v14151_v1 }
  0x19   : > { %289 = vst.msk [vmem:[#allocation2 + $0x48] sm:$0xff] %vm278_vm0, %v14151_v1  ;;  %290 = vst.msk [vmem:[#allocation2 + $0x50] sm:$0xff] %vm278_vm0, %v14151_v1  ;;  %s8273_s15 = sshll.u32 %s274_s14, 8 }
  0x1a   : > { %292 = vst.msk [vmem:[#allocation2 + $0x60] sm:$0xff] %vm278_vm0, %v14151_v1  ;;  %293 = vst.msk [vmem:[#allocation2 + $0x68] sm:$0xff] %vm278_vm0, %v14151_v1  ;;  %s9572_s18 = scalar_lea.vmem %s14143_s0, %s8273_s15 }
  0x1b   : > { %295 = vst.msk [vmem:[#allocation2 + $0x78] sm:$0xff] %vm278_vm0, %v14151_v1  ;;  %296 = vst.msk [vmem:[#allocation2 + $0x80] sm:$0xff] %vm278_vm0, %v14151_v1  ;;  %v334_v2 = vld [vmem:[%s9572_s18] sm:$0xff]  ;;  %v336_v3 = vld [vmem:[%s9572_s18 + $0x10] sm:$0xff] }
  0x1c   : > { %298 = vst.msk [vmem:[#allocation2 + $0x90] sm:$0xff] %vm278_vm0, %v14151_v1  ;;  %299 = vst.msk [vmem:[#allocation2 + $0x98] sm:$0xff] %vm278_vm0, %v14151_v1  ;;  %v335_v4 = vld [vmem:[%s9572_s18 + $0x8] sm:$0xff]  ;;  %v338_v5 = vld [vmem:[%s9572_s18 + $0x20] sm:$0xff] }
  0x1d   : > { %301 = vst.msk [vmem:[#allocation2 + $0xa8] sm:$0xff] %vm278_vm0, %v14151_v1  ;;  %302 = vst.msk [vmem:[#allocation2 + $0xb0] sm:$0xff] %vm278_vm0, %v14151_v1  ;;  %v337_v6 = vld [vmem:[%s9572_s18 + $0x18] sm:$0xff]  ;;  %v340_v7 = vld [vmem:[%s9572_s18 + $0x30] sm:$0xff] }
  0x1e   : > { %304 = vst.msk [vmem:[#allocation2 + $0xc0] sm:$0xff] %vm278_vm0, %v14151_v1  ;;  %305 = vst.msk [vmem:[#allocation2 + $0xc8] sm:$0xff] %vm278_vm0, %v14151_v1  ;;  %v399_v8 = vld [vmem:[#allocation2] sm:$0xff]  ;;  %v400_v9 = vld [vmem:[#allocation2 + $0x8] sm:$0xff] }
  0x1f   : > { %307 = vst.msk [vmem:[#allocation2 + $0xd8] sm:$0xff] %vm278_vm0, %v14151_v1  ;;  %308 = vst.msk [vmem:[#allocation2 + $0xe0] sm:$0xff] %vm278_vm0, %v14151_v1  ;;  %v339_v10 = vld [vmem:[%s9572_s18 + $0x28] sm:$0xff]  ;;  %434 = vperm.xlu0 %9278, %v399_v8   ;;  %v342_v11 = vld [vmem:[%s9572_s18 + $0x40] sm:$0xff] }
  0x20   : > { %310 = vst.msk [vmem:[#allocation2 + $0xf0] sm:$0xff] %vm278_vm0, %v14151_v1  ;;  %311 = vst.msk [vmem:[#allocation2 + $0xf8] sm:$0xff] %vm278_vm0, %v14151_v1  ;;  %v341_v12 = vld [vmem:[%s9572_s18 + $0x38] sm:$0xff]  ;;  %v344_v13 = vld [vmem:[%s9572_s18 + $0x50] sm:$0xff] }
  0x21   : > { %313 = vst.msk [vmem:[#allocation2 + $0x108] sm:$0xff] %vm278_vm0, %v14151_v1  ;;  %314 = vst.msk [vmem:[#allocation2 + $0x110] sm:$0xff] %vm278_vm0, %v14151_v1  ;;  %v343_v14 = vld [vmem:[%s9572_s18 + $0x48] sm:$0xff]  ;;  %v346_v15 = vld [vmem:[%s9572_s18 + $0x60] sm:$0xff] }
  0x22   : > { %316 = vst.msk [vmem:[#allocation2 + $0x120] sm:$0xff] %vm278_vm0, %v14151_v1  ;;  %317 = vst.msk [vmem:[#allocation2 + $0x128] sm:$0xff] %vm278_vm0, %v14151_v1  ;;  %v345_v16 = vld [vmem:[%s9572_s18 + $0x58] sm:$0xff]  ;;  %v348_v17 = vld [vmem:[%s9572_s18 + $0x70] sm:$0xff] }
  0x23   : > { %319 = vst.msk [vmem:[#allocation2 + $0x138] sm:$0xff] %vm278_vm0, %v14151_v1  ;;  %320 = vst.msk [vmem:[#allocation2 + $0x140] sm:$0xff] %vm278_vm0, %v14151_v1  ;;  %v347_v18 = vld [vmem:[%s9572_s18 + $0x68] sm:$0xff]  ;;  %v350_v19 = vld [vmem:[%s9572_s18 + $0x80] sm:$0xff]  ;;  %439 = vperm.xlu0 %9278, %v400_v9  }
  0x24   : > { %322 = vst.msk [vmem:[#allocation2 + $0x150] sm:$0xff] %vm278_vm0, %v14151_v1  ;;  %323 = vst.msk [vmem:[#allocation2 + $0x158] sm:$0xff] %vm278_vm0, %v14151_v1  ;;  %v349_v20 = vld [vmem:[%s9572_s18 + $0x78] sm:$0xff]  ;;  %v352_v21 = vld [vmem:[%s9572_s18 + $0x90] sm:$0xff] }
  0x25   : > { %325 = vst.msk [vmem:[#allocation2 + $0x168] sm:$0xff] %vm278_vm0, %v14151_v1  ;;  %326 = vst.msk [vmem:[#allocation2 + $0x170] sm:$0xff] %vm278_vm0, %v14151_v1  ;;  %v351_v22 = vld [vmem:[%s9572_s18 + $0x88] sm:$0xff]  ;;  %v354_v23 = vld [vmem:[%s9572_s18 + $0xa0] sm:$0xff] }
  0x26   : > { %328 = vst.msk [vmem:[#allocation2 + $0x180] sm:$0xff] %vm278_vm0, %v14151_v1  ;;  %329 = vst.msk [vmem:[#allocation2 + $0x188] sm:$0xff] %vm278_vm0, %v14151_v1  ;;  %v353_v24 = vld [vmem:[%s9572_s18 + $0x98] sm:$0xff]  ;;  %v356_v25 = vld [vmem:[%s9572_s18 + $0xb0] sm:$0xff] }
  0x27   : > { %331 = vst.msk [vmem:[#allocation2 + $0x198] sm:$0xff] %vm278_vm0, %v14151_v1  ;;  %332 = vst.msk [vmem:[#allocation2 + $0x1a0] sm:$0xff] %vm278_vm0, %v14151_v1  ;;  %v355_v29 = vld [vmem:[%s9572_s18 + $0xa8] sm:$0xff]  ;;  %v358_v30 = vld [vmem:[%s9572_s18 + $0xc0] sm:$0xff] }
  0x28   : > { %285 = vst.msk [vmem:[#allocation2 + $0x28] sm:$0x3] %vm281_vm1, %v14151_v1  ;;  %282 = vst.msk [vmem:[#allocation2 + $0x10] sm:$0x3] %vm281_vm1, %v14151_v1  ;;  %v357_v34 = vld [vmem:[%s9572_s18 + $0xb8] sm:$0xff]  ;;  %v360_v35 = vld [vmem:[%s9572_s18 + $0xd0] sm:$0xff] }
  0x29   : > { %288 = vst.msk [vmem:[#allocation2 + $0x40] sm:$0x3] %vm281_vm1, %v14151_v1  ;;  %291 = vst.msk [vmem:[#allocation2 + $0x58] sm:$0x3] %vm281_vm1, %v14151_v1  ;;  %v359_v36 = vld [vmem:[%s9572_s18 + $0xc8] sm:$0xff]  ;;  %v362_v37 = vld [vmem:[%s9572_s18 + $0xe0] sm:$0xff] }
  0x2a   : > { %294 = vst.msk [vmem:[#allocation2 + $0x70] sm:$0x3] %vm281_vm1, %v14151_v1  ;;  %297 = vst.msk [vmem:[#allocation2 + $0x88] sm:$0x3] %vm281_vm1, %v14151_v1  ;;  %v361_v38 = vld [vmem:[%s9572_s18 + $0xd8] sm:$0xff]  ;;  %v363_v40 = vld [vmem:[%s9572_s18 + $0xe8] sm:$0xff] }
  0x2b   : > { %300 = vst.msk [vmem:[#allocation2 + $0xa0] sm:$0x3] %vm281_vm1, %v14151_v1  ;;  %303 = vst.msk [vmem:[#allocation2 + $0xb8] sm:$0x3] %vm281_vm1, %v14151_v1  ;;  %v660_v63 = vld [vmem:[#allocation2 + $0x1] sm:$0xff] }
  0x2c   : > { %306 = vst.msk [vmem:[#allocation2 + $0xd0] sm:$0x3] %vm281_vm1, %v14151_v1  ;;  %309 = vst.msk [vmem:[#allocation2 + $0xe8] sm:$0x3] %vm281_vm1, %v14151_v1 }
  0x2d   : > { %312 = vst.msk [vmem:[#allocation2 + $0x100] sm:$0x3] %vm281_vm1, %v14151_v1  ;;  %315 = vst.msk [vmem:[#allocation2 + $0x118] sm:$0x3] %vm281_vm1, %v14151_v1 }
  0x2e   : > { %318 = vst.msk [vmem:[#allocation2 + $0x130] sm:$0x3] %vm281_vm1, %v14151_v1  ;;  %321 = vst.msk [vmem:[#allocation2 + $0x148] sm:$0x3] %vm281_vm1, %v14151_v1 }
  0x2f   : > { %324 = vst.msk [vmem:[#allocation2 + $0x160] sm:$0x3] %vm281_vm1, %v14151_v1  ;;  %327 = vst.msk [vmem:[#allocation2 + $0x178] sm:$0x3] %vm281_vm1, %v14151_v1 }
  0x30   : > { %330 = vst.msk [vmem:[#allocation2 + $0x190] sm:$0x3] %vm281_vm1, %v14151_v1  ;;  %333 = vst.msk [vmem:[#allocation2 + $0x1a8] sm:$0x3] %vm281_vm1, %v14151_v1 }
  0x31   : > { %367 = vst.msk [vmem:[#allocation2 + $0x19] sm:$0xff] %vm278_vm0, %v334_v2  ;;  %369 = vst.msk [vmem:[#allocation2 + $0x31] sm:$0xff] %vm278_vm0, %v336_v3  ;;  %v661_v3 = vld [vmem:[#allocation2 + $0x9] sm:$0xff] }
  0x32   : > { %368 = vst.msk [vmem:[#allocation2 + $0x21] sm:$0xff] %vm278_vm0, %v335_v4  ;;  %371 = vst.msk [vmem:[#allocation2 + $0x49] sm:$0xff] %vm278_vm0, %v338_v5 }
  0x33   : > { %370 = vst.msk [vmem:[#allocation2 + $0x39] sm:$0xff] %vm278_vm0, %v337_v6  ;;  %373 = vst.msk [vmem:[#allocation2 + $0x61] sm:$0xff] %vm278_vm0, %v340_v7 }
  0x34   : > { %372 = vst.msk [vmem:[#allocation2 + $0x51] sm:$0xff] %vm278_vm0, %v339_v10  ;;  %375 = vst.msk [vmem:[#allocation2 + $0x79] sm:$0xff] %vm278_vm0, %v342_v11 }
  0x35   : > { %374 = vst.msk [vmem:[#allocation2 + $0x69] sm:$0xff] %vm278_vm0, %v341_v12  ;;  %377 = vst.msk [vmem:[#allocation2 + $0x91] sm:$0xff] %vm278_vm0, %v344_v13 }
  0x36   : > { %376 = vst.msk [vmem:[#allocation2 + $0x81] sm:$0xff] %vm278_vm0, %v343_v14  ;;  %379 = vst.msk [vmem:[#allocation2 + $0xa9] sm:$0xff] %vm278_vm0, %v346_v15 }
  0x37   : > { %378 = vst.msk [vmem:[#allocation2 + $0x99] sm:$0xff] %vm278_vm0, %v345_v16  ;;  %381 = vst.msk [vmem:[#allocation2 + $0xc1] sm:$0xff] %vm278_vm0, %v348_v17 }
  0x38   : > { %380 = vst.msk [vmem:[#allocation2 + $0xb1] sm:$0xff] %vm278_vm0, %v347_v18  ;;  %383 = vst.msk [vmem:[#allocation2 + $0xd9] sm:$0xff] %vm278_vm0, %v350_v19  ;;  %v9615_v26 = vld [vmem:[#allocation2 + $0x18] sm:$0xff]  ;;  %v9617_v27 = vld [vmem:[#allocation2 + $0x30] sm:$0xff] }
  0x39   : > { %382 = vst.msk [vmem:[#allocation2 + $0xc9] sm:$0xff] %vm278_vm0, %v349_v20  ;;  %385 = vst.msk [vmem:[#allocation2 + $0xf1] sm:$0xff] %vm278_vm0, %v352_v21  ;;  %444 = vperm.xlu1 %9279, %v9615_v26   ;;  %v9623_v28 = vld [vmem:[#allocation2 + $0x20] sm:$0xff]  ;;  %454 = vperm.xlu0 %9278, %v9617_v27   ;;  %v9630_v31 = vld [vmem:[#allocation2 + $0x48] sm:$0xff] }
  0x3a   : > { %384 = vst.msk [vmem:[#allocation2 + $0xe1] sm:$0xff] %vm278_vm0, %v351_v22  ;;  %387 = vst.msk [vmem:[#allocation2 + $0x109] sm:$0xff] %vm278_vm0, %v354_v23  ;;  %v9633_v32 = vld [vmem:[#allocation2 + $0x38] sm:$0xff]  ;;  %v9636_v33 = vld [vmem:[#allocation2 + $0x60] sm:$0xff] }
  0x3b   : > { %386 = vst.msk [vmem:[#allocation2 + $0xf9] sm:$0xff] %vm278_vm0, %v353_v24  ;;  %389 = vst.msk [vmem:[#allocation2 + $0x121] sm:$0xff] %vm278_vm0, %v356_v25  ;;  %v9647_v39 = vld [vmem:[#allocation2 + $0x50] sm:$0xff]  ;;  %v9654_v41 = vld [vmem:[#allocation2 + $0x78] sm:$0xff] }
  0x3c   : > { %388 = vst.msk [vmem:[#allocation2 + $0x111] sm:$0xff] %vm278_vm0, %v355_v29  ;;  %391 = vst.msk [vmem:[#allocation2 + $0x139] sm:$0xff] %vm278_vm0, %v358_v30  ;;  %v9657_v42 = vld [vmem:[#allocation2 + $0x68] sm:$0xff]  ;;  %v9660_v43 = vld [vmem:[#allocation2 + $0x90] sm:$0xff] }
  0x3d   : > { %449 = vperm.xlu1 %9279, %v9623_v28   ;;  %464 = vperm.xlu0 %9278, %v9630_v31   ;;  %390 = vst.msk [vmem:[#allocation2 + $0x129] sm:$0xff] %vm278_vm0, %v357_v34  ;;  %393 = vst.msk [vmem:[#allocation2 + $0x151] sm:$0xff] %vm278_vm0, %v360_v35  ;;  %v9663_v44 = vld [vmem:[#allocation2 + $0x80] sm:$0xff]  ;;  %v9666_v45 = vld [vmem:[#allocation2 + $0xa8] sm:$0xff] }
  0x3e   : > { %392 = vst.msk [vmem:[#allocation2 + $0x141] sm:$0xff] %vm278_vm0, %v359_v36  ;;  %395 = vst.msk [vmem:[#allocation2 + $0x169] sm:$0xff] %vm278_vm0, %v362_v37  ;;  %v9669_v46 = vld [vmem:[#allocation2 + $0x98] sm:$0xff]  ;;  %v9672_v47 = vld [vmem:[#allocation2 + $0xc0] sm:$0xff] }
  0x3f   : > { %394 = vst.msk [vmem:[#allocation2 + $0x159] sm:$0xff] %vm278_vm0, %v361_v38  ;;  %396 = vst.msk [vmem:[#allocation2 + $0x171] sm:$0xff] %vm278_vm0, %v363_v40  ;;  %v9675_v48 = vld [vmem:[#allocation2 + $0xb0] sm:$0xff]  ;;  %v9678_v49 = vld [vmem:[#allocation2 + $0xd8] sm:$0xff] }
  0x40   : > { %v9681_v50 = vld [vmem:[#allocation2 + $0xc8] sm:$0xff]  ;;  %v9684_v51 = vld [vmem:[#allocation2 + $0xf0] sm:$0xff]  ;;  %v9723_v2 = vld [vmem:[#allocation2 + $0x19] sm:$0xff] }
  0x41   : > { %459 = vperm.xlu1 %9279, %v9633_v32   ;;  %474 = vperm.xlu0 %9278, %v9636_v33   ;;  %v9687_v52 = vld [vmem:[#allocation2 + $0xe0] sm:$0xff]  ;;  %v9690_v53 = vld [vmem:[#allocation2 + $0x108] sm:$0xff]  ;;  %v9727_v4 = vld [vmem:[#allocation2 + $0x31] sm:$0xff] }
  0x42   : > { %v9693_v54 = vld [vmem:[#allocation2 + $0xf8] sm:$0xff]  ;;  %v9696_v55 = vld [vmem:[#allocation2 + $0x120] sm:$0xff]  ;;  %v9732_v6 = vld [vmem:[#allocation2 + $0x49] sm:$0xff] }
  0x43   : > { %v9699_v56 = vld [vmem:[#allocation2 + $0x110] sm:$0xff]  ;;  %v9702_v57 = vld [vmem:[#allocation2 + $0x138] sm:$0xff]  ;;  %v9729_v5 = vld [vmem:[#allocation2 + $0x21] sm:$0xff] }
  0x44   : > { %v9705_v58 = vld [vmem:[#allocation2 + $0x128] sm:$0xff]  ;;  %v9708_v59 = vld [vmem:[#allocation2 + $0x150] sm:$0xff]  ;;  %v9735_v7 = vld [vmem:[#allocation2 + $0x39] sm:$0xff] }
  0x45   : > { %469 = vperm.xlu1 %9279, %v9647_v39   ;;  %484 = vperm.xlu0 %9278, %v9654_v41   ;;  %v9711_v60 = vld [vmem:[#allocation2 + $0x140] sm:$0xff]  ;;  %v9714_v61 = vld [vmem:[#allocation2 + $0x168] sm:$0xff]  ;;  %v9741_v9 = vld [vmem:[#allocation2 + $0x51] sm:$0xff] }
  0x46   : > { %v9717_v62 = vld [vmem:[#allocation2 + $0x158] sm:$0xff]  ;;  %v9721_v0 = vld [vmem:[#allocation2 + $0x170] sm:$0xff]  ;;  %v9738_v8 = vld [vmem:[#allocation2 + $0x61] sm:$0xff] }
  0x47   : > { %v9744_v10 = vld [vmem:[#allocation2 + $0x79] sm:$0xff]  ;;  %v9747_v11 = vld [vmem:[#allocation2 + $0x69] sm:$0xff]  ;;  %v9750_v12 = vld [vmem:[#allocation2 + $0x91] sm:$0xff] }
  0x48   : > { %v9753_v13 = vld [vmem:[#allocation2 + $0x81] sm:$0xff]  ;;  %v9756_v14 = vld [vmem:[#allocation2 + $0xa9] sm:$0xff]  ;;  %v9759_v15 = vld [vmem:[#allocation2 + $0x99] sm:$0xff] }
  0x49   : > { %479 = vperm.xlu1 %9279, %v9657_v42   ;;  %494 = vperm.xlu0 %9278, %v9660_v43   ;;  %v9762_v16 = vld [vmem:[#allocation2 + $0xc1] sm:$0xff]  ;;  %v9765_v17 = vld [vmem:[#allocation2 + $0xb1] sm:$0xff]  ;;  %v9768_v18 = vld [vmem:[#allocation2 + $0xd9] sm:$0xff] }
  0x4a   : > { %v9771_v19 = vld [vmem:[#allocation2 + $0xc9] sm:$0xff]  ;;  %v9774_v20 = vld [vmem:[#allocation2 + $0xf1] sm:$0xff]  ;;  %v9777_v21 = vld [vmem:[#allocation2 + $0xe1] sm:$0xff] }
  0x4b   : > { %v9780_v22 = vld [vmem:[#allocation2 + $0x109] sm:$0xff]  ;;  %v9783_v23 = vld [vmem:[#allocation2 + $0xf9] sm:$0xff]  ;;  %v9786_v24 = vld [vmem:[#allocation2 + $0x121] sm:$0xff] }
  0x4c   : > { %v9789_v25 = vld [vmem:[#allocation2 + $0x111] sm:$0xff]  ;;  %v9792_v29 = vld [vmem:[#allocation2 + $0x139] sm:$0xff]  ;;  %v9795_v30 = vld [vmem:[#allocation2 + $0x129] sm:$0xff] }
  0x4d   : > { %489 = vperm.xlu1 %9279, %v9663_v44   ;;  %504 = vperm.xlu0 %9278, %v9666_v45   ;;  %14217 = vst [vmem:[#allocation8_spill] sm:$0xff] %v9795_v30  ;;  %v364_v34 = vld [vmem:[%s9572_s18 + $0xf0] sm:$0xff]  ;;  %v9803_v36 = vld [vmem:[#allocation2 + $0x141] sm:$0xff]  ;;  %v365_v38 = vld [vmem:[%s9572_s18 + $0xf8] sm:$0xff]  ;;  %s270_s18 = sand.u32 1, %s9347_s27  }
  0x4e   : > { %397 = vst.msk [vmem:[#allocation2 + $0x181] sm:$0xff] %vm278_vm0, %v364_v34  ;;  %v9800_v35 = vld [vmem:[#allocation2 + $0x151] sm:$0xff]  ;;  %14219 = vst [vmem:[#allocation10_spill] sm:$0xff] %v9803_v36  ;;  %v9806_v37 = vld [vmem:[#allocation2 + $0x169] sm:$0xff]  ;;  %s10923_s19 = sshll.u32 %s270_s18, 4 }
  0x4f   : > { %14218 = vst [vmem:[#allocation9_spill] sm:$0xff] %v9800_v35  ;;  %14220 = vst [vmem:[#allocation11_spill] sm:$0xff] %v9806_v37  ;;  %v9819_v1 = vld [vmem:[#allocation2 + $0x171] sm:$0xff]  ;;  %s11807_s15 = scalar_lea.vmem [#allocation5], %s10923_s19 }
  0x50   : > { %398 = vst.msk [vmem:[#allocation2 + $0x189] sm:$0xff] %vm278_vm0, %v365_v38 }
  0x51   : > { %499 = vperm.xlu1 %9279, %v9669_v46   ;;  %514 = vperm.xlu0 %9278, %v9672_v47  }
  0x55   : > { %509 = vperm.xlu1 %9279, %v9675_v48   ;;  %524 = vperm.xlu0 %9278, %v9678_v49  }
  0x59   : > { %519 = vperm.xlu1 %9279, %v9681_v50   ;;  %534 = vperm.xlu0 %9278, %v9684_v51  }
  0x5d   : > { %529 = vperm.xlu1 %9279, %v9687_v52   ;;  %544 = vperm.xlu0 %9278, %v9690_v53  }
  0x61   : > { %539 = vperm.xlu1 %9279, %v9693_v54   ;;  %554 = vperm.xlu0 %9278, %v9696_v55  }
  0x65   : > { %549 = vperm.xlu1 %9279, %v9699_v56   ;;  %564 = vperm.xlu0 %9278, %v9702_v57  }
  0x69   : > { %559 = vperm.xlu1 %9279, %v9705_v58   ;;  %574 = vperm.xlu0 %9278, %v9708_v59  }
  0x6d   : > { %569 = vperm.xlu1 %9279, %v9711_v60   ;;  %584 = vperm.xlu0 %9278, %v9714_v61  }
  0x71   : > { %579 = vperm.xlu1 %9279, %v9717_v62   ;;  %695 = vperm.xlu0 %9278, %v660_v63   ;;  %v9813_v63 = vld [vmem:[#allocation2 + $0x159] sm:$0xff] }
  0x72   : > { %14222 = vst [vmem:[#allocation13_spill] sm:$0xff] %v9813_v63 }
  0x75   : > { %589 = vperm.xlu1 %9279, %v9721_v0   ;;  %705 = vperm.xlu0 %9278, %v9723_v2  }
  0x79   : > { %700 = vperm.xlu1 %9279, %v661_v3   ;;  %715 = vperm.xlu0 %9278, %v9727_v4   ;;  %v921_v3 = vld [vmem:[#allocation2 + $0x2] sm:$0xff] }
  0x7d   : > { %710 = vperm.xlu1 %9279, %v9729_v5   ;;  %725 = vperm.xlu0 %9278, %v9732_v6  }
  0x81   : > { %720 = vperm.xlu1 %9279, %v9735_v7   ;;  %735 = vperm.xlu0 %9278, %v9738_v8  }
  0x85   : > { %730 = vperm.xlu1 %9279, %v9741_v9   ;;  %745 = vperm.xlu0 %9278, %v9744_v10  }
  0x89   : > { %740 = vperm.xlu1 %9279, %v9747_v11   ;;  %755 = vperm.xlu0 %9278, %v9750_v12  }
  0x8d   : > { %750 = vperm.xlu1 %9279, %v9753_v13   ;;  %765 = vperm.xlu0 %9278, %v9756_v14  }
  0x91   : > { %760 = vperm.xlu1 %9279, %v9759_v15   ;;  %775 = vperm.xlu0 %9278, %v9762_v16  }
  0x95   : > { %770 = vperm.xlu1 %9279, %v9765_v17   ;;  %785 = vperm.xlu0 %9278, %v9768_v18  }
  0x99   : > { %780 = vperm.xlu1 %9279, %v9771_v19   ;;  %795 = vperm.xlu0 %9278, %v9774_v20  }
  0x9a   : > { %v9811_v40 = vpop.permute.xlu0 %434 }
  0x9b   : > { %14221 = vst [vmem:[#allocation12_spill] sm:$0xff] %v9811_v40  ;;  %v922_v40 = vld [vmem:[#allocation2 + $0xa] sm:$0xff] }
  0x9d   : > { %790 = vperm.xlu1 %9279, %v9777_v21   ;;  %805 = vperm.xlu0 %9278, %v9780_v22  }
  0x9e   : > { %v9817_v34 = vpop.permute.xlu0 %439 }
  0x9f   : > { %14223 = vst [vmem:[#allocation14_spill] sm:$0xff] %v9817_v34 }
  0xa1   : > { %800 = vperm.xlu1 %9279, %v9783_v23   ;;  %815 = vperm.xlu0 %9278, %v9786_v24  }
  0xa5   : > { %810 = vperm.xlu1 %9279, %v9789_v25   ;;  %825 = vperm.xlu0 %9278, %v9792_v29  }
  0xa9   : > { %820 = vperm.xlu1 %9279, %v9795_v30   ;;  %835 = vperm.xlu0 %9278, %v9800_v35   ;;  %v9823_v30 = vld [vmem:[#allocation2 + $0x1a] sm:$0xff] }
  0xaa   : > { %14225 = vst [vmem:[#allocation16_spill] sm:$0xff] %v9823_v30 }
  0xad   : > { %830 = vperm.xlu1 %9279, %v9803_v36   ;;  %845 = vperm.xlu0 %9278, %v9806_v37   ;;  %v9831_v36 = vld [vmem:[#allocation2 + $0x32] sm:$0xff] }
  0xae   : > { %14228 = vst [vmem:[#allocation19_spill] sm:$0xff] %v9831_v36 }
  0xb1   : > { %840 = vperm.xlu1 %9279, %v9813_v63   ;;  %956 = vperm.xlu0 %9278, %v921_v3   ;;  %v9835_v63 = vld [vmem:[#allocation2 + $0x22] sm:$0xff] }
  0xb2   : > { %14230 = vst [vmem:[#allocation21_spill] sm:$0xff] %v9835_v63 }
  0xb4   : > { %v9821_v35 = vpop.permute.xlu1 %444  ;;  %v9826_v38 = vpop.permute.xlu0 %454 }
  0xb5   : > { %14224 = vst [vmem:[#allocation15_spill] sm:$0xff] %v9821_v35  ;;  %850 = vperm.xlu1 %9279, %v9819_v1   ;;  %14226 = vst [vmem:[#allocation17_spill] sm:$0xff] %v9826_v38  ;;  %966 = vperm.xlu0 %9278, %v9823_v30   ;;  %v9840_v35 = vld [vmem:[#allocation2 + $0x4a] sm:$0xff]  ;;  %v9845_v30 = vld [vmem:[#allocation2 + $0x3a] sm:$0xff] }
  0xb6   : > { %14232 = vst [vmem:[#allocation23_spill] sm:$0xff] %v9840_v35  ;;  %14234 = vst [vmem:[#allocation25_spill] sm:$0xff] %v9845_v30 }
  0xb8   : > { %v9829_v37 = vpop.permute.xlu1 %449  ;;  %v9833_v34 = vpop.permute.xlu0 %464 }
  0xb9   : > { %14227 = vst [vmem:[#allocation18_spill] sm:$0xff] %v9829_v37  ;;  %961 = vperm.xlu1 %9279, %v922_v40   ;;  %14229 = vst [vmem:[#allocation20_spill] sm:$0xff] %v9833_v34  ;;  %976 = vperm.xlu0 %9278, %v9831_v36   ;;  %v9850_v40 = vld [vmem:[#allocation2 + $0x62] sm:$0xff]  ;;  %v9855_v36 = vld [vmem:[#allocation2 + $0x52] sm:$0xff] }
  0xba   : > { %14236 = vst [vmem:[#allocation27_spill] sm:$0xff] %v9850_v40  ;;  %14238 = vst [vmem:[#allocation29_spill] sm:$0xff] %v9855_v36 }
  0xbc   : > { %v9838_v3 = vpop.permute.xlu1 %459  ;;  %v9843_v38 = vpop.permute.xlu0 %474 }
  0xbd   : > { %14231 = vst [vmem:[#allocation22_spill] sm:$0xff] %v9838_v3  ;;  %971 = vperm.xlu1 %9279, %v9835_v63   ;;  %14233 = vst [vmem:[#allocation24_spill] sm:$0xff] %v9843_v38  ;;  %986 = vperm.xlu0 %9278, %v9840_v35   ;;  %v9860_v63 = vld [vmem:[#allocation2 + $0x7a] sm:$0xff]  ;;  %v9865_v35 = vld [vmem:[#allocation2 + $0x6a] sm:$0xff] }
  0xbe   : > { %14240 = vst [vmem:[#allocation31_spill] sm:$0xff] %v9860_v63  ;;  %14242 = vst [vmem:[#allocation33_spill] sm:$0xff] %v9865_v35 }
  0xc0   : > { %v9848_v37 = vpop.permute.xlu1 %469  ;;  %v9853_v34 = vpop.permute.xlu0 %484 }
  0xc1   : > { %14235 = vst [vmem:[#allocation26_spill] sm:$0xff] %v9848_v37  ;;  %981 = vperm.xlu1 %9279, %v9845_v30   ;;  %14237 = vst [vmem:[#allocation28_spill] sm:$0xff] %v9853_v34  ;;  %996 = vperm.xlu0 %9278, %v9850_v40   ;;  %v9870_v30 = vld [vmem:[#allocation2 + $0x92] sm:$0xff]  ;;  %v9875_v40 = vld [vmem:[#allocation2 + $0x82] sm:$0xff] }
  0xc2   : > { %14244 = vst [vmem:[#allocation35_spill] sm:$0xff] %v9870_v30  ;;  %14246 = vst [vmem:[#allocation37_spill] sm:$0xff] %v9875_v40 }
  0xc4   : > { %v9858_v3 = vpop.permute.xlu1 %479  ;;  %v9863_v38 = vpop.permute.xlu0 %494 }
  0xc5   : > { %14239 = vst [vmem:[#allocation30_spill] sm:$0xff] %v9858_v3  ;;  %991 = vperm.xlu1 %9279, %v9855_v36   ;;  %14241 = vst [vmem:[#allocation32_spill] sm:$0xff] %v9863_v38  ;;  %1006 = vperm.xlu0 %9278, %v9860_v63   ;;  %v9880_v36 = vld [vmem:[#allocation2 + $0xaa] sm:$0xff]  ;;  %v9885_v63 = vld [vmem:[#allocation2 + $0x9a] sm:$0xff] }
  0xc6   : > { %14248 = vst [vmem:[#allocation39_spill] sm:$0xff] %v9880_v36  ;;  %14250 = vst [vmem:[#allocation41_spill] sm:$0xff] %v9885_v63 }
  0xc8   : > { %v9868_v37 = vpop.permute.xlu1 %489  ;;  %v9873_v34 = vpop.permute.xlu0 %504 }
  0xc9   : > { %14243 = vst [vmem:[#allocation34_spill] sm:$0xff] %v9868_v37  ;;  %1001 = vperm.xlu1 %9279, %v9865_v35   ;;  %14245 = vst [vmem:[#allocation36_spill] sm:$0xff] %v9873_v34  ;;  %1016 = vperm.xlu0 %9278, %v9870_v30   ;;  %v9890_v35 = vld [vmem:[#allocation2 + $0xc2] sm:$0xff]  ;;  %v9895_v30 = vld [vmem:[#allocation2 + $0xb2] sm:$0xff] }
  0xca   : > { %14252 = vst [vmem:[#allocation43_spill] sm:$0xff] %v9890_v35  ;;  %14254 = vst [vmem:[#allocation45_spill] sm:$0xff] %v9895_v30 }
  0xcc   : > { %v9878_v3 = vpop.permute.xlu1 %499  ;;  %v9883_v38 = vpop.permute.xlu0 %514 }
  0xcd   : > { %14247 = vst [vmem:[#allocation38_spill] sm:$0xff] %v9878_v3  ;;  %1011 = vperm.xlu1 %9279, %v9875_v40   ;;  %14249 = vst [vmem:[#allocation40_spill] sm:$0xff] %v9883_v38  ;;  %1026 = vperm.xlu0 %9278, %v9880_v36   ;;  %v9900_v40 = vld [vmem:[#allocation2 + $0xda] sm:$0xff]  ;;  %v9905_v36 = vld [vmem:[#allocation2 + $0xca] sm:$0xff] }
  0xce   : > { %14256 = vst [vmem:[#allocation47_spill] sm:$0xff] %v9900_v40  ;;  %14258 = vst [vmem:[#allocation49_spill] sm:$0xff] %v9905_v36 }
  0xd0   : > { %v9888_v37 = vpop.permute.xlu1 %509  ;;  %v9893_v34 = vpop.permute.xlu0 %524 }
  0xd1   : > { %14251 = vst [vmem:[#allocation42_spill] sm:$0xff] %v9888_v37  ;;  %1021 = vperm.xlu1 %9279, %v9885_v63   ;;  %14253 = vst [vmem:[#allocation44_spill] sm:$0xff] %v9893_v34  ;;  %1036 = vperm.xlu0 %9278, %v9890_v35   ;;  %v9910_v63 = vld [vmem:[#allocation2 + $0xf2] sm:$0xff]  ;;  %v9915_v35 = vld [vmem:[#allocation2 + $0xe2] sm:$0xff] }
  0xd2   : > { %14260 = vst [vmem:[#allocation51_spill] sm:$0xff] %v9910_v63  ;;  %14262 = vst [vmem:[#allocation53_spill] sm:$0xff] %v9915_v35 }
  0xd4   : > { %v9898_v3 = vpop.permute.xlu1 %519  ;;  %v9903_v38 = vpop.permute.xlu0 %534 }
  0xd5   : > { %14255 = vst [vmem:[#allocation46_spill] sm:$0xff] %v9898_v3  ;;  %1031 = vperm.xlu1 %9279, %v9895_v30   ;;  %14257 = vst [vmem:[#allocation48_spill] sm:$0xff] %v9903_v38  ;;  %1046 = vperm.xlu0 %9278, %v9900_v40   ;;  %v9920_v30 = vld [vmem:[#allocation2 + $0x10a] sm:$0xff]  ;;  %v9925_v40 = vld [vmem:[#allocation2 + $0xfa] sm:$0xff] }
  0xd6   : > { %14264 = vst [vmem:[#allocation55_spill] sm:$0xff] %v9920_v30  ;;  %14266 = vst [vmem:[#allocation57_spill] sm:$0xff] %v9925_v40 }
  0xd8   : > { %v9908_v37 = vpop.permute.xlu1 %529  ;;  %v9913_v34 = vpop.permute.xlu0 %544 }
  0xd9   : > { %14259 = vst [vmem:[#allocation50_spill] sm:$0xff] %v9908_v37  ;;  %1041 = vperm.xlu1 %9279, %v9905_v36   ;;  %14261 = vst [vmem:[#allocation52_spill] sm:$0xff] %v9913_v34  ;;  %1056 = vperm.xlu0 %9278, %v9910_v63   ;;  %v9930_v36 = vld [vmem:[#allocation2 + $0x122] sm:$0xff]  ;;  %v9935_v63 = vld [vmem:[#allocation2 + $0x112] sm:$0xff] }
  0xda   : > { %14268 = vst [vmem:[#allocation59_spill] sm:$0xff] %v9930_v36  ;;  %14270 = vst [vmem:[#allocation61_spill] sm:$0xff] %v9935_v63 }
  0xdc   : > { %v9918_v3 = vpop.permute.xlu1 %539  ;;  %v9923_v38 = vpop.permute.xlu0 %554 }
  0xdd   : > { %14263 = vst [vmem:[#allocation54_spill] sm:$0xff] %v9918_v3  ;;  %1051 = vperm.xlu1 %9279, %v9915_v35   ;;  %14265 = vst [vmem:[#allocation56_spill] sm:$0xff] %v9923_v38  ;;  %1066 = vperm.xlu0 %9278, %v9920_v30   ;;  %v9940_v35 = vld [vmem:[#allocation2 + $0x13a] sm:$0xff]  ;;  %v9945_v30 = vld [vmem:[#allocation2 + $0x12a] sm:$0xff] }
  0xde   : > { %14272 = vst [vmem:[#allocation63_spill] sm:$0xff] %v9940_v35  ;;  %14274 = vst [vmem:[#allocation65_spill] sm:$0xff] %v9945_v30 }
  0xe0   : > { %v9928_v37 = vpop.permute.xlu1 %549  ;;  %v9933_v34 = vpop.permute.xlu0 %564 }
  0xe1   : > { %14267 = vst [vmem:[#allocation58_spill] sm:$0xff] %v9928_v37  ;;  %1061 = vperm.xlu1 %9279, %v9925_v40   ;;  %14269 = vst [vmem:[#allocation60_spill] sm:$0xff] %v9933_v34  ;;  %1076 = vperm.xlu0 %9278, %v9930_v36   ;;  %v9950_v40 = vld [vmem:[#allocation2 + $0x152] sm:$0xff]  ;;  %v9955_v36 = vld [vmem:[#allocation2 + $0x142] sm:$0xff] }
  0xe2   : > { %14277 = vst [vmem:[#allocation68_spill] sm:$0xff] %v9955_v36 }
  0xe4   : > { %v9938_v3 = vpop.permute.xlu1 %559  ;;  %v9943_v38 = vpop.permute.xlu0 %574 }
  0xe5   : > { %14271 = vst [vmem:[#allocation62_spill] sm:$0xff] %v9938_v3  ;;  %1071 = vperm.xlu1 %9279, %v9935_v63   ;;  %14273 = vst [vmem:[#allocation64_spill] sm:$0xff] %v9943_v38  ;;  %1086 = vperm.xlu0 %9278, %v9940_v35   ;;  %v9960_v63 = vld [vmem:[#allocation2 + $0x16a] sm:$0xff]  ;;  %v9965_v35 = vld [vmem:[#allocation2 + $0x15a] sm:$0xff] }
  0xe8   : > { %v9948_v37 = vpop.permute.xlu1 %569  ;;  %v9953_v34 = vpop.permute.xlu0 %584 }
  0xe9   : > { %14275 = vst [vmem:[#allocation66_spill] sm:$0xff] %v9948_v37  ;;  %1081 = vperm.xlu1 %9279, %v9945_v30   ;;  %14276 = vst [vmem:[#allocation67_spill] sm:$0xff] %v9953_v34  ;;  %1096 = vperm.xlu0 %9278, %v9950_v40   ;;  %v9973_v30 = vld [vmem:[#allocation2 + $0x172] sm:$0xff] }
  0xec   : > { %v9958_v3 = vpop.permute.xlu1 %579  ;;  %v9963_v38 = vpop.permute.xlu0 %695 }
  0xed   : > { %14278 = vst [vmem:[#allocation69_spill] sm:$0xff] %v9958_v3  ;;  %1091 = vperm.xlu1 %9279, %v9955_v36   ;;  %14279 = vst [vmem:[#allocation70_spill] sm:$0xff] %v9963_v38  ;;  %1106 = vperm.xlu0 %9278, %v9960_v63  }
  0xf0   : > { %v9968_v37 = vpop.permute.xlu1 %589  ;;  %v9971_v34 = vpop.permute.xlu0 %705 }
  0xf1   : > { %14280 = vst [vmem:[#allocation71_spill] sm:$0xff] %v9968_v37  ;;  %1101 = vperm.xlu1 %9279, %v9965_v35   ;;  %14281 = vst [vmem:[#allocation72_spill] sm:$0xff] %v9971_v34  ;;  %1217 = vperm.xlu0 %9278, %v9615_v26  }
  0xf4   : > { %v9976_v3 = vpop.permute.xlu1 %700  ;;  %v9979_v36 = vpop.permute.xlu0 %715 }
  0xf5   : > { %14282 = vst [vmem:[#allocation73_spill] sm:$0xff] %v9976_v3  ;;  %1111 = vperm.xlu1 %9279, %v9973_v30   ;;  %1227 = vperm.xlu0 %9278, %v9617_v27  }
  0xf8   : > { %v9982_v38 = vpop.permute.xlu1 %710  ;;  %v9985_v37 = vpop.permute.xlu0 %725 }
  0xf9   : > { %1222 = vperm.xlu1 %9279, %v9623_v28   ;;  %1237 = vperm.xlu0 %9278, %v9630_v31  }
  0xfc   : > { %v9988_v34 = vpop.permute.xlu1 %720  ;;  %v9991_v26 = vpop.permute.xlu0 %735 }
  0xfd   : > { %1232 = vperm.xlu1 %9279, %v9633_v32   ;;  %1247 = vperm.xlu0 %9278, %v9636_v33  }
 0x100   : > { %v9994_v3 = vpop.permute.xlu1 %730  ;;  %v9997_v27 = vpop.permute.xlu0 %745 }
 0x101   : > { %1242 = vperm.xlu1 %9279, %v9647_v39   ;;  %1257 = vperm.xlu0 %9278, %v9654_v41  }
 0x104   : > { %v10000_v28 = vpop.permute.xlu1 %740  ;;  %v10003_v31 = vpop.permute.xlu0 %755 }
 0x105   : > { %1252 = vperm.xlu1 %9279, %v9657_v42   ;;  %1267 = vperm.xlu0 %9278, %v9660_v43  }
 0x108   : > { %v10006_v32 = vpop.permute.xlu1 %750  ;;  %v10009_v33 = vpop.permute.xlu0 %765 }
 0x109   : > { %1262 = vperm.xlu1 %9279, %v9663_v44   ;;  %1277 = vperm.xlu0 %9278, %v9666_v45  }
 0x10c   : > { %v10012_v39 = vpop.permute.xlu1 %760  ;;  %v10015_v41 = vpop.permute.xlu0 %775 }
 0x10d   : > { %1272 = vperm.xlu1 %9279, %v9669_v46   ;;  %1287 = vperm.xlu0 %9278, %v9672_v47  }
 0x110   : > { %v10018_v42 = vpop.permute.xlu1 %770  ;;  %v10021_v43 = vpop.permute.xlu0 %785 }
 0x111   : > { %1282 = vperm.xlu1 %9279, %v9675_v48   ;;  %1297 = vperm.xlu0 %9278, %v9678_v49  }
 0x114   : > { %v10024_v44 = vpop.permute.xlu1 %780  ;;  %v10027_v45 = vpop.permute.xlu0 %795 }
 0x115   : > { %1292 = vperm.xlu1 %9279, %v9681_v50   ;;  %1307 = vperm.xlu0 %9278, %v9684_v51  }
 0x118   : > { %v10030_v46 = vpop.permute.xlu1 %790  ;;  %v10033_v47 = vpop.permute.xlu0 %805 }
 0x119   : > { %1302 = vperm.xlu1 %9279, %v9687_v52   ;;  %1317 = vperm.xlu0 %9278, %v9690_v53  }
 0x11c   : > { %v10036_v48 = vpop.permute.xlu1 %800  ;;  %v10039_v49 = vpop.permute.xlu0 %815 }
 0x11d   : > { %14283 = vst [vmem:[#allocation74_spill] sm:$0xff] %v10036_v48  ;;  %1312 = vperm.xlu1 %9279, %v9693_v54   ;;  %14284 = vst [vmem:[#allocation75_spill] sm:$0xff] %v10039_v49  ;;  %1327 = vperm.xlu0 %9278, %v9696_v55   ;;  %v14496_v48 = vld [vmem:[#allocation52_spill] sm:$0xff] }
 0x120   : > { %v10042_v50 = vpop.permute.xlu1 %810  ;;  %v10045_v51 = vpop.permute.xlu0 %825 }
 0x121   : > { %14285 = vst [vmem:[#allocation76_spill] sm:$0xff] %v10042_v50  ;;  %1322 = vperm.xlu1 %9279, %v9699_v56   ;;  %14286 = vst [vmem:[#allocation77_spill] sm:$0xff] %v10045_v51  ;;  %1337 = vperm.xlu0 %9278, %v9702_v57   ;;  %v10062_v51 = vld [vmem:[#allocation2 + $0x180] sm:$0xff] }
 0x124   : > { %v10048_v52 = vpop.permute.xlu1 %820  ;;  %v10051_v53 = vpop.permute.xlu0 %835 }
 0x125   : > { %14287 = vst [vmem:[#allocation78_spill] sm:$0xff] %v10048_v52  ;;  %1332 = vperm.xlu1 %9279, %v9705_v58   ;;  %14288 = vst [vmem:[#allocation79_spill] sm:$0xff] %v10051_v53  ;;  %1347 = vperm.xlu0 %9278, %v9708_v59  }
 0x128   : > { %v10054_v54 = vpop.permute.xlu1 %830  ;;  %v10057_v55 = vpop.permute.xlu0 %845 }
 0x129   : > { %14289 = vst [vmem:[#allocation80_spill] sm:$0xff] %v10054_v54  ;;  %1342 = vperm.xlu1 %9279, %v9711_v60   ;;  %1357 = vperm.xlu0 %9278, %v9714_v61   ;;  %v10073_v60 = vld [vmem:[#allocation2 + $0x188] sm:$0xff] }
 0x12c   : > { %v10060_v56 = vpop.permute.xlu1 %840  ;;  %v10065_v57 = vpop.permute.xlu0 %956 }
 0x12d   : > { %14290 = vst [vmem:[#allocation81_spill] sm:$0xff] %v10060_v56  ;;  %1352 = vperm.xlu1 %9279, %v9717_v62   ;;  %14291 = vst [vmem:[#allocation82_spill] sm:$0xff] %v10065_v57  ;;  %1367 = vperm.xlu0 %9278, %v10062_v51  }
 0x130   : > { %v10068_v58 = vpop.permute.xlu1 %850  ;;  %v10071_v59 = vpop.permute.xlu0 %966 }
 0x131   : > { %1362 = vperm.xlu1 %9279, %v9721_v0   ;;  %14292 = vst [vmem:[#allocation83_spill] sm:$0xff] %v10071_v59  ;;  %1478 = vperm.xlu0 %9278, %v9723_v2   ;;  %v14482_v59 = vld [vmem:[#allocation40_spill] sm:$0xff] }
 0x134   : > { %v10076_v61 = vpop.permute.xlu1 %961  ;;  %v10079_v56 = vpop.permute.xlu0 %976 }
 0x135   : > { %14293 = vst [vmem:[#allocation84_spill] sm:$0xff] %v10076_v61  ;;  %1372 = vperm.xlu1 %9279, %v10073_v60   ;;  %14294 = vst [vmem:[#allocation85_spill] sm:$0xff] %v10079_v56  ;;  %1488 = vperm.xlu0 %9278, %v9727_v4  }
 0x138   : > { %v10082_v62 = vpop.permute.xlu1 %971  ;;  %v10085_v57 = vpop.permute.xlu0 %986 }
 0x139   : > { %14295 = vst [vmem:[#allocation86_spill] sm:$0xff] %v10082_v62  ;;  %1483 = vperm.xlu1 %9279, %v9729_v5   ;;  %14296 = vst [vmem:[#allocation87_spill] sm:$0xff] %v10085_v57  ;;  %1498 = vperm.xlu0 %9278, %v9732_v6   ;;  %v2507_v57 = vld [vmem:[#allocation2 + $0x112] sm:$0xff] }
 0x13a   : > { %v14481_v62 = vld [vmem:[#allocation38_spill] sm:$0xff] }
 0x13c   : > { %v10088_v0 = vpop.permute.xlu1 %981  ;;  %v10091_v2 = vpop.permute.xlu0 %996 }
 0x13d   : > { %14297 = vst [vmem:[#allocation88_spill] sm:$0xff] %v10088_v0  ;;  %1493 = vperm.xlu1 %9279, %v9735_v7   ;;  %14298 = vst [vmem:[#allocation89_spill] sm:$0xff] %v10091_v2  ;;  %1508 = vperm.xlu0 %9278, %v9738_v8  }
 0x140   : > { %v10094_v61 = vpop.permute.xlu1 %991  ;;  %v10097_v4 = vpop.permute.xlu0 %1006 }
 0x141   : > { %14299 = vst [vmem:[#allocation90_spill] sm:$0xff] %v10094_v61  ;;  %1503 = vperm.xlu1 %9279, %v9741_v9   ;;  %14300 = vst [vmem:[#allocation91_spill] sm:$0xff] %v10097_v4  ;;  %1518 = vperm.xlu0 %9278, %v9744_v10  }
 0x144   : > { %v10100_v5 = vpop.permute.xlu1 %1001  ;;  %v10103_v6 = vpop.permute.xlu0 %1016 }
 0x145   : > { %14301 = vst [vmem:[#allocation92_spill] sm:$0xff] %v10100_v5  ;;  %1513 = vperm.xlu1 %9279, %v9747_v11   ;;  %14302 = vst [vmem:[#allocation93_spill] sm:$0xff] %v10103_v6  ;;  %1528 = vperm.xlu0 %9278, %v9750_v12   ;;  %v14472_v6 = vld [vmem:[#allocation22_spill] sm:$0xff] }
 0x148   : > { %v10106_v7 = vpop.permute.xlu1 %1011  ;;  %v10109_v8 = vpop.permute.xlu0 %1026 }
 0x149   : > { %14303 = vst [vmem:[#allocation94_spill] sm:$0xff] %v10106_v7  ;;  %1523 = vperm.xlu1 %9279, %v9753_v13   ;;  %14304 = vst [vmem:[#allocation95_spill] sm:$0xff] %v10109_v8  ;;  %1538 = vperm.xlu0 %9278, %v9756_v14  }
 0x14c   : > { %v10112_v9 = vpop.permute.xlu1 %1021  ;;  %v10115_v10 = vpop.permute.xlu0 %1036 }
 0x14d   : > { %14305 = vst [vmem:[#allocation96_spill] sm:$0xff] %v10112_v9  ;;  %1533 = vperm.xlu1 %9279, %v9759_v15   ;;  %14306 = vst [vmem:[#allocation97_spill] sm:$0xff] %v10115_v10  ;;  %1548 = vperm.xlu0 %9278, %v9762_v16   ;;  %v14469_v9 = vld [vmem:[#allocation18_spill] sm:$0xff] }
 0x150   : > { %v10118_v11 = vpop.permute.xlu1 %1031  ;;  %v10121_v12 = vpop.permute.xlu0 %1046 }
 0x151   : > { %14307 = vst [vmem:[#allocation98_spill] sm:$0xff] %v10118_v11  ;;  %1543 = vperm.xlu1 %9279, %v9765_v17   ;;  %14308 = vst [vmem:[#allocation99_spill] sm:$0xff] %v10121_v12  ;;  %1558 = vperm.xlu0 %9278, %v9768_v18   ;;  %v2491_v11 = vld [vmem:[#allocation2 + $0x52] sm:$0xff] }
 0x154   : > { %v10124_v13 = vpop.permute.xlu1 %1041  ;;  %v10127_v14 = vpop.permute.xlu0 %1056 }
 0x155   : > { %14309 = vst [vmem:[#allocation100_spill] sm:$0xff] %v10124_v13  ;;  %1553 = vperm.xlu1 %9279, %v9771_v19   ;;  %14310 = vst [vmem:[#allocation101_spill] sm:$0xff] %v10127_v14  ;;  %1568 = vperm.xlu0 %9278, %v9774_v20   ;;  %v14337_v14 = vld [vmem:[#allocation25_spill] sm:$0xff] }
 0x158   : > { %v10130_v15 = vpop.permute.xlu1 %1051  ;;  %v10133_v16 = vpop.permute.xlu0 %1066 }
 0x159   : > { %14311 = vst [vmem:[#allocation102_spill] sm:$0xff] %v10130_v15  ;;  %1563 = vperm.xlu1 %9279, %v9777_v21   ;;  %14312 = vst [vmem:[#allocation103_spill] sm:$0xff] %v10133_v16  ;;  %1578 = vperm.xlu0 %9278, %v9780_v22   ;;  %v14318_v16 = vld [vmem:[#allocation8_spill] sm:$0xff] }
 0x15c   : > { %v10136_v17 = vpop.permute.xlu1 %1061  ;;  %v10139_v18 = vpop.permute.xlu0 %1076 }
 0x15d   : > { %14313 = vst [vmem:[#allocation104_spill] sm:$0xff] %v10136_v17  ;;  %1573 = vperm.xlu1 %9279, %v9783_v23   ;;  %14314 = vst [vmem:[#allocation105_spill] sm:$0xff] %v10139_v18  ;;  %1588 = vperm.xlu0 %9278, %v9786_v24   ;;  %v14320_v17 = vld [vmem:[#allocation9_spill] sm:$0xff]  ;;  %v14322_v18 = vld [vmem:[#allocation10_spill] sm:$0xff] }
 0x160   : > { %v10142_v19 = vpop.permute.xlu1 %1071  ;;  %v10145_v20 = vpop.permute.xlu0 %1086 }
 0x161   : > { %14315 = vst [vmem:[#allocation106_spill] sm:$0xff] %v10142_v19  ;;  %1583 = vperm.xlu1 %9279, %v9789_v25   ;;  %14316 = vst [vmem:[#allocation107_spill] sm:$0xff] %v10145_v20  ;;  %1598 = vperm.xlu0 %9278, %v9792_v29   ;;  %v14323_v19 = vld [vmem:[#allocation11_spill] sm:$0xff]  ;;  %v10162_v20 = vld [vmem:[#allocation2 + $0x181] sm:$0xff] }
 0x162   : > { %v14325_v29 = vld [vmem:[#allocation13_spill] sm:$0xff] }
 0x164   : > { %v10148_v21 = vpop.permute.xlu1 %1081  ;;  %v10151_v22 = vpop.permute.xlu0 %1096 }
 0x165   : > { %14317 = vst [vmem:[#allocation108_spill] sm:$0xff] %v10148_v21  ;;  %1593 = vperm.xlu1 %9279, %v14318_v16   ;;  %14319 = vst [vmem:[#allocation8_spill] sm:$0xff] %v10151_v22  ;;  %1608 = vperm.xlu0 %9278, %v14320_v17   ;;  %v14333_v22 = vld [vmem:[#allocation21_spill] sm:$0xff] }
 0x168   : > { %v10154_v23 = vpop.permute.xlu1 %1091  ;;  %v10157_v24 = vpop.permute.xlu0 %1106 }
 0x169   : > { %14321 = vst [vmem:[#allocation9_spill] sm:$0xff] %v10154_v23  ;;  %1603 = vperm.xlu1 %9279, %v14322_v18   ;;  %1618 = vperm.xlu0 %9278, %v14323_v19   ;;  %v10173_v18 = vld [vmem:[#allocation2 + $0x189] sm:$0xff]  ;;  %v14328_v23 = vld [vmem:[#allocation16_spill] sm:$0xff] }
 0x16c   : > { %v10160_v25 = vpop.permute.xlu1 %1101  ;;  %v10165_v21 = vpop.permute.xlu0 %1217 }
 0x16d   : > { %14324 = vst [vmem:[#allocation10_spill] sm:$0xff] %v10160_v25  ;;  %1613 = vperm.xlu1 %9279, %v14325_v29   ;;  %14326 = vst [vmem:[#allocation11_spill] sm:$0xff] %v10165_v21  ;;  %1628 = vperm.xlu0 %9278, %v10162_v20   ;;  %v14331_v29 = vld [vmem:[#allocation19_spill] sm:$0xff] }
 0x170   : > { %v10168_v16 = vpop.permute.xlu1 %1111  ;;  %v10171_v17 = vpop.permute.xlu0 %1227 }
 0x171   : > { %1623 = vperm.xlu1 %9279, %v9819_v1   ;;  %14327 = vst [vmem:[#allocation13_spill] sm:$0xff] %v10171_v17  ;;  %1739 = vperm.xlu0 %9278, %v14328_v23   ;;  %v14335_v1 = vld [vmem:[#allocation23_spill] sm:$0xff] }
 0x174   : > { %v10176_v19 = vpop.permute.xlu1 %1222  ;;  %v10179_v25 = vpop.permute.xlu0 %1237 }
 0x175   : > { %14329 = vst [vmem:[#allocation16_spill] sm:$0xff] %v10176_v19  ;;  %1633 = vperm.xlu1 %9279, %v10173_v18   ;;  %14330 = vst [vmem:[#allocation109_spill] sm:$0xff] %v10179_v25  ;;  %1749 = vperm.xlu0 %9278, %v14331_v29   ;;  %v14339_v19 = vld [vmem:[#allocation27_spill] sm:$0xff]  ;;  %v14341_v25 = vld [vmem:[#allocation29_spill] sm:$0xff] }
 0x178   : > { %v10182_v21 = vpop.permute.xlu1 %1232  ;;  %v10185_v15 = vpop.permute.xlu0 %1247 }
 0x179   : > { %14332 = vst [vmem:[#allocation19_spill] sm:$0xff] %v10182_v21  ;;  %1744 = vperm.xlu1 %9279, %v14333_v22   ;;  %14334 = vst [vmem:[#allocation21_spill] sm:$0xff] %v10185_v15  ;;  %1759 = vperm.xlu0 %9278, %v14335_v1   ;;  %v14343_v21 = vld [vmem:[#allocation31_spill] sm:$0xff]  ;;  %v14345_v15 = vld [vmem:[#allocation33_spill] sm:$0xff] }
 0x17c   : > { %v10188_v17 = vpop.permute.xlu1 %1242  ;;  %v10191_v23 = vpop.permute.xlu0 %1257 }
 0x17d   : > { %14336 = vst [vmem:[#allocation23_spill] sm:$0xff] %v10188_v17  ;;  %1754 = vperm.xlu1 %9279, %v14337_v14   ;;  %14338 = vst [vmem:[#allocation25_spill] sm:$0xff] %v10191_v23  ;;  %1769 = vperm.xlu0 %9278, %v14339_v19   ;;  %v14347_v17 = vld [vmem:[#allocation35_spill] sm:$0xff]  ;;  %v14349_v23 = vld [vmem:[#allocation37_spill] sm:$0xff] }
 0x180   : > { %v10194_v13 = vpop.permute.xlu1 %1252  ;;  %v10197_v29 = vpop.permute.xlu0 %1267 }
 0x181   : > { %14340 = vst [vmem:[#allocation27_spill] sm:$0xff] %v10194_v13  ;;  %1764 = vperm.xlu1 %9279, %v14341_v25   ;;  %14342 = vst [vmem:[#allocation29_spill] sm:$0xff] %v10197_v29  ;;  %1779 = vperm.xlu0 %9278, %v14343_v21   ;;  %v14351_v13 = vld [vmem:[#allocation39_spill] sm:$0xff]  ;;  %v14353_v29 = vld [vmem:[#allocation41_spill] sm:$0xff] }
 0x184   : > { %v10200_v22 = vpop.permute.xlu1 %1262  ;;  %v10203_v1 = vpop.permute.xlu0 %1277 }
 0x185   : > { %14344 = vst [vmem:[#allocation31_spill] sm:$0xff] %v10200_v22  ;;  %1774 = vperm.xlu1 %9279, %v14345_v15   ;;  %14346 = vst [vmem:[#allocation33_spill] sm:$0xff] %v10203_v1  ;;  %1789 = vperm.xlu0 %9278, %v14347_v17   ;;  %v14355_v22 = vld [vmem:[#allocation43_spill] sm:$0xff]  ;;  %v14357_v1 = vld [vmem:[#allocation45_spill] sm:$0xff] }
 0x188   : > { %v10206_v14 = vpop.permute.xlu1 %1272  ;;  %v10209_v19 = vpop.permute.xlu0 %1287 }
 0x189   : > { %14348 = vst [vmem:[#allocation35_spill] sm:$0xff] %v10206_v14  ;;  %1784 = vperm.xlu1 %9279, %v14349_v23   ;;  %14350 = vst [vmem:[#allocation37_spill] sm:$0xff] %v10209_v19  ;;  %1799 = vperm.xlu0 %9278, %v14351_v13   ;;  %v14359_v14 = vld [vmem:[#allocation47_spill] sm:$0xff]  ;;  %v14361_v19 = vld [vmem:[#allocation49_spill] sm:$0xff] }
 0x18c   : > { %v10212_v25 = vpop.permute.xlu1 %1282  ;;  %v10215_v21 = vpop.permute.xlu0 %1297 }
 0x18d   : > { %14352 = vst [vmem:[#allocation39_spill] sm:$0xff] %v10212_v25  ;;  %1794 = vperm.xlu1 %9279, %v14353_v29   ;;  %14354 = vst [vmem:[#allocation41_spill] sm:$0xff] %v10215_v21  ;;  %1809 = vperm.xlu0 %9278, %v14355_v22   ;;  %v14363_v25 = vld [vmem:[#allocation51_spill] sm:$0xff]  ;;  %v14365_v21 = vld [vmem:[#allocation53_spill] sm:$0xff] }
 0x190   : > { %v10218_v15 = vpop.permute.xlu1 %1292  ;;  %v10221_v17 = vpop.permute.xlu0 %1307 }
 0x191   : > { %14356 = vst [vmem:[#allocation43_spill] sm:$0xff] %v10218_v15  ;;  %1804 = vperm.xlu1 %9279, %v14357_v1   ;;  %14358 = vst [vmem:[#allocation45_spill] sm:$0xff] %v10221_v17  ;;  %1819 = vperm.xlu0 %9278, %v14359_v14   ;;  %v14367_v15 = vld [vmem:[#allocation55_spill] sm:$0xff]  ;;  %v14369_v17 = vld [vmem:[#allocation57_spill] sm:$0xff] }
 0x194   : > { %v10224_v23 = vpop.permute.xlu1 %1302  ;;  %v10227_v13 = vpop.permute.xlu0 %1317 }
 0x195   : > { %14360 = vst [vmem:[#allocation47_spill] sm:$0xff] %v10224_v23  ;;  %1814 = vperm.xlu1 %9279, %v14361_v19   ;;  %14362 = vst [vmem:[#allocation49_spill] sm:$0xff] %v10227_v13  ;;  %1829 = vperm.xlu0 %9278, %v14363_v25   ;;  %v14371_v23 = vld [vmem:[#allocation59_spill] sm:$0xff]  ;;  %v14373_v13 = vld [vmem:[#allocation61_spill] sm:$0xff] }
 0x198   : > { %v10230_v29 = vpop.permute.xlu1 %1312  ;;  %v10233_v22 = vpop.permute.xlu0 %1327 }
 0x199   : > { %14364 = vst [vmem:[#allocation51_spill] sm:$0xff] %v10230_v29  ;;  %1824 = vperm.xlu1 %9279, %v14365_v21   ;;  %14366 = vst [vmem:[#allocation53_spill] sm:$0xff] %v10233_v22  ;;  %1839 = vperm.xlu0 %9278, %v14367_v15   ;;  %v14375_v29 = vld [vmem:[#allocation63_spill] sm:$0xff]  ;;  %v14377_v22 = vld [vmem:[#allocation65_spill] sm:$0xff] }
 0x19c   : > { %v10236_v1 = vpop.permute.xlu1 %1322  ;;  %v10239_v14 = vpop.permute.xlu0 %1337 }
 0x19d   : > { %14368 = vst [vmem:[#allocation55_spill] sm:$0xff] %v10236_v1  ;;  %1834 = vperm.xlu1 %9279, %v14369_v17   ;;  %14370 = vst [vmem:[#allocation57_spill] sm:$0xff] %v10239_v14  ;;  %1849 = vperm.xlu0 %9278, %v14371_v23   ;;  %v14380_v14 = vld [vmem:[#allocation68_spill] sm:$0xff]  ;;  %v1971_v1 = vld [vmem:[#allocation2 + $0x68] sm:$0xff] }
 0x1a0   : > { %v10242_v19 = vpop.permute.xlu1 %1332  ;;  %v10245_v25 = vpop.permute.xlu0 %1347 }
 0x1a1   : > { %14372 = vst [vmem:[#allocation59_spill] sm:$0xff] %v10242_v19  ;;  %1844 = vperm.xlu1 %9279, %v14373_v13   ;;  %14374 = vst [vmem:[#allocation61_spill] sm:$0xff] %v10245_v25  ;;  %1859 = vperm.xlu0 %9278, %v14375_v29   ;;  %v10262_v25 = vld [vmem:[#allocation2 + $0x182] sm:$0xff] }
 0x1a4   : > { %v10248_v21 = vpop.permute.xlu1 %1342  ;;  %v10251_v15 = vpop.permute.xlu0 %1357 }
 0x1a5   : > { %14376 = vst [vmem:[#allocation63_spill] sm:$0xff] %v10248_v21  ;;  %1854 = vperm.xlu1 %9279, %v14377_v22   ;;  %14378 = vst [vmem:[#allocation65_spill] sm:$0xff] %v10251_v15  ;;  %1869 = vperm.xlu0 %9278, %v9950_v40   ;;  %v1966_v40 = vld [vmem:[#allocation2 + $0x30] sm:$0xff]  ;;  %v1970_v21 = vld [vmem:[#allocation2 + $0x60] sm:$0xff] }
 0x1a8   : > { %v10254_v17 = vpop.permute.xlu1 %1352  ;;  %v10257_v23 = vpop.permute.xlu0 %1367 }
 0x1a9   : > { %14379 = vst [vmem:[#allocation110_spill] sm:$0xff] %v10254_v17  ;;  %1864 = vperm.xlu1 %9279, %v14380_v14   ;;  %1879 = vperm.xlu0 %9278, %v9960_v63   ;;  %v10273_v17 = vld [vmem:[#allocation2 + $0x18a] sm:$0xff] }
 0x1aa   : > { %14384 = vst [vmem:[#allocation113_spill] sm:$0xff] %v10273_v17 }
 0x1ac   : > { %v10260_v13 = vpop.permute.xlu1 %1362  ;;  %v10265_v29 = vpop.permute.xlu0 %1478 }
 0x1ad   : > { %14381 = vst [vmem:[#allocation68_spill] sm:$0xff] %v10260_v13  ;;  %1874 = vperm.xlu1 %9279, %v9965_v35   ;;  %14382 = vst [vmem:[#allocation111_spill] sm:$0xff] %v10265_v29  ;;  %1889 = vperm.xlu0 %9278, %v10262_v25   ;;  %v1968_v13 = vld [vmem:[#allocation2 + $0x48] sm:$0xff]  ;;  %v1967_v29 = vld [vmem:[#allocation2 + $0x38] sm:$0xff] }
 0x1b0   : > { %v10268_v22 = vpop.permute.xlu1 %1372  ;;  %v10271_v14 = vpop.permute.xlu0 %1488 }
 0x1b1   : > { %1884 = vperm.xlu1 %9279, %v9973_v30   ;;  %14383 = vst [vmem:[#allocation112_spill] sm:$0xff] %v10271_v14  ;;  %2001 = vperm.xlu0 %9278, %v1966_v40   ;;  %v1969_v30 = vld [vmem:[#allocation2 + $0x50] sm:$0xff]  ;;  %v1972_v40 = vld [vmem:[#allocation2 + $0x78] sm:$0xff] }
 0x1b4   : > { %v10275_v63 = vpop.permute.xlu1 %1483  ;;  %v10278_v35 = vpop.permute.xlu0 %1498 }
 0x1b5   : > { %14385 = vst [vmem:[#allocation114_spill] sm:$0xff] %v10275_v63  ;;  %1894 = vperm.xlu1 %9279, %v10273_v17   ;;  %14386 = vst [vmem:[#allocation115_spill] sm:$0xff] %v10278_v35  ;;  %2011 = vperm.xlu0 %9278, %v1968_v13   ;;  %v1974_v35 = vld [vmem:[#allocation2 + $0x90] sm:$0xff] }
 0x1b8   : > { %v10280_v15 = vpop.permute.xlu1 %1493  ;;  %v10282_v19 = vpop.permute.xlu0 %1508 }
 0x1b9   : > { %14387 = vst [vmem:[#allocation116_spill] sm:$0xff] %v10280_v15  ;;  %2006 = vperm.xlu1 %9279, %v1967_v29   ;;  %14388 = vst [vmem:[#allocation117_spill] sm:$0xff] %v10282_v19  ;;  %2021 = vperm.xlu0 %9278, %v1970_v21   ;;  %v1973_v15 = vld [vmem:[#allocation2 + $0x80] sm:$0xff]  ;;  %v1976_v19 = vld [vmem:[#allocation2 + $0xa8] sm:$0xff] }
 0x1bc   : > { %v10284_v14 = vpop.permute.xlu1 %1503  ;;  %v10286_v63 = vpop.permute.xlu0 %1518 }
 0x1bd   : > { %14389 = vst [vmem:[#allocation118_spill] sm:$0xff] %v10284_v14  ;;  %2016 = vperm.xlu1 %9279, %v1969_v30   ;;  %14390 = vst [vmem:[#allocation119_spill] sm:$0xff] %v10286_v63  ;;  %2031 = vperm.xlu0 %9278, %v1972_v40   ;;  %v1975_v14 = vld [vmem:[#allocation2 + $0x98] sm:$0xff]  ;;  %v1978_v63 = vld [vmem:[#allocation2 + $0xc0] sm:$0xff] }
 0x1c0   : > { %v10288_v12 = vpop.permute.xlu1 %1513  ;;  %v10290_v13 = vpop.permute.xlu0 %1528 }
 0x1c1   : > { %14391 = vst [vmem:[#allocation120_spill] sm:$0xff] %v10288_v12  ;;  %2026 = vperm.xlu1 %9279, %v1971_v1   ;;  %14392 = vst [vmem:[#allocation121_spill] sm:$0xff] %v10290_v13  ;;  %2041 = vperm.xlu0 %9278, %v1974_v35   ;;  %v1977_v12 = vld [vmem:[#allocation2 + $0xb0] sm:$0xff]  ;;  %v1980_v13 = vld [vmem:[#allocation2 + $0xd8] sm:$0xff] }
 0x1c4   : > { %v10292_v29 = vpop.permute.xlu1 %1523  ;;  %v10294_v21 = vpop.permute.xlu0 %1538 }
 0x1c5   : > { %14393 = vst [vmem:[#allocation122_spill] sm:$0xff] %v10292_v29  ;;  %2036 = vperm.xlu1 %9279, %v1973_v15   ;;  %14394 = vst [vmem:[#allocation123_spill] sm:$0xff] %v10294_v21  ;;  %2051 = vperm.xlu0 %9278, %v1976_v19   ;;  %v1979_v29 = vld [vmem:[#allocation2 + $0xc8] sm:$0xff]  ;;  %v1982_v21 = vld [vmem:[#allocation2 + $0xf0] sm:$0xff] }
 0x1c8   : > { %v10296_v30 = vpop.permute.xlu1 %1533  ;;  %v10298_v40 = vpop.permute.xlu0 %1548 }
 0x1c9   : > { %14395 = vst [vmem:[#allocation124_spill] sm:$0xff] %v10296_v30  ;;  %2046 = vperm.xlu1 %9279, %v1975_v14   ;;  %14396 = vst [vmem:[#allocation125_spill] sm:$0xff] %v10298_v40  ;;  %2061 = vperm.xlu0 %9278, %v1978_v63   ;;  %v1981_v30 = vld [vmem:[#allocation2 + $0xe0] sm:$0xff]  ;;  %v1984_v40 = vld [vmem:[#allocation2 + $0x108] sm:$0xff] }
 0x1cc   : > { %v10300_v1 = vpop.permute.xlu1 %1543  ;;  %v10302_v35 = vpop.permute.xlu0 %1558 }
 0x1cd   : > { %14397 = vst [vmem:[#allocation126_spill] sm:$0xff] %v10300_v1  ;;  %2056 = vperm.xlu1 %9279, %v1977_v12   ;;  %14398 = vst [vmem:[#allocation127_spill] sm:$0xff] %v10302_v35  ;;  %2071 = vperm.xlu0 %9278, %v1980_v13   ;;  %v1983_v1 = vld [vmem:[#allocation2 + $0xf8] sm:$0xff]  ;;  %v1986_v35 = vld [vmem:[#allocation2 + $0x120] sm:$0xff] }
 0x1d0   : > { %v10304_v15 = vpop.permute.xlu1 %1553  ;;  %v10306_v19 = vpop.permute.xlu0 %1568 }
 0x1d1   : > { %14399 = vst [vmem:[#allocation128_spill] sm:$0xff] %v10304_v15  ;;  %2066 = vperm.xlu1 %9279, %v1979_v29   ;;  %14400 = vst [vmem:[#allocation129_spill] sm:$0xff] %v10306_v19  ;;  %2081 = vperm.xlu0 %9278, %v1982_v21   ;;  %v1985_v15 = vld [vmem:[#allocation2 + $0x110] sm:$0xff]  ;;  %v1988_v19 = vld [vmem:[#allocation2 + $0x138] sm:$0xff] }
 0x1d4   : > { %v10308_v14 = vpop.permute.xlu1 %1563  ;;  %v10310_v63 = vpop.permute.xlu0 %1578 }
 0x1d5   : > { %14401 = vst [vmem:[#allocation130_spill] sm:$0xff] %v10308_v14  ;;  %2076 = vperm.xlu1 %9279, %v1981_v30   ;;  %14402 = vst [vmem:[#allocation131_spill] sm:$0xff] %v10310_v63  ;;  %2091 = vperm.xlu0 %9278, %v1984_v40   ;;  %v1987_v14 = vld [vmem:[#allocation2 + $0x128] sm:$0xff]  ;;  %v1990_v63 = vld [vmem:[#allocation2 + $0x150] sm:$0xff] }
 0x1d8   : > { %v10312_v12 = vpop.permute.xlu1 %1573  ;;  %v10314_v13 = vpop.permute.xlu0 %1588 }
 0x1d9   : > { %14403 = vst [vmem:[#allocation132_spill] sm:$0xff] %v10312_v12  ;;  %2086 = vperm.xlu1 %9279, %v1983_v1   ;;  %14404 = vst [vmem:[#allocation133_spill] sm:$0xff] %v10314_v13  ;;  %2101 = vperm.xlu0 %9278, %v1986_v35   ;;  %v1989_v12 = vld [vmem:[#allocation2 + $0x140] sm:$0xff]  ;;  %v1992_v13 = vld [vmem:[#allocation2 + $0x168] sm:$0xff] }
 0x1dc   : > { %v10316_v29 = vpop.permute.xlu1 %1583  ;;  %v10318_v21 = vpop.permute.xlu0 %1598 }
 0x1dd   : > { %14405 = vst [vmem:[#allocation134_spill] sm:$0xff] %v10316_v29  ;;  %2096 = vperm.xlu1 %9279, %v1985_v15   ;;  %14406 = vst [vmem:[#allocation135_spill] sm:$0xff] %v10318_v21  ;;  %2111 = vperm.xlu0 %9278, %v1988_v19   ;;  %v1991_v29 = vld [vmem:[#allocation2 + $0x158] sm:$0xff] }
 0x1de   : > { %v2230_v21 = vld [vmem:[#allocation2 + $0x51] sm:$0xff] }
 0x1e0   : > { %v10320_v30 = vpop.permute.xlu1 %1593  ;;  %v10322_v40 = vpop.permute.xlu0 %1608 }
 0x1e1   : > { %14407 = vst [vmem:[#allocation136_spill] sm:$0xff] %v10320_v30  ;;  %2106 = vperm.xlu1 %9279, %v1987_v14   ;;  %14408 = vst [vmem:[#allocation137_spill] sm:$0xff] %v10322_v40  ;;  %2121 = vperm.xlu0 %9278, %v1990_v63   ;;  %v1993_v30 = vld [vmem:[#allocation2 + $0x170] sm:$0xff]  ;;  %v1996_v40 = vld [vmem:[#allocation2 + $0x198] sm:$0xff] }
 0x1e4   : > { %v10324_v1 = vpop.permute.xlu1 %1603  ;;  %v10326_v35 = vpop.permute.xlu0 %1618 }
 0x1e5   : > { %14409 = vst [vmem:[#allocation138_spill] sm:$0xff] %v10324_v1  ;;  %2116 = vperm.xlu1 %9279, %v1989_v12   ;;  %14410 = vst [vmem:[#allocation139_spill] sm:$0xff] %v10326_v35  ;;  %2131 = vperm.xlu0 %9278, %v1992_v13   ;;  %v2227_v35 = vld [vmem:[#allocation2 + $0x31] sm:$0xff]  ;;  %v2229_v1 = vld [vmem:[#allocation2 + $0x49] sm:$0xff] }
 0x1e8   : > { %v10328_v15 = vpop.permute.xlu1 %1613  ;;  %v10330_v19 = vpop.permute.xlu0 %1628 }
 0x1e9   : > { %14411 = vst [vmem:[#allocation140_spill] sm:$0xff] %v10328_v15  ;;  %2126 = vperm.xlu1 %9279, %v1991_v29   ;;  %2141 = vperm.xlu0 %9278, %v10062_v51   ;;  %v1997_v29 = vld [vmem:[#allocation2 + $0x1a0] sm:$0xff] }
 0x1ec   : > { %v10333_v14 = vpop.permute.xlu1 %1623  ;;  %v10335_v63 = vpop.permute.xlu0 %1739 }
 0x1ed   : > { %14412 = vst [vmem:[#allocation141_spill] sm:$0xff] %v10333_v14  ;;  %2136 = vperm.xlu1 %9279, %v1993_v30   ;;  %14413 = vst [vmem:[#allocation142_spill] sm:$0xff] %v10335_v63  ;;  %2151 = vperm.xlu0 %9278, %v1996_v40   ;;  %v2228_v14 = vld [vmem:[#allocation2 + $0x39] sm:$0xff]  ;;  %v2231_v40 = vld [vmem:[#allocation2 + $0x61] sm:$0xff] }
 0x1f0   : > { %v10337_v12 = vpop.permute.xlu1 %1633  ;;  %v10340_v13 = vpop.permute.xlu0 %1749 }
 0x1f1   : > { %2146 = vperm.xlu1 %9279, %v10073_v60   ;;  %14414 = vst [vmem:[#allocation143_spill] sm:$0xff] %v10340_v13  ;;  %2262 = vperm.xlu0 %9278, %v2227_v35   ;;  %v2233_v13 = vld [vmem:[#allocation2 + $0x79] sm:$0xff] }
 0x1f4   : > { %v10342_v15 = vpop.permute.xlu1 %1744  ;;  %v10344_v51 = vpop.permute.xlu0 %1759 }
 0x1f5   : > { %14415 = vst [vmem:[#allocation144_spill] sm:$0xff] %v10342_v15  ;;  %2156 = vperm.xlu1 %9279, %v1997_v29   ;;  %14416 = vst [vmem:[#allocation145_spill] sm:$0xff] %v10344_v51  ;;  %2272 = vperm.xlu0 %9278, %v2229_v1   ;;  %v2232_v15 = vld [vmem:[#allocation2 + $0x69] sm:$0xff]  ;;  %v2235_v51 = vld [vmem:[#allocation2 + $0x91] sm:$0xff] }
 0x1f8   : > { %v10346_v30 = vpop.permute.xlu1 %1754  ;;  %v10348_v63 = vpop.permute.xlu0 %1769 }
 0x1f9   : > { %14417 = vst [vmem:[#allocation146_spill] sm:$0xff] %v10346_v30  ;;  %2267 = vperm.xlu1 %9279, %v2228_v14   ;;  %14418 = vst [vmem:[#allocation147_spill] sm:$0xff] %v10348_v63  ;;  %2282 = vperm.xlu0 %9278, %v2231_v40   ;;  %v2234_v30 = vld [vmem:[#allocation2 + $0x81] sm:$0xff]  ;;  %v2237_v63 = vld [vmem:[#allocation2 + $0xa9] sm:$0xff] }
 0x1fc   : > { %v10350_v60 = vpop.permute.xlu1 %1764  ;;  %v10352_v35 = vpop.permute.xlu0 %1779 }
 0x1fd   : > { %14419 = vst [vmem:[#allocation148_spill] sm:$0xff] %v10350_v60  ;;  %2277 = vperm.xlu1 %9279, %v2230_v21   ;;  %14420 = vst [vmem:[#allocation149_spill] sm:$0xff] %v10352_v35  ;;  %2292 = vperm.xlu0 %9278, %v2233_v13   ;;  %v2236_v60 = vld [vmem:[#allocation2 + $0x99] sm:$0xff]  ;;  %v2239_v35 = vld [vmem:[#allocation2 + $0xc1] sm:$0xff] }
 0x200   : > { %v10354_v29 = vpop.permute.xlu1 %1774  ;;  %v10356_v1 = vpop.permute.xlu0 %1789 }
 0x201   : > { %14421 = vst [vmem:[#allocation150_spill] sm:$0xff] %v10354_v29  ;;  %2287 = vperm.xlu1 %9279, %v2232_v15   ;;  %14422 = vst [vmem:[#allocation151_spill] sm:$0xff] %v10356_v1  ;;  %2302 = vperm.xlu0 %9278, %v2235_v51   ;;  %v2238_v29 = vld [vmem:[#allocation2 + $0xb1] sm:$0xff]  ;;  %v2241_v1 = vld [vmem:[#allocation2 + $0xd9] sm:$0xff] }
 0x204   : > { %v10358_v14 = vpop.permute.xlu1 %1784  ;;  %v10360_v40 = vpop.permute.xlu0 %1799 }
 0x205   : > { %14423 = vst [vmem:[#allocation152_spill] sm:$0xff] %v10358_v14  ;;  %2297 = vperm.xlu1 %9279, %v2234_v30   ;;  %14424 = vst [vmem:[#allocation153_spill] sm:$0xff] %v10360_v40  ;;  %2312 = vperm.xlu0 %9278, %v2237_v63   ;;  %v2240_v14 = vld [vmem:[#allocation2 + $0xc9] sm:$0xff]  ;;  %v2243_v40 = vld [vmem:[#allocation2 + $0xf1] sm:$0xff] }
 0x208   : > { %v10362_v21 = vpop.permute.xlu1 %1794  ;;  %v10364_v13 = vpop.permute.xlu0 %1809 }
 0x209   : > { %14425 = vst [vmem:[#allocation154_spill] sm:$0xff] %v10362_v21  ;;  %2307 = vperm.xlu1 %9279, %v2236_v60   ;;  %14426 = vst [vmem:[#allocation155_spill] sm:$0xff] %v10364_v13  ;;  %2322 = vperm.xlu0 %9278, %v2239_v35   ;;  %v2242_v21 = vld [vmem:[#allocation2 + $0xe1] sm:$0xff]  ;;  %v2245_v13 = vld [vmem:[#allocation2 + $0x109] sm:$0xff] }
 0x20c   : > { %v10366_v15 = vpop.permute.xlu1 %1804  ;;  %v10368_v51 = vpop.permute.xlu0 %1819 }
 0x20d   : > { %14427 = vst [vmem:[#allocation156_spill] sm:$0xff] %v10366_v15  ;;  %2317 = vperm.xlu1 %9279, %v2238_v29   ;;  %14428 = vst [vmem:[#allocation157_spill] sm:$0xff] %v10368_v51  ;;  %2332 = vperm.xlu0 %9278, %v2241_v1   ;;  %v2244_v15 = vld [vmem:[#allocation2 + $0xf9] sm:$0xff]  ;;  %v2247_v51 = vld [vmem:[#allocation2 + $0x121] sm:$0xff] }
 0x210   : > { %v10370_v30 = vpop.permute.xlu1 %1814  ;;  %v10372_v63 = vpop.permute.xlu0 %1829 }
 0x211   : > { %14429 = vst [vmem:[#allocation158_spill] sm:$0xff] %v10370_v30  ;;  %2327 = vperm.xlu1 %9279, %v2240_v14   ;;  %14430 = vst [vmem:[#allocation159_spill] sm:$0xff] %v10372_v63  ;;  %2342 = vperm.xlu0 %9278, %v2243_v40   ;;  %v2246_v30 = vld [vmem:[#allocation2 + $0x111] sm:$0xff]  ;;  %v2249_v63 = vld [vmem:[#allocation2 + $0x139] sm:$0xff] }
 0x214   : > { %v10374_v60 = vpop.permute.xlu1 %1824  ;;  %v10376_v35 = vpop.permute.xlu0 %1839 }
 0x215   : > { %14431 = vst [vmem:[#allocation160_spill] sm:$0xff] %v10374_v60  ;;  %2337 = vperm.xlu1 %9279, %v2242_v21   ;;  %14432 = vst [vmem:[#allocation161_spill] sm:$0xff] %v10376_v35  ;;  %2352 = vperm.xlu0 %9278, %v2245_v13   ;;  %v2248_v60 = vld [vmem:[#allocation2 + $0x129] sm:$0xff]  ;;  %v2251_v35 = vld [vmem:[#allocation2 + $0x151] sm:$0xff] }
 0x218   : > { %v10378_v29 = vpop.permute.xlu1 %1834  ;;  %v10380_v1 = vpop.permute.xlu0 %1849 }
 0x219   : > { %14433 = vst [vmem:[#allocation162_spill] sm:$0xff] %v10378_v29  ;;  %2347 = vperm.xlu1 %9279, %v2244_v15   ;;  %14434 = vst [vmem:[#allocation163_spill] sm:$0xff] %v10380_v1  ;;  %2362 = vperm.xlu0 %9278, %v2247_v51   ;;  %v2250_v29 = vld [vmem:[#allocation2 + $0x141] sm:$0xff]  ;;  %v2253_v1 = vld [vmem:[#allocation2 + $0x169] sm:$0xff] }
 0x21c   : > { %v10382_v14 = vpop.permute.xlu1 %1844  ;;  %v10384_v40 = vpop.permute.xlu0 %1859 }
 0x21d   : > { %14435 = vst [vmem:[#allocation164_spill] sm:$0xff] %v10382_v14  ;;  %2357 = vperm.xlu1 %9279, %v2246_v30   ;;  %14436 = vst [vmem:[#allocation165_spill] sm:$0xff] %v10384_v40  ;;  %2372 = vperm.xlu0 %9278, %v2249_v63   ;;  %v2252_v14 = vld [vmem:[#allocation2 + $0x159] sm:$0xff]  ;;  %v2492_v40 = vld [vmem:[#allocation2 + $0x62] sm:$0xff] }
 0x220   : > { %v10386_v21 = vpop.permute.xlu1 %1854  ;;  %v10388_v13 = vpop.permute.xlu0 %1869 }
 0x221   : > { %14437 = vst [vmem:[#allocation166_spill] sm:$0xff] %v10386_v21  ;;  %2367 = vperm.xlu1 %9279, %v2248_v60   ;;  %14438 = vst [vmem:[#allocation167_spill] sm:$0xff] %v10388_v13  ;;  %2382 = vperm.xlu0 %9278, %v2251_v35   ;;  %v2254_v21 = vld [vmem:[#allocation2 + $0x171] sm:$0xff]  ;;  %v2257_v13 = vld [vmem:[#allocation2 + $0x199] sm:$0xff] }
 0x224   : > { %v10390_v15 = vpop.permute.xlu1 %1864  ;;  %v10392_v51 = vpop.permute.xlu0 %1879 }
 0x225   : > { %14439 = vst [vmem:[#allocation168_spill] sm:$0xff] %v10390_v15  ;;  %2377 = vperm.xlu1 %9279, %v2250_v29   ;;  %14440 = vst [vmem:[#allocation169_spill] sm:$0xff] %v10392_v51  ;;  %2392 = vperm.xlu0 %9278, %v2253_v1   ;;  %v2488_v51 = vld [vmem:[#allocation2 + $0x32] sm:$0xff]  ;;  %v14445_v1 = vmov 0.0  }
 0x226   : > { %2825 = vst.msk [vmem:[#allocation3 + $0x18] sm:$0xff] %vm2820_vm2, %v14445_v1  ;;  %2826 = vst.msk [vmem:[#allocation3 + $0x20] sm:$0xff] %vm2820_vm2, %v14445_v1 }
 0x227   : > { %2821 = vst.msk [vmem:[#allocation3] sm:$0xff] %vm2820_vm2, %v14445_v1  ;;  %2822 = vst.msk [vmem:[#allocation3 + $0x8] sm:$0xff] %vm2820_vm2, %v14445_v1 }
 0x228   : > { %v10394_v30 = vpop.permute.xlu1 %1874  ;;  %v10396_v63 = vpop.permute.xlu0 %1889  ;;  %2828 = vst.msk [vmem:[#allocation3 + $0x30] sm:$0xff] %vm2820_vm2, %v14445_v1  ;;  %2829 = vst.msk [vmem:[#allocation3 + $0x38] sm:$0xff] %vm2820_vm2, %v14445_v1 }
 0x229   : > { %14441 = vst [vmem:[#allocation170_spill] sm:$0xff] %v10394_v30  ;;  %2387 = vperm.xlu1 %9279, %v2252_v14   ;;  %2402 = vperm.xlu0 %9278, %v10162_v20   ;;  %2831 = vst.msk [vmem:[#allocation3 + $0x48] sm:$0xff] %vm2820_vm2, %v14445_v1  ;;  %v2258_v14 = vld [vmem:[#allocation2 + $0x1a1] sm:$0xff] }
 0x22a   : > { %2832 = vst.msk [vmem:[#allocation3 + $0x50] sm:$0xff] %vm2820_vm2, %v14445_v1  ;;  %2834 = vst.msk [vmem:[#allocation3 + $0x60] sm:$0xff] %vm2820_vm2, %v14445_v1  ;;  %v2489_v30 = vld [vmem:[#allocation2 + $0x3a] sm:$0xff] }
 0x22b   : > { %2835 = vst.msk [vmem:[#allocation3 + $0x68] sm:$0xff] %vm2820_vm2, %v14445_v1  ;;  %2837 = vst.msk [vmem:[#allocation3 + $0x78] sm:$0xff] %vm2820_vm2, %v14445_v1 }
 0x22c   : > { %v10399_v60 = vpop.permute.xlu1 %1884  ;;  %v10401_v35 = vpop.permute.xlu0 %2001  ;;  %2838 = vst.msk [vmem:[#allocation3 + $0x80] sm:$0xff] %vm2820_vm2, %v14445_v1  ;;  %2840 = vst.msk [vmem:[#allocation3 + $0x90] sm:$0xff] %vm2820_vm2, %v14445_v1 }
 0x22d   : > { %14442 = vst [vmem:[#allocation171_spill] sm:$0xff] %v10399_v60  ;;  %2397 = vperm.xlu1 %9279, %v2254_v21   ;;  %14443 = vst [vmem:[#allocation172_spill] sm:$0xff] %v10401_v35  ;;  %2412 = vperm.xlu0 %9278, %v2257_v13   ;;  %v2490_v13 = vld [vmem:[#allocation2 + $0x4a] sm:$0xff] }
 0x22e   : > { %2841 = vst.msk [vmem:[#allocation3 + $0x98] sm:$0xff] %vm2820_vm2, %v14445_v1  ;;  %2843 = vst.msk [vmem:[#allocation3 + $0xa8] sm:$0xff] %vm2820_vm2, %v14445_v1 }
 0x22f   : > { %2844 = vst.msk [vmem:[#allocation3 + $0xb0] sm:$0xff] %vm2820_vm2, %v14445_v1  ;;  %2846 = vst.msk [vmem:[#allocation3 + $0xc0] sm:$0xff] %vm2820_vm2, %v14445_v1 }
 0x230   : > { %v10403_v29 = vpop.permute.xlu1 %1894  ;;  %2847 = vst.msk [vmem:[#allocation3 + $0xc8] sm:$0xff] %vm2820_vm2, %v14445_v1  ;;  %2849 = vst.msk [vmem:[#allocation3 + $0xd8] sm:$0xff] %vm2820_vm2, %v14445_v1  ;;  %v10478_v20 = vpop.permute.xlu0 %2011 }
 0x231   : > { %14444 = vst [vmem:[#allocation173_spill] sm:$0xff] %v10403_v29  ;;  %2850 = vst.msk [vmem:[#allocation3 + $0xe0] sm:$0xff] %vm2820_vm2, %v14445_v1  ;;  %2407 = vperm.xlu1 %9279, %v10173_v18   ;;  %2523 = vperm.xlu0 %9278, %v2488_v51   ;;  %v2494_v51 = vld [vmem:[#allocation2 + $0x7a] sm:$0xff] }
 0x232   : > { %2852 = vst.msk [vmem:[#allocation3 + $0xf0] sm:$0xff] %vm2820_vm2, %v14445_v1  ;;  %2853 = vst.msk [vmem:[#allocation3 + $0xf8] sm:$0xff] %vm2820_vm2, %v14445_v1 }
 0x233   : > { %2855 = vst.msk [vmem:[#allocation3 + $0x108] sm:$0xff] %vm2820_vm2, %v14445_v1  ;;  %2856 = vst.msk [vmem:[#allocation3 + $0x110] sm:$0xff] %vm2820_vm2, %v14445_v1 }
 0x234   : > { %2858 = vst.msk [vmem:[#allocation3 + $0x120] sm:$0xff] %vm2820_vm2, %v14445_v1  ;;  %2859 = vst.msk [vmem:[#allocation3 + $0x128] sm:$0xff] %vm2820_vm2, %v14445_v1  ;;  %v10480_v21 = vpop.permute.xlu1 %2006  ;;  %v10482_v60 = vpop.permute.xlu0 %2021 }
 0x235   : > { %2861 = vst.msk [vmem:[#allocation3 + $0x138] sm:$0xff] %vm2820_vm2, %v14445_v1  ;;  %2862 = vst.msk [vmem:[#allocation3 + $0x140] sm:$0xff] %vm2820_vm2, %v14445_v1  ;;  %2417 = vperm.xlu1 %9279, %v2258_v14   ;;  %2533 = vperm.xlu0 %9278, %v2490_v13   ;;  %v2496_v13 = vld [vmem:[#allocation2 + $0x92] sm:$0xff] }
 0x236   : > { %2864 = vst.msk [vmem:[#allocation3 + $0x150] sm:$0xff] %vm2820_vm2, %v14445_v1  ;;  %2865 = vst.msk [vmem:[#allocation3 + $0x158] sm:$0xff] %vm2820_vm2, %v14445_v1 }
 0x237   : > { %2867 = vst.msk [vmem:[#allocation3 + $0x168] sm:$0xff] %vm2820_vm2, %v14445_v1  ;;  %2868 = vst.msk [vmem:[#allocation3 + $0x170] sm:$0xff] %vm2820_vm2, %v14445_v1 }
 0x238   : > { %2870 = vst.msk [vmem:[#allocation3 + $0x180] sm:$0xff] %vm2820_vm2, %v14445_v1  ;;  %2871 = vst.msk [vmem:[#allocation3 + $0x188] sm:$0xff] %vm2820_vm2, %v14445_v1  ;;  %v10484_v15 = vpop.permute.xlu1 %2016  ;;  %v10486_v35 = vpop.permute.xlu0 %2031 }
 0x239   : > { %2873 = vst.msk [vmem:[#allocation3 + $0x198] sm:$0xff] %vm2820_vm2, %v14445_v1  ;;  %2874 = vst.msk [vmem:[#allocation3 + $0x1a0] sm:$0xff] %vm2820_vm2, %v14445_v1  ;;  %2528 = vperm.xlu1 %9279, %v2489_v30   ;;  %2543 = vperm.xlu0 %9278, %v2492_v40   ;;  %v2493_v30 = vld [vmem:[#allocation2 + $0x6a] sm:$0xff] }
 0x23a   : > { %14446 = vst [vmem:[#allocation174_spill] sm:$0xff] %v10478_v20  ;;  %14447 = vst [vmem:[#allocation175_spill] sm:$0xff] %v10480_v21 }
 0x23b   : > { %14448 = vst [vmem:[#allocation176_spill] sm:$0xff] %v10482_v60  ;;  %14449 = vst [vmem:[#allocation177_spill] sm:$0xff] %v10484_v15  ;;  %v2498_v60 = vld [vmem:[#allocation2 + $0xaa] sm:$0xff] }
 0x23c   : > { %14450 = vst [vmem:[#allocation178_spill] sm:$0xff] %v10486_v35  ;;  %v10488_v18 = vpop.permute.xlu1 %2026  ;;  %2824 = vst.msk [vmem:[#allocation3 + $0x10] sm:$0x3] %vm2823_vm3, %v14445_v1  ;;  %v10526_v40 = vpop.permute.xlu0 %2041  ;;  %v2495_v35 = vld [vmem:[#allocation2 + $0x82] sm:$0xff] }
 0x23d   : > { %14451 = vst [vmem:[#allocation179_spill] sm:$0xff] %v10488_v18  ;;  %2827 = vst.msk [vmem:[#allocation3 + $0x28] sm:$0x3] %vm2823_vm3, %v14445_v1  ;;  %2538 = vperm.xlu1 %9279, %v2491_v11   ;;  %2553 = vperm.xlu0 %9278, %v2494_v51  }
 0x23e   : > { %2875 = vst.msk [vmem:[#allocation3 + $0x1a8] sm:$0x3] %vm2823_vm3, %v14445_v1  ;;  %2830 = vst.msk [vmem:[#allocation3 + $0x40] sm:$0x3] %vm2823_vm3, %v14445_v1 }
 0x23f   : > { %2833 = vst.msk [vmem:[#allocation3 + $0x58] sm:$0x3] %vm2823_vm3, %v14445_v1  ;;  %2836 = vst.msk [vmem:[#allocation3 + $0x70] sm:$0x3] %vm2823_vm3, %v14445_v1 }
 0x240   : > { %2839 = vst.msk [vmem:[#allocation3 + $0x88] sm:$0x3] %vm2823_vm3, %v14445_v1  ;;  %2842 = vst.msk [vmem:[#allocation3 + $0xa0] sm:$0x3] %vm2823_vm3, %v14445_v1  ;;  %v10528_v14 = vpop.permute.xlu1 %2036  ;;  %v10530_v18 = vpop.permute.xlu0 %2051 }
 0x241   : > { %2845 = vst.msk [vmem:[#allocation3 + $0xb8] sm:$0x3] %vm2823_vm3, %v14445_v1  ;;  %2848 = vst.msk [vmem:[#allocation3 + $0xd0] sm:$0x3] %vm2823_vm3, %v14445_v1  ;;  %2548 = vperm.xlu1 %9279, %v2493_v30   ;;  %2563 = vperm.xlu0 %9278, %v2496_v13  }
 0x242   : > { %2851 = vst.msk [vmem:[#allocation3 + $0xe8] sm:$0x3] %vm2823_vm3, %v14445_v1  ;;  %2854 = vst.msk [vmem:[#allocation3 + $0x100] sm:$0x3] %vm2823_vm3, %v14445_v1 }
 0x243   : > { %2857 = vst.msk [vmem:[#allocation3 + $0x118] sm:$0x3] %vm2823_vm3, %v14445_v1  ;;  %2860 = vst.msk [vmem:[#allocation3 + $0x130] sm:$0x3] %vm2823_vm3, %v14445_v1 }
 0x244   : > { %2863 = vst.msk [vmem:[#allocation3 + $0x148] sm:$0x3] %vm2823_vm3, %v14445_v1  ;;  %2866 = vst.msk [vmem:[#allocation3 + $0x160] sm:$0x3] %vm2823_vm3, %v14445_v1  ;;  %v10532_v15 = vpop.permute.xlu1 %2046  ;;  %v10534_v21 = vpop.permute.xlu0 %2061 }
 0x245   : > { %2869 = vst.msk [vmem:[#allocation3 + $0x178] sm:$0x3] %vm2823_vm3, %v14445_v1  ;;  %2872 = vst.msk [vmem:[#allocation3 + $0x190] sm:$0x3] %vm2823_vm3, %v14445_v1  ;;  %2558 = vperm.xlu1 %9279, %v2495_v35   ;;  %v2497_v1 = vld [vmem:[#allocation2 + $0x9a] sm:$0xff]  ;;  %2573 = vperm.xlu0 %9278, %v2498_v60  }
 0x246   : > { %14452 = vst [vmem:[#allocation180_spill] sm:$0xff] %v10526_v40  ;;  %14453 = vst [vmem:[#allocation181_spill] sm:$0xff] %v10528_v14  ;;  %v2500_v40 = vld [vmem:[#allocation2 + $0xc2] sm:$0xff]  ;;  %v2499_v14 = vld [vmem:[#allocation2 + $0xb2] sm:$0xff] }
 0x247   : > { %14454 = vst [vmem:[#allocation182_spill] sm:$0xff] %v10530_v18  ;;  %14455 = vst [vmem:[#allocation183_spill] sm:$0xff] %v10532_v15  ;;  %v2502_v18 = vld [vmem:[#allocation2 + $0xda] sm:$0xff]  ;;  %v2501_v15 = vld [vmem:[#allocation2 + $0xca] sm:$0xff] }
 0x248   : > { %14456 = vst [vmem:[#allocation184_spill] sm:$0xff] %v10534_v21  ;;  %v10536_v11 = vpop.permute.xlu1 %2056  ;;  %v10538_v51 = vpop.permute.xlu0 %2071  ;;  %v2504_v21 = vld [vmem:[#allocation2 + $0xf2] sm:$0xff] }
 0x249   : > { %14457 = vst [vmem:[#allocation185_spill] sm:$0xff] %v10536_v11  ;;  %2568 = vperm.xlu1 %9279, %v2497_v1   ;;  %14458 = vst [vmem:[#allocation186_spill] sm:$0xff] %v10538_v51  ;;  %2583 = vperm.xlu0 %9278, %v2500_v40   ;;  %v2503_v11 = vld [vmem:[#allocation2 + $0xe2] sm:$0xff]  ;;  %v7887_v40 = vld [vmem:[%s14144_s1] ss:$0 sm:$0xff] }
 0x24a   : > { %v10564_v8 = vmul.f32 %v7887_v40, %v14469_v9  ;;  %v10586_v9 = vld [vmem:[%s14144_s1 + $0x1] ss:$0 sm:$0xff]  ;;  %v10603_v56 = vmul.f32 %v7887_v40, %v14481_v62  ;;  %v14494_v62 = vld [vmem:[#allocation70_spill] sm:$0xff] }
 0x24c   : > { %v10540_v30 = vpop.permute.xlu1 %2066  ;;  %v10542_v13 = vpop.permute.xlu0 %2081 }
 0x24d   : > { %14459 = vst [vmem:[#allocation187_spill] sm:$0xff] %v10540_v30  ;;  %2578 = vperm.xlu1 %9279, %v2499_v14   ;;  %14460 = vst [vmem:[#allocation188_spill] sm:$0xff] %v10542_v13  ;;  %2593 = vperm.xlu0 %9278, %v2502_v18   ;;  %v2506_v30 = vld [vmem:[#allocation2 + $0x10a] sm:$0xff]  ;;  %v2505_v13 = vld [vmem:[#allocation2 + $0xfa] sm:$0xff] }
 0x24e   : > { %v14465_v18 = vld [vmem:[#allocation12_spill] sm:$0xff] }
 0x24f   : > { %v596_v51 = vmul.f32 %v7887_v40, %v14465_v18  ;;  %v10572_v18 = vmul.f32 %v7887_v40, %v14472_v6  ;;  %v14477_v6 = vld [vmem:[#allocation32_spill] sm:$0xff] }
 0x250   : > { %v10544_v35 = vpop.permute.xlu1 %2076  ;;  %v10546_v60 = vpop.permute.xlu0 %2091  ;;  %v10592_v61 = vmul.f32 %v7887_v40, %v14477_v6  ;;  %v14486_v6 = vld [vmem:[#allocation44_spill] sm:$0xff] }
 0x251   : > { %14461 = vst [vmem:[#allocation189_spill] sm:$0xff] %v10544_v35  ;;  %2588 = vperm.xlu1 %9279, %v2501_v15   ;;  %14462 = vst [vmem:[#allocation190_spill] sm:$0xff] %v10546_v60  ;;  %2603 = vperm.xlu0 %9278, %v2504_v21   ;;  %v14466_v35 = vld [vmem:[#allocation14_spill] sm:$0xff]  ;;  %v14467_v15 = vld [vmem:[#allocation15_spill] sm:$0xff]  ;;  %v10612_v54 = vmul.f32 %v7887_v40, %v14486_v6 }
 0x252   : > { %v10557_v20 = vmul.f32 %v7887_v40, %v14466_v35  ;;  %v598_v60 = vmul.f32 %v7887_v40, %v14467_v15  ;;  %v14468_v21 = vld [vmem:[#allocation17_spill] sm:$0xff]  ;;  %v14473_v35 = vld [vmem:[#allocation24_spill] sm:$0xff]  ;;  %v14498_v6 = vld [vmem:[#allocation54_spill] sm:$0xff] }
 0x253   : > { %v10561_v10 = vmul.f32 %v7887_v40, %v14468_v21  ;;  %v10575_v5 = vmul.f32 %v7887_v40, %v14473_v35  ;;  %v14475_v21 = vld [vmem:[#allocation28_spill] sm:$0xff]  ;;  %v14478_v35 = vld [vmem:[#allocation34_spill] sm:$0xff]  ;;  %14487 = vst [vmem:[#allocation18_spill] sm:$0xff] %v10612_v54 }
 0x254   : > { %v10551_v1 = vpop.permute.xlu1 %2086  ;;  %v10553_v14 = vpop.permute.xlu0 %2101  ;;  %v10581_v4 = vmul.f32 %v7887_v40, %v14475_v21  ;;  %v10595_v2 = vmul.f32 %v7887_v40, %v14478_v35  ;;  %v14488_v35 = vld [vmem:[#allocation46_spill] sm:$0xff] }
 0x255   : > { %14463 = vst [vmem:[#allocation191_spill] sm:$0xff] %v10551_v1  ;;  %2598 = vperm.xlu1 %9279, %v2503_v11   ;;  %14464 = vst [vmem:[#allocation192_spill] sm:$0xff] %v10553_v14  ;;  %2613 = vperm.xlu0 %9278, %v2506_v30   ;;  %v14470_v1 = vld [vmem:[#allocation20_spill] sm:$0xff]  ;;  %v14474_v30 = vld [vmem:[#allocation26_spill] sm:$0xff]  ;;  %v10615_v53 = vmul.f32 %v7887_v40, %v14488_v35 }
 0x256   : > { %v10567_v7 = vmul.f32 %v7887_v40, %v14470_v1  ;;  %v2508_v14 = vld [vmem:[#allocation2 + $0x122] sm:$0xff]  ;;  %v10578_v15 = vmul.f32 %v7887_v40, %v14474_v30  ;;  %v14476_v1 = vld [vmem:[#allocation30_spill] sm:$0xff] }
 0x257   : > { %v14479_v30 = vld [vmem:[#allocation36_spill] sm:$0xff]  ;;  %14489 = vst [vmem:[#allocation20_spill] sm:$0xff] %v10615_v53 }
 0x258   : > { %v10569_v11 = vpop.permute.xlu1 %2096  ;;  %v10598_v0 = vmul.f32 %v7887_v40, %v14479_v30  ;;  %v10600_v21 = vpop.permute.xlu0 %2111  ;;  %v14490_v30 = vld [vmem:[#allocation48_spill] sm:$0xff] }
 0x259   : > { %14471 = vst [vmem:[#allocation12_spill] sm:$0xff] %v10569_v11  ;;  %2608 = vperm.xlu1 %9279, %v2505_v13   ;;  %v10589_v11 = vmul.f32 %v7887_v40, %v14476_v1  ;;  %14480 = vst [vmem:[#allocation14_spill] sm:$0xff] %v10600_v21  ;;  %v10606_v13 = vmul.f32 %v7887_v40, %v14482_v59  ;;  %v14484_v1 = vld [vmem:[#allocation42_spill] sm:$0xff]  ;;  %2623 = vperm.xlu0 %9278, %v2508_v14   ;;  %v14500_v35 = vld [vmem:[#allocation56_spill] sm:$0xff] }
 0x25a   : > { %v10609_v17 = vmul.f32 %v7887_v40, %v14484_v1  ;;  %v10618_v52 = vmul.f32 %v7887_v40, %v14490_v30  ;;  %v14492_v21 = vld [vmem:[#allocation50_spill] sm:$0xff]  ;;  %v857_v59 = vmul.f32 %v10586_v9, %v14494_v62  ;;  %v2510_v1 = vld [vmem:[#allocation2 + $0x13a] sm:$0xff]  ;;  %v10631_v14 = vmul.f32 %v7887_v40, %v14498_v6 }
 0x25b   : > { %14483 = vst [vmem:[#allocation15_spill] sm:$0xff] %v10606_v13  ;;  %v10621_v50 = vmul.f32 %v7887_v40, %v14492_v21  ;;  %v10634_v53 = vmul.f32 %v7887_v40, %v14500_v35  ;;  %v14502_v30 = vld [vmem:[#allocation72_spill] sm:$0xff]  ;;  %v14503_v21 = vld [vmem:[#allocation58_spill] sm:$0xff]  ;;  %v14512_v13 = vld [vmem:[#allocation73_spill] sm:$0xff] }
 0x25c   : > { %14485 = vst [vmem:[#allocation17_spill] sm:$0xff] %v10609_v17  ;;  %14491 = vst [vmem:[#allocation22_spill] sm:$0xff] %v10618_v52  ;;  %v10625_v49 = vpop.permute.xlu1 %2106  ;;  %v10628_v17 = vmul.f32 %v7887_v40, %v14496_v48  ;;  %v859_v52 = vmul.f32 %v10586_v9, %v14502_v30  ;;  %v14504_v62 = vld [vmem:[#allocation60_spill] sm:$0xff]  ;;  %v10650_v6 = vpop.permute.xlu0 %2121  ;;  %v2509_v35 = vld [vmem:[#allocation2 + $0x12a] sm:$0xff] }
 0x25d   : > { %14493 = vst [vmem:[#allocation24_spill] sm:$0xff] %v10621_v50  ;;  %14495 = vst [vmem:[#allocation26_spill] sm:$0xff] %v10625_v49  ;;  %2618 = vperm.xlu1 %9279, %v2507_v57   ;;  %v10639_v50 = vmul.f32 %v7887_v40, %v14503_v21  ;;  %v10642_v54 = vmul.f32 %v7887_v40, %v14504_v62  ;;  %v14505_v49 = vld [vmem:[#allocation62_spill] sm:$0xff]  ;;  %v14507_v48 = vld [vmem:[#allocation64_spill] sm:$0xff]  ;;  %v858_v21 = vmul.f32 %v10586_v9, %v14512_v13 }
 0x25e   : > { %14497 = vst [vmem:[#allocation28_spill] sm:$0xff] %v10628_v17  ;;  %14499 = vst [vmem:[#allocation30_spill] sm:$0xff] %v10631_v14  ;;  %v10645_v29 = vmul.f32 %v7887_v40, %v14505_v49  ;;  %v10648_v17 = vmul.f32 %v7887_v40, %v14507_v48  ;;  %v14511_v30 = vld [vmem:[#allocation67_spill] sm:$0xff]  ;;  %v887_v62 = vmul.f32 %v10586_v9, %v10057_v55  ;;  %2633 = vperm.xlu0 %9278, %v2510_v1   ;;  %v14513_v49 = vld [vmem:[#allocation69_spill] sm:$0xff] }
 0x25f   : > { %14501 = vst [vmem:[#allocation32_spill] sm:$0xff] %v10634_v53  ;;  %14508 = vst [vmem:[#allocation36_spill] sm:$0xff] %v10650_v6  ;;  %v14509_v53 = vld [vmem:[#allocation66_spill] sm:$0xff]  ;;  %v626_v57 = vmul.f32 %v7887_v40, %v14511_v30  ;;  %v10663_v48 = vadd.f32 %v857_v59, %v596_v51  ;;  %v861_v6 = vmul.f32 %v10586_v9, %v9979_v36  ;;  %v10672_v30 = vld [vmem:[%s14144_s1 + $0x2] ss:$0 sm:$0xff] }
 0x260   : > { %14506 = vst [vmem:[#allocation34_spill] sm:$0xff] %v10645_v29  ;;  %v10653_v14 = vmul.f32 %v7887_v40, %v14509_v53  ;;  %v10661_v29 = vmul.f32 %v7887_v40, %v14513_v49  ;;  %v860_v53 = vmul.f32 %v10586_v9, %v9982_v38  ;;  %v10674_v13 = vpop.permute.xlu1 %2116  ;;  %v2512_v55 = vld [vmem:[#allocation2 + $0x152] sm:$0xff]  ;;  %v10677_v49 = vadd.f32 %v859_v52, %v598_v60  ;;  %v10696_v60 = vpop.permute.xlu0 %2131 }
 0x261   : > { %14514 = vst [vmem:[#allocation40_spill] sm:$0xff] %v10674_v13  ;;  %v14515_v1 = vld [vmem:[#allocation71_spill] sm:$0xff]  ;;  %v863_v51 = vmul.f32 %v10586_v9, %v9985_v37  ;;  %v1148_v36 = vmul.f32 %v10672_v30, %v10157_v24  ;;  %2628 = vperm.xlu1 %9279, %v2509_v35   ;;  %v862_v38 = vmul.f32 %v10586_v9, %v9988_v34  ;;  %v10694_v37 = vld [vmem:[%s14144_s1 + $0x3] ss:$0 sm:$0xff]  ;;  %14516 = vst [vmem:[#allocation42_spill] sm:$0xff] %v10696_v60 }
 0x262   : > { %14510 = vst [vmem:[#allocation38_spill] sm:$0xff] %v10653_v14  ;;  %v627_v14 = vmul.f32 %v7887_v40, %v14515_v1  ;;  %v865_v59 = vmul.f32 %v10586_v9, %v9991_v26  ;;  %v864_v13 = vmul.f32 %v10586_v9, %v9994_v3  ;;  %v867_v52 = vmul.f32 %v10586_v9, %v9997_v27  ;;  %v2511_v24 = vld [vmem:[#allocation2 + $0x142] sm:$0xff] }
 0x263   : > { %v10699_v40 = vadd.f32 %v858_v21, %v10557_v20  ;;  %v866_v34 = vmul.f32 %v10586_v9, %v10000_v28  ;;  %v919_v26 = vadd.f32 %v887_v62, %v626_v57  ;;  %v1409_v3 = vmul.f32 %v10694_v37, %v10257_v23  ;;  %2643 = vperm.xlu0 %9278, %v2512_v55   ;;  %v10718_v28 = vld [vmem:[%s14144_s1 + $0x4] ss:$0 sm:$0xff]  ;;  %v2514_v23 = vld [vmem:[#allocation2 + $0x16a] sm:$0xff] }
 0x264   : > { %v10706_v27 = vadd.f32 %v861_v6, %v10561_v10  ;;  %v10709_v35 = vadd.f32 %v860_v53, %v10564_v8  ;;  %v869_v1 = vmul.f32 %v10586_v9, %v10003_v31  ;;  %v868_v20 = vmul.f32 %v10586_v9, %v10006_v32  ;;  %v10720_v57 = vpop.permute.xlu1 %2126  ;;  %v10746_v53 = vpop.permute.xlu0 %2141 }
 0x265   : > { %14517 = vst [vmem:[#allocation44_spill] sm:$0xff] %v10720_v57  ;;  %v10723_v10 = vadd.f32 %v863_v51, %v10567_v7  ;;  %v888_v8 = vmul.f32 %v10586_v9, %v10068_v58  ;;  %v1180_v6 = vadd.f32 %v1148_v36, %v919_v26  ;;  %v1670_v31 = vmul.f32 %v10718_v28, %v10330_v19  ;;  %v10744_v58 = vld [vmem:[%s14144_s1 + $0x5] ss:$0 sm:$0xff]  ;;  %v2513_v19 = vld [vmem:[#allocation2 + $0x15a] sm:$0xff] }
 0x266   : > { %2638 = vperm.xlu1 %9279, %v2511_v24   ;;  %v10730_v32 = vadd.f32 %v862_v38, %v10572_v18  ;;  %v10733_v21 = vadd.f32 %v865_v59, %v10575_v5  ;;  %v10736_v62 = vadd.f32 %v864_v13, %v10578_v15  ;;  %v10739_v7 = vadd.f32 %v867_v52, %v10581_v4 }
 0x267   : > { %14518 = vst [vmem:[#allocation46_spill] sm:$0xff] %v10746_v53  ;;  %v10749_v18 = vadd.f32 %v866_v34, %v10589_v11  ;;  %v1149_v5 = vmul.f32 %v10672_v30, %v10168_v16  ;;  %v1441_v55 = vadd.f32 %v1409_v3, %v1180_v6  ;;  %v1931_v15 = vmul.f32 %v10744_v58, %v10396_v63 }
 0x268   : > { %2653 = vperm.xlu0 %9278, %v2514_v23   ;;  %v10756_v4 = vadd.f32 %v869_v1, %v10592_v61  ;;  %v10759_v13 = vadd.f32 %v868_v20, %v10595_v2  ;;  %v871_v51 = vmul.f32 %v10586_v9, %v10009_v33  ;;  %v870_v11 = vmul.f32 %v10586_v9, %v10012_v39  ;;  %v10765_v36 = vpop.permute.xlu1 %2136  ;;  %v14521_v1 = vld [vmem:[#allocation15_spill] sm:$0xff] }
 0x269   : > { %14519 = vst [vmem:[#allocation48_spill] sm:$0xff] %v10765_v36  ;;  %v873_v16 = vmul.f32 %v10586_v9, %v10015_v41  ;;  %v920_v38 = vadd.f32 %v888_v8, %v627_v14  ;;  %v1410_v63 = vmul.f32 %v10694_v37, %v10268_v22  ;;  %v1702_v61 = vadd.f32 %v1670_v31, %v1441_v55  ;;  %v10782_v41 = vld [vmem:[%s14144_s1 + $0x6] ss:$0 sm:$0xff]  ;;  %v2152_v22 = vpop.permute.xlu0 %2151  ;;  %v2515_v14 = vld [vmem:[#allocation2 + $0x172] sm:$0xff] }
 0x26a   : > { %2648 = vperm.xlu1 %9279, %v2513_v19   ;;  %v872_v2 = vmul.f32 %v10586_v9, %v10018_v42  ;;  %v875_v33 = vmul.f32 %v10586_v9, %v10021_v43  ;;  %v874_v39 = vmul.f32 %v10586_v9, %v10024_v44  ;;  %v877_v59 = vmul.f32 %v10586_v9, %v10027_v45 }
 0x26b   : > { %v1181_v52 = vadd.f32 %v1149_v5, %v920_v38  ;;  %v1671_v42 = vmul.f32 %v10718_v28, %v10337_v12  ;;  %v1963_v24 = vadd.f32 %v1931_v15, %v1702_v61  ;;  %v2193_v43 = vmul.f32 %v10782_v41, %v2152_v22  ;;  %v2518_v12 = vld [vmem:[#allocation2 + $0x19a] sm:$0xff] }
 0x26c   : > { %2663 = vperm.xlu0 %9278, %v10262_v25   ;;  %v10789_v44 = vadd.f32 %v871_v51, %v10598_v0  ;;  %v10792_v45 = vadd.f32 %v870_v11, %v10603_v56  ;;  %v876_v34 = vmul.f32 %v10586_v9, %v10030_v46  ;;  %v879_v26 = vmul.f32 %v10586_v9, %v10033_v47  ;;  %v10798_v3 = vpop.permute.xlu1 %2146  ;;  %v14522_v25 = vld [vmem:[#allocation173_spill] sm:$0xff]  ;;  %v14525_v46 = vld [vmem:[#allocation18_spill] sm:$0xff]  ;;  %v14527_v5 = vld [vmem:[#allocation75_spill] sm:$0xff] }
 0x26d   : > { %14520 = vst [vmem:[#allocation50_spill] sm:$0xff] %v10798_v3  ;;  %v10801_v20 = vadd.f32 %v873_v16, %v14521_v1  ;;  %v1442_v23 = vadd.f32 %v1410_v63, %v1181_v52  ;;  %v1932_v0 = vmul.f32 %v10744_v58, %v14522_v25  ;;  %v10805_v8 = vadd.f32 %v2193_v43, %v1963_v24  ;;  %v14524_v56 = vld [vmem:[#allocation17_spill] sm:$0xff]  ;;  %v14526_v47 = vld [vmem:[#allocation74_spill] sm:$0xff]  ;;  %v10817_v15 = vpop.permute.xlu0 %2262  ;;  %v14528_v51 = vld [vmem:[#allocation20_spill] sm:$0xff] }
 0x26e   : > { %2658 = vperm.xlu1 %9279, %v2515_v14   ;;  %v10808_v6 = vadd.f32 %v872_v2, %v14524_v56  ;;  %v10811_v31 = vadd.f32 %v875_v33, %v14525_v46  ;;  %v878_v19 = vmul.f32 %v10586_v9, %v14526_v47  ;;  %v881_v55 = vmul.f32 %v10586_v9, %v14527_v5  ;;  %v14529_v16 = vld [vmem:[#allocation22_spill] sm:$0xff]  ;;  %v14530_v63 = vld [vmem:[#allocation76_spill] sm:$0xff]  ;;  %v14533_v24 = vld [vmem:[#allocation77_spill] sm:$0xff] }
 0x26f   : > { %14523 = vst [vmem:[#allocation70_spill] sm:$0xff] %v10805_v8  ;;  %v10820_v11 = vadd.f32 %v874_v39, %v14528_v51  ;;  %v10823_v38 = vadd.f32 %v877_v59, %v14529_v16  ;;  %v880_v61 = vmul.f32 %v10586_v9, %v14530_v63  ;;  %v1703_v2 = vadd.f32 %v1671_v42, %v1442_v23  ;;  %v14531_v33 = vld [vmem:[#allocation24_spill] sm:$0xff]  ;;  %v14534_v1 = vld [vmem:[#allocation78_spill] sm:$0xff]  ;;  %v14535_v59 = vld [vmem:[#allocation79_spill] sm:$0xff] }
 0x270   : > { %2673 = vperm.xlu0 %9278, %v2518_v12   ;;  %v10828_v22 = vadd.f32 %v876_v34, %v14531_v33  ;;  %v14532_v14 = vld [vmem:[#allocation28_spill] sm:$0xff]  ;;  %v883_v43 = vmul.f32 %v10586_v9, %v14533_v24  ;;  %v882_v39 = vmul.f32 %v10586_v9, %v14534_v1  ;;  %v2157_v25 = vpop.permute.xlu1 %2156  ;;  %v885_v56 = vmul.f32 %v10586_v9, %v14535_v59  ;;  %v14537_v23 = vld [vmem:[#allocation113_spill] sm:$0xff]  ;;  %v14541_v33 = vld [vmem:[#allocation82_spill] sm:$0xff] }
 0x271   : > { %v10831_v52 = vadd.f32 %v879_v26, %v14532_v14  ;;  %v14536_v46 = vld [vmem:[#allocation80_spill] sm:$0xff]  ;;  %v1964_v12 = vadd.f32 %v1932_v0, %v1703_v2  ;;  %v2194_v34 = vmul.f32 %v10782_v41, %v2157_v25  ;;  %v14538_v26 = vld [vmem:[#allocation30_spill] sm:$0xff]  ;;  %v14540_v16 = vld [vmem:[#allocation81_spill] sm:$0xff]  ;;  %v1118_v14 = vmul.f32 %v10672_v30, %v14541_v33  ;;  %v10853_v24 = vpop.permute.xlu0 %2272 }
 0x272   : > { %v884_v42 = vmul.f32 %v10586_v9, %v14536_v46  ;;  %2668 = vperm.xlu1 %9279, %v14537_v23   ;;  %v10844_v47 = vadd.f32 %v878_v19, %v14538_v26  ;;  %v14539_v5 = vld [vmem:[#allocation32_spill] sm:$0xff]  ;;  %v886_v63 = vmul.f32 %v10586_v9, %v14540_v16  ;;  %v10856_v0 = vadd.f32 %v880_v61, %v10639_v50  ;;  %v14542_v2 = vld [vmem:[#allocation83_spill] sm:$0xff]  ;;  %v14545_v9 = vld [vmem:[#allocation34_spill] sm:$0xff] }
 0x273   : > { %v10847_v51 = vadd.f32 %v881_v55, %v14539_v5  ;;  %v2519_v1 = vld [vmem:[#allocation2 + $0x1a2] sm:$0xff]  ;;  %v1120_v25 = vmul.f32 %v10672_v30, %v14542_v2  ;;  %v10862_v55 = vadd.f32 %v2194_v34, %v1964_v12  ;;  %v10865_v46 = vadd.f32 %v883_v43, %v10642_v54  ;;  %v14547_v16 = vld [vmem:[#allocation86_spill] sm:$0xff]  ;;  %v14549_v54 = vld [vmem:[#allocation87_spill] sm:$0xff] }
 0x274   : > { %v14543_v19 = vld [vmem:[#allocation84_spill] sm:$0xff]  ;;  %v10868_v23 = vadd.f32 %v882_v39, %v14545_v9  ;;  %v14546_v26 = vld [vmem:[#allocation85_spill] sm:$0xff]  ;;  %v1121_v50 = vmul.f32 %v10672_v30, %v14547_v16  ;;  %v10874_v61 = vpop.permute.xlu1 %2267  ;;  %v10877_v33 = vadd.f32 %v885_v56, %v10648_v17  ;;  %v14548_v12 = vld [vmem:[#allocation38_spill] sm:$0xff]  ;;  %v1124_v43 = vmul.f32 %v10672_v30, %v14549_v54 }
 0x275   : > { %v1119_v59 = vmul.f32 %v10672_v30, %v14543_v19  ;;  %14544 = vst [vmem:[#allocation52_spill] sm:$0xff] %v10862_v55  ;;  %v1122_v5 = vmul.f32 %v10672_v30, %v14546_v26  ;;  %v10880_v34 = vadd.f32 %v884_v42, %v14548_v12  ;;  %v14550_v39 = vld [vmem:[#allocation88_spill] sm:$0xff]  ;;  %v10887_v19 = vadd.f32 %v886_v63, %v10661_v29  ;;  %v14551_v26 = vld [vmem:[#allocation89_spill] sm:$0xff]  ;;  %v14552_v56 = vld [vmem:[#allocation90_spill] sm:$0xff]  ;;  %v10896_v16 = vpop.permute.xlu0 %2282 }
 0x276   : > { %v1123_v2 = vmul.f32 %v10672_v30, %v14550_v39  ;;  %2678 = vperm.xlu1 %9279, %v2519_v1   ;;  %v10890_v9 = vadd.f32 %v1118_v14, %v10663_v48  ;;  %v1126_v17 = vmul.f32 %v10672_v30, %v14551_v26  ;;  %v1125_v42 = vmul.f32 %v10672_v30, %v14552_v56  ;;  %v14553_v54 = vld [vmem:[#allocation91_spill] sm:$0xff]  ;;  %v14554_v63 = vld [vmem:[#allocation92_spill] sm:$0xff]  ;;  %v14555_v26 = vld [vmem:[#allocation93_spill] sm:$0xff] }
 0x277   : > { %v10899_v12 = vadd.f32 %v1120_v25, %v10677_v49  ;;  %v10902_v1 = vadd.f32 %v1119_v59, %v10699_v40  ;;  %v1128_v29 = vmul.f32 %v10672_v30, %v14553_v54  ;;  %v1127_v48 = vmul.f32 %v10672_v30, %v14554_v63  ;;  %v14556_v25 = vld [vmem:[#allocation94_spill] sm:$0xff] }
 0x278   : > { %v10910_v14 = vadd.f32 %v1122_v5, %v10706_v27  ;;  %v10913_v39 = vadd.f32 %v1121_v50, %v10709_v35  ;;  %v1130_v49 = vmul.f32 %v10672_v30, %v14555_v26  ;;  %v1129_v40 = vmul.f32 %v10672_v30, %v14556_v25  ;;  %v10919_v59 = vpop.permute.xlu1 %2277  ;;  %v14557_v5 = vld [vmem:[#allocation95_spill] sm:$0xff]  ;;  %v14558_v50 = vld [vmem:[#allocation96_spill] sm:$0xff]  ;;  %v14559_v25 = vld [vmem:[#allocation97_spill] sm:$0xff] }
 0x279   : > { %v10926_v56 = vadd.f32 %v1124_v43, %v10723_v10  ;;  %v10929_v27 = vadd.f32 %v1123_v2, %v10730_v32  ;;  %v1132_v35 = vmul.f32 %v10672_v30, %v14557_v5  ;;  %v1131_v54 = vmul.f32 %v10672_v30, %v14558_v50  ;;  %v14560_v10 = vld [vmem:[#allocation98_spill] sm:$0xff]  ;;  %v10945_v32 = vpop.permute.xlu0 %2292  ;;  %v14561_v50 = vld [vmem:[#allocation99_spill] sm:$0xff] }
 0x27a   : > { %v10936_v63 = vadd.f32 %v1126_v17, %v10733_v21  ;;  %v10939_v26 = vadd.f32 %v1125_v42, %v10736_v62  ;;  %v1134_v55 = vmul.f32 %v10672_v30, %v14559_v25  ;;  %v1133_v43 = vmul.f32 %v10672_v30, %v14560_v10  ;;  %v14562_v17 = vld [vmem:[#allocation100_spill] sm:$0xff]  ;;  %v14563_v10 = vld [vmem:[#allocation101_spill] sm:$0xff] }
 0x27b   : > { %v10948_v2 = vadd.f32 %v1128_v29, %v10739_v7  ;;  %v10951_v5 = vadd.f32 %v1127_v48, %v10749_v18  ;;  %v1136_v21 = vmul.f32 %v10672_v30, %v14561_v50  ;;  %v1135_v62 = vmul.f32 %v10672_v30, %v14562_v17  ;;  %v14564_v7 = vld [vmem:[#allocation102_spill] sm:$0xff]  ;;  %v14565_v17 = vld [vmem:[#allocation103_spill] sm:$0xff] }
 0x27c   : > { %v10958_v42 = vadd.f32 %v1130_v49, %v10756_v4  ;;  %v10961_v25 = vadd.f32 %v1129_v40, %v10759_v13  ;;  %v1138_v8 = vmul.f32 %v10672_v30, %v14563_v10  ;;  %v1137_v29 = vmul.f32 %v10672_v30, %v14564_v7  ;;  %v10967_v18 = vpop.permute.xlu1 %2287  ;;  %v14566_v49 = vld [vmem:[#allocation104_spill] sm:$0xff]  ;;  %v14567_v7 = vld [vmem:[#allocation105_spill] sm:$0xff] }
 0x27d   : > { %v10970_v48 = vadd.f32 %v1132_v35, %v10789_v44  ;;  %v10973_v50 = vadd.f32 %v1131_v54, %v10792_v45  ;;  %v1140_v4 = vmul.f32 %v10672_v30, %v14565_v17  ;;  %v1139_v13 = vmul.f32 %v10672_v30, %v14566_v49  ;;  %v14568_v44 = vld [vmem:[#allocation106_spill] sm:$0xff]  ;;  %v10989_v45 = vpop.permute.xlu0 %2302  ;;  %v14569_v49 = vld [vmem:[#allocation107_spill] sm:$0xff] }
 0x27e   : > { %v10980_v40 = vadd.f32 %v1134_v55, %v10801_v20  ;;  %v10983_v10 = vadd.f32 %v1133_v43, %v10808_v6  ;;  %v1142_v3 = vmul.f32 %v10672_v30, %v14567_v7  ;;  %v1141_v35 = vmul.f32 %v10672_v30, %v14568_v44  ;;  %v14570_v55 = vld [vmem:[#allocation108_spill] sm:$0xff] }
 0x27f   : > { %v10992_v54 = vadd.f32 %v1136_v21, %v10811_v31  ;;  %v10995_v17 = vadd.f32 %v1135_v62, %v10820_v11  ;;  %v1144_v20 = vmul.f32 %v10672_v30, %v14569_v49  ;;  %v1143_v6 = vmul.f32 %v10672_v30, %v14570_v55  ;;  %v14571_v44 = vld [vmem:[#allocation8_spill] sm:$0xff]  ;;  %v14572_v31 = vld [vmem:[#allocation9_spill] sm:$0xff]  ;;  %v14573_v55 = vld [vmem:[#allocation10_spill] sm:$0xff] }
 0x280   : > { %v11002_v43 = vadd.f32 %v1138_v8, %v10823_v38  ;;  %v11005_v7 = vadd.f32 %v1137_v29, %v10828_v22  ;;  %v1146_v36 = vmul.f32 %v10672_v30, %v14571_v44  ;;  %v1145_v21 = vmul.f32 %v10672_v30, %v14572_v31  ;;  %v11011_v11 = vpop.permute.xlu1 %2297  ;;  %v14574_v38 = vld [vmem:[#allocation11_spill] sm:$0xff]  ;;  %v14575_v31 = vld [vmem:[#allocation13_spill] sm:$0xff] }
 0x281   : > { %v11014_v62 = vadd.f32 %v1140_v4, %v10831_v52  ;;  %v11017_v49 = vadd.f32 %v1139_v13, %v10844_v47  ;;  %v1147_v8 = vmul.f32 %v10672_v30, %v14573_v55  ;;  %v1379_v22 = vmul.f32 %v10694_v37, %v14574_v38  ;;  %v14576_v52 = vld [vmem:[#allocation16_spill] sm:$0xff]  ;;  %v11033_v47 = vpop.permute.xlu0 %2312  ;;  %v14577_v55 = vld [vmem:[#allocation109_spill] sm:$0xff] }
 0x282   : > { %v11024_v29 = vadd.f32 %v1142_v3, %v10847_v51  ;;  %v11027_v44 = vadd.f32 %v1141_v35, %v10856_v0  ;;  %v1381_v53 = vmul.f32 %v10694_v37, %v14575_v31  ;;  %v1380_v4 = vmul.f32 %v10694_v37, %v14576_v52  ;;  %v14578_v51 = vld [vmem:[#allocation19_spill] sm:$0xff]  ;;  %v14579_v31 = vld [vmem:[#allocation21_spill] sm:$0xff] }
 0x283   : > { %v11036_v13 = vadd.f32 %v1144_v20, %v10865_v46  ;;  %v11039_v30 = vadd.f32 %v1143_v6, %v10868_v23  ;;  %v1383_v3 = vmul.f32 %v10694_v37, %v14577_v55  ;;  %v1382_v0 = vmul.f32 %v10694_v37, %v14578_v51  ;;  %v14580_v46 = vld [vmem:[#allocation23_spill] sm:$0xff]  ;;  %v14581_v51 = vld [vmem:[#allocation25_spill] sm:$0xff] }
 0x284   : > { %v11046_v35 = vadd.f32 %v1146_v36, %v10877_v33  ;;  %v11049_v38 = vadd.f32 %v1145_v21, %v10880_v34  ;;  %v1385_v52 = vmul.f32 %v10694_v37, %v14579_v31  ;;  %v1384_v20 = vmul.f32 %v10694_v37, %v14580_v46  ;;  %v11055_v23 = vpop.permute.xlu1 %2307  ;;  %v14582_v33 = vld [vmem:[#allocation27_spill] sm:$0xff]  ;;  %v14583_v46 = vld [vmem:[#allocation29_spill] sm:$0xff] }
 0x285   : > { %v11058_v6 = vadd.f32 %v1147_v8, %v10887_v19  ;;  %v11061_v55 = vadd.f32 %v1379_v22, %v10890_v9  ;;  %v1387_v36 = vmul.f32 %v10694_v37, %v14581_v51  ;;  %v1386_v34 = vmul.f32 %v10694_v37, %v14582_v33  ;;  %v14584_v19 = vld [vmem:[#allocation31_spill] sm:$0xff]  ;;  %v11077_v9 = vpop.permute.xlu0 %2322  ;;  %v14585_v33 = vld [vmem:[#allocation33_spill] sm:$0xff] }
 0x286   : > { %v11068_v21 = vadd.f32 %v1381_v53, %v10899_v12  ;;  %v11071_v31 = vadd.f32 %v1380_v4, %v10902_v1  ;;  %v1389_v57 = vmul.f32 %v10694_v37, %v14583_v46  ;;  %v1388_v8 = vmul.f32 %v10694_v37, %v14584_v19  ;;  %v14586_v12 = vld [vmem:[#allocation35_spill] sm:$0xff]  ;;  %v14587_v19 = vld [vmem:[#allocation37_spill] sm:$0xff] }
 0x287   : > { %v11080_v22 = vadd.f32 %v1383_v3, %v10910_v14  ;;  %v11083_v51 = vadd.f32 %v1382_v0, %v10913_v39  ;;  %v1391_v53 = vmul.f32 %v10694_v37, %v14585_v33  ;;  %v1390_v1 = vmul.f32 %v10694_v37, %v14586_v12  ;;  %v14588_v14 = vld [vmem:[#allocation39_spill] sm:$0xff]  ;;  %v14590_v12 = vld [vmem:[#allocation41_spill] sm:$0xff] }
 0x288   : > { %v11090_v4 = vadd.f32 %v1385_v52, %v10926_v56  ;;  %v11093_v46 = vadd.f32 %v1384_v20, %v10929_v27  ;;  %v1393_v60 = vmul.f32 %v10694_v37, %v14587_v19  ;;  %v1392_v3 = vmul.f32 %v10694_v37, %v14588_v14  ;;  %v11099_v39 = vpop.permute.xlu1 %2317  ;;  %v14591_v52 = vld [vmem:[#allocation43_spill] sm:$0xff]  ;;  %v14592_v14 = vld [vmem:[#allocation45_spill] sm:$0xff] }
 0x289   : > { %14589 = vst [vmem:[#allocation54_spill] sm:$0xff] %v11099_v39  ;;  %v11102_v0 = vadd.f32 %v1387_v36, %v10936_v63  ;;  %v11105_v33 = vadd.f32 %v1386_v34, %v10939_v26  ;;  %v1395_v56 = vmul.f32 %v10694_v37, %v14590_v12  ;;  %v1394_v27 = vmul.f32 %v10694_v37, %v14591_v52  ;;  %v14593_v63 = vld [vmem:[#allocation47_spill] sm:$0xff]  ;;  %v11121_v26 = vpop.permute.xlu0 %2332  ;;  %v14595_v52 = vld [vmem:[#allocation49_spill] sm:$0xff] }
 0x28a   : > { %v11112_v20 = vadd.f32 %v1389_v57, %v10948_v2  ;;  %v11115_v19 = vadd.f32 %v1388_v8, %v10951_v5  ;;  %v1397_v39 = vmul.f32 %v10694_v37, %v14592_v14  ;;  %v1396_v36 = vmul.f32 %v10694_v37, %v14593_v63  ;;  %14594 = vst [vmem:[#allocation56_spill] sm:$0xff] %v11121_v26  ;;  %v14596_v2 = vld [vmem:[#allocation51_spill] sm:$0xff]  ;;  %v14597_v63 = vld [vmem:[#allocation53_spill] sm:$0xff] }
 0x28b   : > { %v11124_v34 = vadd.f32 %v1391_v53, %v10958_v42  ;;  %v11127_v12 = vadd.f32 %v1390_v1, %v10961_v25  ;;  %v1399_v57 = vmul.f32 %v10694_v37, %v14595_v52  ;;  %v1398_v5 = vmul.f32 %v10694_v37, %v14596_v2  ;;  %v14598_v42 = vld [vmem:[#allocation55_spill] sm:$0xff]  ;;  %v14600_v2 = vld [vmem:[#allocation57_spill] sm:$0xff] }
 0x28c   : > { %v11134_v8 = vadd.f32 %v1393_v60, %v10970_v48  ;;  %v11137_v14 = vadd.f32 %v1392_v3, %v10973_v50  ;;  %v1401_v26 = vmul.f32 %v10694_v37, %v14597_v63  ;;  %v1400_v53 = vmul.f32 %v10694_v37, %v14598_v42  ;;  %v11143_v25 = vpop.permute.xlu1 %2327  ;;  %v14601_v48 = vld [vmem:[#allocation59_spill] sm:$0xff]  ;;  %v14602_v42 = vld [vmem:[#allocation61_spill] sm:$0xff] }
 0x28d   : > { %14599 = vst [vmem:[#allocation72_spill] sm:$0xff] %v11143_v25  ;;  %v11146_v1 = vadd.f32 %v1395_v56, %v10980_v40  ;;  %v11149_v52 = vadd.f32 %v1394_v27, %v10983_v10  ;;  %v1403_v60 = vmul.f32 %v10694_v37, %v14600_v2  ;;  %v1402_v50 = vmul.f32 %v10694_v37, %v14601_v48  ;;  %v14603_v40 = vld [vmem:[#allocation63_spill] sm:$0xff]  ;;  %v11165_v10 = vpop.permute.xlu0 %2342  ;;  %v14605_v48 = vld [vmem:[#allocation65_spill] sm:$0xff] }
 0x28e   : > { %v11156_v3 = vadd.f32 %v1397_v39, %v10992_v54  ;;  %v11159_v63 = vadd.f32 %v1396_v36, %v10995_v17  ;;  %v1405_v25 = vmul.f32 %v10694_v37, %v14602_v42  ;;  %v1404_v56 = vmul.f32 %v10694_v37, %v14603_v40  ;;  %14604 = vst [vmem:[#allocation58_spill] sm:$0xff] %v11165_v10  ;;  %v14606_v39 = vld [vmem:[#allocation110_spill] sm:$0xff]  ;;  %v14607_v40 = vld [vmem:[#allocation68_spill] sm:$0xff] }
 0x28f   : > { %v11168_v27 = vadd.f32 %v1399_v57, %v11002_v43  ;;  %v11171_v2 = vadd.f32 %v1398_v5, %v11005_v7  ;;  %v1407_v54 = vmul.f32 %v10694_v37, %v14605_v48  ;;  %v1406_v17 = vmul.f32 %v10694_v37, %v14606_v39  ;;  %v14608_v43 = vld [vmem:[#allocation111_spill] sm:$0xff]  ;;  %v14609_v39 = vld [vmem:[#allocation112_spill] sm:$0xff] }
 0x290   : > { %v11178_v36 = vadd.f32 %v1401_v26, %v11014_v62  ;;  %v11181_v42 = vadd.f32 %v1400_v53, %v11017_v49  ;;  %v1408_v10 = vmul.f32 %v10694_v37, %v14607_v40  ;;  %v1640_v57 = vmul.f32 %v10718_v28, %v14608_v43  ;;  %v11187_v7 = vpop.permute.xlu1 %2337  ;;  %v14610_v26 = vld [vmem:[#allocation114_spill] sm:$0xff]  ;;  %v14611_v40 = vld [vmem:[#allocation115_spill] sm:$0xff] }
 0x291   : > { %v11190_v5 = vadd.f32 %v1403_v60, %v11024_v29  ;;  %v11193_v48 = vadd.f32 %v1402_v50, %v11027_v44  ;;  %v1642_v62 = vmul.f32 %v10718_v28, %v14609_v39  ;;  %v1641_v49 = vmul.f32 %v10718_v28, %v14610_v26  ;;  %v14612_v29 = vld [vmem:[#allocation116_spill] sm:$0xff]  ;;  %v11209_v44 = vpop.permute.xlu0 %2352  ;;  %v14614_v26 = vld [vmem:[#allocation117_spill] sm:$0xff] }
 0x292   : > { %v11200_v53 = vadd.f32 %v1405_v25, %v11036_v13  ;;  %v11203_v37 = vadd.f32 %v1404_v56, %v11039_v30  ;;  %v1644_v43 = vmul.f32 %v10718_v28, %v14611_v40  ;;  %v1643_v60 = vmul.f32 %v10718_v28, %v14612_v29  ;;  %14613 = vst [vmem:[#allocation60_spill] sm:$0xff] %v11209_v44  ;;  %v14615_v25 = vld [vmem:[#allocation118_spill] sm:$0xff]  ;;  %v14616_v29 = vld [vmem:[#allocation119_spill] sm:$0xff] }
 0x293   : > { %v11212_v50 = vadd.f32 %v1407_v54, %v11046_v35  ;;  %v11215_v39 = vadd.f32 %v1406_v17, %v11049_v38  ;;  %v1646_v13 = vmul.f32 %v10718_v28, %v14614_v26  ;;  %v1645_v30 = vmul.f32 %v10718_v28, %v14615_v25  ;;  %v14617_v35 = vld [vmem:[#allocation120_spill] sm:$0xff]  ;;  %v14619_v25 = vld [vmem:[#allocation121_spill] sm:$0xff] }
 0x294   : > { %v11222_v56 = vadd.f32 %v1408_v10, %v11058_v6  ;;  %v11225_v40 = vadd.f32 %v1640_v57, %v11061_v55  ;;  %v1648_v44 = vmul.f32 %v10718_v28, %v14616_v29  ;;  %v1647_v54 = vmul.f32 %v10718_v28, %v14617_v35  ;;  %v11231_v38 = vpop.permute.xlu1 %2347  ;;  %v14620_v10 = vld [vmem:[#allocation122_spill] sm:$0xff]  ;;  %v14621_v35 = vld [vmem:[#allocation123_spill] sm:$0xff] }
 0x295   : > { %14618 = vst [vmem:[#allocation62_spill] sm:$0xff] %v11231_v38  ;;  %v11234_v17 = vadd.f32 %v1642_v62, %v11068_v21  ;;  %v11237_v26 = vadd.f32 %v1641_v49, %v11071_v31  ;;  %v1650_v6 = vmul.f32 %v10718_v28, %v14619_v25  ;;  %v1649_v55 = vmul.f32 %v10718_v28, %v14620_v10  ;;  %v14622_v21 = vld [vmem:[#allocation124_spill] sm:$0xff]  ;;  %v11253_v31 = vpop.permute.xlu0 %2362  ;;  %v14624_v10 = vld [vmem:[#allocation125_spill] sm:$0xff] }
 0x296   : > { %v11244_v57 = vadd.f32 %v1644_v43, %v11080_v22  ;;  %v11247_v29 = vadd.f32 %v1643_v60, %v11083_v51  ;;  %v1652_v38 = vmul.f32 %v10718_v28, %v14621_v35  ;;  %v1651_v62 = vmul.f32 %v10718_v28, %v14622_v21  ;;  %14623 = vst [vmem:[#allocation64_spill] sm:$0xff] %v11253_v31  ;;  %v14625_v43 = vld [vmem:[#allocation126_spill] sm:$0xff]  ;;  %v14626_v21 = vld [vmem:[#allocation127_spill] sm:$0xff] }
 0x297   : > { %v11256_v49 = vadd.f32 %v1646_v13, %v11090_v4  ;;  %v11259_v25 = vadd.f32 %v1645_v30, %v11093_v46  ;;  %v1654_v22 = vmul.f32 %v10718_v28, %v14624_v10  ;;  %v1653_v51 = vmul.f32 %v10718_v28, %v14625_v43  ;;  %v14627_v4 = vld [vmem:[#allocation128_spill] sm:$0xff]  ;;  %v14629_v43 = vld [vmem:[#allocation129_spill] sm:$0xff] }
 0x298   : > { %v11266_v60 = vadd.f32 %v1648_v44, %v11102_v0  ;;  %v11269_v35 = vadd.f32 %v1647_v54, %v11105_v33  ;;  %v1656_v31 = vmul.f32 %v10718_v28, %v14626_v21  ;;  %v1655_v13 = vmul.f32 %v10718_v28, %v14627_v4  ;;  %v11275_v46 = vpop.permute.xlu1 %2357  ;;  %v14630_v44 = vld [vmem:[#allocation130_spill] sm:$0xff]  ;;  %v14631_v4 = vld [vmem:[#allocation131_spill] sm:$0xff] }
 0x299   : > { %14628 = vst [vmem:[#allocation66_spill] sm:$0xff] %v11275_v46  ;;  %v11278_v30 = vadd.f32 %v1650_v6, %v11112_v20  ;;  %v11281_v10 = vadd.f32 %v1649_v55, %v11115_v19  ;;  %v1658_v0 = vmul.f32 %v10718_v28, %v14629_v43  ;;  %v1657_v33 = vmul.f32 %v10718_v28, %v14630_v44  ;;  %v14632_v20 = vld [vmem:[#allocation132_spill] sm:$0xff]  ;;  %v11297_v19 = vpop.permute.xlu0 %2372  ;;  %v14634_v44 = vld [vmem:[#allocation133_spill] sm:$0xff] }
 0x29a   : > { %v11288_v54 = vadd.f32 %v1652_v38, %v11124_v34  ;;  %v11291_v21 = vadd.f32 %v1651_v62, %v11127_v12  ;;  %v1660_v46 = vmul.f32 %v10718_v28, %v14631_v4  ;;  %v1659_v6 = vmul.f32 %v10718_v28, %v14632_v20  ;;  %14633 = vst [vmem:[#allocation67_spill] sm:$0xff] %v11297_v19  ;;  %v14635_v38 = vld [vmem:[#allocation134_spill] sm:$0xff]  ;;  %v14636_v20 = vld [vmem:[#allocation135_spill] sm:$0xff] }
 0x29b   : > { %v11300_v55 = vadd.f32 %v1654_v22, %v11134_v8  ;;  %v11303_v43 = vadd.f32 %v1653_v51, %v11137_v14  ;;  %v1662_v34 = vmul.f32 %v10718_v28, %v14634_v44  ;;  %v1661_v12 = vmul.f32 %v10718_v28, %v14635_v38  ;;  %v14637_v8 = vld [vmem:[#allocation136_spill] sm:$0xff]  ;;  %v14639_v38 = vld [vmem:[#allocation137_spill] sm:$0xff] }
 0x29c   : > { %v11310_v62 = vadd.f32 %v1656_v31, %v11146_v1  ;;  %v11313_v4 = vadd.f32 %v1655_v13, %v11149_v52  ;;  %v1664_v19 = vmul.f32 %v10718_v28, %v14636_v20  ;;  %v1663_v22 = vmul.f32 %v10718_v28, %v14637_v8  ;;  %v11319_v14 = vpop.permute.xlu1 %2367  ;;  %v14640_v31 = vld [vmem:[#allocation138_spill] sm:$0xff]  ;;  %v14641_v8 = vld [vmem:[#allocation139_spill] sm:$0xff] }
 0x29d   : > { %14638 = vst [vmem:[#allocation73_spill] sm:$0xff] %v11319_v14  ;;  %v11322_v51 = vadd.f32 %v1658_v0, %v11156_v3  ;;  %v11325_v44 = vadd.f32 %v1657_v33, %v11159_v63  ;;  %v1666_v1 = vmul.f32 %v10718_v28, %v14639_v38  ;;  %v1665_v52 = vmul.f32 %v10718_v28, %v14640_v31  ;;  %v14642_v3 = vld [vmem:[#allocation140_spill] sm:$0xff]  ;;  %v11341_v63 = vpop.permute.xlu0 %2382  ;;  %v14644_v31 = vld [vmem:[#allocation141_spill] sm:$0xff] }
 0x29e   : > { %v11332_v13 = vadd.f32 %v1660_v46, %v11168_v27  ;;  %v11335_v20 = vadd.f32 %v1659_v6, %v11171_v2  ;;  %v1668_v14 = vmul.f32 %v10718_v28, %v14641_v8  ;;  %v1667_v0 = vmul.f32 %v10718_v28, %v14642_v3  ;;  %14643 = vst [vmem:[#allocation69_spill] sm:$0xff] %v11341_v63  ;;  %v14645_v46 = vld [vmem:[#allocation142_spill] sm:$0xff]  ;;  %v14646_v3 = vld [vmem:[#allocation143_spill] sm:$0xff] }
 0x29f   : > { %v11344_v33 = vadd.f32 %v1662_v34, %v11178_v36  ;;  %v11347_v38 = vadd.f32 %v1661_v12, %v11181_v42  ;;  %v1669_v27 = vmul.f32 %v10718_v28, %v14644_v31  ;;  %v1901_v2 = vmul.f32 %v10744_v58, %v14645_v46  ;;  %v14647_v36 = vld [vmem:[#allocation144_spill] sm:$0xff]  ;;  %v14649_v31 = vld [vmem:[#allocation145_spill] sm:$0xff] }
 0x2a0   : > { %v11354_v6 = vadd.f32 %v1664_v19, %v11190_v5  ;;  %v11357_v8 = vadd.f32 %v1663_v22, %v11193_v48  ;;  %v1903_v63 = vmul.f32 %v10744_v58, %v14646_v3  ;;  %v1902_v34 = vmul.f32 %v10744_v58, %v14647_v36  ;;  %v11363_v42 = vpop.permute.xlu1 %2377  ;;  %v14650_v19 = vld [vmem:[#allocation146_spill] sm:$0xff]  ;;  %v14651_v3 = vld [vmem:[#allocation147_spill] sm:$0xff] }
 0x2a1   : > { %14648 = vst [vmem:[#allocation71_spill] sm:$0xff] %v11363_v42  ;;  %v11366_v12 = vadd.f32 %v1666_v1, %v11200_v53  ;;  %v11369_v28 = vadd.f32 %v1665_v52, %v11203_v37  ;;  %v1905_v5 = vmul.f32 %v10744_v58, %v14649_v31  ;;  %v1904_v48 = vmul.f32 %v10744_v58, %v14650_v19  ;;  %v14652_v53 = vld [vmem:[#allocation148_spill] sm:$0xff]  ;;  %v11385_v37 = vpop.permute.xlu0 %2392  ;;  %v14655_v19 = vld [vmem:[#allocation149_spill] sm:$0xff] }
 0x2a2   : > { %v11376_v22 = vadd.f32 %v1668_v14, %v11212_v50  ;;  %v11379_v46 = vadd.f32 %v1667_v0, %v11215_v39  ;;  %v1907_v36 = vmul.f32 %v10744_v58, %v14651_v3  ;;  %v1906_v1 = vmul.f32 %v10744_v58, %v14652_v53  ;;  %14653 = vst [vmem:[#allocation15_spill] sm:$0xff] %v11385_v37  ;;  %v14656_v14 = vld [vmem:[#allocation150_spill] sm:$0xff]  ;;  %v14657_v53 = vld [vmem:[#allocation151_spill] sm:$0xff]  ;;  %v14658_v42 = vld [vmem:[#allocation152_spill] sm:$0xff] }
 0x2a3   : > { %v11388_v52 = vadd.f32 %v1669_v27, %v11222_v56  ;;  %v1933_v31 = vadd.f32 %v1901_v2, %v11225_v40  ;;  %v1909_v50 = vmul.f32 %v10744_v58, %v14655_v19  ;;  %v1908_v39 = vmul.f32 %v10744_v58, %v14656_v14  ;;  %v14660_v19 = vld [vmem:[#allocation153_spill] sm:$0xff] }
 0x2a4   : > { %v11396_v0 = vadd.f32 %v1903_v63, %v11234_v17  ;;  %v11399_v3 = vadd.f32 %v1902_v34, %v11237_v26  ;;  %v1911_v37 = vmul.f32 %v10744_v58, %v14657_v53  ;;  %v1910_v56 = vmul.f32 %v10744_v58, %v14658_v42  ;;  %v11405_v27 = vpop.permute.xlu1 %2387  ;;  %v14661_v63 = vld [vmem:[#allocation154_spill] sm:$0xff]  ;;  %v14662_v42 = vld [vmem:[#allocation155_spill] sm:$0xff] }
 0x2a5   : > { %14654 = vst [vmem:[#allocation173_spill] sm:$0xff] %v11388_v52  ;;  %14659 = vst [vmem:[#allocation17_spill] sm:$0xff] %v11405_v27  ;;  %v11408_v40 = vadd.f32 %v1905_v5, %v11244_v57  ;;  %v11411_v2 = vadd.f32 %v1904_v48, %v11247_v29  ;;  %v1913_v17 = vmul.f32 %v10744_v58, %v14660_v19  ;;  %v14663_v57 = vld [vmem:[#allocation156_spill] sm:$0xff]  ;;  %v11427_v29 = vpop.permute.xlu0 %2402  ;;  %v14683_v27 = vld [vmem:[#allocation175_spill] sm:$0xff] }
 0x2a6   : > { %v1912_v26 = vmul.f32 %v10744_v58, %v14661_v63  ;;  %v11418_v34 = vadd.f32 %v1907_v36, %v11256_v49  ;;  %v11421_v14 = vadd.f32 %v1906_v1, %v11259_v25  ;;  %v1915_v53 = vmul.f32 %v10744_v58, %v14662_v42  ;;  %14664 = vst [vmem:[#allocation18_spill] sm:$0xff] %v11427_v29  ;;  %v14665_v63 = vld [vmem:[#allocation157_spill] sm:$0xff]  ;;  %v14666_v36 = vld [vmem:[#allocation158_spill] sm:$0xff] }
 0x2a7   : > { %v1914_v5 = vmul.f32 %v10744_v58, %v14663_v57  ;;  %v11430_v48 = vadd.f32 %v1909_v50, %v11266_v60  ;;  %v11433_v19 = vadd.f32 %v1908_v39, %v11269_v35  ;;  %v1917_v49 = vmul.f32 %v10744_v58, %v14665_v63  ;;  %v14667_v57 = vld [vmem:[#allocation159_spill] sm:$0xff]  ;;  %v14668_v60 = vld [vmem:[#allocation160_spill] sm:$0xff]  ;;  %v14672_v29 = vld [vmem:[#allocation162_spill] sm:$0xff] }
 0x2a8   : > { %v1916_v25 = vmul.f32 %v10744_v58, %v14666_v36  ;;  %v11440_v1 = vadd.f32 %v1911_v37, %v11278_v30  ;;  %v11443_v42 = vadd.f32 %v1910_v56, %v11281_v10  ;;  %v1919_v52 = vmul.f32 %v10744_v58, %v14667_v57  ;;  %v11452_v35 = vld [vmem:[%s14144_s1 + $0x7] ss:$0 sm:$0xff]  ;;  %v11454_v39 = vpop.permute.xlu1 %2397  ;;  %v14670_v10 = vld [vmem:[#allocation161_spill] sm:$0xff] }
 0x2a9   : > { %v1918_v50 = vmul.f32 %v10744_v58, %v14668_v60  ;;  %14669 = vst [vmem:[#allocation74_spill] sm:$0xff] %v11454_v39  ;;  %v11457_v63 = vadd.f32 %v1913_v17, %v11288_v54  ;;  %v11460_v30 = vadd.f32 %v1912_v26, %v11291_v21  ;;  %v1921_v37 = vmul.f32 %v10744_v58, %v14670_v10  ;;  %v14671_v56 = vld [vmem:[#allocation172_spill] sm:$0xff]  ;;  %v14673_v54 = vld [vmem:[#allocation163_spill] sm:$0xff]  ;;  %v11476_v21 = vpop.permute.xlu0 %2412 }
 0x2aa   : > { %v2163_v36 = vmul.f32 %v10782_v41, %v14671_v56  ;;  %v11467_v57 = vadd.f32 %v1915_v53, %v11300_v55  ;;  %v11470_v60 = vadd.f32 %v1914_v5, %v11303_v43  ;;  %v1920_v39 = vmul.f32 %v10744_v58, %v14672_v29  ;;  %14674 = vst [vmem:[#allocation75_spill] sm:$0xff] %v11476_v21  ;;  %v14675_v56 = vld [vmem:[#allocation164_spill] sm:$0xff]  ;;  %v14676_v29 = vld [vmem:[#allocation165_spill] sm:$0xff] }
 0x2ab   : > { %v1923_v17 = vmul.f32 %v10744_v58, %v14673_v54  ;;  %v11479_v26 = vadd.f32 %v1917_v49, %v11310_v62  ;;  %v11482_v10 = vadd.f32 %v1916_v25, %v11313_v4  ;;  %v1922_v55 = vmul.f32 %v10744_v58, %v14675_v56  ;;  %v14677_v62 = vld [vmem:[#allocation166_spill] sm:$0xff]  ;;  %v11503_v25 = vld [vmem:[%s14144_s1 + $0x8] ss:$0 sm:$0xff] }
 0x2ac   : > { %v2424_v43 = vmul.f32 %v11452_v35, %v10817_v15  ;;  %v11489_v53 = vadd.f32 %v1919_v52, %v11322_v51  ;;  %v11492_v5 = vadd.f32 %v1918_v50, %v11325_v44  ;;  %v1925_v54 = vmul.f32 %v10744_v58, %v14676_v29  ;;  %v11498_v4 = vpop.permute.xlu1 %2407  ;;  %v14680_v51 = vld [vmem:[#allocation167_spill] sm:$0xff]  ;;  %v14681_v50 = vld [vmem:[#allocation174_spill] sm:$0xff] }
 0x2ad   : > { %v1924_v49 = vmul.f32 %v10744_v58, %v14677_v62  ;;  %14678 = vst [vmem:[#allocation20_spill] sm:$0xff] %v11498_v4  ;;  %v11506_v15 = vadd.f32 %v1921_v37, %v11332_v13  ;;  %v1927_v44 = vmul.f32 %v10744_v58, %v14680_v51  ;;  %v2195_v52 = vadd.f32 %v2163_v36, %v1933_v31  ;;  %v14682_v4 = vld [vmem:[#allocation168_spill] sm:$0xff]  ;;  %v2524_v37 = vpop.permute.xlu0 %2523 }
 0x2ae   : > { %v2165_v56 = vmul.f32 %v10782_v41, %v14681_v50  ;;  %v11513_v29 = vadd.f32 %v1920_v39, %v11335_v20  ;;  %v11516_v62 = vadd.f32 %v1923_v17, %v11344_v33  ;;  %v1926_v21 = vmul.f32 %v10744_v58, %v14682_v4  ;;  %v14684_v17 = vld [vmem:[#allocation169_spill] sm:$0xff] }
 0x2af   : > { %14679 = vst [vmem:[#allocation22_spill] sm:$0xff] %v11506_v15  ;;  %v2164_v13 = vmul.f32 %v10782_v41, %v14683_v27  ;;  %v11523_v15 = vadd.f32 %v1922_v55, %v11347_v38  ;;  %v2456_v31 = vadd.f32 %v2424_v43, %v2195_v52  ;;  %v2426_v36 = vmul.f32 %v11452_v35, %v10853_v24  ;;  %v14685_v27 = vld [vmem:[#allocation176_spill] sm:$0xff] }
 0x2b0   : > { %v2685_v20 = vmul.f32 %v11503_v25, %v2524_v37  ;;  %v11529_v39 = vadd.f32 %v1925_v54, %v11354_v6  ;;  %v11532_v33 = vadd.f32 %v1924_v49, %v11357_v8  ;;  %v1929_v4 = vmul.f32 %v10744_v58, %v14684_v17  ;;  %v11541_v38 = vld [vmem:[%s14145_s2] ss:$0 sm:$0xff]  ;;  %v11543_v24 = vpop.permute.xlu1 %2417  ;;  %v14686_v49 = vld [vmem:[#allocation170_spill] sm:$0xff]  ;;  %v14687_v37 = vld [vmem:[#allocation177_spill] sm:$0xff] }
 0x2b1   : > { %v2167_v51 = vmul.f32 %v10782_v41, %v14685_v27  ;;  %v11546_v55 = vadd.f32 %v1927_v44, %v11366_v12  ;;  %v2197_v6 = vadd.f32 %v2165_v56, %v11396_v0  ;;  %v2425_v8 = vmul.f32 %v11452_v35, %v10874_v61  ;;  %v2534_v27 = vpop.permute.xlu0 %2533 }
 0x2b2   : > { %v2717_v43 = vadd.f32 %v2685_v20, %v2456_v31  ;;  %v11552_v54 = vadd.f32 %v1926_v21, %v11369_v28  ;;  %v1928_v52 = vmul.f32 %v10744_v58, %v14686_v49  ;;  %v2196_v50 = vadd.f32 %v2164_v13, %v11399_v3  ;;  %v14688_v58 = vld [vmem:[#allocation178_spill] sm:$0xff] }
 0x2b3   : > { %v2166_v17 = vmul.f32 %v10782_v41, %v14687_v37  ;;  %v2458_v12 = vadd.f32 %v2426_v36, %v2197_v6  ;;  %v2428_v0 = vmul.f32 %v11452_v35, %v10896_v16  ;;  %v2687_v61 = vmul.f32 %v11503_v25, %v2534_v27 }
 0x2b4   : > { %v2756_v44 = vadd.f32 %v11541_v38, %v2717_v43  ;;  %v11564_v28 = vadd.f32 %v1929_v4, %v11376_v22  ;;  %v2199_v21 = vadd.f32 %v2167_v51, %v11408_v40  ;;  %v2169_v3 = vmul.f32 %v10782_v41, %v14688_v58  ;;  %v2529_v13 = vpop.permute.xlu1 %2528  ;;  %v14689_v4 = vld [vmem:[#allocation179_spill] sm:$0xff] }
 0x2b5   : > { %v2427_v56 = vmul.f32 %v11452_v35, %v10919_v59  ;;  %v2457_v31 = vadd.f32 %v2425_v8, %v2196_v50  ;;  %v2719_v20 = vadd.f32 %v2687_v61, %v2458_v12  ;;  %v2686_v16 = vmul.f32 %v11503_v25, %v2529_v13  ;;  %v2544_v43 = vpop.permute.xlu0 %2543 }
 0x2b6   : > { %v2788_v36 = vmax.f32 %v2756_v44, 0.0  ;;  %v11573_v6 = vadd.f32 %v1928_v52, %v11379_v46  ;;  %v2198_v22 = vadd.f32 %v2166_v17, %v11411_v2  ;;  %v2168_v40 = vmul.f32 %v10782_v41, %v14689_v4  ;;  %v14690_v52 = vld [vmem:[#allocation180_spill] sm:$0xff] }
 0x2b7   : > { %v2430_v51 = vmul.f32 %v11452_v35, %v10945_v32  ;;  %v2460_v49 = vadd.f32 %v2428_v0, %v2199_v21  ;;  %v2758_v59 = vadd.f32 %v11541_v38, %v2719_v20  ;;  %v2718_v8 = vadd.f32 %v2686_v16, %v2457_v31  ;;  %v14691_v21 = vld [vmem:[#allocation181_spill] sm:$0xff]  ;;  %v14692_v16 = vld [vmem:[#allocation182_spill] sm:$0xff] }
 0x2b8   : > { %2877 = vst.msk [vmem:[#allocation3 + $0x19] sm:$0xff] %vm2820_vm2, %v2788_v36  ;;  %v2689_v50 = vmul.f32 %v11503_v25, %v2544_v43  ;;  %v2201_v46 = vadd.f32 %v2169_v3, %v11418_v34  ;;  %v2171_v2 = vmul.f32 %v10782_v41, %v14690_v52  ;;  %v2459_v37 = vadd.f32 %v2427_v56, %v2198_v22  ;;  %v2539_v27 = vpop.permute.xlu1 %2538 }
 0x2b9   : > { %v2429_v17 = vmul.f32 %v11452_v35, %v10967_v18  ;;  %v2790_v32 = vmax.f32 %v2758_v59, 0.0  ;;  %v2757_v12 = vadd.f32 %v11541_v38, %v2718_v8  ;;  %v2688_v44 = vmul.f32 %v11503_v25, %v2539_v27  ;;  %v2554_v56 = vpop.permute.xlu0 %2553  ;;  %v14693_v8 = vld [vmem:[#allocation183_spill] sm:$0xff] }
 0x2ba   : > { %v2721_v0 = vadd.f32 %v2689_v50, %v2460_v49  ;;  %v2200_v61 = vadd.f32 %v2168_v40, %v11421_v14  ;;  %v2170_v58 = vmul.f32 %v10782_v41, %v14691_v21  ;;  %v2462_v34 = vadd.f32 %v2430_v51, %v2201_v46 }
 0x2bb   : > { %v2432_v3 = vmul.f32 %v11452_v35, %v10989_v45  ;;  %2879 = vst.msk [vmem:[#allocation3 + $0x31] sm:$0xff] %vm2820_vm2, %v2790_v32  ;;  %v2789_v18 = vmax.f32 %v2757_v12, 0.0  ;;  %v2720_v31 = vadd.f32 %v2688_v44, %v2459_v37  ;;  %v2691_v36 = vmul.f32 %v11503_v25, %v2554_v56  ;;  %v14694_v32 = vld [vmem:[#allocation184_spill] sm:$0xff] }
 0x2bc   : > { %v2760_v13 = vadd.f32 %v11541_v38, %v2721_v0  ;;  %v2203_v20 = vadd.f32 %v2171_v2, %v11430_v48  ;;  %v2173_v14 = vmul.f32 %v10782_v41, %v14692_v16  ;;  %v2461_v22 = vadd.f32 %v2429_v17, %v2200_v61  ;;  %v2549_v40 = vpop.permute.xlu1 %2548 }
 0x2bd   : > { %v2431_v4 = vmul.f32 %v11452_v35, %v11011_v11  ;;  %2878 = vst.msk [vmem:[#allocation3 + $0x21] sm:$0xff] %vm2820_vm2, %v2789_v18  ;;  %v2759_v51 = vadd.f32 %v11541_v38, %v2720_v31  ;;  %v2723_v43 = vadd.f32 %v2691_v36, %v2462_v34  ;;  %v2690_v49 = vmul.f32 %v11503_v25, %v2549_v40  ;;  %v2564_v52 = vpop.permute.xlu0 %2563 }
 0x2be   : > { %v2792_v45 = vmax.f32 %v2760_v13, 0.0  ;;  %v2202_v59 = vadd.f32 %v2170_v58, %v11433_v19  ;;  %v2172_v48 = vmul.f32 %v10782_v41, %v14693_v8  ;;  %v2464_v50 = vadd.f32 %v2432_v3, %v2203_v20  ;;  %v14695_v3 = vld [vmem:[#allocation185_spill] sm:$0xff]  ;;  %v14698_v8 = vld [vmem:[#allocation187_spill] sm:$0xff] }
 0x2bf   : > { %v2434_v46 = vmul.f32 %v11452_v35, %v11033_v47  ;;  %v2791_v11 = vmax.f32 %v2759_v51, 0.0  ;;  %v2762_v2 = vadd.f32 %v11541_v38, %v2723_v43  ;;  %v2722_v37 = vadd.f32 %v2690_v49, %v2461_v22 }
 0x2c0   : > { %2881 = vst.msk [vmem:[#allocation3 + $0x49] sm:$0xff] %vm2820_vm2, %v2792_v45  ;;  %v2693_v17 = vmul.f32 %v11503_v25, %v2564_v52  ;;  %v2205_v27 = vadd.f32 %v2173_v14, %v11440_v1  ;;  %v2175_v19 = vmul.f32 %v10782_v41, %v14694_v32  ;;  %v2463_v12 = vadd.f32 %v2431_v4, %v2202_v59  ;;  %v2559_v44 = vpop.permute.xlu1 %2558  ;;  %v14696_v14 = vld [vmem:[#allocation186_spill] sm:$0xff]  ;;  %v14700_v32 = vld [vmem:[#allocation188_spill] sm:$0xff] }
 0x2c1   : > { %v2433_v0 = vmul.f32 %v11452_v35, %v11055_v23  ;;  %2880 = vst.msk [vmem:[#allocation3 + $0x39] sm:$0xff] %vm2820_vm2, %v2791_v11  ;;  %v2794_v47 = vmax.f32 %v2762_v2, 0.0  ;;  %v2761_v61 = vadd.f32 %v11541_v38, %v2722_v37  ;;  %v2692_v58 = vmul.f32 %v11503_v25, %v2559_v44  ;;  %v2574_v13 = vpop.permute.xlu0 %2573  ;;  %v14697_v4 = vld [vmem:[#allocation54_spill] sm:$0xff] }
 0x2c2   : > { %v2725_v21 = vadd.f32 %v2693_v17, %v2464_v50  ;;  %v2204_v34 = vadd.f32 %v2172_v48, %v11443_v42  ;;  %v2174_v1 = vmul.f32 %v10782_v41, %v14695_v3  ;;  %v2466_v56 = vadd.f32 %v2434_v46, %v2205_v27  ;;  %v14699_v50 = vld [vmem:[#allocation56_spill] sm:$0xff]  ;;  %v14702_v3 = vld [vmem:[#allocation189_spill] sm:$0xff] }
 0x2c3   : > { %v2436_v18 = vmul.f32 %v11452_v35, %v11077_v9  ;;  %2883 = vst.msk [vmem:[#allocation3 + $0x61] sm:$0xff] %vm2820_vm2, %v2794_v47  ;;  %v2793_v23 = vmax.f32 %v2761_v61, 0.0  ;;  %v2724_v36 = vadd.f32 %v2692_v58, %v2463_v12  ;;  %v2695_v20 = vmul.f32 %v11503_v25, %v2574_v13  ;;  %v14701_v12 = vld [vmem:[#allocation72_spill] sm:$0xff] }
 0x2c4   : > { %v2764_v31 = vadd.f32 %v11541_v38, %v2725_v21  ;;  %v2207_v16 = vadd.f32 %v2175_v19, %v11457_v63  ;;  %v2177_v42 = vmul.f32 %v10782_v41, %v14696_v14  ;;  %v2465_v22 = vadd.f32 %v2433_v0, %v2204_v34  ;;  %v2569_v45 = vpop.permute.xlu1 %2568  ;;  %v14704_v14 = vld [vmem:[#allocation190_spill] sm:$0xff] }
 0x2c5   : > { %v2435_v40 = vmul.f32 %v11452_v35, %v14697_v4  ;;  %2882 = vst.msk [vmem:[#allocation3 + $0x51] sm:$0xff] %vm2820_vm2, %v2793_v23  ;;  %v2763_v51 = vadd.f32 %v11541_v38, %v2724_v36  ;;  %v2727_v43 = vadd.f32 %v2695_v20, %v2466_v56  ;;  %v2694_v49 = vmul.f32 %v11503_v25, %v2569_v45  ;;  %v2584_v52 = vpop.permute.xlu0 %2583  ;;  %v14703_v56 = vld [vmem:[#allocation58_spill] sm:$0xff] }
 0x2c6   : > { %v2796_v9 = vmax.f32 %v2764_v31, 0.0  ;;  %v2206_v59 = vadd.f32 %v2174_v1, %v11460_v30  ;;  %v2176_v63 = vmul.f32 %v10782_v41, %v14698_v8  ;;  %v2468_v48 = vadd.f32 %v2436_v18, %v2207_v16  ;;  %v14706_v8 = vld [vmem:[#allocation60_spill] sm:$0xff] }
 0x2c7   : > { %v2438_v46 = vmul.f32 %v11452_v35, %v14699_v50  ;;  %v2795_v11 = vmax.f32 %v2763_v51, 0.0  ;;  %v2766_v2 = vadd.f32 %v11541_v38, %v2727_v43  ;;  %v2726_v37 = vadd.f32 %v2694_v49, %v2465_v22  ;;  %v14705_v49 = vld [vmem:[#allocation191_spill] sm:$0xff] }
 0x2c8   : > { %2885 = vst.msk [vmem:[#allocation3 + $0x79] sm:$0xff] %vm2820_vm2, %v2796_v9  ;;  %v2697_v17 = vmul.f32 %v11503_v25, %v2584_v52  ;;  %v2209_v27 = vadd.f32 %v2177_v42, %v11467_v57  ;;  %v2179_v30 = vmul.f32 %v10782_v41, %v14700_v32  ;;  %v2467_v19 = vadd.f32 %v2435_v40, %v2206_v59  ;;  %v2579_v44 = vpop.permute.xlu1 %2578 }
 0x2c9   : > { %v2437_v0 = vmul.f32 %v11452_v35, %v14701_v12  ;;  %2884 = vst.msk [vmem:[#allocation3 + $0x69] sm:$0xff] %vm2820_vm2, %v2795_v11  ;;  %v2798_v47 = vmax.f32 %v2766_v2, 0.0  ;;  %v2765_v61 = vadd.f32 %v11541_v38, %v2726_v37  ;;  %v2696_v58 = vmul.f32 %v11503_v25, %v2579_v44  ;;  %v2594_v13 = vpop.permute.xlu0 %2593  ;;  %v14707_v2 = vld [vmem:[#allocation192_spill] sm:$0xff] }
 0x2ca   : > { %v2729_v21 = vadd.f32 %v2697_v17, %v2468_v48  ;;  %v2208_v34 = vadd.f32 %v2176_v63, %v11470_v60  ;;  %v2178_v57 = vmul.f32 %v10782_v41, %v14702_v3  ;;  %v2470_v1 = vadd.f32 %v2438_v46, %v2209_v27  ;;  %v14708_v17 = vld [vmem:[#allocation62_spill] sm:$0xff] }
 0x2cb   : > { %v2440_v18 = vmul.f32 %v11452_v35, %v14703_v56  ;;  %2887 = vst.msk [vmem:[#allocation3 + $0x91] sm:$0xff] %vm2820_vm2, %v2798_v47  ;;  %v2797_v23 = vmax.f32 %v2765_v61, 0.0  ;;  %v2728_v36 = vadd.f32 %v2696_v58, %v2467_v19  ;;  %v2699_v20 = vmul.f32 %v11503_v25, %v2594_v13  ;;  %v14709_v47 = vld [vmem:[#allocation12_spill] sm:$0xff] }
 0x2cc   : > { %v2768_v31 = vadd.f32 %v11541_v38, %v2729_v21  ;;  %v2211_v16 = vadd.f32 %v2179_v30, %v11479_v26  ;;  %v2181_v60 = vmul.f32 %v10782_v41, %v14704_v14  ;;  %v2469_v42 = vadd.f32 %v2437_v0, %v2208_v34  ;;  %v2589_v4 = vpop.permute.xlu1 %2588  ;;  %v14710_v21 = vld [vmem:[#allocation64_spill] sm:$0xff] }
 0x2cd   : > { %v2439_v22 = vmul.f32 %v11452_v35, %v11187_v7  ;;  %2886 = vst.msk [vmem:[#allocation3 + $0x81] sm:$0xff] %vm2820_vm2, %v2797_v23  ;;  %v2767_v45 = vadd.f32 %v11541_v38, %v2728_v36  ;;  %v2731_v9 = vadd.f32 %v2699_v20, %v2470_v1  ;;  %v2698_v51 = vmul.f32 %v11503_v25, %v2589_v4  ;;  %v2604_v48 = vpop.permute.xlu0 %2603  ;;  %v14712_v23 = vld [vmem:[#allocation14_spill] sm:$0xff] }
 0x2ce   : > { %v2800_v40 = vmax.f32 %v2768_v31, 0.0  ;;  %v2210_v43 = vadd.f32 %v2178_v57, %v11482_v10  ;;  %v2180_v26 = vmul.f32 %v10782_v41, %v14705_v49  ;;  %v2472_v59 = vadd.f32 %v2440_v18, %v2211_v16  ;;  %v14711_v18 = vld [vmem:[#allocation22_spill] sm:$0xff] }
 0x2cf   : > { %v2442_v63 = vmul.f32 %v11452_v35, %v14706_v8  ;;  %v2799_v7 = vmax.f32 %v2767_v45, 0.0  ;;  %v2770_v50 = vadd.f32 %v11541_v38, %v2731_v9  ;;  %v2730_v46 = vadd.f32 %v2698_v51, %v2469_v42  ;;  %v14713_v36 = vld [vmem:[#allocation66_spill] sm:$0xff]  ;;  %v14715_v51 = vld [vmem:[#allocation67_spill] sm:$0xff] }
 0x2d0   : > { %2889 = vst.msk [vmem:[#allocation3 + $0xa9] sm:$0xff] %vm2820_vm2, %v2800_v40  ;;  %v2701_v52 = vmul.f32 %v11503_v25, %v2604_v48  ;;  %v2213_v11 = vadd.f32 %v2181_v60, %v11489_v53  ;;  %v2183_v10 = vmul.f32 %v10782_v41, %v14707_v2  ;;  %v2471_v37 = vadd.f32 %v2439_v22, %v2210_v43  ;;  %v2599_v32 = vpop.permute.xlu1 %2598  ;;  %v11706_v40 = vld [vmem:[%s14144_s1 + $0x6] ss:$0 sm:$0xff] }
 0x2d1   : > { %v2441_v27 = vmul.f32 %v11452_v35, %v14708_v17  ;;  %2888 = vst.msk [vmem:[#allocation3 + $0x99] sm:$0xff] %vm2820_vm2, %v2799_v7  ;;  %v2802_v30 = vmax.f32 %v2770_v50, 0.0  ;;  %v2769_v19 = vadd.f32 %v11541_v38, %v2730_v46  ;;  %v2700_v0 = vmul.f32 %v11503_v25, %v2599_v32  ;;  %v2614_v34 = vpop.permute.xlu0 %2613  ;;  %v14716_v48 = vld [vmem:[#allocation36_spill] sm:$0xff]  ;;  %v14717_v46 = vld [vmem:[#allocation73_spill] sm:$0xff] }
 0x2d2   : > { %v2733_v12 = vadd.f32 %v2701_v52, %v2472_v59  ;;  %v2212_v44 = vadd.f32 %v2180_v26, %v11492_v5  ;;  %v2182_v53 = vmul.f32 %v10782_v41, %v14709_v47  ;;  %v2474_v61 = vadd.f32 %v2442_v63, %v2213_v11  ;;  %v14718_v32 = vld [vmem:[#allocation40_spill] sm:$0xff] }
 0x2d3   : > { %v2444_v58 = vmul.f32 %v11452_v35, %v14710_v21  ;;  %2891 = vst.msk [vmem:[#allocation3 + $0xc1] sm:$0xff] %vm2820_vm2, %v2802_v30  ;;  %v2801_v3 = vmax.f32 %v2769_v19, 0.0  ;;  %v2732_v1 = vadd.f32 %v2700_v0, %v2471_v37  ;;  %v2703_v56 = vmul.f32 %v11503_v25, %v2614_v34  ;;  %v14719_v19 = vld [vmem:[#allocation69_spill] sm:$0xff] }
 0x2d4   : > { %v2772_v57 = vadd.f32 %v11541_v38, %v2733_v12  ;;  %v2215_v13 = vadd.f32 %v2183_v10, %v14711_v18  ;;  %v2185_v5 = vmul.f32 %v10782_v41, %v14712_v23  ;;  %v2473_v31 = vadd.f32 %v2441_v27, %v2212_v44  ;;  %v2609_v16 = vpop.permute.xlu1 %2608  ;;  %v14714_v41 = vld [vmem:[#allocation26_spill] sm:$0xff] }
 0x2d5   : > { %v2443_v20 = vmul.f32 %v11452_v35, %v14713_v36  ;;  %2890 = vst.msk [vmem:[#allocation3 + $0xb1] sm:$0xff] %vm2820_vm2, %v2801_v3  ;;  %v2771_v60 = vadd.f32 %v11541_v38, %v2732_v1  ;;  %v2735_v42 = vadd.f32 %v2703_v56, %v2474_v61  ;;  %v2702_v22 = vmul.f32 %v11503_v25, %v2609_v16  ;;  %v2624_v49 = vpop.permute.xlu0 %2623  ;;  %v14721_v3 = vld [vmem:[#allocation71_spill] sm:$0xff] }
 0x2d6   : > { %v2804_v14 = vmax.f32 %v2772_v57, 0.0  ;;  %v2214_v4 = vadd.f32 %v2182_v53, %v11513_v29  ;;  %v2184_v45 = vmul.f32 %v11706_v40, %v14714_v41  ;;  %v2476_v9 = vadd.f32 %v2444_v58, %v2215_v13  ;;  %v14720_v58 = vld [vmem:[#allocation42_spill] sm:$0xff] }
 0x2d7   : > { %v2446_v43 = vmul.f32 %v11452_v35, %v14715_v51  ;;  %v2803_v26 = vmax.f32 %v2771_v60, 0.0  ;;  %v2774_v59 = vadd.f32 %v11541_v38, %v2735_v42  ;;  %v2734_v8 = vadd.f32 %v2702_v22, %v2473_v31  ;;  %v14722_v31 = vld [vmem:[#allocation44_spill] sm:$0xff]  ;;  %v14725_v51 = vld [vmem:[#allocation17_spill] sm:$0xff] }
 0x2d8   : > { %2893 = vst.msk [vmem:[#allocation3 + $0xd9] sm:$0xff] %vm2820_vm2, %v2804_v14  ;;  %v2705_v29 = vmul.f32 %v11503_v25, %v2624_v49  ;;  %v2217_v63 = vadd.f32 %v2185_v5, %v11516_v62  ;;  %v2187_v7 = vmul.f32 %v11706_v40, %v14716_v48  ;;  %v2475_v50 = vadd.f32 %v2443_v20, %v2214_v4  ;;  %v2619_v11 = vpop.permute.xlu1 %2618  ;;  %v14723_v20 = vld [vmem:[#allocation15_spill] sm:$0xff]  ;;  %v14726_v48 = vld [vmem:[#allocation48_spill] sm:$0xff] }
 0x2d9   : > { %v2445_v52 = vmul.f32 %v11452_v35, %v14717_v46  ;;  %2892 = vst.msk [vmem:[#allocation3 + $0xc9] sm:$0xff] %vm2820_vm2, %v2803_v26  ;;  %v2806_v2 = vmax.f32 %v2774_v59, 0.0  ;;  %v2773_v10 = vadd.f32 %v11541_v38, %v2734_v8  ;;  %v2704_v17 = vmul.f32 %v11503_v25, %v2619_v11  ;;  %v2634_v0 = vpop.permute.xlu0 %2633 }
 0x2da   : > { %v2737_v37 = vadd.f32 %v2705_v29, %v2476_v9  ;;  %v2216_v27 = vadd.f32 %v2184_v45, %v11523_v15  ;;  %v2186_v62 = vmul.f32 %v11706_v40, %v14718_v32  ;;  %v2478_v30 = vadd.f32 %v2446_v43, %v2217_v63  ;;  %v14724_v45 = vld [vmem:[#allocation46_spill] sm:$0xff] }
 0x2db   : > { %v2448_v12 = vmul.f32 %v11452_v35, %v14719_v19  ;;  %2895 = vst.msk [vmem:[#allocation3 + $0xf1] sm:$0xff] %vm2820_vm2, %v2806_v2  ;;  %v2805_v44 = vmax.f32 %v2773_v10, 0.0  ;;  %v2736_v53 = vadd.f32 %v2704_v17, %v2475_v50  ;;  %v2707_v61 = vmul.f32 %v11503_v25, %v2634_v0  ;;  %v14727_v50 = vld [vmem:[#allocation18_spill] sm:$0xff]  ;;  %v14728_v17 = vld [vmem:[#allocation171_spill] sm:$0xff] }
 0x2dc   : > { %v2776_v47 = vadd.f32 %v11541_v38, %v2737_v37  ;;  %v2219_v21 = vadd.f32 %v2187_v7, %v11529_v39  ;;  %v2189_v15 = vmul.f32 %v11706_v40, %v14720_v58  ;;  %v2477_v34 = vadd.f32 %v2445_v52, %v2216_v27  ;;  %v2629_v1 = vpop.permute.xlu1 %2628 }
 0x2dd   : > { %v2447_v57 = vmul.f32 %v11452_v35, %v14721_v3  ;;  %2894 = vst.msk [vmem:[#allocation3 + $0xe1] sm:$0xff] %vm2820_vm2, %v2805_v44  ;;  %v2775_v18 = vadd.f32 %v11541_v38, %v2736_v53  ;;  %v2739_v13 = vadd.f32 %v2707_v61, %v2478_v30  ;;  %v2706_v23 = vmul.f32 %v11503_v25, %v2629_v1  ;;  %v14729_v30 = vld [vmem:[#allocation74_spill] sm:$0xff] }
 0x2de   : > { %v2808_v56 = vmax.f32 %v2776_v47, 0.0  ;;  %v2218_v5 = vadd.f32 %v2186_v62, %v11532_v33  ;;  %v2188_v39 = vmul.f32 %v11706_v40, %v14722_v31  ;;  %v2480_v36 = vadd.f32 %v2448_v12, %v2219_v21  ;;  %v2644_v14 = vpop.permute.xlu0 %2643  ;;  %v14730_v21 = vld [vmem:[#allocation50_spill] sm:$0xff] }
 0x2df   : > { %v2450_v16 = vmul.f32 %v11452_v35, %v14723_v20  ;;  %v2807_v60 = vmax.f32 %v2775_v18, 0.0  ;;  %v2778_v42 = vadd.f32 %v11541_v38, %v2739_v13  ;;  %v2738_v22 = vadd.f32 %v2706_v23, %v2477_v34  ;;  %v14732_v13 = vld [vmem:[#allocation173_spill] sm:$0xff] }
 0x2e0   : > { %2897 = vst.msk [vmem:[#allocation3 + $0x109] sm:$0xff] %vm2820_vm2, %v2808_v56  ;;  %v2709_v4 = vmul.f32 %v11503_v25, %v2644_v14  ;;  %v2221_v41 = vadd.f32 %v2189_v15, %v11546_v55  ;;  %v2191_v33 = vmul.f32 %v11706_v40, %v14724_v45  ;;  %v2479_v9 = vadd.f32 %v2447_v57, %v2218_v5 }
 0x2e1   : > { %v2449_v43 = vmul.f32 %v11452_v35, %v14725_v51  ;;  %v2639_v49 = vpop.permute.xlu1 %2638  ;;  %2896 = vst.msk [vmem:[#allocation3 + $0xf9] sm:$0xff] %vm2820_vm2, %v2807_v60  ;;  %v2810_v26 = vmax.f32 %v2778_v42, 0.0  ;;  %v2777_v59 = vadd.f32 %v11541_v38, %v2738_v22  ;;  %v2220_v63 = vadd.f32 %v2188_v39, %v11552_v54  ;;  %v9281_v54 = vld [vmem:[%s14144_s1 + $0x5] ss:$0 sm:$0xff]  ;;  %v14734_v60 = vld [vmem:[#allocation70_spill] sm:$0xff] }
 0x2e2   : > { %v2741_v8 = vadd.f32 %v2709_v4, %v2480_v36  ;;  %v2708_v29 = vmul.f32 %v11503_v25, %v2639_v49  ;;  %v2190_v55 = vmul.f32 %v11706_v40, %v14726_v48  ;;  %v2482_v7 = vadd.f32 %v2450_v16, %v2221_v41 }
 0x2e3   : > { %v2452_v46 = vmul.f32 %v11452_v35, %v14727_v50  ;;  %v2654_v52 = vpop.permute.xlu0 %2653  ;;  %2899 = vst.msk [vmem:[#allocation3 + $0x121] sm:$0xff] %vm2820_vm2, %v2810_v26  ;;  %v2809_v11 = vmax.f32 %v2777_v59, 0.0  ;;  %v1930_v27 = vmul.f32 %v9281_v54, %v14728_v17  ;;  %v2223_v32 = vadd.f32 %v2191_v33, %v11564_v28  ;;  %v14731_v28 = vld [vmem:[#allocation75_spill] sm:$0xff] }
 0x2e4   : > { %v2780_v2 = vadd.f32 %v11541_v38, %v2741_v8  ;;  %v2740_v10 = vadd.f32 %v2708_v29, %v2479_v9  ;;  %v2711_v37 = vmul.f32 %v11503_v25, %v2654_v52  ;;  %v2481_v62 = vadd.f32 %v2449_v43, %v2220_v63 }
 0x2e5   : > { %v2451_v19 = vmul.f32 %v11452_v35, %v14729_v30  ;;  %v2649_v12 = vpop.permute.xlu1 %2648  ;;  %2898 = vst.msk [vmem:[#allocation3 + $0x111] sm:$0xff] %vm2820_vm2, %v2809_v11  ;;  %v2222_v61 = vadd.f32 %v2190_v55, %v11573_v6  ;;  %v2192_v58 = vmul.f32 %v11706_v40, %v14730_v21  ;;  %v2484_v15 = vadd.f32 %v2452_v46, %v2223_v32  ;;  %v14733_v6 = vld [vmem:[#allocation20_spill] sm:$0xff] }
 0x2e6   : > { %v2812_v0 = vmax.f32 %v2780_v2, 0.0  ;;  %v2779_v44 = vadd.f32 %v11541_v38, %v2740_v10  ;;  %v2743_v47 = vadd.f32 %v2711_v37, %v2482_v7  ;;  %v2710_v53 = vmul.f32 %v11503_v25, %v2649_v12  ;;  %v14735_v7 = vld [vmem:[#allocation52_spill] sm:$0xff] }
 0x2e7   : > { %v2454_v34 = vmul.f32 %v11452_v35, %v14731_v28  ;;  %v2664_v3 = vpop.permute.xlu0 %2663  ;;  %v1962_v23 = vadd.f32 %v1930_v27, %v14732_v13  ;;  %v2483_v5 = vadd.f32 %v2451_v19, %v2222_v61  ;;  %v2453_v31 = vmul.f32 %v11452_v35, %v14733_v6 }
 0x2e8   : > { %2901 = vst.msk [vmem:[#allocation3 + $0x139] sm:$0xff] %vm2820_vm2, %v2812_v0  ;;  %v2811_v57 = vmax.f32 %v2779_v44, 0.0  ;;  %v2782_v1 = vadd.f32 %v11541_v38, %v2743_v47  ;;  %v2742_v56 = vadd.f32 %v2710_v53, %v2481_v62  ;;  %v2713_v18 = vmul.f32 %v11503_v25, %v2664_v3 }
 0x2e9   : > { %v2659_v40 = vpop.permute.xlu1 %2658  ;;  %v2224_v14 = vadd.f32 %v2192_v58, %v1962_v23  ;;  %v2486_v42 = vadd.f32 %v2454_v34, %v14734_v60  ;;  %v2455_v51 = vmul.f32 %v11452_v35, %v11543_v24 }
 0x2ea   : > { %2900 = vst.msk [vmem:[#allocation3 + $0x129] sm:$0xff] %vm2820_vm2, %v2811_v57  ;;  %v2814_v39 = vmax.f32 %v2782_v1, 0.0  ;;  %v2781_v36 = vadd.f32 %v11541_v38, %v2742_v56  ;;  %v2745_v20 = vadd.f32 %v2713_v18, %v2484_v15  ;;  %v2712_v16 = vmul.f32 %v11503_v25, %v2659_v40 }
 0x2eb   : > { %v2674_v22 = vpop.permute.xlu0 %2673  ;;  %v2485_v9 = vadd.f32 %v2453_v31, %v2224_v14  ;;  %v2487_v50 = vadd.f32 %v2455_v51, %v14735_v7 }
 0x2ec   : > { %2903 = vst.msk [vmem:[#allocation3 + $0x151] sm:$0xff] %vm2820_vm2, %v2814_v39  ;;  %v2813_v4 = vmax.f32 %v2781_v36, 0.0  ;;  %v2784_v41 = vadd.f32 %v11541_v38, %v2745_v20  ;;  %v2744_v45 = vadd.f32 %v2712_v16, %v2483_v5  ;;  %v2715_v33 = vmul.f32 %v11503_v25, %v2674_v22 }
 0x2ed   : > { %v2669_v43 = vpop.permute.xlu1 %2668 }
 0x2ee   : > { %2902 = vst.msk [vmem:[#allocation3 + $0x141] sm:$0xff] %vm2820_vm2, %v2813_v4  ;;  %v2816_v49 = vmax.f32 %v2784_v41, 0.0  ;;  %v2783_v26 = vadd.f32 %v11541_v38, %v2744_v45  ;;  %v2747_v59 = vadd.f32 %v2715_v33, %v2486_v42  ;;  %v2714_v8 = vmul.f32 %v11503_v25, %v2669_v43 }
 0x2f0   : > { %2905 = vst.msk [vmem:[#allocation3 + $0x169] sm:$0xff] %vm2820_vm2, %v2816_v49  ;;  %v2815_v29 = vmax.f32 %v2783_v26, 0.0  ;;  %v2786_v63 = vadd.f32 %v11541_v38, %v2747_v59  ;;  %v2746_v48 = vadd.f32 %v2714_v8, %v2485_v9 }
 0x2f1   : > { %v2679_v55 = vpop.permute.xlu1 %2678 }
 0x2f2   : > { %2904 = vst.msk [vmem:[#allocation3 + $0x159] sm:$0xff] %vm2820_vm2, %v2815_v29  ;;  %v2818_v35 = vmax.f32 %v2786_v63, 0.0  ;;  %v2785_v24 = vadd.f32 %v11541_v38, %v2746_v48  ;;  %v2716_v46 = vmul.f32 %v11503_v25, %v2679_v55 }
 0x2f4   : > { %2907 = vst.msk [vmem:[#allocation3 + $0x181] sm:$0xff] %vm2820_vm2, %v2818_v35  ;;  %v2817_v52 = vmax.f32 %v2785_v24, 0.0  ;;  %v2748_v11 = vadd.f32 %v2716_v46, %v2487_v50 }
 0x2f6   : > { %2906 = vst.msk [vmem:[#allocation3 + $0x171] sm:$0xff] %vm2820_vm2, %v2817_v52  ;;  %v2787_v2 = vadd.f32 %v11541_v38, %v2748_v11 }
 0x2f8   : > { %v2819_v10 = vmax.f32 %v2787_v2, 0.0 }
 0x2fa   : > { %2908 = vst.msk [vmem:[#allocation3 + $0x189] sm:$0xff] %vm2820_vm2, %v2819_v10 }
 0x2fb LB: >> { %v11814_v25 = vld [vmem:[#allocation3 + $0xc1] sm:$0xff]  ;;  %s7897_s17 = smul.u32 576, %s9359_s16  ;;  %v11833_v12 = vld [vmem:[#allocation3 + $0xc9] sm:$0xff]  ;;  %v11837_v53 = vld [vmem:[#allocation3 + $0xd9] sm:$0xff]  ;;  %s6416_s24 = scalar_lea.vmem %s14147_s4, %s9359_s16  ;;  %s9359_s16 = sphi %s11809_s16, %s2914_s16  }
 0x2fc   : >> { %v2958_v37 = vld [vmem:[#allocation3 + $0x1] sm:$0xff]  ;;  %8675 = vmatprep.mubr.msk.f32.mxu1 %vm2820_vm2, %v11814_v25  ;;  %v2959_v44 = vld [vmem:[#allocation3 + $0x9] sm:$0xff]  ;;  %v11841_v61 = vld [vmem:[#allocation3 + $0x19] sm:$0xff]  ;;  %s2914_s16 = sadd.s32 1, %s9359_s16  }
 0x2fd   : >> { %8651 = vmatprep.mubr.msk.f32.mxu0 %vm2820_vm2, %v2958_v37  ;;  %s11823_s21 = scalar_lea.vmem %s14146_s3, %s7897_s17  ;;  %v11844_v21 = vld [vmem:[#allocation3 + $0xe1] sm:$0xff]  ;;  %v11854_v34 = vld [vmem:[#allocation3 + $0xf1] sm:$0xff]  ;;  %v11862_v57 = vld [vmem:[#allocation3 + $0xf9] sm:$0xff]  ;;  %p2911_p11 = scmp.ge.s32.totalorder %s2914_s16, 15  }
 0x2fe   : >> { %v7906_v38 = vld [vmem:[%s11823_s21 + $0x78] sm:$0xff]  ;;  %v7905_v54 = vld [vmem:[%s11823_s21 + $0x70] sm:$0xff]  ;;  %v7904_v17 = vld [vmem:[%s11823_s21 + $0x68] sm:$0xff]  ;;  %s7524_s22 = sld [smem:[#allocation4]] (%p2911_p11)  ;;  %vm7601_vm4 = vcmask (%p2911_p11), 130112   ;;  %vm7738_vm5 = vcmask (%p2911_p11), 1041409  }
 0x2ff   : >> { %9211 = vmatprep.subr.mxu1 %v7906_v38  ;;  %8635 = vmatprep.subr.mxu0 %v7906_v38  ;;  %v7903_v27 = vld [vmem:[%s11823_s21 + $0x60] sm:$0xff]  ;;  %v7902_v32 = vld [vmem:[%s11823_s21 + $0x58] sm:$0xff]  ;;  %v7901_v62 = vld [vmem:[%s11823_s21 + $0x50] sm:$0xff]  ;;  %vm7740_vm6 = vcmask (%p2911_p11), 1042434   ;;  %vm7742_vm7 = vcmask (%p2911_p11), 1043459   ;;  %vm7744_vm8 = vcmask (%p2911_p11), 1044484  }
 0x300   : >> { %9219 = vmatpush3.msra.mxu1 %v7906_v38  ;;  %8636 = vmatpush3.msra.mxu0 %v7906_v38  ;;  %v7900_v30 = vld [vmem:[%s11823_s21 + $0x48] sm:$0xff]  ;;  %v7899_v19 = vld [vmem:[%s11823_s21 + $0x40] sm:$0xff]  ;;  %v2957_v0 = vld [vmem:[%s11823_s21 + $0x38] sm:$0xff]  ;;  %vm7746_vm9 = vcmask (%p2911_p11), 1045509   ;;  %vm7748_vm10 = vcmask (%p2911_p11), 1046534   ;;  %vm7750_vm11 = vcmask (%p2911_p11), 1047559  }
 0x301   : >> { %9212 = vmatprep.subr.mxu1 %v7905_v54  ;;  %8637 = vmatprep.subr.mxu0 %v7905_v54  ;;  %v7979_v47 = vld [vmem:[%s11823_s21 + $0xb8] sm:$0xff]  ;;  %v2956_v58 = vld [vmem:[%s11823_s21 + $0x30] sm:$0xff]  ;;  %v11858_v3 = vld [vmem:[#allocation3 + $0x31] sm:$0xff]  ;;  %vm7761_vm12 = vcmask (%p2911_p11), 130048   ;;  %s8274_s23 = sshll.u32 (%p2911_p11), %s9430_s6, 8  ;;  %s14103_s6 = scalar_lea.sflag (%p2911_p11), [#allocation6], %s270_s18 }
 0x302   : >> { %9220 = vmatpush3.msra.mxu1 %v7905_v54  ;;  %8638 = vmatpush3.msra.mxu0 %v7905_v54  ;;  %v11849_v15 = vld [vmem:[#allocation3 + $0x21] sm:$0xff]  ;;  %v2955_v1 = vld [vmem:[%s11823_s21 + $0x28] sm:$0xff]  ;;  %v11872_v13 = vld [vmem:[#allocation3 + $0x109] sm:$0xff]  ;;  %s14092_s9 = scalar_lea.hbm (%p2911_p11), %s14150_s7, %s8274_s23  ;;  %s9363_s14 = smov (%p2911_p11), [#allocation5]  }
 0x303   : >> { %9213 = vmatprep.subr.mxu1 %v7904_v17  ;;  %8639 = vmatprep.subr.mxu0 %v7904_v17  ;;  %v7978_v28 = vld [vmem:[%s11823_s21 + $0xb0] sm:$0xff]  ;;  %v7977_v18 = vld [vmem:[%s11823_s21 + $0xa8] sm:$0xff]  ;;  %v11876_v23 = vld [vmem:[#allocation3 + $0x49] sm:$0xff]  ;;  %s9295_s17 = sshll.u32 (%p2911_p11), %s9363_s14, 4  ;;  %s9296_s17 = int_to_ptr.vmem [resolvable:$false] %s9295_s17 }
 0x304   : >> { %9221 = vmatpush3.msra.mxu1 %v7904_v17  ;;  %8640 = vmatpush3.msra.mxu0 %v7904_v17  ;;  %v11867_v56 = vld [vmem:[#allocation3 + $0x39] sm:$0xff]  ;;  %v11880_v5 = vld [vmem:[#allocation3 + $0x111] sm:$0xff]  ;;  %v11890_v39 = vld [vmem:[#allocation3 + $0x121] sm:$0xff]  ;;  %s9297_s16 = scalar_lea.vmem (%p2911_p11), %s9296_s17, 512 }
 0x305   : >> { %9214 = vmatprep.subr.mxu1 %v7903_v27  ;;  %8641 = vmatprep.subr.mxu0 %v7903_v27  ;;  %v2954_v6 = vld [vmem:[%s11823_s21 + $0x20] sm:$0xff]  ;;  %v11894_v36 = vld [vmem:[#allocation3 + $0x61] sm:$0xff]  ;;  %v11908_v42 = vld [vmem:[#allocation3 + $0x139] sm:$0xff] }
 0x306   : >> { %9222 = vmatpush3.msra.mxu1 %v7903_v27  ;;  %8642 = vmatpush3.msra.mxu0 %v7903_v27  ;;  %v11885_v31 = vld [vmem:[#allocation3 + $0x51] sm:$0xff]  ;;  %v11898_v20 = vld [vmem:[#allocation3 + $0x129] sm:$0xff]  ;;  %v11912_v22 = vld [vmem:[#allocation3 + $0x79] sm:$0xff] }
 0x307   : >> { %9215 = vmatprep.subr.mxu1 %v7902_v32  ;;  %8643 = vmatprep.subr.mxu0 %v7902_v32  ;;  %v7976_v40 = vld [vmem:[%s11823_s21 + $0xa0] sm:$0xff]  ;;  %v2953_v16 = vld [vmem:[%s11823_s21 + $0x18] sm:$0xff]  ;;  %v2952_v41 = vld [vmem:[%s11823_s21 + $0x10] sm:$0xff] }
 0x308   : >> { %9223 = vmatpush3.msra.mxu1 %v7902_v32  ;;  %8644 = vmatpush3.msra.mxu0 %v7902_v32  ;;  %v11903_v14 = vld [vmem:[#allocation3 + $0x69] sm:$0xff]  ;;  %v11916_v4 = vld [vmem:[#allocation3 + $0x141] sm:$0xff]  ;;  %v11926_v9 = vld [vmem:[#allocation3 + $0x151] sm:$0xff] }
 0x309   : >> { %9216 = vmatprep.subr.mxu1 %v7901_v62  ;;  %8645 = vmatprep.subr.mxu0 %v7901_v62  ;;  %v7975_v60 = vld [vmem:[%s11823_s21 + $0x98] sm:$0xff]  ;;  %v7974_v33 = vld [vmem:[%s11823_s21 + $0x90] sm:$0xff]  ;;  %v11930_v51 = vld [vmem:[#allocation3 + $0x91] sm:$0xff] }
 0x30a   : >> { %9224 = vmatpush3.msra.mxu1 %v7901_v62  ;;  %8646 = vmatpush3.msra.mxu0 %v7901_v62  ;;  %v11921_v45 = vld [vmem:[#allocation3 + $0x81] sm:$0xff]  ;;  %v11934_v43 = vld [vmem:[#allocation3 + $0x159] sm:$0xff]  ;;  %v11944_v8 = vld [vmem:[#allocation3 + $0x169] sm:$0xff] }
 0x30b   : >> { %9217 = vmatprep.subr.mxu1 %v7900_v30  ;;  %8647 = vmatprep.subr.mxu0 %v7900_v30  ;;  %v2951_v49 = vld [vmem:[%s11823_s21 + $0x8] sm:$0xff]  ;;  %v11948_v29 = vld [vmem:[#allocation3 + $0xa9] sm:$0xff]  ;;  %v2915_v50 = vld [vmem:[#allocation3] sm:$0xff] }
 0x30c   : >> { %9225 = vmatpush3.msra.mxu1 %v7900_v30  ;;  %8648 = vmatpush3.msra.mxu0 %v7900_v30  ;;  %v11939_v26 = vld [vmem:[#allocation3 + $0x99] sm:$0xff]  ;;  %v11952_v63 = vld [vmem:[#allocation3 + $0x171] sm:$0xff]  ;;  %v3643_v35 = vld [vmem:[#allocation3 + $0x2] sm:$0xff] }
 0x30d   : >> { %9218 = vmatprep.subr.mxu1 %v7899_v19  ;;  %8649 = vmatprep.subr.mxu0 %v7899_v19  ;;  %v7973_v59 = vld [vmem:[%s11823_s21 + $0x88] sm:$0xff]  ;;  %14736 = vst [vmem:[#allocation193_spill] sm:$0xff] %v11952_v63  ;;  %v2950_v48 = vld [vmem:[%s11823_s21] sm:$0xff]  ;;  %v2916_v24 = vld [vmem:[#allocation3 + $0x8] sm:$0xff] }
 0x30e   : >> { %9226 = vmatpush3.msra.mxu1 %v7899_v19  ;;  %8650 = vmatpush3.msra.mxu0 %v7899_v19  ;;  %v11957_v55 = vld [vmem:[#allocation3 + $0xb1] sm:$0xff]  ;;  %v8020_v46 = vld [vmem:[%s11823_s21 + $0xf8] sm:$0xff]  ;;  %v11973_v10 = vld [vmem:[#allocation3 + $0x1a] sm:$0xff] }
 0x30f   : >> { %8676 = vmatmul.mubr.msk.f32.vlgmr.msra.gmra.mxu1 %vm2820_vm2, %v11833_v12  ;;  %8699 = vmatprep.subr.mxu1 %v2957_v0  ;;  %v7972_v7 = vld [vmem:[%s11823_s21 + $0x80] sm:$0xff]  ;;  %v8061_v11 = vld [vmem:[%s11823_s21 + $0x138] sm:$0xff]  ;;  %v11970_v2 = vld [vmem:[#allocation3 + $0x18] sm:$0xff]  ;;  %14737 = vst [vmem:[#allocation194_spill] sm:$0xff] %v11973_v10 }
 0x310   : >> { %8652 = vmatmul.mubr.msk.f32.vlgmr.msra.gmra.mxu0 %vm2820_vm2, %v2959_v44  ;;  %8700 = vmatpush3.msra.mxu1 %v2957_v0  ;;  %v3644_v52 = vld [vmem:[#allocation3 + $0xa] sm:$0xff]  ;;  %v11976_v37 = vld [vmem:[#allocation3 + $0x20] sm:$0xff]  ;;  %v11987_v27 = vld [vmem:[#allocation3 + $0x32] sm:$0xff] }
 0x311   : >> { %8763 = vmatprep.subr.mxu0 %v7979_v47  ;;  %8678 = vmatprep.mubr.msk.f32.mxu1 %vm2820_vm2, %v11837_v53  ;;  %v8019_v38 = vld [vmem:[%s11823_s21 + $0xf0] sm:$0xff]  ;;  %v11983_v17 = vld [vmem:[#allocation3 + $0x30] sm:$0xff]  ;;  %14739 = vst [vmem:[#allocation196_spill] sm:$0xff] %v11987_v27  ;;  %v8018_v62 = vld [vmem:[%s11823_s21 + $0xe8] sm:$0xff] }
 0x312   : >> { %8764 = vmatpush3.msra.mxu0 %v7979_v47  ;;  %8654 = vmatprep.mubr.msk.f32.mxu0 %vm2820_vm2, %v11841_v61  ;;  %v11981_v54 = vld [vmem:[#allocation3 + $0x22] sm:$0xff]  ;;  %v11997_v30 = vld [vmem:[#allocation3 + $0x38] sm:$0xff]  ;;  %v12005_v44 = vld [vmem:[#allocation3 + $0x4a] sm:$0xff] }
 0x313   : >> { %8679 = vmatmul.mubr.msk.f32.gmra.mxu1 %vm2820_vm2, %v11844_v21  ;;  %8701 = vmatprep.subr.mxu1 %v2956_v58  ;;  %14738 = vst [vmem:[#allocation195_spill] sm:$0xff] %v11981_v54  ;;  %v8060_v32 = vld [vmem:[%s11823_s21 + $0x130] sm:$0xff]  ;;  %v12003_v0 = vld [vmem:[#allocation3 + $0x48] sm:$0xff]  ;;  %14741 = vst [vmem:[#allocation198_spill] sm:$0xff] %v12005_v44 }
 0x314   : >> { %8655 = vmatmul.mubr.msk.f32.gmra.mxu0 %vm2820_vm2, %v11849_v15  ;;  %8702 = vmatpush3.msra.mxu1 %v2956_v58  ;;  %v12001_v19 = vld [vmem:[#allocation3 + $0x3a] sm:$0xff]  ;;  %v8017_v58 = vld [vmem:[%s11823_s21 + $0xe0] sm:$0xff] }
 0x315   : >> { %8765 = vmatprep.subr.mxu0 %v7978_v28  ;;  %8681 = vmatprep.mubr.msk.f32.mxu1 %vm2820_vm2, %v11854_v34  ;;  %14740 = vst [vmem:[#allocation197_spill] sm:$0xff] %v12001_v19  ;;  %v8059_v47 = vld [vmem:[%s11823_s21 + $0x128] sm:$0xff] }
 0x316   : >> { %8766 = vmatpush3.msra.mxu0 %v7978_v28  ;;  %8657 = vmatprep.mubr.msk.f32.mxu0 %vm2820_vm2, %v11858_v3  ;;  %v12015_v28 = vld [vmem:[#allocation3 + $0x50] sm:$0xff] }
 0x317   : >> { %8682 = vmatmul.mubr.msk.f32.gmra.mxu1 %vm2820_vm2, %v11862_v57  ;;  %8703 = vmatprep.subr.mxu1 %v2955_v1 }
 0x318   : >> { %8658 = vmatmul.mubr.msk.f32.gmra.mxu0 %vm2820_vm2, %v11867_v56  ;;  %8704 = vmatpush3.msra.mxu1 %v2955_v1  ;;  %v12019_v1 = vld [vmem:[#allocation3 + $0x52] sm:$0xff] }
 0x319   : >> { %8767 = vmatprep.subr.mxu0 %v7977_v18  ;;  %8684 = vmatprep.mubr.msk.f32.mxu1 %vm2820_vm2, %v11872_v13  ;;  %14742 = vst [vmem:[#allocation199_spill] sm:$0xff] %v12019_v1 }
 0x31a   : >> { %8768 = vmatpush3.msra.mxu0 %v7977_v18  ;;  %8660 = vmatprep.mubr.msk.f32.mxu0 %vm2820_vm2, %v11876_v23  ;;  %v12021_v18 = vld [vmem:[#allocation3 + $0x60] sm:$0xff] }
 0x31b   : >> { %8685 = vmatmul.mubr.msk.f32.gmra.mxu1 %vm2820_vm2, %v11880_v5  ;;  %8705 = vmatprep.subr.mxu1 %v2954_v6 }
 0x31c   : >> { %8661 = vmatmul.mubr.msk.f32.gmra.mxu0 %vm2820_vm2, %v11885_v31  ;;  %8706 = vmatpush3.msra.mxu1 %v2954_v6  ;;  %v12023_v6 = vld [vmem:[#allocation3 + $0x62] sm:$0xff] }
 0x31d   : >> { %8769 = vmatprep.subr.mxu0 %v7976_v40  ;;  %8687 = vmatprep.mubr.msk.f32.mxu1 %vm2820_vm2, %v11890_v39  ;;  %14743 = vst [vmem:[#allocation200_spill] sm:$0xff] %v12023_v6 }
 0x31e   : >> { %8770 = vmatpush3.msra.mxu0 %v7976_v40  ;;  %8663 = vmatprep.mubr.msk.f32.mxu0 %vm2820_vm2, %v11894_v36  ;;  %v8058_v40 = vld [vmem:[%s11823_s21 + $0x120] sm:$0xff] }
 0x31f   : >> { %8688 = vmatmul.mubr.msk.f32.gmra.mxu1 %vm2820_vm2, %v11898_v20  ;;  %8707 = vmatprep.subr.mxu1 %v2953_v16 }
 0x320   : >> { %8664 = vmatmul.mubr.msk.f32.gmra.mxu0 %vm2820_vm2, %v11903_v14  ;;  %8708 = vmatpush3.msra.mxu1 %v2953_v16  ;;  %v8016_v16 = vld [vmem:[%s11823_s21 + $0xd8] sm:$0xff] }
 0x321   : >> { %8771 = vmatprep.subr.mxu0 %v7975_v60  ;;  %8690 = vmatprep.mubr.msk.f32.mxu1 %vm2820_vm2, %v11908_v42 }
 0x322   : >> { %8772 = vmatpush3.msra.mxu0 %v7975_v60  ;;  %8666 = vmatprep.mubr.msk.f32.mxu0 %vm2820_vm2, %v11912_v22  ;;  %v12033_v60 = vld [vmem:[#allocation3 + $0x68] sm:$0xff] }
 0x323   : >> { %8691 = vmatmul.mubr.msk.f32.gmra.mxu1 %vm2820_vm2, %v11916_v4  ;;  %8709 = vmatprep.subr.mxu1 %v2952_v41 }
 0x324   : >> { %8667 = vmatmul.mubr.msk.f32.gmra.mxu0 %vm2820_vm2, %v11921_v45  ;;  %8710 = vmatpush3.msra.mxu1 %v2952_v41  ;;  %v12037_v41 = vld [vmem:[#allocation3 + $0x6a] sm:$0xff] }
 0x325   : >> { %8773 = vmatprep.subr.mxu0 %v7974_v33  ;;  %8693 = vmatprep.mubr.msk.f32.mxu1 %vm2820_vm2, %v11926_v9  ;;  %14744 = vst [vmem:[#allocation201_spill] sm:$0xff] %v12037_v41 }
 0x326   : >> { %8774 = vmatpush3.msra.mxu0 %v7974_v33  ;;  %8669 = vmatprep.mubr.msk.f32.mxu0 %vm2820_vm2, %v11930_v51  ;;  %v12039_v33 = vld [vmem:[#allocation3 + $0x78] sm:$0xff] }
 0x327   : >> { %8694 = vmatmul.mubr.msk.f32.gmra.mxu1 %vm2820_vm2, %v11934_v43  ;;  %8711 = vmatprep.subr.mxu1 %v2951_v49 }
 0x328   : >> { %8670 = vmatmul.mubr.msk.f32.gmra.mxu0 %vm2820_vm2, %v11939_v26  ;;  %8712 = vmatpush3.msra.mxu1 %v2951_v49  ;;  %v12041_v49 = vld [vmem:[#allocation3 + $0x7a] sm:$0xff] }
 0x329   : >> { %8775 = vmatprep.subr.mxu0 %v7973_v59  ;;  %8696 = vmatprep.mubr.msk.f32.mxu1 %vm2820_vm2, %v11944_v8  ;;  %14745 = vst [vmem:[#allocation202_spill] sm:$0xff] %v12041_v49 }
 0x32a   : >> { %8776 = vmatpush3.msra.mxu0 %v7973_v59  ;;  %8672 = vmatprep.mubr.msk.f32.mxu0 %vm2820_vm2, %v11948_v29  ;;  %v8057_v59 = vld [vmem:[%s11823_s21 + $0x118] sm:$0xff] }
 0x32b   : >> { %8697 = vmatmul.mubr.msk.f32.gmra.mxu1 %vm2820_vm2, %v11952_v63  ;;  %8713 = vmatprep.subr.mxu1 %v2950_v48  ;;  %v12216_v63 = vld [vmem:[#allocation3 + $0x16a] sm:$0xff] }
 0x32c   : >> { %8673 = vmatmul.mubr.msk.f32.gmra.mxu0 %vm2820_vm2, %v11957_v55  ;;  %8714 = vmatpush3.msra.mxu1 %v2950_v48  ;;  %v8015_v48 = vld [vmem:[%s11823_s21 + $0xd0] sm:$0xff]  ;;  %14765 = vst [vmem:[#allocation222_spill] sm:$0xff] %v12216_v63 }
 0x32d   : >> { %8777 = vmatprep.subr.mxu0 %v7972_v7  ;;  %8715 = vmatprep.mubr.msk.f32.mxu1 %vm2820_vm2, %v2915_v50  ;;  %v12055_v50 = vld [vmem:[#allocation3 + $0x82] sm:$0xff] }
 0x32e   : >> { %8778 = vmatpush3.msra.mxu0 %v7972_v7  ;;  %8779 = vmatprep.mubr.msk.f32.mxu0 %vm2820_vm2, %v3643_v35  ;;  %v12051_v7 = vld [vmem:[#allocation3 + $0x80] sm:$0xff]  ;;  %14746 = vst [vmem:[#allocation203_spill] sm:$0xff] %v12055_v50  ;;  %v12057_v35 = vld [vmem:[#allocation3 + $0x90] sm:$0xff] }
 0x32f   : >> { %8716 = vmatmul.mubr.msk.f32.vlgmr.msra.gmra.mxu1 %vm2820_vm2, %v2916_v24  ;;  %8827 = vmatprep.subr.mxu1 %v8020_v46  ;;  %v12059_v24 = vld [vmem:[#allocation3 + $0x92] sm:$0xff] }
 0x330   : >> { %8780 = vmatmul.mubr.msk.f32.vlgmr.msra.gmra.mxu0 %vm2820_vm2, %v3644_v52  ;;  %8828 = vmatpush3.msra.mxu1 %v8020_v46  ;;  %14747 = vst [vmem:[#allocation204_spill] sm:$0xff] %v12059_v24  ;;  %v8056_v46 = vld [vmem:[%s11823_s21 + $0x110] sm:$0xff]  ;;  %v8014_v52 = vld [vmem:[%s11823_s21 + $0xc8] sm:$0xff] }
 0x331   : >> { %8891 = vmatprep.subr.mxu0 %v8061_v11  ;;  %8718 = vmatprep.mubr.msk.f32.mxu1 %vm2820_vm2, %v11970_v2 }
 0x332   : >> { %8892 = vmatpush3.msra.mxu0 %v8061_v11  ;;  %8782 = vmatprep.mubr.msk.f32.mxu0 %vm2820_vm2, %v11973_v10  ;;  %v12069_v11 = vld [vmem:[#allocation3 + $0x98] sm:$0xff]  ;;  %v12214_v10 = vld [vmem:[#allocation3 + $0x168] sm:$0xff] }
 0x333   : >> { %8719 = vmatmul.mubr.msk.f32.gmra.mxu1 %vm2820_vm2, %v11976_v37  ;;  %8829 = vmatprep.subr.mxu1 %v8019_v38 }
 0x334   : >> { %8783 = vmatmul.mubr.msk.f32.gmra.mxu0 %vm2820_vm2, %v11981_v54  ;;  %8721 = vmatprep.mubr.msk.f32.mxu1 %vm2820_vm2, %v11983_v17  ;;  %v12200_v54 = vld [vmem:[#allocation3 + $0x152] sm:$0xff] }
 0x335   : >> { %8785 = vmatprep.mubr.msk.f32.mxu0 %vm2820_vm2, %v11987_v27  ;;  %8830 = vmatpush3.msra.mxu1 %v8019_v38  ;;  %v12073_v38 = vld [vmem:[#allocation3 + $0x9a] sm:$0xff]  ;;  %v12198_v27 = vld [vmem:[#allocation3 + $0x150] sm:$0xff]  ;;  %14763 = vst [vmem:[#allocation220_spill] sm:$0xff] %v12200_v54 }
 0x336   : >> { %8893 = vmatprep.subr.mxu0 %v8060_v32  ;;  %8831 = vmatprep.subr.mxu1 %v8018_v62  ;;  %14748 = vst [vmem:[#allocation205_spill] sm:$0xff] %v12073_v38 }
 0x337   : >> { %8722 = vmatmul.mubr.msk.f32.gmra.mxu1 %vm2820_vm2, %v11997_v30  ;;  %8894 = vmatpush3.msra.mxu0 %v8060_v32  ;;  %v12075_v32 = vld [vmem:[#allocation3 + $0xa8] sm:$0xff] }
 0x338   : >> { %8786 = vmatmul.mubr.msk.f32.gmra.mxu0 %vm2820_vm2, %v12001_v19  ;;  %8724 = vmatprep.mubr.msk.f32.mxu1 %vm2820_vm2, %v12003_v0  ;;  %v12184_v19 = vld [vmem:[#allocation3 + $0x13a] sm:$0xff] }
 0x339   : >> { %8788 = vmatprep.mubr.msk.f32.mxu0 %vm2820_vm2, %v12005_v44  ;;  %8832 = vmatpush3.msra.mxu1 %v8018_v62  ;;  %v12077_v62 = vld [vmem:[#allocation3 + $0xaa] sm:$0xff]  ;;  %v12182_v44 = vld [vmem:[#allocation3 + $0x138] sm:$0xff]  ;;  %14761 = vst [vmem:[#allocation218_spill] sm:$0xff] %v12184_v19 }
 0x33a   : >> { %8895 = vmatprep.subr.mxu0 %v8059_v47  ;;  %8833 = vmatprep.subr.mxu1 %v8017_v58  ;;  %14749 = vst [vmem:[#allocation206_spill] sm:$0xff] %v12077_v62 }
 0x33b   : >> { %8725 = vmatmul.mubr.msk.f32.gmra.mxu1 %vm2820_vm2, %v12015_v28  ;;  %8896 = vmatpush3.msra.mxu0 %v8059_v47  ;;  %v8055_v47 = vld [vmem:[%s11823_s21 + $0x108] sm:$0xff] }
 0x33c   : >> { %8789 = vmatmul.mubr.msk.f32.gmra.mxu0 %vm2820_vm2, %v12019_v1  ;;  %8727 = vmatprep.mubr.msk.f32.mxu1 %vm2820_vm2, %v12021_v18  ;;  %v12168_v1 = vld [vmem:[#allocation3 + $0x122] sm:$0xff] }
 0x33d   : >> { %8791 = vmatprep.mubr.msk.f32.mxu0 %vm2820_vm2, %v12023_v6  ;;  %8834 = vmatpush3.msra.mxu1 %v8017_v58  ;;  %v8013_v58 = vld [vmem:[%s11823_s21 + $0xc0] sm:$0xff]  ;;  %v12166_v6 = vld [vmem:[#allocation3 + $0x120] sm:$0xff]  ;;  %14759 = vst [vmem:[#allocation216_spill] sm:$0xff] %v12168_v1 }
 0x33e   : >> { %8897 = vmatprep.subr.mxu0 %v8058_v40  ;;  %8835 = vmatprep.subr.mxu1 %v8016_v16 }
 0x33f   : >> { %8728 = vmatmul.mubr.msk.f32.gmra.mxu1 %vm2820_vm2, %v12033_v60  ;;  %8898 = vmatpush3.msra.mxu0 %v8058_v40  ;;  %v12087_v40 = vld [vmem:[#allocation3 + $0xb0] sm:$0xff] }
 0x340   : >> { %8792 = vmatmul.mubr.msk.f32.gmra.mxu0 %vm2820_vm2, %v12037_v41  ;;  %8730 = vmatprep.mubr.msk.f32.mxu1 %vm2820_vm2, %v12039_v33  ;;  %v12152_v41 = vld [vmem:[#allocation3 + $0x10a] sm:$0xff] }
 0x341   : >> { %8794 = vmatprep.mubr.msk.f32.mxu0 %vm2820_vm2, %v12041_v49  ;;  %8836 = vmatpush3.msra.mxu1 %v8016_v16  ;;  %v12091_v16 = vld [vmem:[#allocation3 + $0xb2] sm:$0xff]  ;;  %14757 = vst [vmem:[#allocation214_spill] sm:$0xff] %v12152_v41 }
 0x342   : >> { %8899 = vmatprep.subr.mxu0 %v8057_v59  ;;  %8837 = vmatprep.subr.mxu1 %v8015_v48  ;;  %14750 = vst [vmem:[#allocation207_spill] sm:$0xff] %v12091_v16  ;;  %v12136_v49 = vld [vmem:[#allocation3 + $0xf2] sm:$0xff] }
 0x343   : >> { %8731 = vmatmul.mubr.msk.f32.gmra.mxu1 %vm2820_vm2, %v12051_v7  ;;  %8900 = vmatpush3.msra.mxu0 %v8057_v59  ;;  %v12093_v59 = vld [vmem:[#allocation3 + $0xc0] sm:$0xff]  ;;  %14755 = vst [vmem:[#allocation212_spill] sm:$0xff] %v12136_v49 }
 0x344   : >> { %8795 = vmatmul.mubr.msk.f32.gmra.mxu0 %vm2820_vm2, %v12055_v50  ;;  %8733 = vmatprep.mubr.msk.f32.mxu1 %vm2820_vm2, %v12057_v35  ;;  %v12119_v50 = vld [vmem:[%s11823_s21 + $0x1b8] sm:$0xff] }
 0x345   : >> { %8797 = vmatprep.mubr.msk.f32.mxu0 %vm2820_vm2, %v12059_v24  ;;  %8838 = vmatpush3.msra.mxu1 %v8015_v48  ;;  %v12095_v48 = vld [vmem:[#allocation3 + $0xc2] sm:$0xff]  ;;  %v12113_v24 = vld [vmem:[#allocation3 + $0xd8] sm:$0xff] }
 0x346   : >> { %8901 = vmatprep.subr.mxu0 %v8056_v46  ;;  %8839 = vmatprep.subr.mxu1 %v8014_v52  ;;  %14751 = vst [vmem:[#allocation208_spill] sm:$0xff] %v12095_v48 }
 0x347   : >> { %8734 = vmatmul.mubr.msk.f32.gmra.mxu1 %vm2820_vm2, %v12069_v11  ;;  %8902 = vmatpush3.msra.mxu0 %v8056_v46  ;;  %v8054_v46 = vld [vmem:[%s11823_s21 + $0x100] sm:$0xff] }
 0x348   : >> { %8798 = vmatmul.mubr.msk.f32.gmra.mxu0 %vm2820_vm2, %v12073_v38  ;;  %8736 = vmatprep.mubr.msk.f32.mxu1 %vm2820_vm2, %v12075_v32  ;;  %v12101_v38 = vld [vmem:[%s11823_s21 + $0x178] sm:$0xff] }
 0x349   : >> { %8800 = vmatprep.mubr.msk.f32.mxu0 %vm2820_vm2, %v12077_v62  ;;  %8840 = vmatpush3.msra.mxu1 %v8014_v52  ;;  %v12107_v62 = vld [vmem:[#allocation3 + $0xc8] sm:$0xff] }
 0x34a   : >> { %8903 = vmatprep.subr.mxu0 %v8055_v47  ;;  %8841 = vmatprep.subr.mxu1 %v8013_v58  ;;  %v12111_v52 = vld [vmem:[#allocation3 + $0xca] sm:$0xff] }
 0x34b   : >> { %8737 = vmatmul.mubr.msk.f32.gmra.mxu1 %vm2820_vm2, %v12087_v40  ;;  %8904 = vmatpush3.msra.mxu0 %v8055_v47  ;;  %14752 = vst [vmem:[#allocation209_spill] sm:$0xff] %v12111_v52  ;;  %v12115_v47 = vld [vmem:[#allocation3 + $0xda] sm:$0xff] }
 0x34c   : >> { %8801 = vmatmul.mubr.msk.f32.gmra.mxu0 %vm2820_vm2, %v12091_v16  ;;  %8739 = vmatprep.mubr.msk.f32.mxu1 %vm2820_vm2, %v12093_v59  ;;  %14753 = vst [vmem:[#allocation210_spill] sm:$0xff] %v12115_v47  ;;  %v12133_v16 = vld [vmem:[#allocation3 + $0xf0] sm:$0xff] }
 0x34d   : >> { %8803 = vmatprep.mubr.msk.f32.mxu0 %vm2820_vm2, %v12095_v48  ;;  %8842 = vmatpush3.msra.mxu1 %v8013_v58  ;;  %v12127_v48 = vld [vmem:[#allocation3 + $0xe0] sm:$0xff] }
 0x34e   : >> { %8905 = vmatprep.subr.mxu0 %v8054_v46  ;;  %8955 = vmatprep.subr.mxu1 %v12101_v38  ;;  %v12131_v58 = vld [vmem:[#allocation3 + $0xe2] sm:$0xff] }
 0x34f   : >> { %8740 = vmatmul.mubr.msk.f32.gmra.mxu1 %vm2820_vm2, %v12107_v62  ;;  %8906 = vmatpush3.msra.mxu0 %v8054_v46  ;;  %14754 = vst [vmem:[#allocation211_spill] sm:$0xff] %v12131_v58  ;;  %v12144_v46 = vld [vmem:[#allocation3 + $0xf8] sm:$0xff] }
 0x350   : >> { %8804 = vmatmul.mubr.msk.f32.gmra.mxu0 %vm2820_vm2, %v12111_v52  ;;  %8742 = vmatprep.mubr.msk.f32.mxu1 %vm2820_vm2, %v12113_v24  ;;  %v12150_v52 = vld [vmem:[#allocation3 + $0x108] sm:$0xff] }
 0x351   : >> { %8806 = vmatprep.mubr.msk.f32.mxu0 %vm2820_vm2, %v12115_v47  ;;  %9019 = vmatprep.subr.mxu0 %v12119_v50  ;;  %v12148_v47 = vld [vmem:[#allocation3 + $0xfa] sm:$0xff] }
 0x352   : >> { %14756 = vst [vmem:[#allocation213_spill] sm:$0xff] %v12148_v47 }
 0x353   : >> { %8743 = vmatmul.mubr.msk.f32.gmra.mxu1 %vm2820_vm2, %v12127_v48 }
 0x354   : >> { %8807 = vmatmul.mubr.msk.f32.gmra.mxu0 %vm2820_vm2, %v12131_v58  ;;  %8745 = vmatprep.mubr.msk.f32.mxu1 %vm2820_vm2, %v12133_v16  ;;  %v12160_v58 = vld [vmem:[#allocation3 + $0x110] sm:$0xff] }
 0x355   : >> { %8809 = vmatprep.mubr.msk.f32.mxu0 %vm2820_vm2, %v12136_v49  ;;  %v12164_v49 = vld [vmem:[#allocation3 + $0x112] sm:$0xff] }
 0x356   : >> { %14758 = vst [vmem:[#allocation215_spill] sm:$0xff] %v12164_v49 }
 0x357   : >> { %8746 = vmatmul.mubr.msk.f32.gmra.mxu1 %vm2820_vm2, %v12144_v46 }
 0x358   : >> { %8810 = vmatmul.mubr.msk.f32.gmra.mxu0 %vm2820_vm2, %v12148_v47  ;;  %8748 = vmatprep.mubr.msk.f32.mxu1 %vm2820_vm2, %v12150_v52  ;;  %v12176_v47 = vld [vmem:[#allocation3 + $0x128] sm:$0xff] }
 0x359   : >> { %8812 = vmatprep.mubr.msk.f32.mxu0 %vm2820_vm2, %v12152_v41  ;;  %v12180_v41 = vld [vmem:[#allocation3 + $0x12a] sm:$0xff] }
 0x35a   : >> { %14760 = vst [vmem:[#allocation217_spill] sm:$0xff] %v12180_v41 }
 0x35b   : >> { %8749 = vmatmul.mubr.msk.f32.gmra.mxu1 %vm2820_vm2, %v12160_v58 }
 0x35c   : >> { %8813 = vmatmul.mubr.msk.f32.gmra.mxu0 %vm2820_vm2, %v12164_v49  ;;  %8751 = vmatprep.mubr.msk.f32.mxu1 %vm2820_vm2, %v12166_v6  ;;  %v12192_v49 = vld [vmem:[#allocation3 + $0x140] sm:$0xff] }
 0x35d   : >> { %8815 = vmatprep.mubr.msk.f32.mxu0 %vm2820_vm2, %v12168_v1  ;;  %v12196_v1 = vld [vmem:[#allocation3 + $0x142] sm:$0xff] }
 0x35e   : >> { %14762 = vst [vmem:[#allocation219_spill] sm:$0xff] %v12196_v1 }
 0x35f   : >> { %8752 = vmatmul.mubr.msk.f32.gmra.mxu1 %vm2820_vm2, %v12176_v47 }
 0x360   : >> { %8816 = vmatmul.mubr.msk.f32.gmra.mxu0 %vm2820_vm2, %v12180_v41  ;;  %8754 = vmatprep.mubr.msk.f32.mxu1 %vm2820_vm2, %v12182_v44  ;;  %v12208_v41 = vld [vmem:[#allocation3 + $0x158] sm:$0xff] }
 0x361   : >> { %8818 = vmatprep.mubr.msk.f32.mxu0 %vm2820_vm2, %v12184_v19  ;;  %v12212_v19 = vld [vmem:[#allocation3 + $0x15a] sm:$0xff] }
 0x362   : >> { %14764 = vst [vmem:[#allocation221_spill] sm:$0xff] %v12212_v19 }
 0x363   : >> { %8755 = vmatmul.mubr.msk.f32.gmra.mxu1 %vm2820_vm2, %v12192_v49 }
 0x364   : >> { %8819 = vmatmul.mubr.msk.f32.gmra.mxu0 %vm2820_vm2, %v12196_v1  ;;  %8757 = vmatprep.mubr.msk.f32.mxu1 %vm2820_vm2, %v12198_v27  ;;  %v12224_v1 = vld [vmem:[#allocation3 + $0x170] sm:$0xff] }
 0x365   : >> { %8821 = vmatprep.mubr.msk.f32.mxu0 %vm2820_vm2, %v12200_v54  ;;  %v12228_v54 = vld [vmem:[#allocation3 + $0x172] sm:$0xff] }
 0x367   : >> { %8758 = vmatmul.mubr.msk.f32.gmra.mxu1 %vm2820_vm2, %v12208_v41 }
 0x368   : >> { %8822 = vmatmul.mubr.msk.f32.gmra.mxu0 %vm2820_vm2, %v12212_v19  ;;  %8760 = vmatprep.mubr.msk.f32.mxu1 %vm2820_vm2, %v12214_v10  ;;  %v8142_v19 = vld [vmem:[%s11823_s21 + $0x1b0] sm:$0xff] }
 0x369   : >> { %8824 = vmatprep.mubr.msk.f32.mxu0 %vm2820_vm2, %v12216_v63  ;;  %v8101_v63 = vld [vmem:[%s11823_s21 + $0x170] sm:$0xff] }
 0x36b   : >> { %8761 = vmatmul.mubr.msk.f32.gmra.mxu1 %vm2820_vm2, %v12224_v1 }
 0x36c   : >> { %8825 = vmatmul.mubr.msk.f32.gmra.mxu0 %vm2820_vm2, %v12228_v54  ;;  %8843 = vmatprep.mubr.msk.f32.mxu1 %vm2820_vm2, %v11970_v2  ;;  %v14773_v2 = vld [vmem:[#allocation200_spill] sm:$0xff] }
 0x36d   : >> { %8907 = vmatprep.mubr.msk.f32.mxu0 %vm2820_vm2, %v11841_v61  ;;  %v8100_v61 = vld [vmem:[%s11823_s21 + $0x168] sm:$0xff] }
 0x36f   : >> { %8844 = vmatmul.mubr.msk.f32.vlgmr.msra.gmra.mxu1 %vm2820_vm2, %v11976_v37  ;;  %v8222_v37 = vld [vmem:[%s11823_s21 + $0x220] sm:$0xff] }
 0x370   : >> { %8908 = vmatmul.mubr.msk.f32.vlgmr.msra.gmra.mxu0 %vm2820_vm2, %v11849_v15  ;;  %8956 = vmatpush3.msra.mxu1 %v12101_v38  ;;  %v8141_v15 = vld [vmem:[%s11823_s21 + $0x1a8] sm:$0xff]  ;;  %v14780_v38 = vld [vmem:[#allocation207_spill] sm:$0xff] }
 0x371   : >> { %8846 = vmatprep.mubr.msk.f32.mxu1 %vm2820_vm2, %v11983_v17  ;;  %9020 = vmatpush3.msra.mxu0 %v12119_v50  ;;  %v8178_v50 = vld [vmem:[%s11823_s21 + $0x1c8] sm:$0xff] }
 0x372   : >> { %8910 = vmatprep.mubr.msk.f32.mxu0 %vm2820_vm2, %v11858_v3  ;;  %8957 = vmatprep.subr.mxu1 %v8101_v63  ;;  %v8099_v3 = vld [vmem:[%s11823_s21 + $0x160] sm:$0xff] }
 0x373   : >> { %8847 = vmatmul.mubr.msk.f32.gmra.mxu1 %vm2820_vm2, %v11997_v30  ;;  %9021 = vmatprep.subr.mxu0 %v8142_v19 }
 0x374   : >> { %8911 = vmatmul.mubr.msk.f32.gmra.mxu0 %vm2820_vm2, %v11867_v56  ;;  %8849 = vmatprep.mubr.msk.f32.mxu1 %vm2820_vm2, %v12003_v0  ;;  %v8140_v56 = vld [vmem:[%s11823_s21 + $0x1a0] sm:$0xff] }
 0x375   : >> { %8913 = vmatprep.mubr.msk.f32.mxu0 %vm2820_vm2, %v11876_v23  ;;  %8958 = vmatpush3.msra.mxu1 %v8101_v63  ;;  %v8098_v23 = vld [vmem:[%s11823_s21 + $0x158] sm:$0xff] }
 0x376   : >> { %9022 = vmatpush3.msra.mxu0 %v8142_v19  ;;  %8959 = vmatprep.subr.mxu1 %v8100_v61  ;;  %v8225_v63 = vld [vmem:[%s11823_s21 + $0x238] sm:$0xff]  ;;  %v14775_v19 = vld [vmem:[#allocation202_spill] sm:$0xff] }
 0x377   : >> { %8850 = vmatmul.mubr.msk.f32.gmra.mxu1 %vm2820_vm2, %v12015_v28  ;;  %9023 = vmatprep.subr.mxu0 %v8141_v15 }
 0x378   : >> { %8914 = vmatmul.mubr.msk.f32.gmra.mxu0 %vm2820_vm2, %v11885_v31  ;;  %8852 = vmatprep.mubr.msk.f32.mxu1 %vm2820_vm2, %v12021_v18  ;;  %v8139_v31 = vld [vmem:[%s11823_s21 + $0x198] sm:$0xff] }
 0x379   : >> { %8916 = vmatprep.mubr.msk.f32.mxu0 %vm2820_vm2, %v11894_v36  ;;  %8960 = vmatpush3.msra.mxu1 %v8100_v61  ;;  %v8097_v36 = vld [vmem:[%s11823_s21 + $0x150] sm:$0xff]  ;;  %v14781_v61 = vld [vmem:[#allocation208_spill] sm:$0xff] }
 0x37a   : >> { %9024 = vmatpush3.msra.mxu0 %v8141_v15  ;;  %8961 = vmatprep.subr.mxu1 %v8099_v3  ;;  %v14783_v15 = vld [vmem:[#allocation210_spill] sm:$0xff] }
 0x37b   : >> { %8853 = vmatmul.mubr.msk.f32.gmra.mxu1 %vm2820_vm2, %v12033_v60  ;;  %9025 = vmatprep.subr.mxu0 %v8140_v56 }
 0x37c   : >> { %8917 = vmatmul.mubr.msk.f32.gmra.mxu0 %vm2820_vm2, %v11903_v14  ;;  %8855 = vmatprep.mubr.msk.f32.mxu1 %vm2820_vm2, %v12039_v33  ;;  %v8138_v14 = vld [vmem:[%s11823_s21 + $0x190] sm:$0xff] }
 0x37d   : >> { %8919 = vmatprep.mubr.msk.f32.mxu0 %vm2820_vm2, %v11912_v22  ;;  %8962 = vmatpush3.msra.mxu1 %v8099_v3  ;;  %v8096_v22 = vld [vmem:[%s11823_s21 + $0x148] sm:$0xff] }
 0x37e   : >> { %9026 = vmatpush3.msra.mxu0 %v8140_v56  ;;  %8963 = vmatprep.subr.mxu1 %v8098_v23  ;;  %v14785_v56 = vld [vmem:[#allocation212_spill] sm:$0xff] }
 0x37f   : >> { %8856 = vmatmul.mubr.msk.f32.gmra.mxu1 %vm2820_vm2, %v12051_v7  ;;  %9027 = vmatprep.subr.mxu0 %v8139_v31 }
 0x380   : >> { %8920 = vmatmul.mubr.msk.f32.gmra.mxu0 %vm2820_vm2, %v11921_v45  ;;  %8858 = vmatprep.mubr.msk.f32.mxu1 %vm2820_vm2, %v12057_v35  ;;  %v8137_v45 = vld [vmem:[%s11823_s21 + $0x188] sm:$0xff] }
 0x381   : >> { %8922 = vmatprep.mubr.msk.f32.mxu0 %vm2820_vm2, %v11930_v51  ;;  %8964 = vmatpush3.msra.mxu1 %v8098_v23  ;;  %v8095_v51 = vld [vmem:[%s11823_s21 + $0x140] sm:$0xff] }
 0x382   : >> { %9028 = vmatpush3.msra.mxu0 %v8139_v31  ;;  %8965 = vmatprep.subr.mxu1 %v8097_v36  ;;  %v14786_v31 = vld [vmem:[#allocation213_spill] sm:$0xff] }
 0x383   : >> { %8859 = vmatmul.mubr.msk.f32.gmra.mxu1 %vm2820_vm2, %v12069_v11  ;;  %9029 = vmatprep.subr.mxu0 %v8138_v14 }
 0x384   : >> { %8923 = vmatmul.mubr.msk.f32.gmra.mxu0 %vm2820_vm2, %v11939_v26  ;;  %8861 = vmatprep.mubr.msk.f32.mxu1 %vm2820_vm2, %v12075_v32  ;;  %v8136_v26 = vld [vmem:[%s11823_s21 + $0x180] sm:$0xff] }
 0x385   : >> { %8925 = vmatprep.mubr.msk.f32.mxu0 %vm2820_vm2, %v11948_v29  ;;  %8966 = vmatpush3.msra.mxu1 %v8097_v36  ;;  %v8184_v29 = vld [vmem:[%s11823_s21 + $0x1f8] sm:$0xff] }
 0x386   : >> { %9030 = vmatpush3.msra.mxu0 %v8138_v14  ;;  %8967 = vmatprep.subr.mxu1 %v8096_v22 }
 0x387   : >> { %8862 = vmatmul.mubr.msk.f32.gmra.mxu1 %vm2820_vm2, %v12087_v40  ;;  %9031 = vmatprep.subr.mxu0 %v8137_v45 }
 0x388   : >> { %8926 = vmatmul.mubr.msk.f32.gmra.mxu0 %vm2820_vm2, %v11957_v55  ;;  %8864 = vmatprep.mubr.msk.f32.mxu1 %vm2820_vm2, %v12093_v59  ;;  %v8181_v55 = vld [vmem:[%s11823_s21 + $0x1e0] sm:$0xff] }
 0x389   : >> { %8928 = vmatprep.mubr.msk.f32.mxu0 %vm2820_vm2, %v11814_v25  ;;  %8968 = vmatpush3.msra.mxu1 %v8096_v22  ;;  %v12368_v25 = vld [vmem:[#allocation3 + $0x180] sm:$0xff] }
 0x38a   : >> { %9032 = vmatpush3.msra.mxu0 %v8137_v45  ;;  %8969 = vmatprep.subr.mxu1 %v8095_v51  ;;  %v14788_v45 = vld [vmem:[#allocation215_spill] sm:$0xff] }
 0x38b   : >> { %8865 = vmatmul.mubr.msk.f32.gmra.mxu1 %vm2820_vm2, %v12107_v62  ;;  %9033 = vmatprep.subr.mxu0 %v8136_v26 }
 0x38c   : >> { %8929 = vmatmul.mubr.msk.f32.gmra.mxu0 %vm2820_vm2, %v11833_v12  ;;  %8867 = vmatprep.mubr.msk.f32.mxu1 %vm2820_vm2, %v12113_v24  ;;  %v12370_v12 = vld [vmem:[#allocation3 + $0x181] sm:$0xff] }
 0x38d   : >> { %8931 = vmatprep.mubr.msk.f32.mxu0 %vm2820_vm2, %v11837_v53  ;;  %8970 = vmatpush3.msra.mxu1 %v8095_v51  ;;  %v14766_v53 = vld [vmem:[#allocation193_spill] sm:$0xff] }
 0x38e   : >> { %9034 = vmatpush3.msra.mxu0 %v8136_v26  ;;  %9083 = vmatprep.subr.mxu1 %v8184_v29 }
 0x38f   : >> { %8868 = vmatmul.mubr.msk.f32.gmra.mxu1 %vm2820_vm2, %v12127_v48  ;;  %9147 = vmatprep.subr.mxu0 %v8225_v63 }
 0x390   : >> { %8932 = vmatmul.mubr.msk.f32.gmra.mxu0 %vm2820_vm2, %v11844_v21  ;;  %8870 = vmatprep.mubr.msk.f32.mxu1 %vm2820_vm2, %v12133_v16  ;;  %v12378_v21 = vld [vmem:[#allocation3 + $0x188] sm:$0xff] }
 0x391   : >> { %8934 = vmatprep.mubr.msk.f32.mxu0 %vm2820_vm2, %v11854_v34  ;;  %v12382_v34 = vld [vmem:[#allocation3 + $0x189] sm:$0xff] }
 0x393   : >> { %8871 = vmatmul.mubr.msk.f32.gmra.mxu1 %vm2820_vm2, %v12144_v46 }
 0x394   : >> { %8935 = vmatmul.mubr.msk.f32.gmra.mxu0 %vm2820_vm2, %v11862_v57  ;;  %8873 = vmatprep.mubr.msk.f32.mxu1 %vm2820_vm2, %v12150_v52  ;;  %v14767_v57 = vld [vmem:[#allocation194_spill] sm:$0xff] }
 0x395   : >> { %8937 = vmatprep.mubr.msk.f32.mxu0 %vm2820_vm2, %v11872_v13  ;;  %v14768_v13 = vld [vmem:[#allocation195_spill] sm:$0xff] }
 0x397   : >> { %8874 = vmatmul.mubr.msk.f32.gmra.mxu1 %vm2820_vm2, %v12160_v58 }
 0x398   : >> { %8938 = vmatmul.mubr.msk.f32.gmra.mxu0 %vm2820_vm2, %v11880_v5  ;;  %8876 = vmatprep.mubr.msk.f32.mxu1 %vm2820_vm2, %v12166_v6  ;;  %v8183_v5 = vld [vmem:[%s11823_s21 + $0x1f0] sm:$0xff] }
 0x399   : >> { %8940 = vmatprep.mubr.msk.f32.mxu0 %vm2820_vm2, %v11890_v39  ;;  %v8224_v39 = vld [vmem:[%s11823_s21 + $0x230] sm:$0xff] }
 0x39b   : >> { %8877 = vmatmul.mubr.msk.f32.gmra.mxu1 %vm2820_vm2, %v12176_v47 }
 0x39c   : >> { %8941 = vmatmul.mubr.msk.f32.gmra.mxu0 %vm2820_vm2, %v11898_v20  ;;  %8879 = vmatprep.mubr.msk.f32.mxu1 %vm2820_vm2, %v12182_v44  ;;  %v14769_v20 = vld [vmem:[#allocation196_spill] sm:$0xff] }
 0x39d   : >> { %8943 = vmatprep.mubr.msk.f32.mxu0 %vm2820_vm2, %v11908_v42  ;;  %v14770_v42 = vld [vmem:[#allocation197_spill] sm:$0xff] }
 0x39f   : >> { %8880 = vmatmul.mubr.msk.f32.gmra.mxu1 %vm2820_vm2, %v12192_v49 }
 0x3a0   : >> { %8944 = vmatmul.mubr.msk.f32.gmra.mxu0 %vm2820_vm2, %v11916_v4  ;;  %8882 = vmatprep.mubr.msk.f32.mxu1 %vm2820_vm2, %v12198_v27  ;;  %v8182_v4 = vld [vmem:[%s11823_s21 + $0x1e8] sm:$0xff] }
 0x3a1   : >> { %8946 = vmatprep.mubr.msk.f32.mxu0 %vm2820_vm2, %v11926_v9  ;;  %v14771_v9 = vld [vmem:[#allocation198_spill] sm:$0xff] }
 0x3a3   : >> { %8883 = vmatmul.mubr.msk.f32.gmra.mxu1 %vm2820_vm2, %v12208_v41 }
 0x3a4   : >> { %8947 = vmatmul.mubr.msk.f32.gmra.mxu0 %vm2820_vm2, %v11934_v43  ;;  %8885 = vmatprep.mubr.msk.f32.mxu1 %vm2820_vm2, %v12214_v10  ;;  %v8223_v43 = vld [vmem:[%s11823_s21 + $0x228] sm:$0xff] }
 0x3a5   : >> { %8949 = vmatprep.mubr.msk.f32.mxu0 %vm2820_vm2, %v11944_v8  ;;  %v14772_v8 = vld [vmem:[#allocation199_spill] sm:$0xff] }
 0x3a7   : >> { %8886 = vmatmul.mubr.msk.f32.gmra.mxu1 %vm2820_vm2, %v12224_v1 }
 0x3a8   : >> { %8950 = vmatmul.mubr.msk.f32.gmra.mxu0 %vm2820_vm2, %v14766_v53  ;;  %8888 = vmatprep.mubr.msk.f32.mxu1 %vm2820_vm2, %v12368_v25 }
 0x3a9   : >> { %8952 = vmatprep.mubr.msk.f32.mxu0 %vm2820_vm2, %v12370_v12 }
 0x3ab   : >> { %8889 = vmatmul.mubr.msk.f32.gmra.mxu1 %vm2820_vm2, %v12378_v21 }
 0x3ac   : >> { %8953 = vmatmul.mubr.msk.f32.gmra.mxu0 %vm2820_vm2, %v12382_v34  ;;  %8971 = vmatprep.mubr.msk.f32.mxu1 %vm2820_vm2, %v14767_v57 }
 0x3ad   : >> { %9035 = vmatprep.mubr.msk.f32.mxu0 %vm2820_vm2, %v11983_v17  ;;  %v14774_v17 = vld [vmem:[#allocation201_spill] sm:$0xff] }
 0x3af   : >> { %8972 = vmatmul.mubr.msk.f32.vlgmr.msra.gmra.mxu1 %vm2820_vm2, %v14768_v13 }
 0x3b0   : >> { %9036 = vmatmul.mubr.msk.f32.vlgmr.msra.gmra.mxu0 %vm2820_vm2, %v11997_v30  ;;  %9084 = vmatpush3.msra.mxu1 %v8184_v29  ;;  %v8180_v30 = vld [vmem:[%s11823_s21 + $0x1d8] sm:$0xff] }
 0x3b1   : >> { %8974 = vmatprep.mubr.msk.f32.mxu1 %vm2820_vm2, %v14769_v20  ;;  %9148 = vmatpush3.msra.mxu0 %v8225_v63  ;;  %v14790_v63 = vld [vmem:[#allocation217_spill] sm:$0xff] }
 0x3b2   : >> { %9038 = vmatprep.mubr.msk.f32.mxu0 %vm2820_vm2, %v12003_v0  ;;  %9085 = vmatprep.subr.mxu1 %v8183_v5  ;;  %v8221_v0 = vld [vmem:[%s11823_s21 + $0x218] sm:$0xff] }
 0x3b3   : >> { %8975 = vmatmul.mubr.msk.f32.gmra.mxu1 %vm2820_vm2, %v14770_v42  ;;  %9149 = vmatprep.subr.mxu0 %v8224_v39 }
 0x3b4   : >> { %9039 = vmatmul.mubr.msk.f32.gmra.mxu0 %vm2820_vm2, %v12015_v28  ;;  %8977 = vmatprep.mubr.msk.f32.mxu1 %vm2820_vm2, %v14771_v9  ;;  %v14776_v28 = vld [vmem:[#allocation203_spill] sm:$0xff] }
 0x3b5   : >> { %9041 = vmatprep.mubr.msk.f32.mxu0 %vm2820_vm2, %v12021_v18  ;;  %9086 = vmatpush3.msra.mxu1 %v8183_v5  ;;  %v8179_v18 = vld [vmem:[%s11823_s21 + $0x1d0] sm:$0xff]  ;;  %v14792_v5 = vld [vmem:[#allocation219_spill] sm:$0xff] }
 0x3b6   : >> { %9150 = vmatpush3.msra.mxu0 %v8224_v39  ;;  %9087 = vmatprep.subr.mxu1 %v8182_v4 }
 0x3b7   : >> { %8978 = vmatmul.mubr.msk.f32.gmra.mxu1 %vm2820_vm2, %v14772_v8  ;;  %9151 = vmatprep.subr.mxu0 %v8223_v43 }
 0x3b8   : >> { %9042 = vmatmul.mubr.msk.f32.gmra.mxu0 %vm2820_vm2, %v12033_v60  ;;  %8980 = vmatprep.mubr.msk.f32.mxu1 %vm2820_vm2, %v14773_v2  ;;  %v14777_v60 = vld [vmem:[#allocation204_spill] sm:$0xff] }
 0x3b9   : >> { %9044 = vmatprep.mubr.msk.f32.mxu0 %vm2820_vm2, %v12039_v33  ;;  %9088 = vmatpush3.msra.mxu1 %v8182_v4  ;;  %v8220_v33 = vld [vmem:[%s11823_s21 + $0x210] sm:$0xff]  ;;  %v14794_v4 = vld [vmem:[#allocation221_spill] sm:$0xff] }
 0x3ba   : >> { %9152 = vmatpush3.msra.mxu0 %v8223_v43  ;;  %9089 = vmatprep.subr.mxu1 %v8181_v55 }
 0x3bb   : >> { %8981 = vmatmul.mubr.msk.f32.gmra.mxu1 %vm2820_vm2, %v14774_v17  ;;  %9153 = vmatprep.subr.mxu0 %v8222_v37  ;;  %v5259_v17 = vld [vmem:[#allocation3 + $0x1a0] sm:$0xff] }
 0x3bc   : >> { %9045 = vmatmul.mubr.msk.f32.gmra.mxu0 %vm2820_vm2, %v12051_v7  ;;  %8983 = vmatprep.mubr.msk.f32.mxu1 %vm2820_vm2, %v14775_v19  ;;  %v14778_v7 = vld [vmem:[#allocation205_spill] sm:$0xff] }
 0x3bd   : >> { %9047 = vmatprep.mubr.msk.f32.mxu0 %vm2820_vm2, %v12057_v35  ;;  %9090 = vmatpush3.msra.mxu1 %v8181_v55  ;;  %v14779_v35 = vld [vmem:[#allocation206_spill] sm:$0xff]  ;;  %v5258_v55 = vld [vmem:[#allocation3 + $0x198] sm:$0xff] }
 0x3be   : >> { %9154 = vmatpush3.msra.mxu0 %v8222_v37  ;;  %9091 = vmatprep.subr.mxu1 %v8180_v30 }
 0x3bf   : >> { %8984 = vmatmul.mubr.msk.f32.gmra.mxu1 %vm2820_vm2, %v14776_v28  ;;  %9155 = vmatprep.subr.mxu0 %v8221_v0  ;;  %v5625_v28 = vld [vmem:[#allocation3 + $0x39] sm:$0xff] }
 0x3c0   : >> { %9048 = vmatmul.mubr.msk.f32.gmra.mxu0 %vm2820_vm2, %v12069_v11  ;;  %8986 = vmatprep.mubr.msk.f32.mxu1 %vm2820_vm2, %v14777_v60  ;;  %v8219_v11 = vld [vmem:[%s11823_s21 + $0x208] sm:$0xff] }
 0x3c1   : >> { %9050 = vmatprep.mubr.msk.f32.mxu0 %vm2820_vm2, %v12075_v32  ;;  %9092 = vmatpush3.msra.mxu1 %v8180_v30  ;;  %v8177_v32 = vld [vmem:[%s11823_s21 + $0x1c0] sm:$0xff]  ;;  %v6021_v60 = vld [vmem:[#allocation3 + $0x3a] sm:$0xff] }
 0x3c2   : >> { %9156 = vmatpush3.msra.mxu0 %v8221_v0  ;;  %9093 = vmatprep.subr.mxu1 %v8179_v18  ;;  %v5624_v30 = vld [vmem:[#allocation3 + $0x31] sm:$0xff] }
 0x3c3   : >> { %8987 = vmatmul.mubr.msk.f32.gmra.mxu1 %vm2820_vm2, %v14778_v7  ;;  %9157 = vmatprep.subr.mxu0 %v8220_v33  ;;  %v6020_v0 = vld [vmem:[#allocation3 + $0x32] sm:$0xff] }
 0x3c4   : >> { %9051 = vmatmul.mubr.msk.f32.gmra.mxu0 %vm2820_vm2, %v12087_v40  ;;  %8989 = vmatprep.mubr.msk.f32.mxu1 %vm2820_vm2, %v14779_v35  ;;  %v8218_v40 = vld [vmem:[%s11823_s21 + $0x200] sm:$0xff] }
 0x3c5   : >> { %9053 = vmatprep.mubr.msk.f32.mxu0 %vm2820_vm2, %v12093_v59  ;;  %9094 = vmatpush3.msra.mxu1 %v8179_v18  ;;  %v14782_v59 = vld [vmem:[#allocation209_spill] sm:$0xff] }
 0x3c6   : >> { %9158 = vmatpush3.msra.mxu0 %v8220_v33  ;;  %9095 = vmatprep.subr.mxu1 %v8178_v50  ;;  %v5626_v33 = vld [vmem:[#allocation3 + $0x49] sm:$0xff] }
 0x3c7   : >> { %8990 = vmatmul.mubr.msk.f32.gmra.mxu1 %vm2820_vm2, %v14780_v38  ;;  %9159 = vmatprep.subr.mxu0 %v8219_v11 }
 0x3c8   : >> { %9054 = vmatmul.mubr.msk.f32.gmra.mxu0 %vm2820_vm2, %v12107_v62  ;;  %8992 = vmatprep.mubr.msk.f32.mxu1 %vm2820_vm2, %v14781_v61 }
 0x3c9   : >> { %9056 = vmatprep.mubr.msk.f32.mxu0 %vm2820_vm2, %v12113_v24  ;;  %9096 = vmatpush3.msra.mxu1 %v8178_v50  ;;  %v14784_v24 = vld [vmem:[#allocation211_spill] sm:$0xff] }
 0x3ca   : >> { %9160 = vmatpush3.msra.mxu0 %v8219_v11  ;;  %9097 = vmatprep.subr.mxu1 %v8177_v32  ;;  %v6022_v50 = vld [vmem:[#allocation3 + $0x4a] sm:$0xff] }
 0x3cb   : >> { %8993 = vmatmul.mubr.msk.f32.gmra.mxu1 %vm2820_vm2, %v14782_v59  ;;  %9161 = vmatprep.subr.mxu0 %v8218_v40  ;;  %v5628_v59 = vld [vmem:[#allocation3 + $0x61] sm:$0xff] }
 0x3cc   : >> { %9057 = vmatmul.mubr.msk.f32.gmra.mxu0 %vm2820_vm2, %v12127_v48  ;;  %8995 = vmatprep.mubr.msk.f32.mxu1 %vm2820_vm2, %v14783_v15 }
 0x3cd   : >> { %9059 = vmatprep.mubr.msk.f32.mxu0 %vm2820_vm2, %v12133_v16  ;;  %9098 = vmatpush3.msra.mxu1 %v8177_v32  ;;  %v5627_v32 = vld [vmem:[#allocation3 + $0x51] sm:$0xff] }
 0x3ce   : >> { %9162 = vmatpush3.msra.mxu0 %v8218_v40  ;;  %v6023_v40 = vld [vmem:[#allocation3 + $0x52] sm:$0xff] }
 0x3cf   : >> { %v12470_v62 = vpop.f32.mrf.mxu1  ;;  %8996 = vmatmul.mubr.msk.f32.gmra.mxu1 %vm2820_vm2, %v14784_v24 }
 0x3d0   : >> { %v12474_v3 = vpop.f32.mrf.mxu0  ;;  %9060 = vmatmul.mubr.msk.f32.gmra.mxu0 %vm2820_vm2, %v12144_v46  ;;  %8998 = vmatprep.mubr.msk.f32.mxu1 %vm2820_vm2, %v14785_v56  ;;  %v14787_v46 = vld [vmem:[#allocation214_spill] sm:$0xff] }
 0x3d1   : >> { %v12480_v48 = vpop.f32.mrf.mxu1  ;;  %9062 = vmatprep.mubr.msk.f32.mxu0 %vm2820_vm2, %v12150_v52 }
 0x3d2   : >> { %v12484_v16 = vpop.f32.mrf.mxu0 }
 0x3d3   : >> { %v12486_v23 = vpop.f32.mrf.mxu1  ;;  %8999 = vmatmul.mubr.msk.f32.gmra.mxu1 %vm2820_vm2, %v14786_v31  ;;  %v6024_v31 = vld [vmem:[#allocation3 + $0x62] sm:$0xff] }
 0x3d4   : >> { %v12490_v36 = vpop.f32.mrf.mxu0  ;;  %9063 = vmatmul.mubr.msk.f32.gmra.mxu0 %vm2820_vm2, %v12160_v58  ;;  %9001 = vmatprep.mubr.msk.f32.mxu1 %vm2820_vm2, %v14787_v46  ;;  %v14789_v58 = vld [vmem:[#allocation216_spill] sm:$0xff] }
 0x3d5   : >> { %v12496_v14 = vpop.f32.mrf.mxu1  ;;  %9065 = vmatprep.mubr.msk.f32.mxu0 %vm2820_vm2, %v12166_v6 }
 0x3d6   : >> { %v12500_v52 = vpop.f32.mrf.mxu0 }
 0x3d7   : >> { %v12502_v22 = vpop.f32.mrf.mxu1  ;;  %9002 = vmatmul.mubr.msk.f32.gmra.mxu1 %vm2820_vm2, %v14788_v45 }
 0x3d8   : >> { %v12506_v51 = vpop.f32.mrf.mxu0  ;;  %9066 = vmatmul.mubr.msk.f32.gmra.mxu0 %vm2820_vm2, %v12176_v47  ;;  %9004 = vmatprep.mubr.msk.f32.mxu1 %vm2820_vm2, %v14789_v58  ;;  %v14791_v47 = vld [vmem:[#allocation218_spill] sm:$0xff] }
 0x3d9   : >> { %v12512_v26 = vpop.f32.mrf.mxu1  ;;  %9068 = vmatprep.mubr.msk.f32.mxu0 %vm2820_vm2, %v12182_v44 }
 0x3da   : >> { %v12516_v6 = vpop.f32.mrf.mxu0 }
 0x3db   : >> { %v12518_v29 = vpop.f32.mrf.mxu1  ;;  %9005 = vmatmul.mubr.msk.f32.gmra.mxu1 %vm2820_vm2, %v14790_v63  ;;  %v5629_v63 = vld [vmem:[#allocation3 + $0x69] sm:$0xff] }
 0x3dc   : >> { %v12522_v53 = vpop.f32.mrf.mxu0  ;;  %9069 = vmatmul.mubr.msk.f32.gmra.mxu0 %vm2820_vm2, %v12192_v49  ;;  %9007 = vmatprep.mubr.msk.f32.mxu1 %vm2820_vm2, %v14791_v47  ;;  %v14793_v49 = vld [vmem:[#allocation220_spill] sm:$0xff] }
 0x3dd   : >> { %v12528_v57 = vpop.f32.mrf.mxu1  ;;  %9071 = vmatprep.mubr.msk.f32.mxu0 %vm2820_vm2, %v12198_v27 }
 0x3de   : >> { %v12532_v44 = vpop.f32.mrf.mxu0 }
 0x3df   : >> { %v12534_v13 = vpop.f32.mrf.mxu1  ;;  %9008 = vmatmul.mubr.msk.f32.gmra.mxu1 %vm2820_vm2, %v14792_v5  ;;  %v6025_v5 = vld [vmem:[#allocation3 + $0x6a] sm:$0xff] }
 0x3e0   : >> { %v12538_v39 = vpop.f32.mrf.mxu0  ;;  %9072 = vmatmul.mubr.msk.f32.gmra.mxu0 %vm2820_vm2, %v12208_v41  ;;  %9010 = vmatprep.mubr.msk.f32.mxu1 %vm2820_vm2, %v14793_v49  ;;  %v14795_v41 = vld [vmem:[#allocation222_spill] sm:$0xff] }
 0x3e1   : >> { %v12544_v20 = vpop.f32.mrf.mxu1  ;;  %9074 = vmatprep.mubr.msk.f32.mxu0 %vm2820_vm2, %v12214_v10  ;;  %v12564_v10 = vld [vmem:[#allocation3 + $0x182] sm:$0xff] }
 0x3e2   : >> { %v12548_v27 = vpop.f32.mrf.mxu0 }
 0x3e3   : >> { %v12550_v42 = vpop.f32.mrf.mxu1  ;;  %9011 = vmatmul.mubr.msk.f32.gmra.mxu1 %vm2820_vm2, %v14794_v4 }
 0x3e4   : >> { %v12554_v9 = vpop.f32.mrf.mxu0  ;;  %9075 = vmatmul.mubr.msk.f32.gmra.mxu0 %vm2820_vm2, %v12224_v1  ;;  %9013 = vmatprep.mubr.msk.f32.mxu1 %vm2820_vm2, %v14795_v41  ;;  %v12578_v1 = vld [vmem:[#allocation3 + $0x18a] sm:$0xff] }
 0x3e5   : >> { %v12560_v43 = vpop.f32.mrf.mxu1  ;;  %9077 = vmatprep.mubr.msk.f32.mxu0 %vm2820_vm2, %v12368_v25 }
 0x3e6   : >> { %v12566_v8 = vpop.f32.mrf.mxu0 }
 0x3e7   : >> { %v12568_v2 = vpop.f32.mrf.mxu1  ;;  %9014 = vmatmul.mubr.msk.f32.gmra.mxu1 %vm2820_vm2, %v12228_v54 }
 0x3e8   : >> { %v12572_v37 = vpop.f32.mrf.mxu0  ;;  %9078 = vmatmul.mubr.msk.f32.gmra.mxu0 %vm2820_vm2, %v12378_v21  ;;  %9016 = vmatprep.mubr.msk.f32.mxu1 %vm2820_vm2, %v12564_v10 }
 0x3e9   : >> { %v12580_v25 = vpop.f32.mrf.mxu1  ;;  %9080 = vmatprep.mubr.msk.f32.mxu0 %vm2820_vm2, %v5258_v55  ;;  %v6026_v55 = vld [vmem:[#allocation3 + $0x7a] sm:$0xff] }
 0x3ea   : >> { %v12583_v19 = vpop.f32.mrf.mxu0 }
 0x3eb   : >> { %v12585_v54 = vpop.f32.mrf.mxu1  ;;  %9017 = vmatmul.mubr.msk.f32.gmra.mxu1 %vm2820_vm2, %v12578_v1 }
 0x3ec   : >> { %v12589_v21 = vpop.f32.mrf.mxu0  ;;  %9081 = vmatmul.mubr.msk.f32.gmra.mxu0 %vm2820_vm2, %v5259_v17  ;;  %9099 = vmatprep.mubr.msk.f32.mxu1 %vm2820_vm2, %v5624_v30 }
 0x3ed   : >> { %v12593_v18 = vpop.f32.mrf.mxu1  ;;  %9163 = vmatprep.mubr.msk.f32.mxu0 %vm2820_vm2, %v6020_v0 }
 0x3ee   : >> { %v12596_v7 = vpop.f32.mrf.mxu0 }
 0x3ef   : >> { %v8717_v35 = vpop.f32.mrf.mxu1  ;;  %9100 = vmatmul.mubr.msk.f32.vlgmr.msra.gmra.mxu1 %vm2820_vm2, %v5625_v28  ;;  %v5631_v28 = vld [vmem:[#allocation3 + $0x81] sm:$0xff] }
 0x3f0   : >> { %v3490_v11 = vadd.f32 %v8717_v35, %v12474_v3  ;;  %v8781_v38 = vpop.f32.mrf.mxu0  ;;  %9164 = vmatmul.mubr.msk.f32.vlgmr.msra.gmra.mxu0 %vm2820_vm2, %v6021_v60  ;;  %9102 = vmatprep.mubr.msk.f32.mxu1 %vm2820_vm2, %v5626_v33  ;;  %v6027_v33 = vld [vmem:[#allocation3 + $0x82] sm:$0xff] }
 0x3f1   : >> { %v3484_v61 = vpop.f32.mrf.mxu1  ;;  %9166 = vmatprep.mubr.msk.f32.mxu0 %vm2820_vm2, %v6022_v50 }
 0x3f2   : >> { %v12603_v15 = vadd.f32 %v8781_v38, %v3490_v11  ;;  %v3485_v24 = vadd.f32 %v3484_v61, %v12484_v16  ;;  %v3848_v56 = vpop.f32.mrf.mxu0  ;;  %v5630_v16 = vld [vmem:[#allocation3 + $0x79] sm:$0xff] }
 0x3f3   : >> { %v8720_v46 = vpop.f32.mrf.mxu1  ;;  %9103 = vmatmul.mubr.msk.f32.gmra.mxu1 %vm2820_vm2, %v5627_v32  ;;  %v6028_v38 = vld [vmem:[#allocation3 + $0x92] sm:$0xff] }
 0x3f4   : >> { %v12607_v3 = vadd.f32 %v3848_v56, %v3485_v24  ;;  %v3500_v45 = vadd.f32 %v8720_v46, %v12490_v36  ;;  %v8784_v58 = vpop.f32.mrf.mxu0  ;;  %9167 = vmatmul.mubr.msk.f32.gmra.mxu0 %vm2820_vm2, %v6023_v40  ;;  %9105 = vmatprep.mubr.msk.f32.mxu1 %vm2820_vm2, %v5628_v59  ;;  %v5633_v59 = vld [vmem:[#allocation3 + $0x99] sm:$0xff] }
 0x3f5   : >> { %v3494_v47 = vpop.f32.mrf.mxu1  ;;  %9169 = vmatprep.mubr.msk.f32.mxu0 %vm2820_vm2, %v6024_v31  ;;  %v6029_v56 = vld [vmem:[#allocation3 + $0x9a] sm:$0xff] }
 0x3f6   : >> { %v12613_v49 = vadd.f32 %v8784_v58, %v3500_v45  ;;  %v3495_v4 = vadd.f32 %v3494_v47, %v12500_v52  ;;  %v3858_v41 = vpop.f32.mrf.mxu0  ;;  %v5632_v52 = vld [vmem:[#allocation3 + $0x91] sm:$0xff] }
 0x3f7   : >> { %v8723_v17 = vpop.f32.mrf.mxu1  ;;  %9106 = vmatmul.mubr.msk.f32.gmra.mxu1 %vm2820_vm2, %v5629_v63  ;;  %v6030_v58 = vld [vmem:[#allocation3 + $0xaa] sm:$0xff] }
 0x3f8   : >> { %v12617_v36 = vadd.f32 %v3858_v41, %v3495_v4  ;;  %v3510_v30 = vadd.f32 %v8723_v17, %v12506_v51  ;;  %v8787_v0 = vpop.f32.mrf.mxu0  ;;  %9170 = vmatmul.mubr.msk.f32.gmra.mxu0 %vm2820_vm2, %v6025_v5  ;;  %9108 = vmatprep.mubr.msk.f32.mxu1 %vm2820_vm2, %v5630_v16  ;;  %v5635_v16 = vld [vmem:[#allocation3 + $0xb1] sm:$0xff] }
 0x3f9   : >> { %v3504_v60 = vpop.f32.mrf.mxu1  ;;  %9172 = vmatprep.mubr.msk.f32.mxu0 %vm2820_vm2, %v6026_v55  ;;  %v6031_v41 = vld [vmem:[#allocation3 + $0xb2] sm:$0xff] }
 0x3fa   : >> { %v12623_v50 = vadd.f32 %v8787_v0, %v3510_v30  ;;  %v3505_v35 = vadd.f32 %v3504_v60, %v12516_v6  ;;  %v3868_v11 = vpop.f32.mrf.mxu0  ;;  %v5634_v6 = vld [vmem:[#allocation3 + $0xa9] sm:$0xff] }
 0x3fb   : >> { %v8726_v32 = vpop.f32.mrf.mxu1  ;;  %9109 = vmatmul.mubr.msk.f32.gmra.mxu1 %vm2820_vm2, %v5631_v28  ;;  %v6032_v0 = vld [vmem:[#allocation3 + $0xc2] sm:$0xff] }
 0x3fc   : >> { %v12627_v51 = vadd.f32 %v3868_v11, %v3505_v35  ;;  %v3520_v61 = vadd.f32 %v8726_v32, %v12522_v53  ;;  %v8790_v40 = vpop.f32.mrf.mxu0  ;;  %9173 = vmatmul.mubr.msk.f32.gmra.mxu0 %vm2820_vm2, %v6027_v33  ;;  %9111 = vmatprep.mubr.msk.f32.mxu1 %vm2820_vm2, %v5632_v52  ;;  %v5637_v52 = vld [vmem:[#allocation3 + $0xc9] sm:$0xff] }
 0x3fd   : >> { %v3514_v24 = vpop.f32.mrf.mxu1  ;;  %9175 = vmatprep.mubr.msk.f32.mxu0 %vm2820_vm2, %v6028_v38  ;;  %v6033_v11 = vld [vmem:[#allocation3 + $0xca] sm:$0xff] }
 0x3fe   : >> { %v12633_v31 = vadd.f32 %v8790_v40, %v3520_v61  ;;  %v3515_v46 = vadd.f32 %v3514_v24, %v12532_v44  ;;  %v3878_v45 = vpop.f32.mrf.mxu0  ;;  %v5636_v44 = vld [vmem:[#allocation3 + $0xc1] sm:$0xff] }
 0x3ff   : >> { %v8729_v63 = vpop.f32.mrf.mxu1  ;;  %9112 = vmatmul.mubr.msk.f32.gmra.mxu1 %vm2820_vm2, %v5633_v59  ;;  %v6034_v40 = vld [vmem:[#allocation3 + $0xda] sm:$0xff] }
 0x400   : >> { %v12637_v53 = vadd.f32 %v3878_v45, %v3515_v46  ;;  %v3530_v47 = vadd.f32 %v8729_v63, %v12538_v39  ;;  %v8793_v5 = vpop.f32.mrf.mxu0  ;;  %9176 = vmatmul.mubr.msk.f32.gmra.mxu0 %vm2820_vm2, %v6029_v56  ;;  %9114 = vmatprep.mubr.msk.f32.mxu1 %vm2820_vm2, %v5634_v6  ;;  %v5639_v6 = vld [vmem:[#allocation3 + $0xe1] sm:$0xff] }
 0x401   : >> { %v3524_v4 = vpop.f32.mrf.mxu1  ;;  %9178 = vmatprep.mubr.msk.f32.mxu0 %vm2820_vm2, %v6030_v58  ;;  %v6035_v45 = vld [vmem:[#allocation3 + $0xe2] sm:$0xff] }
 0x402   : >> { %v12643_v55 = vadd.f32 %v8793_v5, %v3530_v47  ;;  %v3525_v17 = vadd.f32 %v3524_v4, %v12548_v27  ;;  %v3888_v30 = vpop.f32.mrf.mxu0  ;;  %v5638_v27 = vld [vmem:[#allocation3 + $0xd9] sm:$0xff] }
 0x403   : >> { %v8732_v28 = vpop.f32.mrf.mxu1  ;;  %9115 = vmatmul.mubr.msk.f32.gmra.mxu1 %vm2820_vm2, %v5635_v16  ;;  %v6036_v5 = vld [vmem:[#allocation3 + $0xf2] sm:$0xff] }
 0x404   : >> { %v12647_v39 = vadd.f32 %v3888_v30, %v3525_v17  ;;  %v3540_v60 = vadd.f32 %v8732_v28, %v12554_v9  ;;  %v8796_v33 = vpop.f32.mrf.mxu0  ;;  %9179 = vmatmul.mubr.msk.f32.gmra.mxu0 %vm2820_vm2, %v6031_v41  ;;  %9117 = vmatprep.mubr.msk.f32.mxu1 %vm2820_vm2, %v5636_v44  ;;  %v5641_v44 = vld [vmem:[#allocation3 + $0xf9] sm:$0xff] }
 0x405   : >> { %v3534_v35 = vpop.f32.mrf.mxu1  ;;  %9181 = vmatprep.mubr.msk.f32.mxu0 %vm2820_vm2, %v6032_v0  ;;  %v6037_v30 = vld [vmem:[#allocation3 + $0xfa] sm:$0xff] }
 0x406   : >> { %v12653_v38 = vadd.f32 %v8796_v33, %v3540_v60  ;;  %v3535_v32 = vadd.f32 %v3534_v35, %v12566_v8  ;;  %v3898_v61 = vpop.f32.mrf.mxu0  ;;  %v5640_v8 = vld [vmem:[#allocation3 + $0xf1] sm:$0xff] }
 0x407   : >> { %v8735_v59 = vpop.f32.mrf.mxu1  ;;  %9118 = vmatmul.mubr.msk.f32.gmra.mxu1 %vm2820_vm2, %v5637_v52  ;;  %v6038_v33 = vld [vmem:[#allocation3 + $0x10a] sm:$0xff] }
 0x408   : >> { %v12657_v9 = vadd.f32 %v3898_v61, %v3535_v32  ;;  %v3550_v24 = vadd.f32 %v8735_v59, %v12572_v37  ;;  %v8799_v56 = vpop.f32.mrf.mxu0  ;;  %9182 = vmatmul.mubr.msk.f32.gmra.mxu0 %vm2820_vm2, %v6033_v11  ;;  %9120 = vmatprep.mubr.msk.f32.mxu1 %vm2820_vm2, %v5638_v27  ;;  %v5643_v27 = vld [vmem:[#allocation3 + $0x111] sm:$0xff] }
 0x409   : >> { %v3544_v46 = vpop.f32.mrf.mxu1  ;;  %9184 = vmatprep.mubr.msk.f32.mxu0 %vm2820_vm2, %v6034_v40  ;;  %v6039_v61 = vld [vmem:[#allocation3 + $0x112] sm:$0xff] }
 0x40a   : >> { %v12663_v58 = vadd.f32 %v8799_v56, %v3550_v24  ;;  %v3545_v63 = vadd.f32 %v3544_v46, %v12583_v19  ;;  %v3908_v47 = vpop.f32.mrf.mxu0  ;;  %v5642_v19 = vld [vmem:[#allocation3 + $0x109] sm:$0xff] }
 0x40b   : >> { %v8738_v16 = vpop.f32.mrf.mxu1  ;;  %9121 = vmatmul.mubr.msk.f32.gmra.mxu1 %vm2820_vm2, %v5639_v6  ;;  %v6040_v56 = vld [vmem:[#allocation3 + $0x122] sm:$0xff] }
 0x40c   : >> { %v12667_v37 = vadd.f32 %v3908_v47, %v3545_v63  ;;  %v3560_v4 = vadd.f32 %v8738_v16, %v12589_v21  ;;  %v8802_v41 = vpop.f32.mrf.mxu0  ;;  %9185 = vmatmul.mubr.msk.f32.gmra.mxu0 %vm2820_vm2, %v6035_v45  ;;  %9123 = vmatprep.mubr.msk.f32.mxu1 %vm2820_vm2, %v5640_v8  ;;  %v5645_v8 = vld [vmem:[#allocation3 + $0x129] sm:$0xff] }
 0x40d   : >> { %v3554_v17 = vpop.f32.mrf.mxu1  ;;  %9187 = vmatprep.mubr.msk.f32.mxu0 %vm2820_vm2, %v6036_v5  ;;  %v6041_v47 = vld [vmem:[#allocation3 + $0x12a] sm:$0xff] }
 0x40e   : >> { %v12673_v0 = vadd.f32 %v8802_v41, %v3560_v4  ;;  %v3555_v28 = vadd.f32 %v3554_v17, %v12596_v7  ;;  %v3918_v60 = vpop.f32.mrf.mxu0  ;;  %v5644_v7 = vld [vmem:[#allocation3 + $0x121] sm:$0xff] }
 0x40f   : >> { %v8741_v52 = vpop.f32.mrf.mxu1  ;;  %9124 = vmatmul.mubr.msk.f32.gmra.mxu1 %vm2820_vm2, %v5641_v44  ;;  %v6042_v41 = vld [vmem:[#allocation3 + $0x13a] sm:$0xff] }
 0x410   : >> { %v12677_v21 = vadd.f32 %v3918_v60, %v3555_v28  ;;  %v3570_v35 = vadd.f32 %v8741_v52, %v12470_v62  ;;  %v8805_v11 = vpop.f32.mrf.mxu0  ;;  %9188 = vmatmul.mubr.msk.f32.gmra.mxu0 %vm2820_vm2, %v6037_v30  ;;  %9126 = vmatprep.mubr.msk.f32.mxu1 %vm2820_vm2, %v5642_v19  ;;  %v5647_v19 = vld [vmem:[#allocation3 + $0x141] sm:$0xff] }
 0x411   : >> { %v3564_v32 = vpop.f32.mrf.mxu1  ;;  %9190 = vmatprep.mubr.msk.f32.mxu0 %vm2820_vm2, %v6038_v33  ;;  %v6043_v60 = vld [vmem:[#allocation3 + $0x142] sm:$0xff] }
 0x412   : >> { %v12683_v40 = vadd.f32 %v8805_v11, %v3570_v35  ;;  %v3565_v59 = vadd.f32 %v3564_v32, %v12480_v48  ;;  %v3928_v24 = vpop.f32.mrf.mxu0  ;;  %v5646_v48 = vld [vmem:[#allocation3 + $0x139] sm:$0xff] }
 0x413   : >> { %v8744_v6 = vpop.f32.mrf.mxu1  ;;  %9127 = vmatmul.mubr.msk.f32.gmra.mxu1 %vm2820_vm2, %v5643_v27  ;;  %v6044_v11 = vld [vmem:[#allocation3 + $0x152] sm:$0xff] }
 0x414   : >> { %v12687_v62 = vadd.f32 %v3928_v24, %v3565_v59  ;;  %v3580_v46 = vadd.f32 %v8744_v6, %v12486_v23  ;;  %v8808_v45 = vpop.f32.mrf.mxu0  ;;  %9191 = vmatmul.mubr.msk.f32.gmra.mxu0 %vm2820_vm2, %v6039_v61  ;;  %9129 = vmatprep.mubr.msk.f32.mxu1 %vm2820_vm2, %v5644_v7  ;;  %v5649_v7 = vld [vmem:[#allocation3 + $0x159] sm:$0xff] }
 0x415   : >> { %v3574_v63 = vpop.f32.mrf.mxu1  ;;  %9193 = vmatprep.mubr.msk.f32.mxu0 %vm2820_vm2, %v6040_v56  ;;  %v6045_v24 = vld [vmem:[#allocation3 + $0x15a] sm:$0xff] }
 0x416   : >> { %v12693_v5 = vadd.f32 %v8808_v45, %v3580_v46  ;;  %v3575_v16 = vadd.f32 %v3574_v63, %v12496_v14  ;;  %v3938_v4 = vpop.f32.mrf.mxu0  ;;  %v5648_v14 = vld [vmem:[#allocation3 + $0x151] sm:$0xff] }
 0x417   : >> { %v8747_v44 = vpop.f32.mrf.mxu1  ;;  %9130 = vmatmul.mubr.msk.f32.gmra.mxu1 %vm2820_vm2, %v5645_v8  ;;  %v6046_v45 = vld [vmem:[#allocation3 + $0x16a] sm:$0xff] }
 0x418   : >> { %v12697_v23 = vadd.f32 %v3938_v4, %v3575_v16  ;;  %v3590_v17 = vadd.f32 %v8747_v44, %v12502_v22  ;;  %v8811_v30 = vpop.f32.mrf.mxu0  ;;  %9194 = vmatmul.mubr.msk.f32.gmra.mxu0 %vm2820_vm2, %v6041_v47  ;;  %9132 = vmatprep.mubr.msk.f32.mxu1 %vm2820_vm2, %v5646_v48  ;;  %v5651_v48 = vld [vmem:[#allocation3 + $0x171] sm:$0xff] }
 0x419   : >> { %v3584_v28 = vpop.f32.mrf.mxu1  ;;  %9196 = vmatprep.mubr.msk.f32.mxu0 %vm2820_vm2, %v6042_v41  ;;  %v6047_v4 = vld [vmem:[#allocation3 + $0x172] sm:$0xff] }
 0x41a   : >> { %v12703_v33 = vadd.f32 %v8811_v30, %v3590_v17  ;;  %v3585_v52 = vadd.f32 %v3584_v28, %v12512_v26  ;;  %v3948_v35 = vpop.f32.mrf.mxu0  ;;  %v5650_v26 = vld [vmem:[#allocation3 + $0x169] sm:$0xff] }
 0x41b   : >> { %v8750_v27 = vpop.f32.mrf.mxu1  ;;  %9133 = vmatmul.mubr.msk.f32.gmra.mxu1 %vm2820_vm2, %v5647_v19 }
 0x41c   : >> { %v12707_v22 = vadd.f32 %v3948_v35, %v3585_v52  ;;  %v3600_v32 = vadd.f32 %v8750_v27, %v12518_v29  ;;  %v8814_v61 = vpop.f32.mrf.mxu0  ;;  %9197 = vmatmul.mubr.msk.f32.gmra.mxu0 %vm2820_vm2, %v6043_v60  ;;  %9135 = vmatprep.mubr.msk.f32.mxu1 %vm2820_vm2, %v5648_v14  ;;  %v5654_v60 = vld [vmem:[#allocation3 + $0x199] sm:$0xff] }
 0x41d   : >> { %v3594_v59 = vpop.f32.mrf.mxu1  ;;  %9199 = vmatprep.mubr.msk.f32.mxu0 %vm2820_vm2, %v6044_v11  ;;  %v6050_v35 = vld [vmem:[#allocation3 + $0x19a] sm:$0xff] }
 0x41e   : >> { %v12713_v56 = vadd.f32 %v8814_v61, %v3600_v32  ;;  %v3595_v6 = vadd.f32 %v3594_v59, %v12528_v57  ;;  %v3958_v46 = vpop.f32.mrf.mxu0 }
 0x41f   : >> { %v8753_v8 = vpop.f32.mrf.mxu1  ;;  %9136 = vmatmul.mubr.msk.f32.gmra.mxu1 %vm2820_vm2, %v5649_v7 }
 0x420   : >> { %v12717_v29 = vadd.f32 %v3958_v46, %v3595_v6  ;;  %v3610_v63 = vadd.f32 %v8753_v8, %v12534_v13  ;;  %v8817_v47 = vpop.f32.mrf.mxu0  ;;  %9200 = vmatmul.mubr.msk.f32.gmra.mxu0 %vm2820_vm2, %v6045_v24  ;;  %9138 = vmatprep.mubr.msk.f32.mxu1 %vm2820_vm2, %v5650_v26 }
 0x421   : >> { %v3604_v16 = vpop.f32.mrf.mxu1  ;;  %9202 = vmatprep.mubr.msk.f32.mxu0 %vm2820_vm2, %v6046_v45 }
 0x422   : >> { %v12723_v57 = vadd.f32 %v8817_v47, %v3610_v63  ;;  %v3605_v41 = vadd.f32 %v3604_v16, %v12544_v20  ;;  %v3968_v44 = vpop.f32.mrf.mxu0 }
 0x423   : >> { %v8756_v17 = vpop.f32.mrf.mxu1  ;;  %9139 = vmatmul.mubr.msk.f32.gmra.mxu1 %vm2820_vm2, %v5651_v48 }
 0x424   : >> { %v12727_v30 = vadd.f32 %v3968_v44, %v3605_v41  ;;  %v3620_v13 = vadd.f32 %v8756_v17, %v12550_v42  ;;  %v8820_v19 = vpop.f32.mrf.mxu0  ;;  %9203 = vmatmul.mubr.msk.f32.gmra.mxu0 %vm2820_vm2, %v6047_v4  ;;  %9141 = vmatprep.mubr.msk.f32.mxu1 %vm2820_vm2, %v12370_v12 }
 0x425   : >> { %v3614_v28 = vpop.f32.mrf.mxu1  ;;  %9205 = vmatprep.mubr.msk.f32.mxu0 %vm2820_vm2, %v12564_v10  ;;  %v5655_v10 = vld [vmem:[#allocation3 + $0x1a1] sm:$0xff] }
 0x426   : >> { %v12735_v20 = vadd.f32 %v8820_v19, %v3620_v13  ;;  %v3615_v14 = vadd.f32 %v3614_v28, %v12560_v43  ;;  %v3978_v52 = vpop.f32.mrf.mxu0  ;;  %v6051_v43 = vld [vmem:[#allocation3 + $0x1a2] sm:$0xff] }
 0x427   : >> { %v8759_v11 = vpop.f32.mrf.mxu1  ;;  %9142 = vmatmul.mubr.msk.f32.gmra.mxu1 %vm2820_vm2, %v12382_v34 }
 0x428   : >> { %v12740_v42 = vadd.f32 %v3978_v52, %v3615_v14  ;;  %v3630_v27 = vadd.f32 %v8759_v11, %v12568_v2  ;;  %v8823_v12 = vpop.f32.mrf.mxu0  ;;  %9206 = vmatmul.mubr.msk.f32.gmra.mxu0 %vm2820_vm2, %v12578_v1  ;;  %9144 = vmatprep.mubr.msk.f32.mxu1 %vm2820_vm2, %v5654_v60 }
 0x429   : >> { %v3624_v32 = vpop.f32.mrf.mxu1  ;;  %9208 = vmatprep.mubr.msk.f32.mxu0 %vm2820_vm2, %v6050_v35 }
 0x42a   : >> { %v12747_v61 = vadd.f32 %v8823_v12, %v3630_v27  ;;  %v3625_v7 = vadd.f32 %v3624_v32, %v12580_v25  ;;  %v3988_v34 = vpop.f32.mrf.mxu0 }
 0x42b   : >> { %v8762_v59 = vpop.f32.mrf.mxu1  ;;  %9145 = vmatmul.mubr.msk.f32.gmra.mxu1 %vm2820_vm2, %v5655_v10 }
 0x42c   : >> { %v12751_v2 = vadd.f32 %v3988_v34, %v3625_v7  ;;  %v3640_v24 = vadd.f32 %v8762_v59, %v12585_v54  ;;  %v8826_v1 = vpop.f32.mrf.mxu0  ;;  %9209 = vmatmul.mubr.msk.f32.gmra.mxu0 %vm2820_vm2, %v6051_v43 }
 0x42d   : >> { %v3634_v26 = vpop.f32.mrf.mxu1 }
 0x42e   : >> { %v12755_v6 = vadd.f32 %v8826_v1, %v3640_v24  ;;  %v3635_v46 = vadd.f32 %v3634_v26, %v12593_v18  ;;  %v3998_v45 = vpop.f32.mrf.mxu0 }
 0x42f   : >> { %v8845_v8 = vpop.f32.mrf.mxu1 }
 0x430   : >> { %v12758_v63 = vadd.f32 %v3998_v45, %v3635_v46  ;;  %v4404_v25 = vadd.f32 %v8845_v8, %v12603_v15  ;;  %v8909_v47 = vpop.f32.mrf.mxu0 }
 0x431   : >> { %v4244_v48 = vpop.f32.mrf.mxu1 }
 0x432   : >> { %v12761_v16 = vadd.f32 %v8909_v47, %v4404_v25  ;;  %v4403_v54 = vadd.f32 %v4244_v48, %v12607_v3  ;;  %v4640_v4 = vpop.f32.mrf.mxu0 }
 0x433   : >> { %v8848_v41 = vpop.f32.mrf.mxu1 }
 0x434   : >> { %v12764_v44 = vadd.f32 %v4640_v4, %v4403_v54  ;;  %v4406_v17 = vadd.f32 %v8848_v41, %v12613_v49  ;;  %v8912_v13 = vpop.f32.mrf.mxu0 }
 0x435   : >> { %v4254_v18 = vpop.f32.mrf.mxu1 }
 0x436   : >> { %v12767_v19 = vadd.f32 %v8912_v13, %v4406_v17  ;;  %v4405_v28 = vadd.f32 %v4254_v18, %v12617_v36  ;;  %v4650_v60 = vpop.f32.mrf.mxu0 }
 0x437   : >> { %v8851_v15 = vpop.f32.mrf.mxu1 }
 0x438   : >> { %v12770_v14 = vadd.f32 %v4650_v60, %v4405_v28  ;;  %v4408_v52 = vadd.f32 %v8851_v15, %v12623_v50  ;;  %v8915_v35 = vpop.f32.mrf.mxu0 }
 0x439   : >> { %v4264_v3 = vpop.f32.mrf.mxu1 }
 0x43a   : >> { %v12773_v11 = vadd.f32 %v8915_v35, %v4408_v52  ;;  %v4407_v27 = vadd.f32 %v4264_v3, %v12627_v51  ;;  %v4660_v12 = vpop.f32.mrf.mxu0 }
 0x43b   : >> { %v8854_v49 = vpop.f32.mrf.mxu1 }
 0x43c   : >> { %v12776_v10 = vadd.f32 %v4660_v12, %v4407_v27  ;;  %v4410_v32 = vadd.f32 %v8854_v49, %v12633_v31  ;;  %v8918_v43 = vpop.f32.mrf.mxu0 }
 0x43d   : >> { %v4274_v36 = vpop.f32.mrf.mxu1 }
 0x43e   : >> { %v12779_v7 = vadd.f32 %v8918_v43, %v4410_v32  ;;  %v4409_v34 = vadd.f32 %v4274_v36, %v12637_v53  ;;  %v4670_v59 = vpop.f32.mrf.mxu0 }
 0x43f   : >> { %v8857_v50 = vpop.f32.mrf.mxu1 }
 0x440   : >> { %v12782_v24 = vadd.f32 %v4670_v59, %v4409_v34  ;;  %v4412_v1 = vadd.f32 %v8857_v50, %v12643_v55  ;;  %v8921_v26 = vpop.f32.mrf.mxu0 }
 0x441   : >> { %v4284_v51 = vpop.f32.mrf.mxu1 }
 0x442   : >> { %v12785_v46 = vadd.f32 %v8921_v26, %v4412_v1  ;;  %v4411_v45 = vadd.f32 %v4284_v51, %v12647_v39  ;;  %v4680_v8 = vpop.f32.mrf.mxu0 }
 0x443   : >> { %v8860_v31 = vpop.f32.mrf.mxu1 }
 0x444   : >> { %v12788_v25 = vadd.f32 %v4680_v8, %v4411_v45  ;;  %v4414_v47 = vadd.f32 %v8860_v31, %v12653_v38  ;;  %v8924_v48 = vpop.f32.mrf.mxu0 }
 0x445   : >> { %v4294_v53 = vpop.f32.mrf.mxu1 }
 0x446   : >> { %v12791_v54 = vadd.f32 %v8924_v48, %v4414_v47  ;;  %v4413_v4 = vadd.f32 %v4294_v53, %v12657_v9  ;;  %v4690_v41 = vpop.f32.mrf.mxu0 }
 0x447   : >> { %v8863_v55 = vpop.f32.mrf.mxu1 }
 0x448   : >> { %v12794_v17 = vadd.f32 %v4690_v41, %v4413_v4  ;;  %v4416_v13 = vadd.f32 %v8863_v55, %v12663_v58  ;;  %v8927_v18 = vpop.f32.mrf.mxu0 }
 0x449   : >> { %v4304_v39 = vpop.f32.mrf.mxu1 }
 0x44a   : >> { %v12797_v28 = vadd.f32 %v8927_v18, %v4416_v13  ;;  %v4415_v60 = vadd.f32 %v4304_v39, %v12667_v37  ;;  %v4700_v15 = vpop.f32.mrf.mxu0 }
 0x44b   : >> { %v8866_v38 = vpop.f32.mrf.mxu1 }
 0x44c   : >> { %v12800_v52 = vadd.f32 %v4700_v15, %v4415_v60  ;;  %v4418_v35 = vadd.f32 %v8866_v38, %v12673_v0  ;;  %v8930_v3 = vpop.f32.mrf.mxu0 }
 0x44d   : >> { %v4314_v9 = vpop.f32.mrf.mxu1 }
 0x44e   : >> { %v12803_v27 = vadd.f32 %v8930_v3, %v4418_v35  ;;  %v4417_v12 = vadd.f32 %v4314_v9, %v12677_v21  ;;  %v4710_v49 = vpop.f32.mrf.mxu0 }
 0x44f   : >> { %v8869_v58 = vpop.f32.mrf.mxu1 }
 0x450   : >> { %v12806_v32 = vadd.f32 %v4710_v49, %v4417_v12  ;;  %v4420_v43 = vadd.f32 %v8869_v58, %v12683_v40  ;;  %v8933_v36 = vpop.f32.mrf.mxu0 }
 0x451   : >> { %v4324_v37 = vpop.f32.mrf.mxu1 }
 0x452   : >> { %v12809_v34 = vadd.f32 %v8933_v36, %v4420_v43  ;;  %v4419_v59 = vadd.f32 %v4324_v37, %v12687_v62  ;;  %v4720_v50 = vpop.f32.mrf.mxu0 }
 0x453   : >> { %v8872_v0 = vpop.f32.mrf.mxu1 }
 0x454   : >> { %v12812_v1 = vadd.f32 %v4720_v50, %v4419_v59  ;;  %v4422_v26 = vadd.f32 %v8872_v0, %v12693_v5  ;;  %v8936_v51 = vpop.f32.mrf.mxu0 }
 0x455   : >> { %v4334_v21 = vpop.f32.mrf.mxu1 }
 0x456   : >> { %v12815_v45 = vadd.f32 %v8936_v51, %v4422_v26  ;;  %v4421_v8 = vadd.f32 %v4334_v21, %v12697_v23  ;;  %v4730_v31 = vpop.f32.mrf.mxu0 }
 0x457   : >> { %v8875_v40 = vpop.f32.mrf.mxu1 }
 0x458   : >> { %14796 = vst [vmem:[#allocation193_spill] sm:$0xff] %v12815_v45  ;;  %v12818_v47 = vadd.f32 %v4730_v31, %v4421_v8  ;;  %v4424_v48 = vadd.f32 %v8875_v40, %v12703_v33  ;;  %v8939_v53 = vpop.f32.mrf.mxu0 }
 0x459   : >> { %v4344_v62 = vpop.f32.mrf.mxu1 }
 0x45a   : >> { %14797 = vst [vmem:[#allocation194_spill] sm:$0xff] %v12818_v47  ;;  %v12821_v4 = vadd.f32 %v8939_v53, %v4424_v48  ;;  %v4423_v41 = vadd.f32 %v4344_v62, %v12707_v22  ;;  %v4740_v55 = vpop.f32.mrf.mxu0 }
 0x45b   : >> { %v8878_v5 = vpop.f32.mrf.mxu1 }
 0x45c   : >> { %14798 = vst [vmem:[#allocation195_spill] sm:$0xff] %v12821_v4  ;;  %v12824_v13 = vadd.f32 %v4740_v55, %v4423_v41  ;;  %v4426_v18 = vadd.f32 %v8878_v5, %v12713_v56  ;;  %v8942_v39 = vpop.f32.mrf.mxu0 }
 0x45d   : >> { %v4354_v23 = vpop.f32.mrf.mxu1 }
 0x45e   : >> { %14799 = vst [vmem:[#allocation196_spill] sm:$0xff] %v12824_v13  ;;  %v12827_v60 = vadd.f32 %v8942_v39, %v4426_v18  ;;  %v4425_v15 = vadd.f32 %v4354_v23, %v12717_v29  ;;  %v4750_v38 = vpop.f32.mrf.mxu0 }
 0x45f   : >> { %v8881_v33 = vpop.f32.mrf.mxu1 }
 0x460   : >> { %14800 = vst [vmem:[#allocation197_spill] sm:$0xff] %v12827_v60  ;;  %v12830_v35 = vadd.f32 %v4750_v38, %v4425_v15  ;;  %v4428_v3 = vadd.f32 %v8881_v33, %v12723_v57  ;;  %v8945_v9 = vpop.f32.mrf.mxu0 }
 0x461   : >> { %v4364_v22 = vpop.f32.mrf.mxu1 }
 0x462   : >> { %14801 = vst [vmem:[#allocation198_spill] sm:$0xff] %v12830_v35  ;;  %v12833_v12 = vadd.f32 %v8945_v9, %v4428_v3  ;;  %v4427_v49 = vadd.f32 %v4364_v22, %v12727_v30  ;;  %v4760_v58 = vpop.f32.mrf.mxu0 }
 0x463   : >> { %v8884_v56 = vpop.f32.mrf.mxu1 }
 0x464   : >> { %14802 = vst [vmem:[#allocation199_spill] sm:$0xff] %v12833_v12  ;;  %v12836_v43 = vadd.f32 %v4760_v58, %v4427_v49  ;;  %v4430_v36 = vadd.f32 %v8884_v56, %v12735_v20  ;;  %v8948_v37 = vpop.f32.mrf.mxu0 }
 0x465   : >> { %v4374_v29 = vpop.f32.mrf.mxu1 }
 0x466   : >> { %14803 = vst [vmem:[#allocation200_spill] sm:$0xff] %v12836_v43  ;;  %v12839_v59 = vadd.f32 %v8948_v37, %v4430_v36  ;;  %v4429_v50 = vadd.f32 %v4374_v29, %v12740_v42  ;;  %v4770_v0 = vpop.f32.mrf.mxu0 }
 0x467   : >> { %v8887_v57 = vpop.f32.mrf.mxu1 }
 0x468   : >> { %14804 = vst [vmem:[#allocation201_spill] sm:$0xff] %v12839_v59  ;;  %v12842_v26 = vadd.f32 %v4770_v0, %v4429_v50  ;;  %v4432_v51 = vadd.f32 %v8887_v57, %v12747_v61  ;;  %v8951_v21 = vpop.f32.mrf.mxu0 }
 0x469   : >> { %v4384_v30 = vpop.f32.mrf.mxu1 }
 0x46a   : >> { %14805 = vst [vmem:[#allocation202_spill] sm:$0xff] %v12842_v26  ;;  %v12845_v8 = vadd.f32 %v8951_v21, %v4432_v51  ;;  %v4431_v31 = vadd.f32 %v4384_v30, %v12751_v2  ;;  %v4780_v40 = vpop.f32.mrf.mxu0 }
 0x46b   : >> { %v8890_v20 = vpop.f32.mrf.mxu1 }
 0x46c   : >> { %14806 = vst [vmem:[#allocation203_spill] sm:$0xff] %v12845_v8  ;;  %v12848_v48 = vadd.f32 %v4780_v40, %v4431_v31  ;;  %v4434_v53 = vadd.f32 %v8890_v20, %v12755_v6  ;;  %v8954_v62 = vpop.f32.mrf.mxu0 }
 0x46d   : >> { %v4394_v42 = vpop.f32.mrf.mxu1 }
 0x46e   : >> { %14807 = vst [vmem:[#allocation204_spill] sm:$0xff] %v12848_v48  ;;  %v12851_v41 = vadd.f32 %v8954_v62, %v4434_v53  ;;  %v4433_v55 = vadd.f32 %v4394_v42, %v12758_v63  ;;  %v4790_v5 = vpop.f32.mrf.mxu0 }
 0x46f   : >> { %v8973_v61 = vpop.f32.mrf.mxu1 }
 0x470   : >> { %14808 = vst [vmem:[#allocation205_spill] sm:$0xff] %v12851_v41  ;;  %v12854_v18 = vadd.f32 %v4790_v5, %v4433_v55  ;;  %v12856_v39 = vpop.f32.mrf.mxu0 }
 0x471   : >> { %v5036_v23 = vpop.f32.mrf.mxu1 }
 0x472   : >> { %14809 = vst [vmem:[#allocation206_spill] sm:$0xff] %v12854_v18  ;;  %v12858_v2 = vpop.f32.mrf.mxu0 }
 0x473   : >> { %v8976_v15 = vpop.f32.mrf.mxu1 }
 0x474   : >> { %v12860_v38 = vpop.f32.mrf.mxu0 }
 0x475   : >> { %v12862_v33 = vpop.f32.mrf.mxu1 }
 0x476   : >> { %v12864_v6 = vpop.f32.mrf.mxu0 }
 0x477   : >> { %v12866_v3 = vpop.f32.mrf.mxu1 }
 0x478   : >> { %v12868_v9 = vpop.f32.mrf.mxu0 }
 0x479   : >> { %v12870_v63 = vpop.f32.mrf.mxu1 }
 0x47a   : >> { %v12872_v22 = vpop.f32.mrf.mxu0 }
 0x47b   : >> { %v12874_v49 = vpop.f32.mrf.mxu1 }
 0x47c   : >> { %v12876_v58 = vpop.f32.mrf.mxu0 }
 0x47d   : >> { %v12878_v56 = vpop.f32.mrf.mxu1 }
 0x47e   : >> { %v12880_v36 = vpop.f32.mrf.mxu0 }
 0x47f   : >> { %v12882_v37 = vpop.f32.mrf.mxu1 }
 0x480   : >> { %v12884_v29 = vpop.f32.mrf.mxu0 }
 0x481   : >> { %v12886_v50 = vpop.f32.mrf.mxu1 }
 0x482   : >> { %v12888_v0 = vpop.f32.mrf.mxu0 }
 0x483   : >> { %v12890_v57 = vpop.f32.mrf.mxu1 }
 0x484   : >> { %v12892_v51 = vpop.f32.mrf.mxu0 }
 0x485   : >> { %v12894_v21 = vpop.f32.mrf.mxu1 }
 0x486   : >> { %v12896_v30 = vpop.f32.mrf.mxu0 }
 0x487   : >> { %v12898_v31 = vpop.f32.mrf.mxu1 }
 0x488   : >> { %v12900_v40 = vpop.f32.mrf.mxu0 }
 0x489   : >> { %v12902_v20 = vpop.f32.mrf.mxu1 }
 0x48a   : >> { %v12904_v53 = vpop.f32.mrf.mxu0 }
 0x48b   : >> { %v12906_v62 = vpop.f32.mrf.mxu1 }
 0x48c   : >> { %v12908_v42 = vpop.f32.mrf.mxu0 }
 0x48d   : >> { %v12910_v55 = vpop.f32.mrf.mxu1 }
 0x48e   : >> { %v12912_v5 = vpop.f32.mrf.mxu0 }
 0x48f   : >> { %v12914_v18 = vpop.f32.mrf.mxu1 }
 0x490   : >> { %v12916_v41 = vpop.f32.mrf.mxu0 }
 0x491   : >> { %v12918_v48 = vpop.f32.mrf.mxu1 }
 0x492   : >> { %v12920_v8 = vpop.f32.mrf.mxu0 }
 0x493   : >> { %14810 = vst [vmem:[#allocation207_spill] sm:$0xff] %v12920_v8  ;;  %v12922_v26 = vpop.f32.mrf.mxu1 }
 0x494   : >> { %14811 = vst [vmem:[#allocation208_spill] sm:$0xff] %v12922_v26  ;;  %v12924_v59 = vpop.f32.mrf.mxu0 }
 0x495   : >> { %14812 = vst [vmem:[#allocation209_spill] sm:$0xff] %v12924_v59  ;;  %v12926_v43 = vpop.f32.mrf.mxu1 }
 0x496   : >> { %14813 = vst [vmem:[#allocation210_spill] sm:$0xff] %v12926_v43  ;;  %v12928_v12 = vpop.f32.mrf.mxu0 }
 0x497   : >> { %14814 = vst [vmem:[#allocation211_spill] sm:$0xff] %v12928_v12  ;;  %v12930_v35 = vpop.f32.mrf.mxu1 }
 0x498   : >> { %14815 = vst [vmem:[#allocation212_spill] sm:$0xff] %v12930_v35  ;;  %v12932_v60 = vpop.f32.mrf.mxu0 }
 0x499   : >> { %14816 = vst [vmem:[#allocation213_spill] sm:$0xff] %v12932_v60  ;;  %v12934_v13 = vpop.f32.mrf.mxu1 }
 0x49a   : >> { %14817 = vst [vmem:[#allocation214_spill] sm:$0xff] %v12934_v13  ;;  %v12936_v4 = vpop.f32.mrf.mxu0 }
 0x49b   : >> { %14818 = vst [vmem:[#allocation215_spill] sm:$0xff] %v12936_v4  ;;  %v12938_v47 = vpop.f32.mrf.mxu1 }
 0x49c   : >> { %14819 = vst [vmem:[#allocation216_spill] sm:$0xff] %v12938_v47  ;;  %v12940_v45 = vpop.f32.mrf.mxu0 }
 0x49d   : >> { %14820 = vst [vmem:[#allocation217_spill] sm:$0xff] %v12940_v45  ;;  %v12942_v8 = vpop.f32.mrf.mxu1 }
 0x49e   : >> { %14821 = vst [vmem:[#allocation218_spill] sm:$0xff] %v12942_v8  ;;  %v12944_v26 = vpop.f32.mrf.mxu0 }
 0x49f   : >> { %14822 = vst [vmem:[#allocation219_spill] sm:$0xff] %v12944_v26  ;;  %v12946_v59 = vpop.f32.mrf.mxu1 }
 0x4a0   : >> { %14823 = vst [vmem:[#allocation220_spill] sm:$0xff] %v12946_v59  ;;  %v12948_v43 = vpop.f32.mrf.mxu0 }
 0x4a1   : >> { %14824 = vst [vmem:[#allocation221_spill] sm:$0xff] %v12948_v43  ;;  %v12950_v12 = vpop.f32.mrf.mxu1  ;;  %v5196_v43 = vadd.f32 %v8973_v61, %v12761_v16 }
 0x4a2   : >> { %14825 = vst [vmem:[#allocation222_spill] sm:$0xff] %v12950_v12  ;;  %v12952_v35 = vpop.f32.mrf.mxu0 }
 0x4a3   : >> { %14826 = vst [vmem:[#allocation223_spill] sm:$0xff] %v12952_v35  ;;  %v12954_v60 = vpop.f32.mrf.mxu1 }
 0x4a4   : >> { %14827 = vst [vmem:[#allocation224_spill] sm:$0xff] %v12954_v60  ;;  %v12956_v4 = vpop.f32.mrf.mxu0  ;;  %v5195_v60 = vadd.f32 %v5036_v23, %v12764_v44  ;;  %v5197_v44 = vadd.f32 %v12862_v33, %v12770_v14 }
 0x4a5   : >> { %14828 = vst [vmem:[#allocation225_spill] sm:$0xff] %v12956_v4  ;;  %v12958_v47 = vpop.f32.mrf.mxu1 }
 0x4a6   : >> { %14829 = vst [vmem:[#allocation226_spill] sm:$0xff] %v12958_v47  ;;  %v12960_v45 = vpop.f32.mrf.mxu0  ;;  %v5592_v61 = vadd.f32 %v12858_v2, %v5195_v60  ;;  %v5594_v2 = vadd.f32 %v12864_v6, %v5197_v44  ;;  %v5201_v6 = vadd.f32 %v12878_v56, %v12782_v24 }
 0x4a7   : >> { %14830 = vst [vmem:[#allocation227_spill] sm:$0xff] %v12960_v45  ;;  %v12962_v8 = vpop.f32.mrf.mxu1  ;;  %v5593_v45 = vadd.f32 %v12856_v39, %v5196_v43  ;;  %v12991_v43 = vld [vmem:[%s6416_s24] ss:$0 sm:$0xff]  ;;  %s7778_s24 = sshll.u32 (%p2911_p11), %s11807_s15, 4  ;;  %s14094_s24 = int_to_ptr.vmem [resolvable:$true] %s7778_s24 }
 0x4a8   : >> { %14831 = vst [vmem:[#allocation228_spill] sm:$0xff] %v12962_v8  ;;  %v12964_v26 = vpop.f32.mrf.mxu0  ;;  %v5198_v8 = vadd.f32 %v8976_v15, %v12767_v19  ;;  %s9291_s10 = scalar_lea.vmem (%p2911_p11), %s14094_s24, 256  ;;  %p9298_p1 = scmp.lt.s32.totalorder (%p2911_p11), %s14094_s24, %s9296_s17 }
 0x4a9   : >> { %v12966_v59 = vpop.f32.mrf.mxu1  ;;  %p9292_p12 = scmp.ne.s32.totalorder (%p2911_p11), %s14094_s24, %s9291_s10  ;;  %p9299_p2 = scmp.lt.s32.totalorder (%p2911_p11), %s9297_s16, %s9291_s10 }
 0x4aa   : >> { %v12969_v12 = vpop.f32.mrf.mxu0  ;;  %v5595_v39 = vadd.f32 %v12860_v38, %v5198_v8 }
 0x4ab   : >> { %14832 = vst [vmem:[#allocation229_spill] sm:$0xff] %v12969_v12  ;;  %v12971_v35 = vpop.f32.mrf.mxu1  ;;  %p9293_p13 = pnand (%p2911_p11), %p9292_p12, %p9447_p5  ;;  %p9300_p3 = por (%p2911_p11), %p9299_p2, %p9298_p1 }
 0x4ac   : >> { %14833 = vst [vmem:[#allocation230_spill] sm:$0xff] %v12971_v35  ;;  %v12974_v13 = vpop.f32.mrf.mxu0  ;;  %v5199_v35 = vadd.f32 %v12870_v63, %v12776_v10 }
 0x4ad   : >> { %14834 = vst [vmem:[#allocation231_spill] sm:$0xff] %v12974_v13  ;;  %v12976_v4 = vpop.f32.mrf.mxu1  ;;  %p9294_p0 = pneg (%p2911_p11), %p9293_p13 }
 0x4ae   : >> { %14835 = vst [vmem:[#allocation232_spill] sm:$0xff] %v12976_v4  ;;  %v12980_v47 = vpop.f32.mrf.mxu0  ;;  %v5200_v4 = vadd.f32 %v12866_v3, %v12773_v11  ;;  %v5202_v3 = vadd.f32 %v12874_v49, %v12779_v7  ;;  %v5596_v63 = vadd.f32 %v12872_v22, %v5199_v35 }
 0x4af   : >> { %14836 = vst [vmem:[#allocation233_spill] sm:$0xff] %v12980_v47  ;;  %v9101_v16 = vpop.f32.mrf.mxu1  ;;  %p9301_p4 = pnand (%p2911_p11), %p9300_p3, %p9294_p0 }
 0x4b0   : >> { %v5989_v23 = vadd.f32 %v9101_v16, %v5593_v45  ;;  %v9165_v13 = vpop.f32.mrf.mxu0  ;;  %v5597_v11 = vadd.f32 %v12868_v9, %v5200_v4  ;;  %v5599_v44 = vadd.f32 %v12876_v58, %v5202_v3 }
 0x4b1   : >> { %v5829_v19 = vpop.f32.mrf.mxu1 }
 0x4b2   : >> { %v6385_v15 = vadd.f32 %v9165_v13, %v5989_v23  ;;  %v5988_v47 = vadd.f32 %v5829_v19, %v5592_v61  ;;  %v6225_v12 = vpop.f32.mrf.mxu0  ;;  %v5204_v19 = vadd.f32 %v12882_v37, %v12785_v46 }
 0x4b3   : >> { %v9104_v60 = vpop.f32.mrf.mxu1 }
 0x4b4   : >> { %v6423_v14 = vadd.f32 %v12991_v43, %v6385_v15  ;;  %v6384_v45 = vadd.f32 %v6225_v12, %v5988_v47  ;;  %v5991_v33 = vadd.f32 %v9104_v60, %v5595_v39  ;;  %v9168_v16 = vpop.f32.mrf.mxu0  ;;  %v5598_v60 = vadd.f32 %v12880_v36, %v5201_v6 }
 0x4b5   : >> { %v5839_v8 = vpop.f32.mrf.mxu1 }
 0x4b6   : >> { %v6455_v13 = vmax.f32 %v6423_v14, 0.0  ;;  %v6422_v38 = vadd.f32 %v12991_v43, %v6384_v45  ;;  %v6387_v61 = vadd.f32 %v9168_v16, %v5991_v33  ;;  %v5990_v23 = vadd.f32 %v5839_v8, %v5594_v2  ;;  %v6235_v10 = vpop.f32.mrf.mxu0 }
 0x4b7   : >> { %v9107_v47 = vpop.f32.mrf.mxu1  ;;  %v5203_v2 = vadd.f32 %v12886_v50, %v12788_v25  ;;  %v5601_v16 = vadd.f32 %v12884_v29, %v5204_v19 }
 0x4b8   : >> { %6487 = vst.msk [vmem:[#allocation3 + $0x21] sm:$0xff] %vm2820_vm2, %v6455_v13  ;;  %v6454_v12 = vmax.f32 %v6422_v38, 0.0  ;;  %v6425_v4 = vadd.f32 %v12991_v43, %v6387_v61  ;;  %v6386_v9 = vadd.f32 %v6235_v10, %v5990_v23  ;;  %v5993_v7 = vadd.f32 %v9107_v47, %v5597_v11  ;;  %v9171_v49 = vpop.f32.mrf.mxu0 }
 0x4b9   : >> { %v5849_v39 = vpop.f32.mrf.mxu1  ;;  %v5206_v11 = vadd.f32 %v12890_v57, %v12791_v54  ;;  %v5600_v38 = vadd.f32 %v12888_v0, %v5203_v2  ;;  %v5205_v61 = vadd.f32 %v12894_v21, %v12794_v17  ;;  %v5208_v47 = vadd.f32 %v12898_v31, %v12797_v28 }
 0x4ba   : >> { %6486 = vst.msk [vmem:[#allocation3 + $0x19] sm:$0xff] %vm2820_vm2, %v6454_v12  ;;  %v6457_v35 = vmax.f32 %v6425_v4, 0.0  ;;  %v6424_v24 = vadd.f32 %v12991_v43, %v6386_v9  ;;  %v6389_v22 = vadd.f32 %v9171_v49, %v5993_v7  ;;  %v5992_v56 = vadd.f32 %v5849_v39, %v5596_v63  ;;  %v6245_v15 = vpop.f32.mrf.mxu0 }
 0x4bb   : >> { %v9110_v14 = vpop.f32.mrf.mxu1  ;;  %v5603_v6 = vadd.f32 %v12892_v51, %v5206_v11  ;;  %v5602_v7 = vadd.f32 %v12896_v30, %v5205_v61  ;;  %v5207_v49 = vadd.f32 %v12902_v20, %v12800_v52  ;;  %v5209_v2 = vadd.f32 %v12910_v55, %v12806_v32  ;;  %v14838_v61 = vld [vmem:[#allocation208_spill] sm:$0xff] }
 0x4bc   : >> { %6489 = vst.msk [vmem:[#allocation3 + $0x39] sm:$0xff] %vm2820_vm2, %v6457_v35  ;;  %v6456_v58 = vmax.f32 %v6424_v24, 0.0  ;;  %v6427_v46 = vadd.f32 %v12991_v43, %v6389_v22  ;;  %v6388_v37 = vadd.f32 %v6245_v15, %v5992_v56  ;;  %v5995_v45 = vadd.f32 %v9110_v14, %v5599_v44  ;;  %v9174_v33 = vpop.f32.mrf.mxu0 }
 0x4bd   : >> { %v5859_v3 = vpop.f32.mrf.mxu1  ;;  %v5605_v35 = vadd.f32 %v12900_v40, %v5208_v47  ;;  %v5210_v24 = vadd.f32 %v12906_v62, %v12803_v27  ;;  %v14841_v47 = vld [vmem:[#allocation210_spill] sm:$0xff] }
 0x4be   : >> { %6488 = vst.msk [vmem:[#allocation3 + $0x31] sm:$0xff] %vm2820_vm2, %v6456_v58  ;;  %v6459_v36 = vmax.f32 %v6427_v46, 0.0  ;;  %v6426_v25 = vadd.f32 %v12991_v43, %v6388_v37  ;;  %v6391_v50 = vadd.f32 %v9174_v33, %v5995_v45  ;;  %v5994_v8 = vadd.f32 %v5859_v3, %v5598_v60  ;;  %v6255_v13 = vpop.f32.mrf.mxu0 }
 0x4bf   : >> { %v9113_v23 = vpop.f32.mrf.mxu1  ;;  %v5604_v60 = vadd.f32 %v12904_v53, %v5207_v49  ;;  %v5607_v37 = vadd.f32 %v12908_v42, %v5210_v24  ;;  %v5212_v45 = vadd.f32 %v12914_v18, %v12809_v34  ;;  %v5606_v3 = vadd.f32 %v12912_v5, %v5209_v2 }
 0x4c0   : >> { %6491 = vst.msk [vmem:[#allocation3 + $0x51] sm:$0xff] %vm2820_vm2, %v6459_v36  ;;  %v6458_v29 = vmax.f32 %v6426_v25, 0.0  ;;  %v6429_v54 = vadd.f32 %v12991_v43, %v6391_v50  ;;  %v6390_v57 = vadd.f32 %v6255_v13, %v5994_v8  ;;  %v5997_v10 = vadd.f32 %v9113_v23, %v5601_v16  ;;  %v9177_v63 = vpop.f32.mrf.mxu0 }
 0x4c1   : >> { %v5869_v12 = vpop.f32.mrf.mxu1  ;;  %v5211_v36 = vadd.f32 %v12918_v48, %v12812_v1  ;;  %v5609_v13 = vadd.f32 %v12916_v41, %v5212_v45  ;;  %v14850_v45 = vld [vmem:[#allocation216_spill] sm:$0xff] }
 0x4c2   : >> { %6490 = vst.msk [vmem:[#allocation3 + $0x49] sm:$0xff] %vm2820_vm2, %v6458_v29  ;;  %v6461_v0 = vmax.f32 %v6429_v54, 0.0  ;;  %v6428_v17 = vadd.f32 %v12991_v43, %v6390_v57  ;;  %v6393_v21 = vadd.f32 %v9177_v63, %v5997_v10  ;;  %v5996_v4 = vadd.f32 %v5869_v12, %v5600_v38  ;;  %v6265_v9 = vpop.f32.mrf.mxu0  ;;  %v14837_v38 = vld [vmem:[#allocation193_spill] sm:$0xff]  ;;  %v14839_v10 = vld [vmem:[#allocation207_spill] sm:$0xff] }
 0x4c3   : >> { %v9116_v44 = vpop.f32.mrf.mxu1  ;;  %v5214_v23 = vadd.f32 %v14838_v61, %v14837_v38  ;;  %v5608_v63 = vadd.f32 %v14839_v10, %v5211_v36  ;;  %v14851_v36 = vld [vmem:[#allocation215_spill] sm:$0xff] }
 0x4c4   : >> { %6493 = vst.msk [vmem:[#allocation3 + $0x69] sm:$0xff] %vm2820_vm2, %v6461_v0  ;;  %v6460_v51 = vmax.f32 %v6428_v17, 0.0  ;;  %v6431_v28 = vadd.f32 %v12991_v43, %v6393_v21  ;;  %v6392_v31 = vadd.f32 %v6265_v9, %v5996_v4  ;;  %v5999_v19 = vadd.f32 %v9116_v44, %v5603_v6  ;;  %v9180_v39 = vpop.f32.mrf.mxu0  ;;  %v14840_v6 = vld [vmem:[#allocation194_spill] sm:$0xff]  ;;  %v14843_v44 = vld [vmem:[#allocation195_spill] sm:$0xff] }
 0x4c5   : >> { %v5879_v22 = vpop.f32.mrf.mxu1  ;;  %v5213_v12 = vadd.f32 %v14841_v47, %v14840_v6 }
 0x4c6   : >> { %6492 = vst.msk [vmem:[#allocation3 + $0x61] sm:$0xff] %vm2820_vm2, %v6460_v51  ;;  %v6463_v30 = vmax.f32 %v6431_v28, 0.0  ;;  %v6430_v52 = vadd.f32 %v12991_v43, %v6392_v31  ;;  %v6395_v20 = vadd.f32 %v9180_v39, %v5999_v19  ;;  %v5998_v56 = vadd.f32 %v5879_v22, %v5602_v7  ;;  %v6275_v15 = vpop.f32.mrf.mxu0  ;;  %v14842_v7 = vld [vmem:[#allocation209_spill] sm:$0xff]  ;;  %v14844_v51 = vld [vmem:[#allocation212_spill] sm:$0xff] }
 0x4c7   : >> { %v9119_v14 = vpop.f32.mrf.mxu1  ;;  %v5611_v49 = vadd.f32 %v14842_v7, %v5214_v23  ;;  %v5216_v28 = vadd.f32 %v14844_v51, %v14843_v44 }
 0x4c8   : >> { %6495 = vst.msk [vmem:[#allocation3 + $0x81] sm:$0xff] %vm2820_vm2, %v6463_v30  ;;  %v6462_v40 = vmax.f32 %v6430_v52, 0.0  ;;  %v6433_v27 = vadd.f32 %v12991_v43, %v6395_v20  ;;  %v6394_v62 = vadd.f32 %v6275_v15, %v5998_v56  ;;  %v6001_v58 = vadd.f32 %v9119_v14, %v5605_v35  ;;  %v9183_v46 = vpop.f32.mrf.mxu0  ;;  %v14845_v30 = vld [vmem:[#allocation211_spill] sm:$0xff]  ;;  %v14846_v20 = vld [vmem:[#allocation196_spill] sm:$0xff]  ;;  %v14847_v56 = vld [vmem:[#allocation214_spill] sm:$0xff] }
 0x4c9   : >> { %v5889_v33 = vpop.f32.mrf.mxu1  ;;  %v5610_v52 = vadd.f32 %v14845_v30, %v5213_v12  ;;  %v5215_v15 = vadd.f32 %v14847_v56, %v14846_v20 }
 0x4ca   : >> { %6494 = vst.msk [vmem:[#allocation3 + $0x79] sm:$0xff] %vm2820_vm2, %v6462_v40  ;;  %v6465_v53 = vmax.f32 %v6433_v27, 0.0  ;;  %v6432_v32 = vadd.f32 %v12991_v43, %v6394_v62  ;;  %v6397_v55 = vadd.f32 %v9183_v46, %v6001_v58  ;;  %v6000_v16 = vadd.f32 %v5889_v33, %v5604_v60  ;;  %v6285_v11 = vpop.f32.mrf.mxu0  ;;  %v14848_v58 = vld [vmem:[#allocation213_spill] sm:$0xff] }
 0x4cb   : >> { %v9122_v25 = vpop.f32.mrf.mxu1  ;;  %v5613_v46 = vadd.f32 %v14848_v58, %v5216_v28 }
 0x4cc   : >> { %6497 = vst.msk [vmem:[#allocation3 + $0x99] sm:$0xff] %vm2820_vm2, %v6465_v53  ;;  %v6464_v42 = vmax.f32 %v6432_v32, 0.0  ;;  %v6435_v34 = vadd.f32 %v12991_v43, %v6397_v55  ;;  %v6396_v18 = vadd.f32 %v6285_v11, %v6000_v16  ;;  %v6003_v50 = vadd.f32 %v9122_v25, %v5607_v37  ;;  %v9186_v8 = vpop.f32.mrf.mxu0  ;;  %v14849_v37 = vld [vmem:[#allocation197_spill] sm:$0xff] }
 0x4cd   : >> { %v5899_v29 = vpop.f32.mrf.mxu1  ;;  %v5218_v33 = vadd.f32 %v14850_v45, %v14849_v37  ;;  %v5612_v25 = vadd.f32 %v14851_v36, %v5215_v15 }
 0x4ce   : >> { %6496 = vst.msk [vmem:[#allocation3 + $0x91] sm:$0xff] %vm2820_vm2, %v6464_v42  ;;  %v6467_v5 = vmax.f32 %v6435_v34, 0.0  ;;  %v6434_v1 = vadd.f32 %v12991_v43, %v6396_v18  ;;  %v6399_v48 = vadd.f32 %v9186_v8, %v6003_v50  ;;  %v6002_v54 = vadd.f32 %v5899_v29, %v5606_v3  ;;  %v6295_v57 = vpop.f32.mrf.mxu0  ;;  %v14852_v42 = vld [vmem:[#allocation198_spill] sm:$0xff]  ;;  %v14854_v29 = vld [vmem:[#allocation217_spill] sm:$0xff] }
 0x4cf   : >> { %v9125_v0 = vpop.f32.mrf.mxu1  ;;  %v14853_v34 = vld [vmem:[#allocation218_spill] sm:$0xff] }
 0x4d0   : >> { %6499 = vst.msk [vmem:[#allocation3 + $0xb1] sm:$0xff] %vm2820_vm2, %v6467_v5  ;;  %v6466_v41 = vmax.f32 %v6434_v1, 0.0  ;;  %v6437_v17 = vadd.f32 %v12991_v43, %v6399_v48  ;;  %v6398_v21 = vadd.f32 %v6295_v57, %v6002_v54  ;;  %v6005_v4 = vadd.f32 %v9125_v0, %v5609_v13  ;;  %v9189_v9 = vpop.f32.mrf.mxu0  ;;  %v14855_v1 = vld [vmem:[#allocation199_spill] sm:$0xff]  ;;  %v14856_v48 = vld [vmem:[#allocation220_spill] sm:$0xff] }
 0x4d1   : >> { %v5909_v31 = vpop.f32.mrf.mxu1  ;;  %v5217_v18 = vadd.f32 %v14853_v34, %v14852_v42  ;;  %v5615_v5 = vadd.f32 %v14854_v29, %v5218_v33  ;;  %v5220_v54 = vadd.f32 %v14856_v48, %v14855_v1  ;;  %v14857_v0 = vld [vmem:[#allocation219_spill] sm:$0xff] }
 0x4d2   : >> { %6498 = vst.msk [vmem:[#allocation3 + $0xa9] sm:$0xff] %vm2820_vm2, %v6466_v41  ;;  %v6469_v19 = vmax.f32 %v6437_v17, 0.0  ;;  %v6436_v39 = vadd.f32 %v12991_v43, %v6398_v21  ;;  %v6401_v35 = vadd.f32 %v9189_v9, %v6005_v4  ;;  %v6004_v24 = vadd.f32 %v5909_v31, %v5608_v63  ;;  %v6305_v22 = vpop.f32.mrf.mxu0  ;;  %v14858_v17 = vld [vmem:[#allocation200_spill] sm:$0xff]  ;;  %v14859_v21 = vld [vmem:[#allocation222_spill] sm:$0xff]  ;;  %v14860_v31 = vld [vmem:[#allocation221_spill] sm:$0xff] }
 0x4d3   : >> { %v9128_v60 = vpop.f32.mrf.mxu1  ;;  %v5614_v41 = vadd.f32 %v14857_v0, %v5217_v18  ;;  %v5219_v4 = vadd.f32 %v14859_v21, %v14858_v17  ;;  %v14873_v17 = vld [vmem:[#allocation229_spill] sm:$0xff] }
 0x4d4   : >> { %6501 = vst.msk [vmem:[#allocation3 + $0xc9] sm:$0xff] %vm2820_vm2, %v6469_v19  ;;  %v6468_v2 = vmax.f32 %v6436_v39, 0.0  ;;  %v6439_v14 = vadd.f32 %v12991_v43, %v6401_v35  ;;  %v6400_v40 = vadd.f32 %v6305_v22, %v6004_v24  ;;  %v6007_v27 = vadd.f32 %v9128_v60, %v5611_v49  ;;  %v9192_v62 = vpop.f32.mrf.mxu0  ;;  %v14861_v39 = vld [vmem:[#allocation201_spill] sm:$0xff]  ;;  %v14862_v35 = vld [vmem:[#allocation224_spill] sm:$0xff]  ;;  %v14863_v60 = vld [vmem:[#allocation223_spill] sm:$0xff] }
 0x4d5   : >> { %v5919_v53 = vpop.f32.mrf.mxu1  ;;  %v5617_v19 = vadd.f32 %v14860_v31, %v5220_v54  ;;  %v5222_v24 = vadd.f32 %v14862_v35, %v14861_v39 }
 0x4d6   : >> { %6500 = vst.msk [vmem:[#allocation3 + $0xc1] sm:$0xff] %vm2820_vm2, %v6468_v2  ;;  %v6471_v32 = vmax.f32 %v6439_v14, 0.0  ;;  %v6438_v55 = vadd.f32 %v12991_v43, %v6400_v40  ;;  %v6403_v16 = vadd.f32 %v9192_v62, %v6007_v27  ;;  %v6006_v11 = vadd.f32 %v5919_v53, %v5610_v52  ;;  %v6315_v3 = vpop.f32.mrf.mxu0  ;;  %v14864_v14 = vld [vmem:[#allocation202_spill] sm:$0xff]  ;;  %v14866_v53 = vld [vmem:[#allocation225_spill] sm:$0xff] }
 0x4d7   : >> { %v9131_v50 = vpop.f32.mrf.mxu1  ;;  %v5616_v2 = vadd.f32 %v14863_v60, %v5219_v4  ;;  %v14865_v40 = vld [vmem:[#allocation226_spill] sm:$0xff] }
 0x4d8   : >> { %6503 = vst.msk [vmem:[#allocation3 + $0xe1] sm:$0xff] %vm2820_vm2, %v6471_v32  ;;  %v6470_v8 = vmax.f32 %v6438_v55, 0.0  ;;  %v6441_v13 = vadd.f32 %v12991_v43, %v6403_v16  ;;  %v6402_v38 = vadd.f32 %v6315_v3, %v6006_v11  ;;  %v6009_v61 = vadd.f32 %v9131_v50, %v5613_v46  ;;  %v9195_v23 = vpop.f32.mrf.mxu0  ;;  %v14867_v55 = vld [vmem:[#allocation203_spill] sm:$0xff]  ;;  %v14868_v16 = vld [vmem:[#allocation228_spill] sm:$0xff]  ;;  %v14874_v4 = vld [vmem:[#allocation206_spill] sm:$0xff] }
 0x4d9   : >> { %v5929_v57 = vpop.f32.mrf.mxu1  ;;  %v5221_v27 = vadd.f32 %v14865_v40, %v14864_v14  ;;  %v5619_v32 = vadd.f32 %v14866_v53, %v5222_v24  ;;  %v5224_v11 = vadd.f32 %v14868_v16, %v14867_v55  ;;  %v14869_v50 = vld [vmem:[#allocation227_spill] sm:$0xff] }
 0x4da   : >> { %6502 = vst.msk [vmem:[#allocation3 + $0xd9] sm:$0xff] %vm2820_vm2, %v6470_v8  ;;  %v6473_v10 = vmax.f32 %v6441_v13, 0.0  ;;  %v6440_v63 = vadd.f32 %v12991_v43, %v6402_v38  ;;  %v6405_v6 = vadd.f32 %v9195_v23, %v6009_v61  ;;  %v6008_v47 = vadd.f32 %v5929_v57, %v5612_v25  ;;  %v6325_v12 = vpop.f32.mrf.mxu0  ;;  %v14870_v13 = vld [vmem:[#allocation204_spill] sm:$0xff]  ;;  %v14871_v57 = vld [vmem:[#allocation205_spill] sm:$0xff] }
 0x4db   : >> { %v9134_v9 = vpop.f32.mrf.mxu1  ;;  %v5618_v8 = vadd.f32 %v14869_v50, %v5221_v27  ;;  %v5223_v38 = vadd.f32 %v12966_v59, %v14870_v13  ;;  %v5621_v54 = vadd.f32 %v12964_v26, %v5224_v11  ;;  %v6722_v50 = vld [vmem:[#allocation3 + $0x1a] sm:$0xff] (%p2911_p11) }
 0x4dc   : >> { %6505 = vst.msk [vmem:[#allocation3 + $0xf9] sm:$0xff] %vm2820_vm2, %v6473_v10  ;;  %v6472_v7 = vmax.f32 %v6440_v63, 0.0  ;;  %v6443_v49 = vadd.f32 %v12991_v43, %v6405_v6  ;;  %v6404_v44 = vadd.f32 %v6325_v12, %v6008_v47  ;;  %v6011_v51 = vadd.f32 %v9134_v9, %v5615_v5  ;;  %v9198_v28 = vpop.f32.mrf.mxu0  ;;  %v14872_v10 = vld [vmem:[#allocation230_spill] sm:$0xff]  ;;  %v14875_v9 = vld [vmem:[#allocation232_spill] sm:$0xff] }
 0x4dd   : >> { %v5939_v22 = vpop.f32.mrf.mxu1  ;;  %v5226_v63 = vadd.f32 %v14872_v10, %v14871_v57  ;;  %v5620_v21 = vadd.f32 %v14873_v17, %v5223_v38  ;;  %v13199_v17 = vld [vmem:[#allocation3 + $0x4a] sm:$0xff] (%p2911_p11) }
 0x4de   : >> { %6504 = vst.msk [vmem:[#allocation3 + $0xf1] sm:$0xff] %vm2820_vm2, %v6472_v7  ;;  %v6475_v30 = vmax.f32 %v6443_v49, 0.0  ;;  %v6442_v52 = vadd.f32 %v12991_v43, %v6404_v44  ;;  %v6407_v20 = vadd.f32 %v9198_v28, %v6011_v51  ;;  %v6010_v56 = vadd.f32 %v5939_v22, %v5614_v41  ;;  %v6335_v15 = vpop.f32.mrf.mxu0 }
 0x4df   : >> { %v9137_v62 = vpop.f32.mrf.mxu1  ;;  %v5225_v7 = vadd.f32 %v14875_v9, %v14874_v4 }
 0x4e0   : >> { %6507 = vst.msk [vmem:[#allocation3 + $0x111] sm:$0xff] %vm2820_vm2, %v6475_v30  ;;  %v6474_v58 = vmax.f32 %v6442_v52, 0.0  ;;  %v6445_v46 = vadd.f32 %v12991_v43, %v6407_v20  ;;  %v6406_v37 = vadd.f32 %v6335_v15, %v6010_v56  ;;  %v6013_v45 = vadd.f32 %v9137_v62, %v5617_v19  ;;  %v9201_v33 = vpop.f32.mrf.mxu0  ;;  %v14876_v19 = vld [vmem:[#allocation231_spill] sm:$0xff]  ;;  %v14877_v56 = vld [vmem:[#allocation233_spill] sm:$0xff] }
 0x4e1   : >> { %v5949_v3 = vpop.f32.mrf.mxu1  ;;  %v5623_v39 = vadd.f32 %v14876_v19, %v5226_v63  ;;  %v5622_v15 = vadd.f32 %v14877_v56, %v5225_v7 }
 0x4e2   : >> { %6506 = vst.msk [vmem:[#allocation3 + $0x109] sm:$0xff] %vm2820_vm2, %v6474_v58  ;;  %v6477_v36 = vmax.f32 %v6445_v46, 0.0  ;;  %v6444_v25 = vadd.f32 %v12991_v43, %v6406_v37  ;;  %v6409_v42 = vadd.f32 %v9201_v33, %v6013_v45  ;;  %v6012_v34 = vadd.f32 %v5949_v3, %v5616_v2  ;;  %v6345_v18 = vpop.f32.mrf.mxu0 }
 0x4e3   : >> { %v9140_v61 = vpop.f32.mrf.mxu1 }
 0x4e4   : >> { %6509 = vst.msk [vmem:[#allocation3 + $0x129] sm:$0xff] %vm2820_vm2, %v6477_v36  ;;  %v6476_v23 = vmax.f32 %v6444_v25, 0.0  ;;  %v6447_v29 = vadd.f32 %v12991_v43, %v6409_v42  ;;  %v6408_v5 = vadd.f32 %v6345_v18, %v6012_v34  ;;  %v6015_v1 = vadd.f32 %v9140_v61, %v5619_v32  ;;  %v9204_v48 = vpop.f32.mrf.mxu0  ;;  %v6520_v25 = vld [vmem:[#allocation3 + $0x18] sm:$0xff] (%p2911_p11)  ;;  %v13147_v42 = vld [vmem:[%s14148_s5] ss:$0 sm:$0xff] (%p2911_p11) }
 0x4e5   : >> { %v5959_v6 = vpop.f32.mrf.mxu1  ;;  %v6621_v34 = vld [vmem:[#allocation3 + $0x19] sm:$0xff] (%p2911_p11)  ;;  %v13153_v18 = vld [vmem:[%s14148_s5 + $0x1] ss:$0 sm:$0xff] (%p2911_p11) }
 0x4e6   : >> { %6508 = vst.msk [vmem:[#allocation3 + $0x121] sm:$0xff] %vm2820_vm2, %v6476_v23  ;;  %v6479_v47 = vmax.f32 %v6447_v29, 0.0  ;;  %v6446_v59 = vadd.f32 %v12991_v43, %v6408_v5  ;;  %v6411_v12 = vadd.f32 %v9204_v48, %v6015_v1  ;;  %v6014_v0 = vadd.f32 %v5959_v6, %v5618_v8  ;;  %v6355_v41 = vpop.f32.mrf.mxu0  ;;  %v13158_v8 = vld [vmem:[%s14148_s5 + $0x2] ss:$0 sm:$0xff] (%p2911_p11)  ;;  %v13165_v23 = vld [vmem:[%s14148_s5 + $0x3] ss:$0 sm:$0xff] (%p2911_p11) }
 0x4e7   : >> { %v9143_v49 = vpop.f32.mrf.mxu1  ;;  %v6658_v13 = vmul.f32 (%p2911_p11), %v13153_v18, %v6621_v34  ;;  %v6759_v38 = vmul.f32 (%p2911_p11), %v13158_v8, %v6722_v50  ;;  %v6823_v61 = vld [vmem:[#allocation3 + $0x30] sm:$0xff] (%p2911_p11)  ;;  %v13182_v6 = vld [vmem:[#allocation3 + $0x48] sm:$0xff] (%p2911_p11)  ;;  %v6858_v4 = vmul.f32 (%p2911_p11), %v13165_v23, %v6520_v25 }
 0x4e8   : >> { %6511 = vst.msk [vmem:[#allocation3 + $0x141] sm:$0xff] %vm2820_vm2, %v6479_v47  ;;  %v6478_v26 = vmax.f32 %v6446_v59, 0.0  ;;  %v6449_v44 = vadd.f32 %v12991_v43, %v6411_v12  ;;  %v6410_v51 = vadd.f32 %v6355_v41, %v6014_v0  ;;  %v6017_v28 = vadd.f32 %v9143_v49, %v5621_v54  ;;  %v9207_v31 = vpop.f32.mrf.mxu0  ;;  %v6924_v29 = vld [vmem:[#allocation3 + $0x31] sm:$0xff] (%p2911_p11)  ;;  %v13189_v59 = vld [vmem:[#allocation3 + $0x49] sm:$0xff] (%p2911_p11) }
 0x4e9   : >> { %v5969_v35 = vpop.f32.mrf.mxu1  ;;  %v13170_v5 = vld [vmem:[%s14148_s5 + $0x4] ss:$0 sm:$0xff] (%p2911_p11)  ;;  %v13177_v48 = vld [vmem:[%s14148_s5 + $0x5] ss:$0 sm:$0xff] (%p2911_p11)  ;;  %v6559_v54 = vmul.f32 (%p2911_p11), %v13147_v42, %v6823_v61  ;;  %v6660_v57 = vmul.f32 (%p2911_p11), %v13153_v18, %v6924_v29  ;;  %v6860_v63 = vmul.f32 (%p2911_p11), %v13165_v23, %v6823_v61  ;;  %v13187_v47 = vld [vmem:[%s14148_s5 + $0x6] ss:$0 sm:$0xff] (%p2911_p11) }
 0x4ea   : >> { %6510 = vst.msk [vmem:[#allocation3 + $0x139] sm:$0xff] %vm2820_vm2, %v6478_v26  ;;  %v6481_v24 = vmax.f32 %v6449_v44, 0.0  ;;  %v6448_v22 = vadd.f32 %v12991_v43, %v6410_v51  ;;  %v6413_v30 = vadd.f32 %v9207_v31, %v6017_v28  ;;  %v6016_v52 = vadd.f32 %v5969_v35, %v5620_v21  ;;  %v6365_v20 = vpop.f32.mrf.mxu0  ;;  %v13172_v1 = vld [vmem:[#allocation3 + $0x32] sm:$0xff] (%p2911_p11)  ;;  %v6518_v26 = vld [vmem:[#allocation3] sm:$0xff] (%p2911_p11) }
 0x4eb   : >> { %v9146_v60 = vpop.f32.mrf.mxu1  ;;  %v6961_v12 = vmul.f32 (%p2911_p11), %v13170_v5, %v6924_v29  ;;  %v7062_v0 = vmul.f32 (%p2911_p11), %v13177_v48, %v13172_v1  ;;  %v13197_v41 = vld [vmem:[%s14148_s5 + $0x7] ss:$0 sm:$0xff] (%p2911_p11)  ;;  %v13204_v21 = vld [vmem:[%s14148_s5 + $0x8] ss:$0 sm:$0xff] (%p2911_p11)  ;;  %v6959_v9 = vmul.f32 (%p2911_p11), %v13170_v5, %v6621_v34  ;;  %v7164_v49 = vmul.f32 (%p2911_p11), %v13187_v47, %v13182_v6  ;;  %v6619_v44 = vld [vmem:[#allocation3 + $0x1] sm:$0xff] (%p2911_p11) }
 0x4ec   : >> { %6513 = vst.msk [vmem:[#allocation3 + $0x159] sm:$0xff] %vm2820_vm2, %v6481_v24  ;;  %v6480_v2 = vmax.f32 %v6448_v22, 0.0  ;;  %v6451_v14 = vadd.f32 %v12991_v43, %v6413_v30  ;;  %v6412_v40 = vadd.f32 %v6365_v20, %v6016_v52  ;;  %v6019_v27 = vadd.f32 %v9146_v60, %v5623_v39  ;;  %v9210_v62 = vpop.f32.mrf.mxu0  ;;  %v6720_v51 = vld [vmem:[#allocation3 + $0x2] sm:$0xff] (%p2911_p11)  ;;  %v13245_v34 = vld [vmem:[#allocation3 + $0x52] sm:$0xff] (%p2911_p11) }
 0x4ed   : >> { %v5979_v58 = vpop.f32.mrf.mxu1  ;;  %v7060_v28 = vmul.f32 (%p2911_p11), %v13177_v48, %v6722_v50  ;;  %v13212_v31 = vmul.f32 (%p2911_p11), %v13187_v47, %v6823_v61  ;;  %v6555_v19 = vmul.f32 (%p2911_p11), %v13147_v42, %v6518_v26  ;;  %v6656_v39 = vmul.f32 (%p2911_p11), %v13153_v18, %v6619_v44  ;;  %v6521_v24 = vld [vmem:[#allocation3 + $0x20] sm:$0xff] (%p2911_p11)  ;;  %v6737_v26 = vld [vmem:[#allocation3 + $0xca] sm:$0xff] (%p2911_p11) }
 0x4ee   : >> { %6512 = vst.msk [vmem:[#allocation3 + $0x151] sm:$0xff] %vm2820_vm2, %v6480_v2  ;;  %v6483_v46 = vmax.f32 %v6451_v14, 0.0  ;;  %v6450_v37 = vadd.f32 %v12991_v43, %v6412_v40  ;;  %v6415_v45 = vadd.f32 %v9210_v62, %v6019_v27  ;;  %v6018_v33 = vadd.f32 %v5979_v58, %v5622_v15  ;;  %v6375_v53 = vpop.f32.mrf.mxu0  ;;  %v6622_v22 = vld [vmem:[#allocation3 + $0x21] sm:$0xff] (%p2911_p11)  ;;  %v13222_v2 = vld [vmem:[#allocation3 + $0x38] sm:$0xff] (%p2911_p11) }
 0x4ef   : > { %v6757_v35 = vmul.f32 (%p2911_p11), %v13158_v8, %v6720_v51  ;;  %v6723_v30 = vld [vmem:[#allocation3 + $0x22] sm:$0xff] (%p2911_p11)  ;;  %v13217_v52 = vadd.f32 (%p2911_p11), %v6660_v57, %v6559_v54  ;;  %v6558_v56 = vmul.f32 (%p2911_p11), %v13147_v42, %v6521_v24  ;;  %v6659_v15 = vmul.f32 (%p2911_p11), %v13153_v18, %v6622_v22  ;;  %v13224_v14 = vld [vmem:[#allocation3 + $0x39] sm:$0xff] (%p2911_p11) }
 0x4f0   : >> { %6515 = vst.msk [vmem:[#allocation3 + $0x171] sm:$0xff] %vm2820_vm2, %v6483_v46  ;;  %v6482_v32 = vmax.f32 %v6450_v37, 0.0  ;;  %v6453_v55 = vadd.f32 %v12991_v43, %v6415_v45  ;;  %v6414_v16 = vadd.f32 %v6375_v53, %v6018_v33  ;;  %v6760_v60 = vmul.f32 (%p2911_p11), %v13158_v8, %v6723_v30  ;;  %v13231_v46 = vld [vmem:[#allocation3 + $0x3a] sm:$0xff] (%p2911_p11)  ;;  %v13233_v37 = vld [vmem:[#allocation3 + $0x50] sm:$0xff] (%p2911_p11)  ;;  %v6535_v54 = vld [vmem:[#allocation3 + $0xc8] sm:$0xff] (%p2911_p11) }
 0x4f1   : > { %v7265_v40 = vmul.f32 (%p2911_p11), %v13197_v41, %v13189_v59  ;;  %v7366_v27 = vmul.f32 (%p2911_p11), %v13204_v21, %v13199_v17  ;;  %v6688_v62 = vadd.f32 (%p2911_p11), %v6656_v39, %v6555_v19  ;;  %v7263_v58 = vmul.f32 (%p2911_p11), %v13197_v41, %v6924_v29 }
 0x4f2   : >> { %6514 = vst.msk [vmem:[#allocation3 + $0x169] sm:$0xff] %vm2820_vm2, %v6482_v32  ;;  %v6485_v11 = vmax.f32 %v6453_v55, 0.0  ;;  %v6452_v3 = vadd.f32 %v12991_v43, %v6414_v16  ;;  %2913 = sbr.rel (!%p2911_p11) target bundleno = 763 (0x2fb), region = 105  ;;  %v6557_v43 = vmul.f32 (%p2911_p11), %v13147_v42, %v6520_v25  ;;  %v13237_v33 = vmul.f32 (%p2911_p11), %v13204_v21, %v13172_v1  ;;  %v6519_v55 = vld [vmem:[#allocation3 + $0x8] sm:$0xff] (%p2911_p11)  ;;  %v13243_v25 = vld [vmem:[#allocation3 + $0x51] sm:$0xff] (%p2911_p11) }
 0x4f3   : > { %v6691_v53 = vadd.f32 (%p2911_p11), %v6659_v15, %v6558_v56  ;;  %v6861_v32 = vmul.f32 (%p2911_p11), %v13165_v23, %v13222_v2  ;;  %v6620_v16 = vld [vmem:[#allocation3 + $0x9] sm:$0xff] (%p2911_p11)  ;;  %v7063_v61 = vmul.f32 (%p2911_p11), %v13177_v48, %v13231_v46  ;;  %v7367_v19 = vmul.f32 (%p2911_p11), %v13204_v21, %v13245_v34  ;;  %v6838_v56 = vld [vmem:[#allocation3 + $0xe0] sm:$0xff] (%p2911_p11) }
 0x4f4   : >> { %6517 = vst.msk [vmem:[#allocation3 + $0x189] sm:$0xff] %vm2820_vm2, %v6485_v11  ;;  %v6484_v36 = vmax.f32 %v6452_v3, 0.0  ;;  %v6690_v10 = vadd.f32 (%p2911_p11), %v6658_v13, %v6557_v43  ;;  %v6721_v11 = vld [vmem:[#allocation3 + $0xa] sm:$0xff] (%p2911_p11)  ;;  %v6789_v3 = vadd.f32 (%p2911_p11), %v6757_v35, %v6688_v62  ;;  %v6556_v43 = vmul.f32 (%p2911_p11), %v13147_v42, %v6519_v55 }
 0x4f5   : > { %v6657_v50 = vmul.f32 (%p2911_p11), %v13153_v18, %v6620_v16  ;;  %v6758_v29 = vmul.f32 (%p2911_p11), %v13158_v8, %v6721_v11  ;;  %v6534_v11 = vld [vmem:[#allocation3 + $0xc0] sm:$0xff] (%p2911_p11) }
 0x4f6   : >> { %6516 = vst.msk [vmem:[#allocation3 + $0x181] sm:$0xff] %vm2820_vm2, %v6484_v36  ;;  %v6791_v7 = vadd.f32 (%p2911_p11), %v6759_v38, %v6690_v10  ;;  %v6962_v36 = vmul.f32 (%p2911_p11), %v13170_v5, %v13224_v14  ;;  %v6792_v38 = vadd.f32 (%p2911_p11), %v6760_v60, %v6691_v53  ;;  %v6890_v57 = vadd.f32 (%p2911_p11), %v6858_v4, %v6789_v3  ;;  %v6635_v3 = vld [vmem:[#allocation3 + $0xc1] sm:$0xff] (%p2911_p11) }
 0x4f7   : > { %v7165_v10 = vmul.f32 %v13187_v47, %v13233_v37  ;;  %v6960_v4 = vmul.f32 %v13170_v5, %v6622_v22  ;;  %v7061_v53 = vmul.f32 %v13177_v48, %v6723_v30  ;;  %v6875_v22 = vmul.f32 %v13165_v23, %v6838_v56  ;;  %v6939_v30 = vld [vmem:[#allocation3 + $0xe1] sm:$0xff] }
 0x4f8   : > { %v6892_v20 = vadd.f32 %v6860_v63, %v6791_v7  ;;  %v6689_v63 = vadd.f32 %v6657_v50, %v6556_v43  ;;  %v6636_v7 = vld [vmem:[#allocation3 + $0xc9] sm:$0xff]  ;;  %v6893_v51 = vadd.f32 %v6861_v32, %v6792_v38  ;;  %v6991_v39 = vadd.f32 %v6959_v9, %v6890_v57 }
 0x4f9   : > { %v7163_v32 = vmul.f32 %v13187_v47, %v13222_v2  ;;  %v7264_v43 = vmul.f32 %v13197_v41, %v13224_v14  ;;  %v6736_v50 = vld [vmem:[#allocation3 + $0xc2] sm:$0xff] }
 0x4fa   : > { %v6993_v45 = vadd.f32 %v6961_v12, %v6892_v20  ;;  %v6859_v12 = vmul.f32 %v13165_v23, %v6521_v24  ;;  %v6790_v35 = vadd.f32 %v6758_v29, %v6689_v63  ;;  %v6572_v20 = vmul.f32 %v13147_v42, %v6535_v54  ;;  %v6837_v29 = vld [vmem:[#allocation3 + $0xd8] sm:$0xff] }
 0x4fb   : > { %v6994_v60 = vadd.f32 %v6962_v36, %v6893_v51  ;;  %v6673_v24 = vmul.f32 %v13153_v18, %v6636_v7  ;;  %v7092_v62 = vadd.f32 %v7060_v28, %v6991_v39  ;;  %v7365_v28 = vmul.f32 %v13204_v21, %v13231_v46 }
 0x4fc   : > { %v7094_v13 = vadd.f32 %v7062_v0, %v6993_v45  ;;  %v7266_v0 = vmul.f32 %v13197_v41, %v13243_v25  ;;  %v6891_v45 = vadd.f32 %v6859_v12, %v6790_v35  ;;  %v6571_v63 = vmul.f32 %v13147_v42, %v6534_v11  ;;  %v13279_v35 = vld [vmem:[#allocation3 + $0xf8] sm:$0xff] }
 0x4fd   : > { %v7095_v55 = vadd.f32 %v7063_v61, %v6994_v60  ;;  %v6705_v16 = vadd.f32 %v6673_v24, %v6572_v20  ;;  %v6976_v61 = vmul.f32 %v13170_v5, %v6939_v30  ;;  %v6672_v12 = vmul.f32 %v13153_v18, %v6635_v3  ;;  %v13293_v11 = vld [vmem:[#allocation3 + $0xfa] sm:$0xff] }
 0x4fe   : > { %v7196_v44 = vadd.f32 %v7164_v49, %v7094_v13  ;;  %v6774_v49 = vmul.f32 %v13158_v8, %v6737_v26  ;;  %v6992_v36 = vadd.f32 %v6960_v4, %v6891_v45  ;;  %v6773_v51 = vmul.f32 %v13158_v8, %v6736_v50  ;;  %v13281_v4 = vld [vmem:[#allocation3 + $0xf9] sm:$0xff] }
 0x4ff   : > { %v6874_v20 = vmul.f32 %v13165_v23, %v6837_v29  ;;  %v7280_v24 = vmul.f32 %v13197_v41, %v13281_v4 }
 0x500   : > { %v7297_v15 = vadd.f32 %v7265_v40, %v7196_v44  ;;  %v7194_v40 = vadd.f32 %v13212_v31, %v7092_v62  ;;  %v6806_v38 = vadd.f32 %v6774_v49, %v6705_v16  ;;  %v7093_v57 = vadd.f32 %v7061_v53, %v6992_v36  ;;  %v7040_v31 = vld [vmem:[#allocation3 + $0xe2] sm:$0xff]  ;;  %v6938_v49 = vld [vmem:[#allocation3 + $0xd9] sm:$0xff]  ;;  %v13297_v36 = vld [vmem:[#allocation3 + $0xf1] sm:$0xff] }
 0x501   : > { %v7077_v44 = vmul.f32 %v13177_v48, %v7040_v31  ;;  %v6975_v53 = vmul.f32 %v13170_v5, %v6938_v49  ;;  %v6574_v16 = vmul.f32 %v13147_v42, %v6838_v56  ;;  %v6776_v50 = vmul.f32 %v13158_v8, %v7040_v31  ;;  %v13312_v31 = vld [vmem:[#allocation3 + $0x110] sm:$0xff] }
 0x502   : > { %v7398_v9 = vadd.f32 %v7366_v27, %v7297_v15  ;;  %v7197_v27 = vadd.f32 %v7165_v10, %v7095_v55  ;;  %v7295_v54 = vadd.f32 %v7263_v58, %v7194_v40  ;;  %v6907_v26 = vadd.f32 %v6875_v22, %v6806_v38  ;;  %v13295_v40 = vld [vmem:[#allocation3 + $0xf0] sm:$0xff] }
 0x503   : > { %v7195_v39 = vadd.f32 %v7163_v32, %v7093_v57  ;;  %v6704_v58 = vadd.f32 %v6672_v12, %v6571_v63  ;;  %v7039_v32 = vld [vmem:[#allocation3 + $0xda] sm:$0xff]  ;;  %v7178_v56 = vmul.f32 %v13187_v47, %v13295_v40  ;;  %v13314_v63 = vld [vmem:[#allocation3 + $0x111] sm:$0xff] }
 0x504   : > { %v7434_v13 = vsel %vm2820_vm2, %v7398_v9, 0.0  ;;  %v7298_v7 = vadd.f32 %v7266_v0, %v7197_v27  ;;  %v7396_v10 = vadd.f32 %v13237_v33, %v7295_v54  ;;  %v7008_v60 = vadd.f32 %v6976_v61, %v6907_v26  ;;  %v13308_v54 = vld [vmem:[#allocation3 + $0xf2] sm:$0xff] }
 0x505   : > { %7435 = vadd.xlane.f32.xlu1 %v7434_v13  ;;  %v7179_v0 = vmul.f32 %v13187_v47, %v13279_v35  ;;  %v7296_v33 = vadd.f32 %v7264_v43, %v7195_v39  ;;  %v6805_v45 = vadd.f32 %v6773_v51, %v6704_v58  ;;  %v6675_v43 = vmul.f32 %v13153_v18, %v6939_v30  ;;  %v13321_v39 = vld [vmem:[#allocation3 + $0x112] sm:$0xff] }
 0x506   : > { %v7399_v15 = vadd.f32 %v7367_v19, %v7298_v7  ;;  %v7428_v62 = vsel %vm2820_vm2, %v7396_v10, 0.0  ;;  %v7109_v55 = vadd.f32 %v7077_v44, %v7008_v60  ;;  %v7076_v19 = vmul.f32 %v13177_v48, %v7039_v32 }
 0x507   : > { %7429 = vadd.xlane.f32.xlu0 %v7428_v62  ;;  %v7397_v22 = vadd.f32 %v7365_v28, %v7296_v33  ;;  %v6906_v3 = vadd.f32 %v6874_v20, %v6805_v45  ;;  %v7381_v27 = vmul.f32 %v13204_v21, %v13293_v11  ;;  %v7279_v28 = vmul.f32 %v13197_v41, %v13297_v36 }
 0x508   : > { %v7437_v9 = vsel %vm2820_vm2, %v7399_v15, 0.0  ;;  %v7211_v13 = vadd.f32 %v7179_v0, %v7109_v55  ;;  %v6707_v57 = vadd.f32 %v6675_v43, %v6574_v16  ;;  %v6877_v30 = vmul.f32 %v13165_v23, %v13279_v35  ;;  %v13344_v43 = vld [vmem:[#allocation3 + $0x10a] sm:$0xff] }
 0x509   : > { %7438 = vadd.xlane.f32.xlu1 %v7437_v9  ;;  %v7431_v38 = vsel %vm2820_vm2, %v7397_v22, 0.0  ;;  %v7007_v61 = vadd.f32 %v6975_v53, %v6906_v3  ;;  %v7380_v7 = vmul.f32 %v13204_v21, %v13308_v54  ;;  %v6978_v26 = vmul.f32 %v13170_v5, %v13281_v4  ;;  %v13333_v53 = vld [vmem:[#allocation3 + $0x108] sm:$0xff] }
 0x50a   : > { %v7312_v12 = vadd.f32 %v7280_v24, %v7211_v13  ;;  %v6573_v44 = vmul.f32 %v13147_v42, %v6837_v29  ;;  %v6808_v10 = vadd.f32 %v6776_v50, %v6707_v57  ;;  %v6674_v58 = vmul.f32 %v13153_v18, %v6938_v49  ;;  %v13342_v3 = vld [vmem:[#allocation3 + $0x109] sm:$0xff] }
 0x50b   : > { %7432 = vadd.xlane.f32.xlu0 %v7431_v38  ;;  %v7108_v51 = vadd.f32 %v7076_v19, %v7007_v61  ;;  %v6775_v20 = vmul.f32 %v13158_v8, %v7039_v32  ;;  %v7079_v60 = vmul.f32 %v13177_v48, %v13293_v11  ;;  %v7181_v0 = vmul.f32 %v13187_v47, %v13312_v31 }
 0x50c   : > { %v7413_v15 = vadd.f32 %v7381_v27, %v7312_v12  ;;  %v7282_v24 = vmul.f32 %v13197_v41, %v13314_v63  ;;  %v6909_v29 = vadd.f32 %v6877_v30, %v6808_v10  ;;  %v6706_v33 = vadd.f32 %v6674_v58, %v6573_v44  ;;  %v13367_v58 = vld [vmem:[#allocation3 + $0x69] sm:$0xff] }
 0x50d   : > { %v7210_v62 = vadd.f32 %v7178_v56, %v7108_v51  ;;  %v6876_v45 = vmul.f32 %v13165_v23, %v13295_v40  ;;  %v7383_v32 = vmul.f32 %v13204_v21, %v13321_v39  ;;  %v6977_v9 = vmul.f32 %v13170_v5, %v13297_v36 }
 0x50e   : > { %v7479_v49 = vsel %vm2820_vm2, %v7413_v15, 0.0  ;;  %v6560_v55 = vmul.f32 %v13147_v42, %v13222_v2  ;;  %v7010_v16 = vadd.f32 %v6978_v26, %v6909_v29  ;;  %v6807_v22 = vadd.f32 %v6775_v20, %v6706_v33  ;;  %v13362_v26 = vld [vmem:[#allocation3 + $0x68] sm:$0xff] }
 0x50f   : > { %7480 = vadd.xlane.f32.xlu1 %v7479_v49  ;;  %v7311_v19 = vadd.f32 %v7279_v28, %v7210_v62  ;;  %v6661_v50 = vmul.f32 %v13153_v18, %v13224_v14  ;;  %v7078_v13 = vmul.f32 %v13177_v48, %v13308_v54  ;;  %v7180_v27 = vmul.f32 %v13187_v47, %v13333_v53 }
 0x510   : > { %v6762_v2 = vmul.f32 %v13158_v8, %v13231_v46  ;;  %v6863_v56 = vmul.f32 %v13165_v23, %v13233_v37  ;;  %v7111_v38 = vadd.f32 %v7079_v60, %v7010_v16  ;;  %v6908_v61 = vadd.f32 %v6876_v45, %v6807_v22  ;;  %v13378_v45 = vld [vmem:[#allocation3 + $0x60] sm:$0xff]  ;;  %v13386_v22 = vld [vmem:[#allocation3 + $0x6a] sm:$0xff] }
 0x511   : > { %v7412_v28 = vadd.f32 %v7380_v7, %v7311_v19  ;;  %v6693_v57 = vadd.f32 %v6661_v50, %v6560_v55  ;;  %v7281_v30 = vmul.f32 %v13197_v41, %v13342_v3  ;;  %v7382_v14 = vmul.f32 %v13204_v21, %v13344_v43  ;;  %v13388_v50 = vld [vmem:[#allocation3 + $0x61] sm:$0xff] }
 0x512   : > { %v6964_v12 = vmul.f32 %v13170_v5, %v13243_v25  ;;  %v6761_v46 = vmul.f32 %v13158_v8, %v13172_v1  ;;  %v7213_v7 = vadd.f32 %v7181_v0, %v7111_v38  ;;  %v7009_v51 = vadd.f32 %v6977_v9, %v6908_v61 }
 0x513   : > { %v7476_v44 = vsel %vm2820_vm2, %v7412_v28, 0.0  ;;  %v6794_v10 = vadd.f32 %v6762_v2, %v6693_v57  ;;  %v7065_v20 = vmul.f32 %v13177_v48, %v13245_v34  ;;  %v6862_v60 = vmul.f32 %v13165_v23, %v13182_v6 }
 0x514   : > { %7477 = vadd.xlane.f32.xlu0 %v7476_v44  ;;  %v6793_v15 = vadd.f32 %v6761_v46, %v13217_v52  ;;  %v6963_v62 = vmul.f32 %v13170_v5, %v13189_v59  ;;  %v7314_v1 = vadd.f32 %v7282_v24, %v7213_v7  ;;  %v7110_v29 = vadd.f32 %v7078_v13, %v7009_v51  ;;  %v13390_v13 = vld [vmem:[#allocation3 + $0x62] sm:$0xff] }
 0x515   : > { %v6895_v33 = vadd.f32 %v6863_v56, %v6794_v10  ;;  %v7167_v0 = vmul.f32 %v13187_v47, %v13362_v26  ;;  %v7268_v49 = vmul.f32 %v13197_v41, %v13367_v58  ;;  %v7064_v52 = vmul.f32 %v13177_v48, %v13199_v17 }
 0x516   : > { %v6894_v9 = vadd.f32 %v6862_v60, %v6793_v15  ;;  %v6576_v55 = vmul.f32 %v13147_v42, %v13279_v35  ;;  %v7415_v19 = vadd.f32 %v7383_v32, %v7314_v1  ;;  %v7212_v16 = vadd.f32 %v7180_v27, %v7110_v29  ;;  %v13411_v15 = vld [vmem:[#allocation3 + $0x129] sm:$0xff] }
 0x517   : > { %v6996_v24 = vadd.f32 %v6964_v12, %v6895_v33  ;;  %v6677_v2 = vmul.f32 %v13153_v18, %v13281_v4  ;;  %v7166_v28 = vmul.f32 %v13187_v47, %v13378_v45  ;;  %v6778_v38 = vmul.f32 %v13158_v8, %v13293_v11 }
 0x518   : > { %v6995_v56 = vadd.f32 %v6963_v62, %v6894_v9  ;;  %v6879_v35 = vmul.f32 %v13165_v23, %v13312_v31  ;;  %v7485_v32 = vsel %vm2820_vm2, %v7415_v19, 0.0  ;;  %v7313_v27 = vadd.f32 %v7281_v30, %v7212_v16 }
 0x519   : > { %v7097_v61 = vadd.f32 %v7065_v20, %v6996_v24  ;;  %v6709_v57 = vadd.f32 %v6677_v2, %v6576_v55  ;;  %7486 = vadd.xlane.f32.xlu1 %v7485_v32  ;;  %v7369_v12 = vmul.f32 %v13204_v21, %v13386_v22  ;;  %v7267_v46 = vmul.f32 %v13197_v41, %v13388_v50  ;;  %v13409_v20 = vld [vmem:[#allocation3 + $0x128] sm:$0xff] }
 0x51a   : > { %v7096_v4 = vadd.f32 %v7064_v52, %v6995_v56  ;;  %v7368_v44 = vmul.f32 %v13204_v21, %v13390_v13  ;;  %v7414_v11 = vadd.f32 %v7382_v14, %v7313_v27  ;;  %v6980_v10 = vmul.f32 %v13170_v5, %v13314_v63 }
 0x51b   : > { %v7199_v7 = vadd.f32 %v7167_v0, %v7097_v61  ;;  %v6810_v51 = vadd.f32 %v6778_v38, %v6709_v57  ;;  %v6575_v60 = vmul.f32 %v13147_v42, %v13295_v40  ;;  %v6676_v62 = vmul.f32 %v13153_v18, %v13297_v36 }
 0x51c   : > { %v7198_v30 = vadd.f32 %v7166_v28, %v7096_v4  ;;  %v6777_v1 = vmul.f32 %v13158_v8, %v13308_v54  ;;  %v7482_v14 = vsel %vm2820_vm2, %v7414_v11, 0.0  ;;  %v7081_v0 = vmul.f32 %v13177_v48, %v13321_v39 }
 0x51d   : > { %v7300_v29 = vadd.f32 %v7268_v49, %v7199_v7  ;;  %v6911_v33 = vadd.f32 %v6879_v35, %v6810_v51  ;;  %7483 = vadd.xlane.f32.xlu0 %v7482_v14  ;;  %v6708_v52 = vadd.f32 %v6676_v62, %v6575_v60  ;;  %v6878_v55 = vmul.f32 %v13165_v23, %v13333_v53  ;;  %v13428_v49 = vld [vmem:[#allocation3 + $0x12a] sm:$0xff]  ;;  %v13435_v35 = vld [vmem:[#allocation3 + $0x120] sm:$0xff] }
 0x51e   : > { %v7299_v9 = vadd.f32 %v7267_v46, %v7198_v30  ;;  %v7183_v36 = vmul.f32 %v13187_v47, %v13409_v20  ;;  %v7284_v54 = vmul.f32 %v13197_v41, %v13411_v15  ;;  %v6979_v2 = vmul.f32 %v13170_v5, %v13342_v3  ;;  %v13446_v46 = vld [vmem:[#allocation3 + $0x121] sm:$0xff] }
 0x51f   : > { %v7401_v40 = vadd.f32 %v7369_v12, %v7300_v29  ;;  %v7012_v19 = vadd.f32 %v6980_v10, %v6911_v33  ;;  %v6809_v24 = vadd.f32 %v6777_v1, %v6708_v52  ;;  %v6562_v56 = vmul.f32 %v13147_v42, %v13233_v37  ;;  %v13458_v62 = vld [vmem:[#allocation3 + $0x80] sm:$0xff] }
 0x520   : > { %v7400_v16 = vadd.f32 %v7368_v44, %v7299_v9  ;;  %v6663_v32 = vmul.f32 %v13153_v18, %v13243_v25  ;;  %v6764_v27 = vmul.f32 %v13158_v8, %v13245_v34  ;;  %v7080_v12 = vmul.f32 %v13177_v48, %v13344_v43  ;;  %v13448_v44 = vld [vmem:[#allocation3 + $0x122] sm:$0xff] }
 0x521   : > { %v7443_v28 = vsel %vm2820_vm2, %v7401_v40, 0.0  ;;  %v7113_v38 = vadd.f32 %v7081_v0, %v7012_v19  ;;  %v6910_v57 = vadd.f32 %v6878_v55, %v6809_v24  ;;  %v7385_v4 = vmul.f32 %v13204_v21, %v13428_v49  ;;  %v13470_v55 = vld [vmem:[#allocation3 + $0x81] sm:$0xff] }
 0x522   : > { %7444 = vadd.xlane.f32.xlu1 %v7443_v28  ;;  %v7440_v61 = vsel %vm2820_vm2, %v7400_v16, 0.0  ;;  %v6695_v25 = vadd.f32 %v6663_v32, %v6562_v56  ;;  %v6865_v34 = vmul.f32 %v13165_v23, %v13362_v26  ;;  %v7182_v7 = vmul.f32 %v13187_v47, %v13435_v35  ;;  %v13483_v28 = vld [vmem:[#allocation3 + $0x78] sm:$0xff] }
 0x523   : > { %7441 = vadd.xlane.f32.xlu0 %v7440_v61  ;;  %v7215_v37 = vadd.f32 %v7183_v36, %v7113_v38  ;;  %v7011_v11 = vadd.f32 %v6979_v2, %v6910_v57  ;;  %v6966_v51 = vmul.f32 %v13170_v5, %v13367_v58  ;;  %v6561_v10 = vmul.f32 %v13147_v42, %v13182_v6  ;;  %v13481_v2 = vld [vmem:[#allocation3 + $0x82] sm:$0xff] }
 0x524   : > { %v6796_v60 = vadd.f32 %v6764_v27, %v6695_v25  ;;  %v6662_v1 = vmul.f32 %v13153_v18, %v13189_v59  ;;  %v6763_v14 = vmul.f32 %v13158_v8, %v13199_v17  ;;  %v7283_v33 = vmul.f32 %v13197_v41, %v13446_v46 }
 0x525   : > { %v7316_v30 = vadd.f32 %v7284_v54, %v7215_v37  ;;  %v7112_v29 = vadd.f32 %v7080_v12, %v7011_v11  ;;  %v7384_v0 = vmul.f32 %v13204_v21, %v13448_v44  ;;  %v7067_v6 = vmul.f32 %v13177_v48, %v13386_v22  ;;  %v13493_v37 = vld [vmem:[#allocation3 + $0x79] sm:$0xff] }
 0x526   : > { %v6897_v52 = vadd.f32 %v6865_v34, %v6796_v60  ;;  %v6694_v40 = vadd.f32 %v6662_v1, %v6561_v10  ;;  %v6864_v59 = vmul.f32 %v13165_v23, %v13378_v45  ;;  %v7169_v17 = vmul.f32 %v13187_v47, %v13458_v62  ;;  %v13503_v10 = vld [vmem:[#allocation3 + $0x7a] sm:$0xff] }
 0x527   : > { %v7417_v9 = vadd.f32 %v7385_v4, %v7316_v30  ;;  %v7214_v19 = vadd.f32 %v7182_v7, %v7112_v29  ;;  %v6965_v36 = vmul.f32 %v13170_v5, %v13388_v50  ;;  %v6578_v54 = vmul.f32 %v13147_v42, %v13312_v31  ;;  %v13505_v60 = vld [vmem:[#allocation3 + $0x140] sm:$0xff] }
 0x528   : > { %v6998_v24 = vadd.f32 %v6966_v51, %v6897_v52  ;;  %v6795_v56 = vadd.f32 %v6763_v14, %v6694_v40  ;;  %v6679_v38 = vmul.f32 %v13153_v18, %v13314_v63  ;;  %v7270_v27 = vmul.f32 %v13197_v41, %v13470_v55 }
 0x529   : > { %v7491_v16 = vsel %vm2820_vm2, %v7417_v9, 0.0  ;;  %v7315_v32 = vadd.f32 %v7283_v33, %v7214_v19  ;;  %v7066_v61 = vmul.f32 %v13177_v48, %v13390_v13  ;;  %v6780_v31 = vmul.f32 %v13158_v8, %v13321_v39  ;;  %v13522_v19 = vld [vmem:[#allocation3 + $0x141] sm:$0xff] }
 0x52a   : > { %7492 = vadd.xlane.f32.xlu1 %v7491_v16  ;;  %v7099_v57 = vadd.f32 %v7067_v6, %v6998_v24  ;;  %v6896_v12 = vadd.f32 %v6864_v59, %v6795_v56  ;;  %v6711_v4 = vadd.f32 %v6679_v38, %v6578_v54  ;;  %v6881_v25 = vmul.f32 %v13165_v23, %v13409_v20  ;;  %v13528_v24 = vld [vmem:[#allocation3 + $0x142] sm:$0xff]  ;;  %v13530_v38 = vld [vmem:[#allocation3 + $0x138] sm:$0xff] }
 0x52b   : > { %v7416_v63 = vadd.f32 %v7384_v0, %v7315_v32  ;;  %v7371_v34 = vmul.f32 %v13204_v21, %v13481_v2  ;;  %v7168_v11 = vmul.f32 %v13187_v47, %v13483_v28  ;;  %v6982_v7 = vmul.f32 %v13170_v5, %v13411_v15 }
 0x52c   : > { %v7201_v51 = vadd.f32 %v7169_v17, %v7099_v57  ;;  %v6997_v39 = vadd.f32 %v6965_v36, %v6896_v12  ;;  %v6812_v30 = vadd.f32 %v6780_v31, %v6711_v4  ;;  %v6577_v1 = vmul.f32 %v13147_v42, %v13333_v53 }
 0x52d   : > { %v7488_v14 = vsel %vm2820_vm2, %v7416_v63, 0.0  ;;  %v7269_v29 = vmul.f32 %v13197_v41, %v13493_v37  ;;  %v6678_v33 = vmul.f32 %v13153_v18, %v13342_v3  ;;  %v6779_v0 = vmul.f32 %v13158_v8, %v13344_v43 }
 0x52e   : > { %7489 = vadd.xlane.f32.xlu0 %v7488_v14  ;;  %v7302_v6 = vadd.f32 %v7270_v27, %v7201_v51  ;;  %v7098_v9 = vadd.f32 %v7066_v61, %v6997_v39  ;;  %v6913_v52 = vadd.f32 %v6881_v25, %v6812_v30  ;;  %v7083_v40 = vmul.f32 %v13177_v48, %v13428_v49  ;;  %v13549_v51 = vld [vmem:[#allocation3 + $0x139] sm:$0xff] }
 0x52f   : > { %v7370_v53 = vmul.f32 %v13204_v21, %v13503_v10  ;;  %v7185_v59 = vmul.f32 %v13187_v47, %v13505_v60  ;;  %v6710_v17 = vadd.f32 %v6678_v33, %v6577_v1  ;;  %v6880_v3 = vmul.f32 %v13165_v23, %v13435_v35  ;;  %v13551_v30 = vld [vmem:[#allocation3 + $0x13a] sm:$0xff] }
 0x530   : > { %v7403_v43 = vadd.f32 %v7371_v34, %v7302_v6  ;;  %v7200_v36 = vadd.f32 %v7168_v11, %v7098_v9  ;;  %v7014_v54 = vadd.f32 %v6982_v7, %v6913_v52  ;;  %v6981_v16 = vmul.f32 %v13170_v5, %v13446_v46  ;;  %v13558_v6 = vld [vmem:[#allocation3 + $0x98] sm:$0xff] }
 0x531   : > { %v6811_v56 = vadd.f32 %v6779_v0, %v6710_v17  ;;  %v6564_v32 = vmul.f32 %v13147_v42, %v13362_v26  ;;  %v6665_v27 = vmul.f32 %v13153_v18, %v13367_v58  ;;  %v6766_v61 = vmul.f32 %v13158_v8, %v13386_v22 }
 0x532   : > { %v7449_v31 = vsel %vm2820_vm2, %v7403_v43, 0.0  ;;  %v7301_v57 = vadd.f32 %v7269_v29, %v7200_v36  ;;  %v7115_v12 = vadd.f32 %v7083_v40, %v7014_v54  ;;  %v7286_v4 = vmul.f32 %v13197_v41, %v13522_v19  ;;  %v13570_v43 = vld [vmem:[#allocation3 + $0x99] sm:$0xff] }
 0x533   : > { %7450 = vadd.xlane.f32.xlu1 %v7449_v31  ;;  %v6912_v25 = vadd.f32 %v6880_v3, %v6811_v56  ;;  %v7082_v63 = vmul.f32 %v13177_v48, %v13448_v44  ;;  %v6697_v34 = vadd.f32 %v6665_v27, %v6564_v32  ;;  %v6867_v26 = vmul.f32 %v13165_v23, %v13458_v62  ;;  %v13579_v27 = vld [vmem:[#allocation3 + $0x9a] sm:$0xff]  ;;  %v13581_v31 = vld [vmem:[#allocation3 + $0x90] sm:$0xff] }
 0x534   : > { %v7402_v58 = vadd.f32 %v7370_v53, %v7301_v57  ;;  %v7217_v11 = vadd.f32 %v7185_v59, %v7115_v12  ;;  %v7387_v22 = vmul.f32 %v13204_v21, %v13528_v24  ;;  %v7184_v7 = vmul.f32 %v13187_v47, %v13530_v38 }
 0x535   : > { %v7013_v39 = vadd.f32 %v6981_v16, %v6912_v25  ;;  %v6798_v1 = vadd.f32 %v6766_v61, %v6697_v34  ;;  %v6968_v14 = vmul.f32 %v13170_v5, %v13470_v55  ;;  %v6563_v29 = vmul.f32 %v13147_v42, %v13378_v45 }
 0x536   : > { %v7446_v33 = vsel %vm2820_vm2, %v7402_v58, 0.0  ;;  %v7318_v0 = vadd.f32 %v7286_v4, %v7217_v11  ;;  %v6664_v9 = vmul.f32 %v13153_v18, %v13388_v50  ;;  %v6765_v52 = vmul.f32 %v13158_v8, %v13390_v13 }
 0x537   : > { %7447 = vadd.xlane.f32.xlu0 %v7446_v33  ;;  %v7114_v40 = vadd.f32 %v7082_v63, %v7013_v39  ;;  %v7285_v53 = vmul.f32 %v13197_v41, %v13549_v51  ;;  %v6899_v59 = vadd.f32 %v6867_v26, %v6798_v1  ;;  %v7069_v45 = vmul.f32 %v13177_v48, %v13481_v2  ;;  %v13599_v1 = vld [vmem:[#allocation3 + $0x91] sm:$0xff] }
 0x538   : > { %v7419_v17 = vadd.f32 %v7387_v22, %v7318_v0  ;;  %v7386_v3 = vmul.f32 %v13204_v21, %v13551_v30  ;;  %v6696_v36 = vadd.f32 %v6664_v9, %v6563_v29  ;;  %v6866_v50 = vmul.f32 %v13165_v23, %v13483_v28 }
 0x539   : > { %v7216_v13 = vadd.f32 %v7184_v7, %v7114_v40  ;;  %v7000_v54 = vadd.f32 %v6968_v14, %v6899_v59  ;;  %v7171_v16 = vmul.f32 %v13187_v47, %v13558_v6  ;;  %v6967_v56 = vmul.f32 %v13170_v5, %v13493_v37  ;;  %v13608_v40 = vld [vmem:[#allocation3 + $0x158] sm:$0xff] }
 0x53a   : > { %v7497_v32 = vsel %vm2820_vm2, %v7419_v17, 0.0  ;;  %v6797_v61 = vadd.f32 %v6765_v52, %v6696_v36  ;;  %v6580_v57 = vmul.f32 %v13147_v42, %v13409_v20  ;;  %v6681_v12 = vmul.f32 %v13153_v18, %v13411_v15 }
 0x53b   : > { %7498 = vadd.xlane.f32.xlu1 %v7497_v32  ;;  %v7317_v4 = vadd.f32 %v7285_v53, %v7216_v13  ;;  %v7101_v25 = vadd.f32 %v7069_v45, %v7000_v54  ;;  %v7272_v63 = vmul.f32 %v13197_v41, %v13570_v43  ;;  %v6782_v34 = vmul.f32 %v13158_v8, %v13428_v49  ;;  %v13601_v49 = vld [vmem:[#allocation3 + $0x92] sm:$0xff] }
 0x53c   : > { %v6898_v26 = vadd.f32 %v6866_v50, %v6797_v61  ;;  %v7068_v58 = vmul.f32 %v13177_v48, %v13503_v10  ;;  %v6713_v11 = vadd.f32 %v6681_v12, %v6580_v57  ;;  %v6883_v20 = vmul.f32 %v13165_v23, %v13505_v60  ;;  %v13620_v13 = vld [vmem:[#allocation3 + $0x159] sm:$0xff] }
 0x53d   : > { %v7418_v22 = vadd.f32 %v7386_v3, %v7317_v4  ;;  %v7203_v7 = vadd.f32 %v7171_v16, %v7101_v25  ;;  %v7373_v15 = vmul.f32 %v13204_v21, %v13579_v27  ;;  %v7170_v39 = vmul.f32 %v13187_v47, %v13581_v31  ;;  %v13629_v57 = vld [vmem:[#allocation3 + $0x15a] sm:$0xff]  ;;  %v13631_v4 = vld [vmem:[#allocation3 + $0x150] sm:$0xff] }
 0x53e   : > { %v6999_v14 = vadd.f32 %v6967_v56, %v6898_v26  ;;  %v6814_v29 = vadd.f32 %v6782_v34, %v6713_v11  ;;  %v6984_v33 = vmul.f32 %v13170_v5, %v13522_v19  ;;  %v6579_v0 = vmul.f32 %v13147_v42, %v13435_v35 }
 0x53f   : > { %v7494_v9 = vsel %vm2820_vm2, %v7418_v22, 0.0  ;;  %v7304_v52 = vadd.f32 %v7272_v63, %v7203_v7  ;;  %v6680_v53 = vmul.f32 %v13153_v18, %v13446_v46  ;;  %v6781_v59 = vmul.f32 %v13158_v8, %v13448_v44 }
 0x540   : > { %7495 = vadd.xlane.f32.xlu0 %v7494_v9  ;;  %v7100_v45 = vadd.f32 %v7068_v58, %v6999_v14  ;;  %v7271_v17 = vmul.f32 %v13197_v41, %v13599_v1  ;;  %v6915_v3 = vadd.f32 %v6883_v20, %v6814_v29  ;;  %v7085_v35 = vmul.f32 %v13177_v48, %v13528_v24  ;;  %v13649_v29 = vld [vmem:[#allocation3 + $0x151] sm:$0xff] }
 0x541   : > { %v7405_v36 = vadd.f32 %v7373_v15, %v7304_v52  ;;  %v7372_v50 = vmul.f32 %v13204_v21, %v13601_v49  ;;  %v6712_v54 = vadd.f32 %v6680_v53, %v6579_v0  ;;  %v6882_v46 = vmul.f32 %v13165_v23, %v13530_v38 }
 0x542   : > { %v7202_v44 = vadd.f32 %v7170_v39, %v7100_v45  ;;  %v7016_v16 = vadd.f32 %v6984_v33, %v6915_v3  ;;  %v7187_v56 = vmul.f32 %v13187_v47, %v13608_v40  ;;  %v6983_v32 = vmul.f32 %v13170_v5, %v13549_v51  ;;  %v13658_v45 = vld [vmem:[#allocation3 + $0xb0] sm:$0xff] }
 0x543   : > { %v7455_v61 = vsel %vm2820_vm2, %v7405_v36, 0.0  ;;  %v6813_v12 = vadd.f32 %v6781_v59, %v6712_v54  ;;  %v6566_v25 = vmul.f32 %v13147_v42, %v13458_v62  ;;  %v6667_v63 = vmul.f32 %v13153_v18, %v13470_v55 }
 0x544   : > { %7456 = vadd.xlane.f32.xlu1 %v7455_v61  ;;  %v7303_v34 = vadd.f32 %v7271_v17, %v7202_v44  ;;  %v7117_v26 = vadd.f32 %v7085_v35, %v7016_v16  ;;  %v7288_v58 = vmul.f32 %v13197_v41, %v13620_v13  ;;  %v6768_v11 = vmul.f32 %v13158_v8, %v13481_v2  ;;  %v13651_v2 = vld [vmem:[#allocation3 + $0x152] sm:$0xff] }
 0x545   : > { %v6914_v20 = vadd.f32 %v6882_v46, %v6813_v12  ;;  %v7084_v22 = vmul.f32 %v13177_v48, %v13551_v30  ;;  %v6699_v7 = vadd.f32 %v6667_v63, %v6566_v25  ;;  %v6869_v62 = vmul.f32 %v13165_v23, %v13558_v6  ;;  %v13670_v44 = vld [vmem:[#allocation3 + $0xb1] sm:$0xff] }
 0x546   : > { %v7404_v15 = vadd.f32 %v7372_v50, %v7303_v34  ;;  %v7219_v39 = vadd.f32 %v7187_v56, %v7117_v26  ;;  %v7389_v55 = vmul.f32 %v13204_v21, %v13629_v57  ;;  %v7186_v14 = vmul.f32 %v13187_v47, %v13631_v4  ;;  %v13679_v25 = vld [vmem:[#allocation3 + $0xb2] sm:$0xff]  ;;  %v13681_v34 = vld [vmem:[#allocation3 + $0xa8] sm:$0xff] }
 0x547   : > { %v7015_v33 = vadd.f32 %v6983_v32, %v6914_v20  ;;  %v6800_v0 = vadd.f32 %v6768_v11, %v6699_v7  ;;  %v6970_v9 = vmul.f32 %v13170_v5, %v13570_v43  ;;  %v6565_v52 = vmul.f32 %v13147_v42, %v13483_v28 }
 0x548   : > { %v7452_v53 = vsel %vm2820_vm2, %v7404_v15, 0.0  ;;  %v7320_v59 = vadd.f32 %v7288_v58, %v7219_v39  ;;  %v6666_v17 = vmul.f32 %v13153_v18, %v13493_v37  ;;  %v6767_v3 = vmul.f32 %v13158_v8, %v13503_v10 }
 0x549   : > { %7453 = vadd.xlane.f32.xlu0 %v7452_v53  ;;  %v7116_v35 = vadd.f32 %v7084_v22, %v7015_v33  ;;  %v7287_v36 = vmul.f32 %v13197_v41, %v13649_v29  ;;  %v6901_v50 = vadd.f32 %v6869_v62, %v6800_v0  ;;  %v7071_v28 = vmul.f32 %v13177_v48, %v13579_v27  ;;  %v13699_v0 = vld [vmem:[#allocation3 + $0xa9] sm:$0xff] }
 0x54a   : > { %v7421_v54 = vadd.f32 %v7389_v55, %v7320_v59  ;;  %v7388_v46 = vmul.f32 %v13204_v21, %v13651_v2  ;;  %v6698_v16 = vadd.f32 %v6666_v17, %v6565_v52  ;;  %v6868_v37 = vmul.f32 %v13165_v23, %v13581_v31 }
 0x54b   : > { %v7218_v10 = vadd.f32 %v7186_v14, %v7116_v35  ;;  %v7002_v56 = vadd.f32 %v6970_v9, %v6901_v50  ;;  %v7173_v32 = vmul.f32 %v13187_v47, %v13658_v45  ;;  %v6969_v61 = vmul.f32 %v13170_v5, %v13599_v1 }
 0x54c   : > { %v7503_v12 = vsel %vm2820_vm2, %v7421_v54, 0.0  ;;  %v6799_v63 = vadd.f32 %v6767_v3, %v6698_v16  ;;  %v6582_v26 = vmul.f32 %v13147_v42, %v13505_v60  ;;  %v6683_v58 = vmul.f32 %v13153_v18, %v13522_v19  ;;  %v13708_v3 = vld [vmem:[#allocation3 + $0x170] sm:$0xff] }
 0x54d   : > { %7504 = vadd.xlane.f32.xlu1 %v7503_v12  ;;  %v7319_v11 = vadd.f32 %v7287_v36, %v7218_v10  ;;  %v7103_v20 = vadd.f32 %v7071_v28, %v7002_v56  ;;  %v7274_v22 = vmul.f32 %v13197_v41, %v13670_v44  ;;  %v6784_v7 = vmul.f32 %v13158_v8, %v13528_v24  ;;  %v13701_v24 = vld [vmem:[#allocation3 + $0xaa] sm:$0xff]  ;;  %v13739_v10 = vld [vmem:[#allocation3 + $0x172] sm:$0xff] }
 0x54e   : > { %v6900_v62 = vadd.f32 %v6868_v37, %v6799_v63  ;;  %v7070_v15 = vmul.f32 %v13177_v48, %v13601_v49  ;;  %v6715_v39 = vadd.f32 %v6683_v58, %v6582_v26  ;;  %v6885_v60 = vmul.f32 %v13165_v23, %v13608_v40  ;;  %v13753_v12 = vld [vmem:[%s14148_s5 + $0x1] ss:$0 sm:$0xff] }
 0x54f   : > { %v7420_v55 = vadd.f32 %v7388_v46, %v7319_v11  ;;  %v7205_v14 = vadd.f32 %v7173_v32, %v7103_v20  ;;  %v7375_v19 = vmul.f32 %v13204_v21, %v13679_v25  ;;  %v7172_v33 = vmul.f32 %v13187_v47, %v13681_v34  ;;  %v13720_v46 = vld [vmem:[#allocation3 + $0x171] sm:$0xff]  ;;  %v13741_v32 = vld [vmem:[#allocation3 + $0x168] sm:$0xff] }
 0x550   : > { %v7001_v9 = vadd.f32 %v6969_v61, %v6900_v62  ;;  %v6816_v52 = vadd.f32 %v6784_v7, %v6715_v39  ;;  %v6986_v53 = vmul.f32 %v13170_v5, %v13620_v13  ;;  %v6581_v23 = vmul.f32 %v13147_v42, %v13530_v38  ;;  %v13746_v61 = vld [vmem:[%s14148_s5] ss:$0 sm:$0xff]  ;;  %v13760_v11 = vld [vmem:[%s14148_s5 + $0x7] ss:$0 sm:$0xff]  ;;  %v13774_v7 = vld [vmem:[%s14148_s5 + $0x5] ss:$0 sm:$0xff] }
 0x551   : > { %v7500_v59 = vsel %vm2820_vm2, %v7420_v55, 0.0  ;;  %v7306_v17 = vadd.f32 %v7274_v22, %v7205_v14  ;;  %v6682_v35 = vmul.f32 %v13153_v18, %v13549_v51  ;;  %v6783_v36 = vmul.f32 %v13158_v8, %v13551_v30  ;;  %v13725_v18 = vld [vmem:[%s14148_s5 + $0x3] ss:$0 sm:$0xff]  ;;  %v13783_v14 = vld [vmem:[%s14148_s5 + $0x8] ss:$0 sm:$0xff] }
 0x552   : > { %7501 = vadd.xlane.f32.xlu0 %v7500_v59  ;;  %v7102_v50 = vadd.f32 %v7070_v15, %v7001_v9  ;;  %v7273_v28 = vmul.f32 %v13197_v41, %v13699_v0  ;;  %v6917_v5 = vadd.f32 %v6885_v60, %v6816_v52  ;;  %v7087_v42 = vmul.f32 %v13177_v48, %v13629_v57  ;;  %v13794_v9 = vld [vmem:[#allocation3 + $0x169] sm:$0xff] }
 0x553   : > { %v7407_v38 = vadd.f32 %v7375_v19, %v7306_v17  ;;  %v7374_v54 = vmul.f32 %v13204_v21, %v13701_v24  ;;  %v6714_v16 = vadd.f32 %v6682_v35, %v6581_v23  ;;  %v6884_v8 = vmul.f32 %v13725_v18, %v13631_v4  ;;  %v13734_v21 = vld [vmem:[%s14148_s5 + $0x4] ss:$0 sm:$0xff]  ;;  %v13790_v19 = vld [vmem:[%s14148_s5 + $0x6] ss:$0 sm:$0xff] }
 0x554   : > { %v7204_v41 = vadd.f32 %v7172_v33, %v7102_v50  ;;  %v7018_v51 = vadd.f32 %v6986_v53, %v6917_v5  ;;  %v7189_v48 = vmul.f32 %v13187_v47, %v13708_v3  ;;  %v6985_v30 = vmul.f32 %v13734_v21, %v13649_v29  ;;  %v13796_v53 = vld [vmem:[#allocation3 + $0x16a] sm:$0xff] }
 0x555   : > { %v7461_v37 = vsel %vm2820_vm2, %v7407_v38, 0.0  ;;  %v6815_v56 = vadd.f32 %v6783_v36, %v6714_v16  ;;  %v6568_v47 = vmul.f32 %v13746_v61, %v13558_v6  ;;  %v6669_v63 = vmul.f32 %v13753_v12, %v13570_v43  ;;  %v13767_v6 = vld [vmem:[%s14148_s5 + $0x2] ss:$0 sm:$0xff]  ;;  %v13803_v50 = vld [vmem:[#allocation3 + $0xc8] sm:$0xff] }
 0x556   : > { %7462 = vadd.xlane.f32.xlu1 %v7461_v37  ;;  %v7305_v26 = vadd.f32 %v7273_v28, %v7204_v41  ;;  %v7119_v58 = vadd.f32 %v7087_v42, %v7018_v51  ;;  %v7290_v20 = vmul.f32 %v13760_v11, %v13720_v46  ;;  %v6770_v22 = vmul.f32 %v13767_v6, %v13579_v27  ;;  %v13815_v41 = vld [vmem:[#allocation3 + $0xc9] sm:$0xff] }
 0x557   : > { %v6916_v43 = vadd.f32 %v6884_v8, %v6815_v56  ;;  %v7086_v62 = vmul.f32 %v13774_v7, %v13651_v2  ;;  %v6701_v15 = vadd.f32 %v6669_v63, %v6568_v47  ;;  %v6871_v39 = vmul.f32 %v13725_v18, %v13658_v45  ;;  %v13824_v47 = vld [vmem:[#allocation3 + $0xca] sm:$0xff] }
 0x558   : > { %v7406_v60 = vadd.f32 %v7374_v54, %v7305_v26  ;;  %v7221_v55 = vadd.f32 %v7189_v48, %v7119_v58  ;;  %v7391_v27 = vmul.f32 %v13783_v14, %v13739_v10  ;;  %v7188_v33 = vmul.f32 %v13790_v19, %v13741_v32  ;;  %v13826_v26 = vld [vmem:[#allocation3 + $0xc0] sm:$0xff] }
 0x559   : > { %v7017_v52 = vadd.f32 %v6985_v30, %v6916_v43  ;;  %v6802_v23 = vadd.f32 %v6770_v22, %v6701_v15  ;;  %v6972_v59 = vmul.f32 %v13734_v21, %v13670_v44  ;;  %v6567_v17 = vmul.f32 %v13746_v61, %v13581_v31 }
 0x55a   : > { %v7458_v35 = vsel %vm2820_vm2, %v7406_v60, 0.0  ;;  %v7322_v36 = vadd.f32 %v7290_v20, %v7221_v55  ;;  %v6668_v28 = vmul.f32 %v13753_v12, %v13599_v1  ;;  %v6769_v5 = vmul.f32 %v13767_v6, %v13601_v49 }
 0x55b   : > { %7459 = vadd.xlane.f32.xlu0 %v7458_v35  ;;  %v7118_v42 = vadd.f32 %v7086_v62, %v7017_v52  ;;  %v7289_v38 = vmul.f32 %v13760_v11, %v13794_v9  ;;  %v6903_v54 = vadd.f32 %v6871_v39, %v6802_v23  ;;  %v7073_v31 = vmul.f32 %v13774_v7, %v13679_v25  ;;  %v13844_v23 = vld [vmem:[#allocation3 + $0xc1] sm:$0xff] }
 0x55c   : > { %v7423_v16 = vadd.f32 %v7391_v27, %v7322_v36  ;;  %v7390_v8 = vmul.f32 %v13783_v14, %v13796_v53  ;;  %v6700_v51 = vadd.f32 %v6668_v28, %v6567_v17  ;;  %v6870_v1 = vmul.f32 %v13725_v18, %v13681_v34 }
 0x55d   : > { %v7220_v49 = vadd.f32 %v7188_v33, %v7118_v42  ;;  %v7004_v48 = vadd.f32 %v6972_v59, %v6903_v54  ;;  %v7175_v30 = vmul.f32 %v13790_v19, %v13803_v50  ;;  %v6971_v37 = vmul.f32 %v13734_v21, %v13699_v0  ;;  %v13853_v42 = vld [vmem:[#allocation3 + $0x188] sm:$0xff] }
 0x55e   : > { %v7509_v56 = vsel %vm2820_vm2, %v7423_v16, 0.0  ;;  %v6801_v63 = vadd.f32 %v6769_v5, %v6700_v51  ;;  %v6584_v58 = vmul.f32 %v13746_v61, %v13608_v40  ;;  %v6685_v20 = vmul.f32 %v13753_v12, %v13620_v13 }
 0x55f   : > { %7510 = vadd.xlane.f32.xlu1 %v7509_v56  ;;  %v7321_v22 = vadd.f32 %v7289_v38, %v7220_v49  ;;  %v7105_v43 = vadd.f32 %v7073_v31, %v7004_v48  ;;  %v7276_v62 = vmul.f32 %v13760_v11, %v13815_v41  ;;  %v6786_v15 = vmul.f32 %v13767_v6, %v13629_v57  ;;  %v13846_v57 = vld [vmem:[#allocation3 + $0xc2] sm:$0xff] }
 0x560   : > { %v6902_v39 = vadd.f32 %v6870_v1, %v6801_v63  ;;  %v7072_v60 = vmul.f32 %v13774_v7, %v13701_v24  ;;  %v6717_v55 = vadd.f32 %v6685_v20, %v6584_v58  ;;  %v6887_v40 = vmul.f32 %v13725_v18, %v13708_v3  ;;  %v13865_v49 = vld [vmem:[#allocation3 + $0x189] sm:$0xff] }
 0x561   : > { %v7422_v27 = vadd.f32 %v7390_v8, %v7321_v22  ;;  %v7207_v33 = vadd.f32 %v7175_v30, %v7105_v43  ;;  %v7377_v13 = vmul.f32 %v13783_v14, %v13824_v47  ;;  %v7174_v52 = vmul.f32 %v13790_v19, %v13826_v26  ;;  %v13874_v58 = vld [vmem:[#allocation3 + $0x18a] sm:$0xff]  ;;  %v13876_v22 = vld [vmem:[#allocation3 + $0x180] sm:$0xff] }
 0x562   : > { %v7003_v59 = vadd.f32 %v6971_v37, %v6902_v39  ;;  %v6818_v17 = vadd.f32 %v6786_v15, %v6717_v55  ;;  %v6988_v35 = vmul.f32 %v13734_v21, %v13720_v46  ;;  %v6583_v36 = vmul.f32 %v13746_v61, %v13631_v4 }
 0x563   : > { %v7506_v28 = vsel %vm2820_vm2, %v7422_v27, 0.0  ;;  %v7308_v5 = vadd.f32 %v7276_v62, %v7207_v33  ;;  %v6684_v38 = vmul.f32 %v13753_v12, %v13649_v29  ;;  %v6785_v54 = vmul.f32 %v13767_v6, %v13651_v2 }
 0x564   : > { %7507 = vadd.xlane.f32.xlu0 %v7506_v28  ;;  %v7104_v31 = vadd.f32 %v7072_v60, %v7003_v59  ;;  %v7275_v16 = vmul.f32 %v13760_v11, %v13844_v23  ;;  %v6919_v8 = vadd.f32 %v6887_v40, %v6818_v17  ;;  %v7089_v4 = vmul.f32 %v13774_v7, %v13739_v10  ;;  %v13894_v17 = vld [vmem:[#allocation3 + $0x181] sm:$0xff] }
 0x565   : > { %v7409_v51 = vadd.f32 %v7377_v13, %v7308_v5  ;;  %v7376_v1 = vmul.f32 %v13783_v14, %v13846_v57  ;;  %v6716_v48 = vadd.f32 %v6684_v38, %v6583_v36  ;;  %v6886_v29 = vmul.f32 %v13725_v18, %v13741_v32 }
 0x566   : > { %v7206_v2 = vadd.f32 %v7174_v52, %v7104_v31  ;;  %v7020_v30 = vadd.f32 %v6988_v35, %v6919_v8  ;;  %v7191_v37 = vmul.f32 %v13790_v19, %v13853_v42  ;;  %v6987_v56 = vmul.f32 %v13734_v21, %v13794_v9 }
 0x567   : > { %v7467_v63 = vsel %vm2820_vm2, %v7409_v51, 0.0  ;;  %v6817_v20 = vadd.f32 %v6785_v54, %v6716_v48  ;;  %v6570_v43 = vmul.f32 %v13746_v61, %v13658_v45  ;;  %v6671_v62 = vmul.f32 %v13753_v12, %v13670_v44  ;;  %v7140_v54 = vld [vmem:[#allocation3 + $0xe0] sm:$0xff] }
 0x568   : > { %7468 = vadd.xlane.f32.xlu1 %v7467_v63  ;;  %v7307_v15 = vadd.f32 %v7275_v16, %v7206_v2  ;;  %v7121_v39 = vadd.f32 %v7089_v4, %v7020_v30  ;;  %v7292_v60 = vmul.f32 %v13760_v11, %v13865_v49  ;;  %v6772_v55 = vmul.f32 %v13767_v6, %v13679_v25  ;;  %v13896_v25 = vld [vmem:[#allocation3 + $0x182] sm:$0xff] }
 0x569   : > { %v6918_v40 = vadd.f32 %v6886_v29, %v6817_v20  ;;  %v7088_v27 = vmul.f32 %v13774_v7, %v13796_v53  ;;  %v6703_v33 = vadd.f32 %v6671_v62, %v6570_v43  ;;  %v6873_v45 = vmul.f32 %v13725_v18, %v13803_v50  ;;  %v7241_v48 = vld [vmem:[#allocation3 + $0xe1] sm:$0xff]  ;;  %v7139_v20 = vld [vmem:[#allocation3 + $0xd8] sm:$0xff] }
 0x56a   : > { %v7408_v13 = vadd.f32 %v7376_v1, %v7307_v15  ;;  %v7223_v52 = vadd.f32 %v7191_v37, %v7121_v39  ;;  %v7393_v44 = vmul.f32 %v13783_v14, %v13874_v58  ;;  %v7190_v59 = vmul.f32 %v13790_v19, %v13876_v22  ;;  %v7342_v63 = vld [vmem:[#allocation3 + $0xe2] sm:$0xff] }
 0x56b   : > { %v7019_v35 = vadd.f32 %v6987_v56, %v6918_v40  ;;  %v6804_v36 = vadd.f32 %v6772_v55, %v6703_v33  ;;  %v6974_v28 = vmul.f32 %v13734_v21, %v13815_v41  ;;  %v6569_v50 = vmul.f32 %v13746_v61, %v13681_v34 }
 0x56c   : > { %v7464_v5 = vsel %vm2820_vm2, %v7408_v13, 0.0  ;;  %v7324_v38 = vadd.f32 %v7292_v60, %v7223_v52  ;;  %v6670_v31 = vmul.f32 %v13753_v12, %v13699_v0  ;;  %v6771_v16 = vmul.f32 %v13767_v6, %v13701_v24  ;;  %v7240_v13 = vld [vmem:[#allocation3 + $0xd9] sm:$0xff] }
 0x56d   : > { %7465 = vadd.xlane.f32.xlu0 %v7464_v5  ;;  %v7120_v8 = vadd.f32 %v7088_v27, %v7019_v35  ;;  %v7291_v4 = vmul.f32 %v13760_v11, %v13894_v17  ;;  %v6905_v51 = vadd.f32 %v6873_v45, %v6804_v36  ;;  %v7075_v41 = vmul.f32 %v13774_v7, %v13824_v47  ;;  %v7341_v36 = vld [vmem:[#allocation3 + $0xda] sm:$0xff] }
 0x56e   : > { %v7425_v34 = vadd.f32 %v7393_v44, %v7324_v38  ;;  %v7392_v1 = vmul.f32 %v13783_v14, %v13896_v25  ;;  %v6702_v29 = vadd.f32 %v6670_v31, %v6569_v50  ;;  %v6872_v0 = vmul.f32 %v13725_v18, %v13826_v26 }
 0x56f   : > { %v7222_v2 = vadd.f32 %v7190_v59, %v7120_v8  ;;  %v7006_v24 = vadd.f32 %v6974_v28, %v6905_v51  ;;  %v7177_v30 = vmul.f32 %v13790_v19, %v7140_v54  ;;  %v6973_v37 = vmul.f32 %v13734_v21, %v13844_v23 }
 0x570   : > { %v7515_v56 = vsel %vm2820_vm2, %v7425_v34, 0.0  ;;  %v6803_v47 = vadd.f32 %v6771_v16, %v6702_v29  ;;  %v6586_v43 = vmul.f32 %v13746_v61, %v13708_v3  ;;  %v6687_v62 = vmul.f32 %v13753_v12, %v13720_v46 }
 0x571   : > { %7516 = vadd.xlane.f32.xlu1 %v7515_v56  ;;  %v7323_v26 = vadd.f32 %v7291_v4, %v7222_v2  ;;  %v7107_v15 = vadd.f32 %v7075_v41, %v7006_v24  ;;  %v7278_v39 = vmul.f32 %v13760_v11, %v7241_v48  ;;  %v6788_v60 = vmul.f32 %v13767_v6, %v13739_v10  ;;  %v7358_v4 = vld [vmem:[#allocation3 + $0x1a2] sm:$0xff]  ;;  %v7155_v48 = vld [vmem:[#allocation3 + $0x198] sm:$0xff] }
 0x572   : > { %v6904_v23 = vadd.f32 %v6872_v0, %v6803_v47  ;;  %v7074_v55 = vmul.f32 %v13774_v7, %v13846_v57  ;;  %v6719_v40 = vadd.f32 %v6687_v62, %v6586_v43  ;;  %v6889_v27 = vmul.f32 %v13725_v18, %v13853_v42  ;;  %v7156_v42 = vld [vmem:[#allocation3 + $0x1a0] sm:$0xff] }
 0x573   : > { %v7424_v3 = vadd.f32 %v7392_v1, %v7323_v26  ;;  %v7209_v33 = vadd.f32 %v7177_v30, %v7107_v15  ;;  %v7379_v46 = vmul.f32 %v13783_v14, %v7342_v63  ;;  %v7176_v45 = vmul.f32 %v13790_v19, %v7139_v20  ;;  %v7256_v24 = vld [vmem:[#allocation3 + $0x199] sm:$0xff] }
 0x574   : > { %v7005_v52 = vadd.f32 %v6973_v37, %v6904_v23  ;;  %v6820_v44 = vadd.f32 %v6788_v60, %v6719_v40  ;;  %v6990_v10 = vmul.f32 %v13734_v21, %v13865_v49  ;;  %v6585_v59 = vmul.f32 %v13746_v61, %v13741_v32  ;;  %v7257_v61 = vld [vmem:[#allocation3 + $0x1a1] sm:$0xff] }
 0x575   : > { %v7512_v57 = vsel %vm2820_vm2, %v7424_v3, 0.0  ;;  %v7310_v35 = vadd.f32 %v7278_v39, %v7209_v33  ;;  %v6686_v28 = vmul.f32 %v13753_v12, %v13794_v9  ;;  %v6787_v50 = vmul.f32 %v13767_v6, %v13796_v53  ;;  %v7357_v56 = vld [vmem:[#allocation3 + $0x19a] sm:$0xff] }
 0x576   : > { %7513 = vadd.xlane.f32.xlu0 %v7512_v57  ;;  %v7106_v5 = vadd.f32 %v7074_v55, %v7005_v52  ;;  %v7277_v38 = vmul.f32 %v13760_v11, %v7240_v13  ;;  %v6921_v54 = vadd.f32 %v6889_v27, %v6820_v44  ;;  %v7091_v49 = vmul.f32 %v13774_v7, %v13874_v58 }
 0x577   : > { %v7411_v32 = vadd.f32 %v7379_v46, %v7310_v35  ;;  %v6718_v31 = vadd.f32 %v6686_v28, %v6585_v59  ;;  %v6888_v16 = vmul.f32 %v13725_v18, %v13876_v22  ;;  %v7378_v12 = vmul.f32 %v13783_v14, %v7341_v36 }
 0x578   : > { %v7208_v8 = vadd.f32 %v7176_v45, %v7106_v5  ;;  %v7022_v9 = vadd.f32 %v6990_v10, %v6921_v54  ;;  %v7193_v6 = vmul.f32 %v13790_v19, %v7156_v42  ;;  %v6989_v41 = vmul.f32 %v13734_v21, %v13894_v17 }
 0x579   : > { %v7473_v53 = vsel %vm2820_vm2, %v7411_v32, 0.0  ;;  %v6819_v51 = vadd.f32 %v6787_v50, %v6718_v31  ;;  %v7294_v1 = vmul.f32 %v13760_v11, %v7257_v61  ;;  %v7090_v22 = vmul.f32 %v13774_v7, %v13896_v25 }
 0x57a   : > { %7474 = vadd.xlane.f32.xlu1 %v7473_v53  ;;  %v7309_v58 = vadd.f32 %v7277_v38, %v7208_v8  ;;  %v7123_v34 = vadd.f32 %v7091_v49, %v7022_v9  ;;  %v7395_v2 = vmul.f32 %v13783_v14, %v7358_v4  ;;  %v7192_v37 = vmul.f32 %v13790_v19, %v7155_v48 }
 0x57b   : > { %v6920_v18 = vadd.f32 %v6888_v16, %v6819_v51  ;;  %v7293_v47 = vmul.f32 %v13760_v11, %v7256_v24  ;;  %v7394_v7 = vmul.f32 %v13783_v14, %v7357_v56  ;;  %v7590_v42 = vlaneseq }
 0x57c   : > { %v7410_v29 = vadd.f32 %v7378_v12, %v7309_v58  ;;  %v7225_v0 = vadd.f32 %v7193_v6, %v7123_v34  ;;  %v13971_v49 = vstv %s7524_s22 }
 0x57d   : > { %v7021_v30 = vadd.f32 %v6989_v41, %v6920_v18  ;;  %v7591_v28 = vand.u32 127, %v7590_v42  ;;  %v7593_v54 = vshrl.u32 %v7590_v42, 7 }
 0x57e   : > { %v7470_v21 = vsel %vm2820_vm2, %v7410_v29, 0.0  ;;  %v7326_v17 = vadd.f32 %v7294_v1, %v7225_v0 }
 0x57f   : > { %7471 = vadd.xlane.f32.xlu0 %v7470_v21  ;;  %v7122_v63 = vadd.f32 %v7090_v22, %v7021_v30  ;;  %v7596_v38 = vadd.s32 4294967288, %v7591_v28  ;;  %v13979_v12 = vsub.s32 %v7591_v28, %v7593_v54 }
 0x580   : > { %v7427_v20 = vadd.f32 %v7395_v2, %v7326_v17 }
 0x581   : > { %v7224_v43 = vadd.f32 %v7192_v37, %v7122_v63  ;;  %v13973_v32 = vsub.s32 %v7596_v38, %v7593_v54 }
 0x582   : > { %v7521_v25 = vsel %vm2820_vm2, %v7427_v20, 0.0 }
 0x583   : > { %7522 = vadd.xlane.f32.xlu1 %v7521_v25  ;;  %v7325_v62 = vadd.f32 %v7293_v47, %v7224_v43 }
 0x585   : > { %v7426_v26 = vadd.f32 %v7394_v7, %v7325_v62 }
 0x587   : > { %v7518_v15 = vsel %vm2820_vm2, %v7426_v26, 0.0 }
 0x588   : > { %7519 = vadd.xlane.f32.xlu0 %v7518_v15 }
 0x58e   : > { %v7436_v19 = vpop.xlane.xlu1 %7435 }
 0x58f   : > { %v7528_v9 = vadd.f32 %v13971_v49, %v7436_v19 }
 0x590   : > { %v7430_v39 = vpop.xlane.xlu0 %7429 }
 0x591   : > { %v7526_v6 = vadd.f32 %v13971_v49, %v7430_v39  ;;  %v7606_v51 = vrot.slane %v7528_v9, %v13979_v12 }
 0x592   : > { %v7439_v60 = vpop.xlane.xlu1 %7438 }
 0x593   : > { %v7529_v61 = vadd.f32 %v13971_v49, %v7439_v60  ;;  %v7595_v41 = vrot.slane %v7526_v6, %v13979_v12 }
 0x594   : > { %v7433_v23 = vpop.xlane.xlu0 %7432 }
 0x595   : > { %v7527_v31 = vadd.f32 %v13971_v49, %v7433_v23  ;;  %v7610_v53 = vrot.slane %v7529_v61, %v13973_v32 }
 0x597   : > { %v7600_v4 = vrot.slane %v7527_v31, %v13973_v32  ;;  %v7611_v18 = vsel %vm7601_vm4, %v7610_v53, %v7606_v51 }
 0x598   : > { %v7481_v55 = vpop.xlane.xlu1 %7480 }
 0x599   : > { %v7602_v22 = vsel %vm7601_vm4, %v7600_v4, %v7595_v41  ;;  %v13994_v29 = vadd.f32 %v13971_v49, %v7481_v55 }
 0x59a   : > { %v7739_v17 = vsel %vm7738_vm5, %v7611_v18, %v7602_v22 }
 0x59b   : > { %v7673_v23 = vrot.slane %v13994_v29, %v13973_v32 }
 0x59d   : > { %v7478_v40 = vpop.xlane.xlu0 %7477 }
 0x59e   : > { %v14004_v56 = vadd.f32 %v13971_v49, %v7478_v40 }
 0x5a2   : > { %v7487_v27 = vpop.xlane.xlu1 %7486 }
 0x5a3   : > { %v7545_v20 = vadd.f32 %v13971_v49, %v7487_v27 }
 0x5a6   : > { %v7484_v11 = vpop.xlane.xlu0 %7483 }
 0x5a7   : > { %v7544_v43 = vadd.f32 %v13971_v49, %v7484_v11  ;;  %v7669_v11 = vrot.slane %v14004_v56, %v13979_v12 }
 0x5ab   : > { %v7445_v3 = vpop.xlane.xlu1 %7444 }
 0x5ac   : > { %v7442_v33 = vpop.xlane.xlu0 %7441  ;;  %v7531_v58 = vadd.f32 %v13971_v49, %v7445_v3 }
 0x5ad   : > { %v7530_v34 = vadd.f32 %v13971_v49, %v7442_v33 }
 0x5ae   : > { %v7619_v24 = vrot.slane %v7531_v58, %v13973_v32 }
 0x5af   : > { %v7615_v30 = vrot.slane %v7530_v34, %v13979_v12 }
 0x5b1   : > { %v7620_v55 = vsel %vm7601_vm4, %v7619_v24, %v7615_v30 }
 0x5b3   : > { %v7493_v46 = vpop.xlane.xlu1 %7492 }
 0x5b4   : > { %v7547_v26 = vadd.f32 %v13971_v49, %v7493_v46 }
 0x5b7   : > { %v7490_v14 = vpop.xlane.xlu0 %7489 }
 0x5b8   : > { %v7546_v15 = vadd.f32 %v13971_v49, %v7490_v14  ;;  %v7682_v14 = vrot.slane %v7545_v20, %v13973_v32 }
 0x5ba   : > { %v7687_v42 = vrot.slane %v7546_v15, %v13979_v12 }
 0x5bc   : > { %v7451_v45 = vpop.xlane.xlu1 %7450 }
 0x5bd   : > { %v7533_v0 = vadd.f32 %v13971_v49, %v7451_v45  ;;  %v7678_v45 = vrot.slane %v7544_v43, %v13979_v12 }
 0x5bf   : > { %v7628_v19 = vrot.slane %v7533_v0, %v13973_v32  ;;  %v7683_v34 = vsel %vm7601_vm4, %v7682_v14, %v7678_v45 }
 0x5c0   : > { %v7448_v13 = vpop.xlane.xlu0 %7447 }
 0x5c1   : > { %v7532_v2 = vadd.f32 %v13971_v49, %v7448_v13 }
 0x5c3   : > { %v7624_v39 = vrot.slane %v7532_v2, %v13979_v12 }
 0x5c4   : > { %v13961_v52 = vpop.xlane.xlu1 %7498 }
 0x5c5   : > { %v7629_v28 = vsel %vm7601_vm4, %v7628_v19, %v7624_v39 }
 0x5c9   : > { %v13963_v44 = vpop.xlane.xlu0 %7495 }
 0x5ca   : > { %v7548_v38 = vadd.f32 %v13971_v49, %v13963_v44 }
 0x5cd   : > { %v7457_v10 = vpop.xlane.xlu1 %7456 }
 0x5ce   : > { %v7535_v37 = vadd.f32 %v13971_v49, %v7457_v10 }
 0x5d0   : > { %v7637_v40 = vrot.slane %v7535_v37, %v13973_v32 }
 0x5d2   : > { %v7454_v59 = vpop.xlane.xlu0 %7453 }
 0x5d3   : > { %v7534_v21 = vadd.f32 %v13971_v49, %v7454_v59  ;;  %v7741_v59 = vsel %vm7740_vm6, %v7620_v55, %v7739_v17 }
 0x5d5   : > { %v7633_v27 = vrot.slane %v7534_v21, %v13979_v12 }
 0x5d6   : > { %v13965_v57 = vpop.xlane.xlu1 %7504 }
 0x5d7   : > { %v7638_v54 = vsel %vm7601_vm4, %v7637_v40, %v7633_v27  ;;  %v7551_v61 = vadd.f32 %v13971_v49, %v13965_v57 }
 0x5d9   : > { %v7709_v22 = vrot.slane %v7551_v61, %v13973_v32 }
 0x5db   : > { %v13967_v35 = vpop.xlane.xlu0 %7501 }
 0x5df   : > { %v7463_v36 = vpop.xlane.xlu1 %7462 }
 0x5e0   : > { %v7537_v63 = vadd.f32 %v13971_v49, %v7463_v36  ;;  %v7691_v36 = vrot.slane %v7547_v26, %v13973_v32 }
 0x5e2   : > { %v7646_v3 = vrot.slane %v7537_v63, %v13973_v32  ;;  %v7692_v21 = vsel %vm7601_vm4, %v7691_v36, %v7687_v42  ;;  %v7674_v63 = vsel %vm7601_vm4, %v7673_v23, %v7669_v11 }
 0x5e3   : > { %v7752_v20 = vsel %vm7738_vm5, %v7683_v34, %v7674_v63 }
 0x5e4   : > { %v7460_v50 = vpop.xlane.xlu0 %7459 }
 0x5e5   : > { %v7536_v47 = vadd.f32 %v13971_v49, %v7460_v50  ;;  %v7549_v50 = vadd.f32 %v13971_v49, %v13961_v52  ;;  %v7743_v52 = vsel %vm7742_vm7, %v7629_v28, %v7741_v59 }
 0x5e6   : > { %v7745_v51 = vsel %vm7744_vm8, %v7638_v54, %v7743_v52 }
 0x5e7   : > { %v7642_v33 = vrot.slane %v7536_v47, %v13979_v12 }
 0x5e8   : > { %v13969_v5 = vpop.xlane.xlu1 %7510 }
 0x5e9   : > { %v7647_v9 = vsel %vm7601_vm4, %v7646_v3, %v7642_v33  ;;  %v7553_v44 = vadd.f32 %v13971_v49, %v13969_v5  ;;  %v7696_v5 = vrot.slane %v7548_v38, %v13979_v12 }
 0x5eb   : > { %v7718_v2 = vrot.slane %v7553_v44, %v13973_v32 }
 0x5ed   : > { %v13977_v16 = vpop.xlane.xlu0 %7507 }
 0x5ee   : > { %v7552_v4 = vadd.f32 %v13971_v49, %v13977_v16  ;;  %v7747_v16 = vsel %vm7746_vm9, %v7647_v9, %v7745_v51 }
 0x5f0   : > { %v7714_v24 = vrot.slane %v7552_v4, %v13979_v12 }
 0x5f1   : > { %v7469_v8 = vpop.xlane.xlu1 %7468 }
 0x5f2   : > { %v7539_v7 = vadd.f32 %v13971_v49, %v7469_v8  ;;  %v7550_v8 = vadd.f32 %v13971_v49, %v13967_v35 }
 0x5f4   : > { %v7655_v13 = vrot.slane %v7539_v7, %v13973_v32  ;;  %v7705_v29 = vrot.slane %v7550_v8, %v13979_v12 }
 0x5f6   : > { %v7466_v1 = vpop.xlane.xlu0 %7465  ;;  %v7710_v43 = vsel %vm7601_vm4, %v7709_v22, %v7705_v29 }
 0x5f7   : > { %v7538_v25 = vadd.f32 %v13971_v49, %v7466_v1  ;;  %v7700_v1 = vrot.slane %v7549_v50, %v13973_v32 }
 0x5f9   : > { %v7651_v10 = vrot.slane %v7538_v25, %v13979_v12  ;;  %v7701_v47 = vsel %vm7601_vm4, %v7700_v1, %v7696_v5  ;;  %v7753_v25 = vsel %vm7740_vm6, %v7692_v21, %v7752_v20 }
 0x5fa   : > { %v13989_v48 = vpop.xlane.xlu1 %7516  ;;  %v7754_v19 = vsel %vm7742_vm7, %v7701_v47, %v7753_v25 }
 0x5fb   : > { %v7656_v57 = vsel %vm7601_vm4, %v7655_v13, %v7651_v10  ;;  %v7555_v35 = vadd.f32 %v13971_v49, %v13989_v48 }
 0x5fc   : > { %v7749_v48 = vsel %vm7748_vm10, %v7656_v57, %v7747_v16 }
 0x5fd   : > { %v7727_v17 = vrot.slane %v7555_v35, %v13973_v32 }
 0x5ff   : > { %v7514_v62 = vpop.xlane.xlu0 %7513 }
 0x600   : > { %v7554_v41 = vadd.f32 %v13971_v49, %v7514_v62  ;;  %v7719_v62 = vsel %vm7601_vm4, %v7718_v2, %v7714_v24 }
 0x602   : > { %v7723_v56 = vrot.slane %v7554_v41, %v13979_v12 }
 0x603   : > { %v7475_v60 = vpop.xlane.xlu1 %7474 }
 0x604   : > { %v7541_v46 = vadd.f32 %v13971_v49, %v7475_v60  ;;  %v7728_v39 = vsel %vm7601_vm4, %v7727_v17, %v7723_v56  ;;  %v7755_v60 = vsel %vm7744_vm8, %v7710_v43, %v7754_v19 }
 0x605   : > { %v7756_v55 = vsel %vm7746_vm9, %v7719_v62, %v7755_v60 }
 0x606   : > { %v7664_v6 = vrot.slane %v7541_v46, %v13973_v32 }
 0x608   : > { %v7472_v31 = vpop.xlane.xlu0 %7471 }
 0x609   : > { %v7540_v53 = vadd.f32 %v13971_v49, %v7472_v31 }
 0x60b   : > { %v7660_v58 = vrot.slane %v7540_v53, %v13979_v12 }
 0x60c   : > { %v7523_v18 = vpop.xlane.xlu1 %7522 }
 0x60d   : > { %v7665_v0 = vsel %vm7601_vm4, %v7664_v6, %v7660_v58  ;;  %v7557_v37 = vadd.f32 %v13971_v49, %v7523_v18 }
 0x60e   : > { %v7751_v30 = vsel %vm7750_vm11, %v7665_v0, %v7749_v48 }
 0x60f   : > { %7762 = vst.msk [vmem:[%s11807_s15] sm:$0xff] %vm7761_vm12, %v7751_v30  ;;  %v7736_v26 = vrot.slane %v7557_v37, %v13973_v32 }
 0x611   : > { %v7520_v7 = vpop.xlane.xlu0 %7519 }
 0x612   : > { %v7556_v15 = vadd.f32 %v13971_v49, %v7520_v7  ;;  %v7757_v49 = vsel %vm7748_vm10, %v7728_v39, %v7756_v55 }
 0x614   : > { %v7732_v23 = vrot.slane %v7556_v15, %v13979_v12 }
 0x616   : > { %v7737_v32 = vsel %vm7601_vm4, %v7736_v26, %v7732_v23 }
 0x617   : > { %v7758_v40 = vsel %vm7750_vm11, %v7737_v32, %v7757_v49 }
 0x618   : > { %7763 = vst.msk [vmem:[%s11807_s15 + $0x8] sm:$0xff] %vm7761_vm12, %v7758_v40 }
 0x619   : > { %9304 = shalt.err (!%p9301_p4)
}
 0x61a   : > { %s9305_s18 = scalar_lea.hbm %s14092_s9, 256  ;;  %s9309_s19 = scalar_lea.hbm %s14150_s7, 512 }
 0x61b   : > { %p9306_p7 = scmp.ne.s32.totalorder %s14092_s9, %s9305_s18  ;;  %p9310_p10 = scmp.lt.s32.totalorder %s14092_s9, %s14150_s7 }
 0x61c   : > { %p9311_p11 = scmp.lt.s32.totalorder %s9309_s19, %s9305_s18 }
 0x61d   : > { %p9307_p8 = pnand %p9306_p7, %p9447_p5 }
 0x61e   : > { %p9312_p12 = por %p9311_p11, %p9310_p10 }
 0x61f   : > { %p9308_p9 = pneg %p9307_p8 }
 0x621   : > { %p9313_p13 = pnand %p9312_p12, %p9308_p9 }
 0x623   : > { %9316 = shalt.err (!%p9313_p13)
}
 0x624   : > { %s9364_s23 = smov 128   ;;  %s9365_s25 = smov 8  }
 0x625   : > { %9227 = dma.vmem_to_hbm [thread:$0]  (%p9447_p5), %s14094_s24, 256, %s14092_s9, %s14103_s6, %s9364_s23, %s9364_s23, %s9365_s25  }
 0x626 PF: > { %p9233_p0 = scmp.ge.s32.totalorder %s9355_s29, 2  ;;  %s7793_s30 = sand.u32 1, %s9343_s26  }
 0x627   : > { %s7794_s10 = scalar_lea.sflag [#allocation6], %s7793_s30 }
 0x628   : > { %p9230_p1 = pnand %p9233_p0, %p9451_p6 }
 0x62a   : > { %p9231_p2 = pneg %p9230_p1 }
 0x62c   : > { %9338 = dma.done.wait (%p9231_p2), %s7794_s10, 256  }
 0x62d   : > { %9340 = vsyncadd (%p9231_p2), %s7794_s10, 4294967040  ;;  %p18_p3 = scmp.ge.s32.totalorder %s9434_s8, 4   ;;  %s14878_s26 = smov %s9347_s27 }
 0x62e   : > { %s14879_s27 = smov %s9351_s28  ;;  %s14880_s28 = smov %s9445_s11 }
 0x62f   : > { %s14881_s29 = smov %s9434_s8  ;;  %20 = sbr.rel (!%p18_p3) target bundleno = 5 (0x5), region = 116 }
 0x634   :  { %7799 = vsyncpa [#allocation6], 1 }
 0x635   :  { %7801 = vsyncpa [#allocation6 + $0x1], 1 }

</bundles_post_ra>
